<compile_context>
chip_gen: v7x
topology: tpu7x:2x2x1
jax: 0.10.0
libtpu: 0.0.40
codegen_flags: <defaults>
</compile_context>

<pallas_src>
import numpy as np

import jax
import jax.numpy as jnp
from jax.experimental import pallas as pl
from jax.experimental.pallas import tpu as pltpu

EPS = 1e-5
N_CLASSES = 10
FC_PAD = 128          # lane-dense FC output width (sliced back to 10 outside)
TN = 128              # lane-dense Cout2 tile for the gridded block kernels


# ----------------------------------------------------------------------------
# Static conv geometry: taps as constant contiguous row offsets into a
# guard-padded, stride^2 phase-decomposed flat source, plus 0/1 boundary masks.
# ----------------------------------------------------------------------------
def _geom(N, H, W, k, stride, pad):
    s = stride
    Ho = (H + 2 * pad - k) // s + 1
    Wo = (W + 2 * pad - k) // s + 1
    if s > 1:
        assert H % s == 0 and W % s == 0, (H, W, s)
        assert Ho == H // s and Wo == W // s
    M = N * Ho * Wo
    G = Wo + 1                                    # guard rows for +/-1 tap shifts
    r = np.arange(M)
    out_h = (r % (Ho * Wo)) // Wo
    out_w = r % Wo
    taps, mask_cols = [], []
    for di in range(k):
        dh = di - pad
        if s * (Ho - 1) + dh < 0 or dh >= H:
            continue                              # tap never in-bounds -> prune
        for dj in range(k):
            dw = dj - pad
            if s * (Wo - 1) + dw < 0 or dw >= W:
                continue
            pa, sh = dh % s, dh // s
            pb, sw = dw % s, dw // s
            off = G + (pa * s + pb) * M + sh * Wo + sw
            hi = s * out_h + dh
            wi = s * out_w + dw
            valid = (hi >= 0) & (hi < H) & (wi >= 0) & (wi < W)
            if valid.all():
                midx = None
            else:
                midx = len(mask_cols)
                mask_cols.append(valid.astype(np.float32))
            taps.append((off, di * k + dj, midx))
    mask = np.stack(mask_cols, axis=1) if mask_cols else None
    return {"Ho": Ho, "Wo": Wo, "M": M, "G": G, "taps": taps, "mask": mask}


def _select_taps(w, taps):
    """Ship only surviving weight taps; remap tap -> shipped index."""
    used = [t for (_, t, _) in taps]
    kk = w.shape[0]
    if used == list(range(kk)):
        w_used = w
        remap = {t: t for t in used}
    elif used == list(range(used[0], used[-1] + 1)):
        w_used = w[used[0]:used[-1] + 1]
        remap = {t: t - used[0] for t in used}
    else:
        w_used = jnp.concatenate([w[t:t + 1] for t in used], axis=0)
        remap = {t: i for i, t in enumerate(used)}
    new_taps = tuple((off, remap[t], midx) for (off, t, midx) in taps)
    return w_used, new_taps


def _build_src(x_flat, hw, stride, M, G):
    """Guard-padded, phase-decomposed f32 source (rows, Cin)."""
    N, H, W = hw
    cin = x_flat.shape[1]
    x = x_flat.astype(jnp.float32)
    if stride == 1:
        phases = [x]
    else:
        x4 = x.reshape(N, H, W, cin)
        phases = [x4[:, a::stride, b::stride, :].reshape(M, cin)
                  for a in range(stride) for b in range(stride)]
    guard = jnp.zeros((G, cin), jnp.float32)
    return jnp.concatenate([guard] + phases + [guard], axis=0)


def _nbytes(shape, dtype):
    return int(np.prod(shape)) * int(np.dtype(dtype).itemsize)


# ----------------------------------------------------------------------------
# In-kernel building blocks
# ----------------------------------------------------------------------------
def _conv_taps(src_ref, w_ref, taps, m, mask_ref):
    """Sum of shifted (M, Cin)@(Cin, Cout) MXU matmuls; mask applied on the LHS."""
    acc = None
    for off, widx, midx in taps:
        tap = src_ref[pl.ds(off, m), :]                         # (M, Cin) f32
        if midx is not None:
            tap = tap * mask_ref[:, midx:midx + 1]              # boundary mask on LHS
        part = jnp.dot(tap.astype(jnp.bfloat16), w_ref[widx],
                       preferred_element_type=jnp.float32)      # bf16 MXU, f32 acc
        acc = part if acc is None else acc + part
    return acc


def _bn(acc, g, b, inv_m):
    """Train-mode BatchNorm (biased variance) epilogue in f32."""
    mean = jnp.sum(acc, axis=0, keepdims=True) * inv_m
    xc = acc - mean
    var = jnp.sum(xc * xc, axis=0, keepdims=True) * inv_m
    return xc * jax.lax.rsqrt(var + EPS) * g + b


def _make_stem_kernel(*, taps, m, has_mask):
    inv_m = 1.0 / m

    def kernel(*refs):
        src, w, g, b = refs[:4]
        idx = 4
        mask = None
        if has_mask:
            mask = refs[idx]
            idx += 1
        o_ref = refs[idx]
        acc = _conv_taps(src, w, taps, m, mask)
        y = jnp.maximum(_bn(acc, g[...], b[...], inv_m), 0.0)
        o_ref[...] = y.astype(o_ref.dtype)

    return kernel


def _make_block_kernel(*, taps1, taps2, m, g1len, g2len, has_mask1, has_mask2,
                       proj, fuse_fc, need_pad2):
    """Fully fused ResBlock (optionally + avgpool + FC tile) kernel."""
    inv_m = 1.0 / m

    def kernel(*refs):
        idx = 0

        def nxt():
            nonlocal idx
            r = refs[idx]
            idx += 1
            return r

        src1 = nxt(); w1 = nxt(); g1 = nxt(); b1 = nxt()
        mask1 = nxt() if has_mask1 else None
        w2 = nxt(); g2 = nxt(); b2 = nxt()
        mask2 = nxt() if has_mask2 else None
        if proj:
            we = nxt(); ge = nxt(); be = nxt()
        else:
            xres = nxt()
        fcw = nxt() if fuse_fc else None
        o_ref = nxt()
        pad2 = nxt() if need_pad2 else None

        # conv1 + bn1 + relu (full Cout1).  Recomputed per Cout2 tile: cheap,
        # keeps the grid axis state-free (megacore-safe); w1's block index is
        # constant so it is DMA'd only once per core.
        h1 = jnp.maximum(_bn(_conv_taps(src1, w1, taps1, m, mask1),
                             g1[...], b1[...], inv_m), 0.0)

        # Shortcut (this Cout2 tile).
        if proj:
            # 1x1 stride-s conv input == phase-(0,0) rows of src1.
            x00 = src1[pl.ds(g1len, m), :]
            sc = jnp.dot(x00.astype(jnp.bfloat16), we[0],
                         preferred_element_type=jnp.float32)
            sc = _bn(sc, ge[...], be[...], inv_m)
        else:
            sc = xres[...].astype(jnp.float32)

        # conv2 (this Cout2 tile) + bn2 + residual + relu.
        if need_pad2:
            cin2 = h1.shape[1]
            zero = jnp.zeros((g2len, cin2), jnp.float32)
            pad2[pl.ds(0, g2len), :] = zero
            pad2[pl.ds(g2len, m), :] = h1
            pad2[pl.ds(g2len + m, g2len), :] = zero
            acc2 = _conv_taps(pad2, w2, taps2, m, mask2)
        else:
            # 1x1 spatial: the 3x3 conv collapses to its centre tap.
            acc2 = jnp.dot(h1.astype(jnp.bfloat16), w2[0],
                           preferred_element_type=jnp.float32)
        y = jnp.maximum(_bn(acc2, g2[...], b2[...], inv_m) + sc, 0.0)

        if fuse_fc:
            # adaptive_avg_pool2d(1x1) is the identity at 1x1 spatial; emit the
            # partial FC contribution of this channel tile (lane-dense, 128 wide).
            o_ref[...] = jnp.dot(y.astype(jnp.bfloat16), fcw[...],
                                 preferred_element_type=jnp.float32)[None]
        else:
            o_ref[...] = y.astype(o_ref.dtype)

    return kernel


# ----------------------------------------------------------------------------
# Wrappers
# ----------------------------------------------------------------------------
def _stem_call(x_nchw, P):
    x = jnp.transpose(x_nchw, (0, 2, 3, 1))                  # NCHW -> NHWC
    N, H, W, C = x.shape
    flat = x.reshape(N * H * W, C).astype(jnp.float32)
    geo = _geom(N, H, W, k=3, stride=2, pad=1)
    Ho, Wo, M, G = geo["Ho"], geo["Wo"], geo["M"], geo["G"]
    src = _build_src(flat, (N, H, W), 2, M, G)
    w_used, taps = _select_taps(P["c1w"], geo["taps"])
    cout = w_used.shape[2]

    args = [src, w_used, P["c1g"], P["c1be"]]
    if geo["mask"] is not None:
        args.append(jnp.asarray(geo["mask"]))

    flops = 2 * M * (len(taps) * C) * cout
    bytes_acc = sum(_nbytes(a.shape, a.dtype) for a in args) + _nbytes((M, cout), jnp.bfloat16)

    vspec = pl.BlockSpec(memory_space=pltpu.MemorySpace.VMEM)
    out = pl.pallas_call(
        _make_stem_kernel(taps=taps, m=M, has_mask=geo["mask"] is not None),
        out_shape=jax.ShapeDtypeStruct((M, cout), jnp.bfloat16),
        in_specs=[vspec] * len(args),
        out_specs=vspec,
        cost_estimate=pl.CostEstimate(flops=int(flops), transcendentals=0,
                                      bytes_accessed=int(bytes_acc)),
    )(*args)
    return out, (N, Ho, Wo)


def _block_call(x, hw, p, stride, *, fuse_fc=False, fcw=None):
    """Fused ResBlock [+ avgpool + FC].  x: (N*H*W, Cin) bf16, NHWC row order."""
    N, H, W = hw
    cin = x.shape[1]
    c1 = p["w1"].shape[2]
    c2 = p["w2"].shape[2]
    proj = "we" in p
    num_j = max(1, c2 // TN)
    tn = c2 // num_j

    geo1 = _geom(N, H, W, k=3, stride=stride, pad=1)
    Ho, Wo, M, G1 = geo1["Ho"], geo1["Wo"], geo1["M"], geo1["G"]
    geo2 = _geom(N, Ho, Wo, k=3, stride=1, pad=1)
    G2 = geo2["G"]
    assert geo2["M"] == M

    src1 = _build_src(x, (N, H, W), stride, M, G1)
    w1u, taps1 = _select_taps(p["w1"], geo1["taps"])
    w2u, taps2 = _select_taps(p["w2"], geo2["taps"])
    mask1, mask2 = geo1["mask"], geo2["mask"]
    need_pad2 = (len(taps2) > 1 or taps2[0][2] is not None or taps2[0][0] != G2)

    args, specs = [], []

    def add(a, spec):
        args.append(a)
        specs.append(spec)

    def const_spec(a):
        nd = a.ndim
        return pl.BlockSpec(a.shape, lambda j, _nd=nd: (0,) * _nd)

    add(src1, const_spec(src1))
    add(w1u, const_spec(w1u))                                   # resident across grid
    add(p["g1"], const_spec(p["g1"]))
    add(p["be1"], const_spec(p["be1"]))
    if mask1 is not None:
        m1 = jnp.asarray(mask1)
        add(m1, const_spec(m1))
    add(w2u, pl.BlockSpec((w2u.shape[0], c1, tn), lambda j: (0, 0, j)))   # streamed tile
    add(p["g2"], pl.BlockSpec((1, tn), lambda j: (0, j)))
    add(p["be2"], pl.BlockSpec((1, tn), lambda j: (0, j)))
    if mask2 is not None:
        m2 = jnp.asarray(mask2)
        add(m2, const_spec(m2))
    if proj:
        add(p["we"], pl.BlockSpec((1, cin, tn), lambda j: (0, 0, j)))
        add(p["ge"], pl.BlockSpec((1, tn), lambda j: (0, j)))
        add(p["bee"], pl.BlockSpec((1, tn), lambda j: (0, j)))
    else:
        add(x, pl.BlockSpec((x.shape[0], tn), lambda j: (0, j)))          # identity residual
    if fuse_fc:
        add(fcw, pl.BlockSpec((tn, FC_PAD), lambda j: (j, 0)))

    kern = _make_block_kernel(
        taps1=taps1, taps2=taps2, m=M, g1len=G1, g2len=G2,
        has_mask1=mask1 is not None, has_mask2=mask2 is not None,
        proj=proj, fuse_fc=fuse_fc, need_pad2=need_pad2)

    if fuse_fc:
        out_shape = jax.ShapeDtypeStruct((num_j, M, FC_PAD), jnp.float32)
        out_spec = pl.BlockSpec((1, M, FC_PAD), lambda j: (j, 0, 0))
        out_bytes = _nbytes((num_j, M, FC_PAD), jnp.float32)
    else:
        out_shape = jax.ShapeDtypeStruct((M, c2), jnp.bfloat16)
        out_spec = pl.BlockSpec((M, tn), lambda j: (0, j))
        out_bytes = _nbytes((M, c2), jnp.bfloat16)

    scratch = [pltpu.VMEM((M + 2 * G2, c1), jnp.float32)] if need_pad2 else []

    flops = 2 * M * (len(taps1) * cin) * c1 * num_j            # conv1 (recomputed per tile)
    flops += 2 * M * (len(taps2) * c1) * c2                    # conv2
    if proj:
        flops += 2 * M * cin * c2                              # 1x1 projection
    if fuse_fc:
        flops += 2 * M * c2 * FC_PAD                           # FC
    bytes_acc = sum(_nbytes(a.shape, a.dtype) for a in args) + out_bytes

    out = pl.pallas_call(
        kern,
        out_shape=out_shape,
        grid=(num_j,),
        in_specs=specs,
        out_specs=out_spec,
        scratch_shapes=scratch,
        compiler_params=pltpu.CompilerParams(dimension_semantics=("parallel",)),
        cost_estimate=pl.CostEstimate(flops=int(flops), transcendentals=0,
                                      bytes_accessed=int(bytes_acc)),
    )(*args)
    return out, (N, Ho, Wo)


# ----------------------------------------------------------------------------
# Model
# ----------------------------------------------------------------------------
def resnet18_forward(x_nchw, P):
    h, hw = _stem_call(x_nchw, P)                            # conv1 + bn + relu
    h, hw = _block_call(h, hw, P["blk1"], 2)
    h, hw = _block_call(h, hw, P["blk2"], 2)
    h, hw = _block_call(h, hw, P["blk3"], 2)
    partial, _ = _block_call(h, hw, P["blk4"], 1, fuse_fc=True, fcw=P["fcw"])
    logits = jnp.sum(partial, axis=0) + P["fcb"]             # (N, FC_PAD)
    return logits[:, :N_CLASSES]


# ----------------------------------------------------------------------------
# Deterministic parameter initialization (shapes follow the PyTorch __init__).
# Conv weights stored pre-reshaped as (k*k, Cin, Cout) bf16 (MXU operand
# layout); conv biases omitted (the following train-mode BatchNorm cancels them
# exactly).  BN gamma/beta pre-shaped (1, C) f32.  FC weight lane-padded to 128.
# ----------------------------------------------------------------------------
def _init_conv(key, c_in, c_out, k):
    w = jax.random.normal(key, (k * k, c_in, c_out), jnp.float32)
    w = w / float((c_in * k * k) ** 0.5)
    return w.astype(jnp.bfloat16)


def _init_bn(c):
    return jnp.ones((1, c), jnp.float32), jnp.zeros((1, c), jnp.float32)


def _init_block(key, c_in, c_out):
    k1, k2, k3 = jax.random.split(key, 3)
    p = {"w1": _init_conv(k1, c_in, c_out, 3),
         "w2": _init_conv(k2, c_out, c_out, 3)}
    p["g1"], p["be1"] = _init_bn(c_out)
    p["g2"], p["be2"] = _init_bn(c_out)
    if c_in != c_out:
        p["we"] = _init_conv(k3, c_in, c_out, 1)
        p["ge"], p["bee"] = _init_bn(c_out)
    return p


def init_params(key):
    ks = jax.random.split(key, 6)
    P = {"c1w": _init_conv(ks[0], 3, 64, 3)}
    P["c1g"], P["c1be"] = _init_bn(64)
    P["blk1"] = _init_block(ks[1], 64, 128)
    P["blk2"] = _init_block(ks[2], 128, 256)
    P["blk3"] = _init_block(ks[3], 256, 512)
    P["blk4"] = _init_block(ks[4], 512, 512)
    fcw = jax.random.normal(ks[5], (512, N_CLASSES), jnp.float32) / float(512 ** 0.5)
    P["fcw"] = jnp.pad(fcw, ((0, 0), (0, FC_PAD - N_CLASSES))).astype(jnp.bfloat16)
    P["fcb"] = jnp.zeros((1, FC_PAD), jnp.float32)
    return P


if __name__ == "__main__":
    key = jax.random.PRNGKey(0)
    k_param, k_data = jax.random.split(key)
    params = init_params(k_param)
    # NCHW input, like the PyTorch module: batch=2, 3 channels, 16x16 spatial.
    x = jax.random.normal(k_data, (2, 3, 16, 16), jnp.float32)
    fwd = jax.jit(resnet18_forward)
    out = jax.block_until_ready(fwd(x, params))
    assert out.shape == (2, N_CLASSES), out.shape
    assert bool(jnp.all(jnp.isfinite(out)))
    print("KERNEL_OK")
</pallas_src>

<mosaic_0001>
module attributes {stable_mosaic.version = 11 : i64} {
  func.func @kernel(%arg0: memref<530x3xf32, #tpu.memory_space<vmem>>, %arg1: memref<9x3x64xbf16, #tpu.memory_space<vmem>>, %arg2: memref<1x64xf32, #tpu.memory_space<vmem>>, %arg3: memref<1x64xf32, #tpu.memory_space<vmem>>, %arg4: memref<128x5xf32, #tpu.memory_space<vmem>>, %arg5: memref<128x64xbf16, #tpu.memory_space<vmem>>) attributes {dimension_semantics = [], scalar_prefetch = 0 : i64, scratch_operands = 0 : i64, tpu.core_type = #tpu.core_type<tc>} {
    %c384 = arith.constant 384 : index
    %c0 = arith.constant 0 : index
    %0 = vector.load %arg0[%c384, %c0] : memref<530x3xf32, #tpu.memory_space<vmem>>, vector<128x3xf32>
    %c0_0 = arith.constant 0 : index
    %c0_1 = arith.constant 0 : index
    %1 = vector.load %arg4[%c0_0, %c0_1] : memref<128x5xf32, #tpu.memory_space<vmem>>, vector<128x1xf32>
    %2 = vector.broadcast %1 : vector<128x1xf32> to vector<128x3xf32>
    %3 = arith.mulf %0, %2 : vector<128x3xf32>
    %4 = arith.truncf %3 : vector<128x3xf32> to vector<128x3xbf16>
    %c0_2 = arith.constant 0 : index
    %c0_3 = arith.constant 0 : index
    %c0_4 = arith.constant 0 : index
    %5 = vector.load %arg1[%c0_2, %c0_3, %c0_4] : memref<9x3x64xbf16, #tpu.memory_space<vmem>>, vector<1x3x64xbf16>
    %6 = vector.shape_cast %5 : vector<1x3x64xbf16> to vector<3x64xbf16>
    %cst = arith.constant dense<0.000000e+00> : vector<128x64xf32>
    %7 = tpu.matmul %4, %6, %cst {dimension_numbers = #tpu.dot_dimension_numbers<[1], [0], [0], [1], [0, 0, 1, 1], [], []>} : vector<128x3xbf16>, vector<3x64xbf16>, vector<128x64xf32> -> vector<128x64xf32>
    %c257 = arith.constant 257 : index
    %c0_5 = arith.constant 0 : index
    %8 = vector.load %arg0[%c257, %c0_5] : memref<530x3xf32, #tpu.memory_space<vmem>>, vector<128x3xf32>
    %c0_6 = arith.constant 0 : index
    %c1 = arith.constant 1 : index
    %9 = vector.load %arg4[%c0_6, %c1] : memref<128x5xf32, #tpu.memory_space<vmem>>, vector<128x1xf32>
    %10 = vector.broadcast %9 : vector<128x1xf32> to vector<128x3xf32>
    %11 = arith.mulf %8, %10 : vector<128x3xf32>
    %12 = arith.truncf %11 : vector<128x3xf32> to vector<128x3xbf16>
    %c1_7 = arith.constant 1 : index
    %c0_8 = arith.constant 0 : index
    %c0_9 = arith.constant 0 : index
    %13 = vector.load %arg1[%c1_7, %c0_8, %c0_9] : memref<9x3x64xbf16, #tpu.memory_space<vmem>>, vector<1x3x64xbf16>
    %14 = vector.shape_cast %13 : vector<1x3x64xbf16> to vector<3x64xbf16>
    %cst_10 = arith.constant dense<0.000000e+00> : vector<128x64xf32>
    %15 = tpu.matmul %12, %14, %cst_10 {dimension_numbers = #tpu.dot_dimension_numbers<[1], [0], [0], [1], [0, 0, 1, 1], [], []>} : vector<128x3xbf16>, vector<3x64xbf16>, vector<128x64xf32> -> vector<128x64xf32>
    %16 = arith.addf %7, %15 : vector<128x64xf32>
    %c385 = arith.constant 385 : index
    %c0_11 = arith.constant 0 : index
    %17 = vector.load %arg0[%c385, %c0_11] : memref<530x3xf32, #tpu.memory_space<vmem>>, vector<128x3xf32>
    %c0_12 = arith.constant 0 : index
    %c2 = arith.constant 2 : index
    %18 = vector.load %arg4[%c0_12, %c2] : memref<128x5xf32, #tpu.memory_space<vmem>>, vector<128x1xf32>
    %19 = vector.broadcast %18 : vector<128x1xf32> to vector<128x3xf32>
    %20 = arith.mulf %17, %19 : vector<128x3xf32>
    %21 = arith.truncf %20 : vector<128x3xf32> to vector<128x3xbf16>
    %c2_13 = arith.constant 2 : index
    %c0_14 = arith.constant 0 : index
    %c0_15 = arith.constant 0 : index
    %22 = vector.load %arg1[%c2_13, %c0_14, %c0_15] : memref<9x3x64xbf16, #tpu.memory_space<vmem>>, vector<1x3x64xbf16>
    %23 = vector.shape_cast %22 : vector<1x3x64xbf16> to vector<3x64xbf16>
    %cst_16 = arith.constant dense<0.000000e+00> : vector<128x64xf32>
    %24 = tpu.matmul %21, %23, %cst_16 {dimension_numbers = #tpu.dot_dimension_numbers<[1], [0], [0], [1], [0, 0, 1, 1], [], []>} : vector<128x3xbf16>, vector<3x64xbf16>, vector<128x64xf32> -> vector<128x64xf32>
    %25 = arith.addf %16, %24 : vector<128x64xf32>
    %c136 = arith.constant 136 : index
    %c0_17 = arith.constant 0 : index
    %26 = vector.load %arg0[%c136, %c0_17] : memref<530x3xf32, #tpu.memory_space<vmem>>, vector<128x3xf32>
    %c0_18 = arith.constant 0 : index
    %c3 = arith.constant 3 : index
    %27 = vector.load %arg4[%c0_18, %c3] : memref<128x5xf32, #tpu.memory_space<vmem>>, vector<128x1xf32>
    %28 = vector.broadcast %27 : vector<128x1xf32> to vector<128x3xf32>
    %29 = arith.mulf %26, %28 : vector<128x3xf32>
    %30 = arith.truncf %29 : vector<128x3xf32> to vector<128x3xbf16>
    %c3_19 = arith.constant 3 : index
    %c0_20 = arith.constant 0 : index
    %c0_21 = arith.constant 0 : index
    %31 = vector.load %arg1[%c3_19, %c0_20, %c0_21] : memref<9x3x64xbf16, #tpu.memory_space<vmem>>, vector<1x3x64xbf16>
    %32 = vector.shape_cast %31 : vector<1x3x64xbf16> to vector<3x64xbf16>
    %cst_22 = arith.constant dense<0.000000e+00> : vector<128x64xf32>
    %33 = tpu.matmul %30, %32, %cst_22 {dimension_numbers = #tpu.dot_dimension_numbers<[1], [0], [0], [1], [0, 0, 1, 1], [], []>} : vector<128x3xbf16>, vector<3x64xbf16>, vector<128x64xf32> -> vector<128x64xf32>
    %34 = arith.addf %25, %33 : vector<128x64xf32>
    %c9 = arith.constant 9 : index
    %c0_23 = arith.constant 0 : index
    %35 = vector.load %arg0[%c9, %c0_23] : memref<530x3xf32, #tpu.memory_space<vmem>>, vector<128x3xf32>
    %36 = arith.truncf %35 : vector<128x3xf32> to vector<128x3xbf16>
    %c4 = arith.constant 4 : index
    %c0_24 = arith.constant 0 : index
    %c0_25 = arith.constant 0 : index
    %37 = vector.load %arg1[%c4, %c0_24, %c0_25] : memref<9x3x64xbf16, #tpu.memory_space<vmem>>, vector<1x3x64xbf16>
    %38 = vector.shape_cast %37 : vector<1x3x64xbf16> to vector<3x64xbf16>
    %cst_26 = arith.constant dense<0.000000e+00> : vector<128x64xf32>
    %39 = tpu.matmul %36, %38, %cst_26 {dimension_numbers = #tpu.dot_dimension_numbers<[1], [0], [0], [1], [0, 0, 1, 1], [], []>} : vector<128x3xbf16>, vector<3x64xbf16>, vector<128x64xf32> -> vector<128x64xf32>
    %40 = arith.addf %34, %39 : vector<128x64xf32>
    %c137 = arith.constant 137 : index
    %c0_27 = arith.constant 0 : index
    %41 = vector.load %arg0[%c137, %c0_27] : memref<530x3xf32, #tpu.memory_space<vmem>>, vector<128x3xf32>
    %42 = arith.truncf %41 : vector<128x3xf32> to vector<128x3xbf16>
    %c5 = arith.constant 5 : index
    %c0_28 = arith.constant 0 : index
    %c0_29 = arith.constant 0 : index
    %43 = vector.load %arg1[%c5, %c0_28, %c0_29] : memref<9x3x64xbf16, #tpu.memory_space<vmem>>, vector<1x3x64xbf16>
    %44 = vector.shape_cast %43 : vector<1x3x64xbf16> to vector<3x64xbf16>
    %cst_30 = arith.constant dense<0.000000e+00> : vector<128x64xf32>
    %45 = tpu.matmul %42, %44, %cst_30 {dimension_numbers = #tpu.dot_dimension_numbers<[1], [0], [0], [1], [0, 0, 1, 1], [], []>} : vector<128x3xbf16>, vector<3x64xbf16>, vector<128x64xf32> -> vector<128x64xf32>
    %46 = arith.addf %40, %45 : vector<128x64xf32>
    %c392 = arith.constant 392 : index
    %c0_31 = arith.constant 0 : index
    %47 = vector.load %arg0[%c392, %c0_31] : memref<530x3xf32, #tpu.memory_space<vmem>>, vector<128x3xf32>
    %c0_32 = arith.constant 0 : index
    %c4_33 = arith.constant 4 : index
    %48 = vector.load %arg4[%c0_32, %c4_33] : memref<128x5xf32, #tpu.memory_space<vmem>>, vector<128x1xf32>
    %49 = vector.broadcast %48 : vector<128x1xf32> to vector<128x3xf32>
    %50 = arith.mulf %47, %49 : vector<128x3xf32>
    %51 = arith.truncf %50 : vector<128x3xf32> to vector<128x3xbf16>
    %c6 = arith.constant 6 : index
    %c0_34 = arith.constant 0 : index
    %c0_35 = arith.constant 0 : index
    %52 = vector.load %arg1[%c6, %c0_34, %c0_35] : memref<9x3x64xbf16, #tpu.memory_space<vmem>>, vector<1x3x64xbf16>
    %53 = vector.shape_cast %52 : vector<1x3x64xbf16> to vector<3x64xbf16>
    %cst_36 = arith.constant dense<0.000000e+00> : vector<128x64xf32>
    %54 = tpu.matmul %51, %53, %cst_36 {dimension_numbers = #tpu.dot_dimension_numbers<[1], [0], [0], [1], [0, 0, 1, 1], [], []>} : vector<128x3xbf16>, vector<3x64xbf16>, vector<128x64xf32> -> vector<128x64xf32>
    %55 = arith.addf %46, %54 : vector<128x64xf32>
    %c265 = arith.constant 265 : index
    %c0_37 = arith.constant 0 : index
    %56 = vector.load %arg0[%c265, %c0_37] : memref<530x3xf32, #tpu.memory_space<vmem>>, vector<128x3xf32>
    %57 = arith.truncf %56 : vector<128x3xf32> to vector<128x3xbf16>
    %c7 = arith.constant 7 : index
    %c0_38 = arith.constant 0 : index
    %c0_39 = arith.constant 0 : index
    %58 = vector.load %arg1[%c7, %c0_38, %c0_39] : memref<9x3x64xbf16, #tpu.memory_space<vmem>>, vector<1x3x64xbf16>
    %59 = vector.shape_cast %58 : vector<1x3x64xbf16> to vector<3x64xbf16>
    %cst_40 = arith.constant dense<0.000000e+00> : vector<128x64xf32>
    %60 = tpu.matmul %57, %59, %cst_40 {dimension_numbers = #tpu.dot_dimension_numbers<[1], [0], [0], [1], [0, 0, 1, 1], [], []>} : vector<128x3xbf16>, vector<3x64xbf16>, vector<128x64xf32> -> vector<128x64xf32>
    %61 = arith.addf %55, %60 : vector<128x64xf32>
    %c393 = arith.constant 393 : index
    %c0_41 = arith.constant 0 : index
    %62 = vector.load %arg0[%c393, %c0_41] : memref<530x3xf32, #tpu.memory_space<vmem>>, vector<128x3xf32>
    %63 = arith.truncf %62 : vector<128x3xf32> to vector<128x3xbf16>
    %c8 = arith.constant 8 : index
    %c0_42 = arith.constant 0 : index
    %c0_43 = arith.constant 0 : index
    %64 = vector.load %arg1[%c8, %c0_42, %c0_43] : memref<9x3x64xbf16, #tpu.memory_space<vmem>>, vector<1x3x64xbf16>
    %65 = vector.shape_cast %64 : vector<1x3x64xbf16> to vector<3x64xbf16>
    %cst_44 = arith.constant dense<0.000000e+00> : vector<128x64xf32>
    %66 = tpu.matmul %63, %65, %cst_44 {dimension_numbers = #tpu.dot_dimension_numbers<[1], [0], [0], [1], [0, 0, 1, 1], [], []>} : vector<128x3xbf16>, vector<3x64xbf16>, vector<128x64xf32> -> vector<128x64xf32>
    %67 = arith.addf %61, %66 : vector<128x64xf32>
    %c0_45 = arith.constant 0 : index
    %c0_46 = arith.constant 0 : index
    %68 = vector.load %arg2[%c0_45, %c0_46] : memref<1x64xf32, #tpu.memory_space<vmem>>, vector<1x64xf32>
    %c0_47 = arith.constant 0 : index
    %c0_48 = arith.constant 0 : index
    %69 = vector.load %arg3[%c0_47, %c0_48] : memref<1x64xf32, #tpu.memory_space<vmem>>, vector<1x64xf32>
    %cst_49 = arith.constant dense<0.000000e+00> : vector<64xf32>
    %70 = vector.multi_reduction <add>, %67, %cst_49 [0] : vector<128x64xf32> to vector<64xf32>
    %71 = vector.shape_cast %70 : vector<64xf32> to vector<1x64xf32>
    %cst_50 = arith.constant 7.812500e-03 : f32
    %72 = vector.broadcast %cst_50 : f32 to vector<1x64xf32>
    %73 = arith.mulf %71, %72 : vector<1x64xf32>
    %74 = vector.broadcast %73 : vector<1x64xf32> to vector<128x64xf32>
    %75 = arith.subf %67, %74 : vector<128x64xf32>
    %76 = arith.mulf %75, %75 : vector<128x64xf32>
    %cst_51 = arith.constant dense<0.000000e+00> : vector<64xf32>
    %77 = vector.multi_reduction <add>, %76, %cst_51 [0] : vector<128x64xf32> to vector<64xf32>
    %78 = vector.shape_cast %77 : vector<64xf32> to vector<1x64xf32>
    %cst_52 = arith.constant 7.812500e-03 : f32
    %79 = vector.broadcast %cst_52 : f32 to vector<1x64xf32>
    %80 = arith.mulf %78, %79 : vector<1x64xf32>
    %cst_53 = arith.constant 9.99999974E-6 : f32
    %81 = vector.broadcast %cst_53 : f32 to vector<1x64xf32>
    %82 = arith.addf %80, %81 : vector<1x64xf32>
    %83 = math.rsqrt %82 : vector<1x64xf32>
    %84 = vector.broadcast %83 : vector<1x64xf32> to vector<128x64xf32>
    %85 = arith.mulf %75, %84 : vector<128x64xf32>
    %86 = vector.broadcast %68 : vector<1x64xf32> to vector<128x64xf32>
    %87 = arith.mulf %85, %86 : vector<128x64xf32>
    %88 = vector.broadcast %69 : vector<1x64xf32> to vector<128x64xf32>
    %89 = arith.addf %87, %88 : vector<128x64xf32>
    %cst_54 = arith.constant 0.000000e+00 : f32
    %90 = vector.broadcast %cst_54 : f32 to vector<128x64xf32>
    %91 = arith.maximumf %89, %90 : vector<128x64xf32>
    %92 = arith.truncf %91 : vector<128x64xf32> to vector<128x64xbf16>
    %c0_55 = arith.constant 0 : index
    %c0_56 = arith.constant 0 : index
    %93 = vector.load %arg5[%c0_55, %c0_56] : memref<128x64xbf16, #tpu.memory_space<vmem>>, vector<128x64xbf16>
    tpu.vector_store %arg5[%c0_55, %c0_56], %92 {strides = array<i32>} : memref<128x64xbf16, #tpu.memory_space<vmem>>, vector<128x64xbf16>,
    return
  }
}

module attributes {stable_mosaic.version = 11 : i64} {
  func.func @kernel(%arg0: i32, %arg1: memref<138x64xf32, #tpu.memory_space<vmem>>, %arg2: memref<9x64x128xbf16, #tpu.memory_space<vmem>>, %arg3: memref<1x128xf32, #tpu.memory_space<vmem>>, %arg4: memref<1x128xf32, #tpu.memory_space<vmem>>, %arg5: memref<32x5xf32, #tpu.memory_space<vmem>>, %arg6: memref<9x128x128xbf16, #tpu.memory_space<vmem>>, %arg7: memref<1x128xf32, #tpu.memory_space<vmem>>, %arg8: memref<1x128xf32, #tpu.memory_space<vmem>>, %arg9: memref<32x8xf32, #tpu.memory_space<vmem>>, %arg10: memref<1x64x128xbf16, #tpu.memory_space<vmem>>, %arg11: memref<1x128xf32, #tpu.memory_space<vmem>>, %arg12: memref<1x128xf32, #tpu.memory_space<vmem>>, %arg13: memref<32x128xbf16, #tpu.memory_space<vmem>>, %arg14: memref<42x128xf32, #tpu.memory_space<vmem>>) attributes {dimension_semantics = [#tpu.dimension_semantics<parallel>], iteration_bounds = array<i64: 1>, scalar_prefetch = 0 : i64, scratch_operands = 1 : i64, tpu.core_type = #tpu.core_type<tc>, window_params = [{pipeline_mode = #tpu.pipeline_mode<synchronous>, transform_indices = @transform_0, window_bounds = array<i64: 138, 64>}, {pipeline_mode = #tpu.pipeline_mode<synchronous>, transform_indices = @transform_1, window_bounds = array<i64: 9, 64, 128>}, {pipeline_mode = #tpu.pipeline_mode<synchronous>, transform_indices = @transform_2, window_bounds = array<i64: 1, 128>}, {pipeline_mode = #tpu.pipeline_mode<synchronous>, transform_indices = @transform_3, window_bounds = array<i64: 1, 128>}, {pipeline_mode = #tpu.pipeline_mode<synchronous>, transform_indices = @transform_4, window_bounds = array<i64: 32, 5>}, {transform_indices = @transform_5, window_bounds = array<i64: 9, 128, 128>}, {transform_indices = @transform_6, window_bounds = array<i64: 1, 128>}, {transform_indices = @transform_7, window_bounds = array<i64: 1, 128>}, {pipeline_mode = #tpu.pipeline_mode<synchronous>, transform_indices = @transform_8, window_bounds = array<i64: 32, 8>}, {transform_indices = @transform_9, window_bounds = array<i64: 1, 64, 128>}, {transform_indices = @transform_10, window_bounds = array<i64: 1, 128>}, {transform_indices = @transform_11, window_bounds = array<i64: 1, 128>}, {transform_indices = @transform_12, window_bounds = array<i64: 32, 128>}]} {
    %c96 = arith.constant 96 : index
    %c0 = arith.constant 0 : index
    %0 = vector.load %arg1[%c96, %c0] : memref<138x64xf32, #tpu.memory_space<vmem>>, vector<32x64xf32>
    %c0_0 = arith.constant 0 : index
    %c0_1 = arith.constant 0 : index
    %1 = vector.load %arg5[%c0_0, %c0_1] : memref<32x5xf32, #tpu.memory_space<vmem>>, vector<32x1xf32>
    %2 = vector.broadcast %1 : vector<32x1xf32> to vector<32x64xf32>
    %3 = arith.mulf %0, %2 : vector<32x64xf32>
    %4 = arith.truncf %3 : vector<32x64xf32> to vector<32x64xbf16>
    %c0_2 = arith.constant 0 : index
    %c0_3 = arith.constant 0 : index
    %c0_4 = arith.constant 0 : index
    %5 = vector.load %arg2[%c0_2, %c0_3, %c0_4] : memref<9x64x128xbf16, #tpu.memory_space<vmem>>, vector<1x64x128xbf16>
    %6 = vector.shape_cast %5 : vector<1x64x128xbf16> to vector<64x128xbf16>
    %cst = arith.constant dense<0.000000e+00> : vector<32x128xf32>
    %7 = tpu.matmul %4, %6, %cst {dimension_numbers = #tpu.dot_dimension_numbers<[1], [0], [0], [1], [0, 0, 1, 1], [], []>} : vector<32x64xbf16>, vector<64x128xbf16>, vector<32x128xf32> -> vector<32x128xf32>
    %c65 = arith.constant 65 : index
    %c0_5 = arith.constant 0 : index
    %8 = vector.load %arg1[%c65, %c0_5] : memref<138x64xf32, #tpu.memory_space<vmem>>, vector<32x64xf32>
    %c0_6 = arith.constant 0 : index
    %c1 = arith.constant 1 : index
    %9 = vector.load %arg5[%c0_6, %c1] : memref<32x5xf32, #tpu.memory_space<vmem>>, vector<32x1xf32>
    %10 = vector.broadcast %9 : vector<32x1xf32> to vector<32x64xf32>
    %11 = arith.mulf %8, %10 : vector<32x64xf32>
    %12 = arith.truncf %11 : vector<32x64xf32> to vector<32x64xbf16>
    %c1_7 = arith.constant 1 : index
    %c0_8 = arith.constant 0 : index
    %c0_9 = arith.constant 0 : index
    %13 = vector.load %arg2[%c1_7, %c0_8, %c0_9] : memref<9x64x128xbf16, #tpu.memory_space<vmem>>, vector<1x64x128xbf16>
    %14 = vector.shape_cast %13 : vector<1x64x128xbf16> to vector<64x128xbf16>
    %cst_10 = arith.constant dense<0.000000e+00> : vector<32x128xf32>
    %15 = tpu.matmul %12, %14, %cst_10 {dimension_numbers = #tpu.dot_dimension_numbers<[1], [0], [0], [1], [0, 0, 1, 1], [], []>} : vector<32x64xbf16>, vector<64x128xbf16>, vector<32x128xf32> -> vector<32x128xf32>
    %16 = arith.addf %7, %15 : vector<32x128xf32>
    %c97 = arith.constant 97 : index
    %c0_11 = arith.constant 0 : index
    %17 = vector.load %arg1[%c97, %c0_11] : memref<138x64xf32, #tpu.memory_space<vmem>>, vector<32x64xf32>
    %c0_12 = arith.constant 0 : index
    %c2 = arith.constant 2 : index
    %18 = vector.load %arg5[%c0_12, %c2] : memref<32x5xf32, #tpu.memory_space<vmem>>, vector<32x1xf32>
    %19 = vector.broadcast %18 : vector<32x1xf32> to vector<32x64xf32>
    %20 = arith.mulf %17, %19 : vector<32x64xf32>
    %21 = arith.truncf %20 : vector<32x64xf32> to vector<32x64xbf16>
    %c2_13 = arith.constant 2 : index
    %c0_14 = arith.constant 0 : index
    %c0_15 = arith.constant 0 : index
    %22 = vector.load %arg2[%c2_13, %c0_14, %c0_15] : memref<9x64x128xbf16, #tpu.memory_space<vmem>>, vector<1x64x128xbf16>
    %23 = vector.shape_cast %22 : vector<1x64x128xbf16> to vector<64x128xbf16>
    %cst_16 = arith.constant dense<0.000000e+00> : vector<32x128xf32>
    %24 = tpu.matmul %21, %23, %cst_16 {dimension_numbers = #tpu.dot_dimension_numbers<[1], [0], [0], [1], [0, 0, 1, 1], [], []>} : vector<32x64xbf16>, vector<64x128xbf16>, vector<32x128xf32> -> vector<32x128xf32>
    %25 = arith.addf %16, %24 : vector<32x128xf32>
    %c36 = arith.constant 36 : index
    %c0_17 = arith.constant 0 : index
    %26 = vector.load %arg1[%c36, %c0_17] : memref<138x64xf32, #tpu.memory_space<vmem>>, vector<32x64xf32>
    %c0_18 = arith.constant 0 : index
    %c3 = arith.constant 3 : index
    %27 = vector.load %arg5[%c0_18, %c3] : memref<32x5xf32, #tpu.memory_space<vmem>>, vector<32x1xf32>
    %28 = vector.broadcast %27 : vector<32x1xf32> to vector<32x64xf32>
    %29 = arith.mulf %26, %28 : vector<32x64xf32>
    %30 = arith.truncf %29 : vector<32x64xf32> to vector<32x64xbf16>
    %c3_19 = arith.constant 3 : index
    %c0_20 = arith.constant 0 : index
    %c0_21 = arith.constant 0 : index
    %31 = vector.load %arg2[%c3_19, %c0_20, %c0_21] : memref<9x64x128xbf16, #tpu.memory_space<vmem>>, vector<1x64x128xbf16>
    %32 = vector.shape_cast %31 : vector<1x64x128xbf16> to vector<64x128xbf16>
    %cst_22 = arith.constant dense<0.000000e+00> : vector<32x128xf32>
    %33 = tpu.matmul %30, %32, %cst_22 {dimension_numbers = #tpu.dot_dimension_numbers<[1], [0], [0], [1], [0, 0, 1, 1], [], []>} : vector<32x64xbf16>, vector<64x128xbf16>, vector<32x128xf32> -> vector<32x128xf32>
    %34 = arith.addf %25, %33 : vector<32x128xf32>
    %c5 = arith.constant 5 : index
    %c0_23 = arith.constant 0 : index
    %35 = vector.load %arg1[%c5, %c0_23] : memref<138x64xf32, #tpu.memory_space<vmem>>, vector<32x64xf32>
    %36 = arith.truncf %35 : vector<32x64xf32> to vector<32x64xbf16>
    %c4 = arith.constant 4 : index
    %c0_24 = arith.constant 0 : index
    %c0_25 = arith.constant 0 : index
    %37 = vector.load %arg2[%c4, %c0_24, %c0_25] : memref<9x64x128xbf16, #tpu.memory_space<vmem>>, vector<1x64x128xbf16>
    %38 = vector.shape_cast %37 : vector<1x64x128xbf16> to vector<64x128xbf16>
    %cst_26 = arith.constant dense<0.000000e+00> : vector<32x128xf32>
    %39 = tpu.matmul %36, %38, %cst_26 {dimension_numbers = #tpu.dot_dimension_numbers<[1], [0], [0], [1], [0, 0, 1, 1], [], []>} : vector<32x64xbf16>, vector<64x128xbf16>, vector<32x128xf32> -> vector<32x128xf32>
    %40 = arith.addf %34, %39 : vector<32x128xf32>
    %c37 = arith.constant 37 : index
    %c0_27 = arith.constant 0 : index
    %41 = vector.load %arg1[%c37, %c0_27] : memref<138x64xf32, #tpu.memory_space<vmem>>, vector<32x64xf32>
    %42 = arith.truncf %41 : vector<32x64xf32> to vector<32x64xbf16>
    %c5_28 = arith.constant 5 : index
    %c0_29 = arith.constant 0 : index
    %c0_30 = arith.constant 0 : index
    %43 = vector.load %arg2[%c5_28, %c0_29, %c0_30] : memref<9x64x128xbf16, #tpu.memory_space<vmem>>, vector<1x64x128xbf16>
    %44 = vector.shape_cast %43 : vector<1x64x128xbf16> to vector<64x128xbf16>
    %cst_31 = arith.constant dense<0.000000e+00> : vector<32x128xf32>
    %45 = tpu.matmul %42, %44, %cst_31 {dimension_numbers = #tpu.dot_dimension_numbers<[1], [0], [0], [1], [0, 0, 1, 1], [], []>} : vector<32x64xbf16>, vector<64x128xbf16>, vector<32x128xf32> -> vector<32x128xf32>
    %46 = arith.addf %40, %45 : vector<32x128xf32>
    %c100 = arith.constant 100 : index
    %c0_32 = arith.constant 0 : index
    %47 = vector.load %arg1[%c100, %c0_32] : memref<138x64xf32, #tpu.memory_space<vmem>>, vector<32x64xf32>
    %c0_33 = arith.constant 0 : index
    %c4_34 = arith.constant 4 : index
    %48 = vector.load %arg5[%c0_33, %c4_34] : memref<32x5xf32, #tpu.memory_space<vmem>>, vector<32x1xf32>
    %49 = vector.broadcast %48 : vector<32x1xf32> to vector<32x64xf32>
    %50 = arith.mulf %47, %49 : vector<32x64xf32>
    %51 = arith.truncf %50 : vector<32x64xf32> to vector<32x64xbf16>
    %c6 = arith.constant 6 : index
    %c0_35 = arith.constant 0 : index
    %c0_36 = arith.constant 0 : index
    %52 = vector.load %arg2[%c6, %c0_35, %c0_36] : memref<9x64x128xbf16, #tpu.memory_space<vmem>>, vector<1x64x128xbf16>
    %53 = vector.shape_cast %52 : vector<1x64x128xbf16> to vector<64x128xbf16>
    %cst_37 = arith.constant dense<0.000000e+00> : vector<32x128xf32>
    %54 = tpu.matmul %51, %53, %cst_37 {dimension_numbers = #tpu.dot_dimension_numbers<[1], [0], [0], [1], [0, 0, 1, 1], [], []>} : vector<32x64xbf16>, vector<64x128xbf16>, vector<32x128xf32> -> vector<32x128xf32>
    %55 = arith.addf %46, %54 : vector<32x128xf32>
    %c69 = arith.constant 69 : index
    %c0_38 = arith.constant 0 : index
    %56 = vector.load %arg1[%c69, %c0_38] : memref<138x64xf32, #tpu.memory_space<vmem>>, vector<32x64xf32>
    %57 = arith.truncf %56 : vector<32x64xf32> to vector<32x64xbf16>
    %c7 = arith.constant 7 : index
    %c0_39 = arith.constant 0 : index
    %c0_40 = arith.constant 0 : index
    %58 = vector.load %arg2[%c7, %c0_39, %c0_40] : memref<9x64x128xbf16, #tpu.memory_space<vmem>>, vector<1x64x128xbf16>
    %59 = vector.shape_cast %58 : vector<1x64x128xbf16> to vector<64x128xbf16>
    %cst_41 = arith.constant dense<0.000000e+00> : vector<32x128xf32>
    %60 = tpu.matmul %57, %59, %cst_41 {dimension_numbers = #tpu.dot_dimension_numbers<[1], [0], [0], [1], [0, 0, 1, 1], [], []>} : vector<32x64xbf16>, vector<64x128xbf16>, vector<32x128xf32> -> vector<32x128xf32>
    %61 = arith.addf %55, %60 : vector<32x128xf32>
    %c101 = arith.constant 101 : index
    %c0_42 = arith.constant 0 : index
    %62 = vector.load %arg1[%c101, %c0_42] : memref<138x64xf32, #tpu.memory_space<vmem>>, vector<32x64xf32>
    %63 = arith.truncf %62 : vector<32x64xf32> to vector<32x64xbf16>
    %c8 = arith.constant 8 : index
    %c0_43 = arith.constant 0 : index
    %c0_44 = arith.constant 0 : index
    %64 = vector.load %arg2[%c8, %c0_43, %c0_44] : memref<9x64x128xbf16, #tpu.memory_space<vmem>>, vector<1x64x128xbf16>
    %65 = vector.shape_cast %64 : vector<1x64x128xbf16> to vector<64x128xbf16>
    %cst_45 = arith.constant dense<0.000000e+00> : vector<32x128xf32>
    %66 = tpu.matmul %63, %65, %cst_45 {dimension_numbers = #tpu.dot_dimension_numbers<[1], [0], [0], [1], [0, 0, 1, 1], [], []>} : vector<32x64xbf16>, vector<64x128xbf16>, vector<32x128xf32> -> vector<32x128xf32>
    %67 = arith.addf %61, %66 : vector<32x128xf32>
    %c0_46 = arith.constant 0 : index
    %c0_47 = arith.constant 0 : index
    %68 = vector.load %arg3[%c0_46, %c0_47] : memref<1x128xf32, #tpu.memory_space<vmem>>, vector<1x128xf32>
    %c0_48 = arith.constant 0 : index
    %c0_49 = arith.constant 0 : index
    %69 = vector.load %arg4[%c0_48, %c0_49] : memref<1x128xf32, #tpu.memory_space<vmem>>, vector<1x128xf32>
    %cst_50 = arith.constant dense<0.000000e+00> : vector<128xf32>
    %70 = vector.multi_reduction <add>, %67, %cst_50 [0] : vector<32x128xf32> to vector<128xf32>
    %71 = vector.shape_cast %70 : vector<128xf32> to vector<1x128xf32>
    %cst_51 = arith.constant 3.125000e-02 : f32
    %72 = vector.broadcast %cst_51 : f32 to vector<1x128xf32>
    %73 = arith.mulf %71, %72 : vector<1x128xf32>
    %74 = vector.broadcast %73 : vector<1x128xf32> to vector<32x128xf32>
    %75 = arith.subf %67, %74 : vector<32x128xf32>
    %76 = arith.mulf %75, %75 : vector<32x128xf32>
    %cst_52 = arith.constant dense<0.000000e+00> : vector<128xf32>
    %77 = vector.multi_reduction <add>, %76, %cst_52 [0] : vector<32x128xf32> to vector<128xf32>
    %78 = vector.shape_cast %77 : vector<128xf32> to vector<1x128xf32>
    %cst_53 = arith.constant 3.125000e-02 : f32
    %79 = vector.broadcast %cst_53 : f32 to vector<1x128xf32>
    %80 = arith.mulf %78, %79 : vector<1x128xf32>
    %cst_54 = arith.constant 9.99999974E-6 : f32
    %81 = vector.broadcast %cst_54 : f32 to vector<1x128xf32>
    %82 = arith.addf %80, %81 : vector<1x128xf32>
    %83 = math.rsqrt %82 : vector<1x128xf32>
    %84 = vector.broadcast %83 : vector<1x128xf32> to vector<32x128xf32>
    %85 = arith.mulf %75, %84 : vector<32x128xf32>
    %86 = vector.broadcast %68 : vector<1x128xf32> to vector<32x128xf32>
    %87 = arith.mulf %85, %86 : vector<32x128xf32>
    %88 = vector.broadcast %69 : vector<1x128xf32> to vector<32x128xf32>
    %89 = arith.addf %87, %88 : vector<32x128xf32>
    %cst_55 = arith.constant 0.000000e+00 : f32
    %90 = vector.broadcast %cst_55 : f32 to vector<32x128xf32>
    %91 = arith.maximumf %89, %90 : vector<32x128xf32>
    %c5_56 = arith.constant 5 : index
    %c0_57 = arith.constant 0 : index
    %92 = vector.load %arg1[%c5_56, %c0_57] : memref<138x64xf32, #tpu.memory_space<vmem>>, vector<32x64xf32>
    %93 = arith.truncf %92 : vector<32x64xf32> to vector<32x64xbf16>
    %c0_58 = arith.constant 0 : index
    %c0_59 = arith.constant 0 : index
    %c0_60 = arith.constant 0 : index
    %94 = vector.load %arg10[%c0_58, %c0_59, %c0_60] : memref<1x64x128xbf16, #tpu.memory_space<vmem>>, vector<1x64x128xbf16>
    %95 = vector.shape_cast %94 : vector<1x64x128xbf16> to vector<64x128xbf16>
    %cst_61 = arith.constant dense<0.000000e+00> : vector<32x128xf32>
    %96 = tpu.matmul %93, %95, %cst_61 {dimension_numbers = #tpu.dot_dimension_numbers<[1], [0], [0], [1], [0, 0, 1, 1], [], []>} : vector<32x64xbf16>, vector<64x128xbf16>, vector<32x128xf32> -> vector<32x128xf32>
    %c0_62 = arith.constant 0 : index
    %c0_63 = arith.constant 0 : index
    %97 = vector.load %arg11[%c0_62, %c0_63] : memref<1x128xf32, #tpu.memory_space<vmem>>, vector<1x128xf32>
    %c0_64 = arith.constant 0 : index
    %c0_65 = arith.constant 0 : index
    %98 = vector.load %arg12[%c0_64, %c0_65] : memref<1x128xf32, #tpu.memory_space<vmem>>, vector<1x128xf32>
    %cst_66 = arith.constant dense<0.000000e+00> : vector<128xf32>
    %99 = vector.multi_reduction <add>, %96, %cst_66 [0] : vector<32x128xf32> to vector<128xf32>
    %100 = vector.shape_cast %99 : vector<128xf32> to vector<1x128xf32>
    %cst_67 = arith.constant 3.125000e-02 : f32
    %101 = vector.broadcast %cst_67 : f32 to vector<1x128xf32>
    %102 = arith.mulf %100, %101 : vector<1x128xf32>
    %103 = vector.broadcast %102 : vector<1x128xf32> to vector<32x128xf32>
    %104 = arith.subf %96, %103 : vector<32x128xf32>
    %105 = arith.mulf %104, %104 : vector<32x128xf32>
    %cst_68 = arith.constant dense<0.000000e+00> : vector<128xf32>
    %106 = vector.multi_reduction <add>, %105, %cst_68 [0] : vector<32x128xf32> to vector<128xf32>
    %107 = vector.shape_cast %106 : vector<128xf32> to vector<1x128xf32>
    %cst_69 = arith.constant 3.125000e-02 : f32
    %108 = vector.broadcast %cst_69 : f32 to vector<1x128xf32>
    %109 = arith.mulf %107, %108 : vector<1x128xf32>
    %cst_70 = arith.constant 9.99999974E-6 : f32
    %110 = vector.broadcast %cst_70 : f32 to vector<1x128xf32>
    %111 = arith.addf %109, %110 : vector<1x128xf32>
    %112 = math.rsqrt %111 : vector<1x128xf32>
    %113 = vector.broadcast %112 : vector<1x128xf32> to vector<32x128xf32>
    %114 = arith.mulf %104, %113 : vector<32x128xf32>
    %115 = vector.broadcast %97 : vector<1x128xf32> to vector<32x128xf32>
    %116 = arith.mulf %114, %115 : vector<32x128xf32>
    %117 = vector.broadcast %98 : vector<1x128xf32> to vector<32x128xf32>
    %118 = arith.addf %116, %117 : vector<32x128xf32>
    %cst_71 = arith.constant 0.000000e+00 : f32
    %119 = vector.broadcast %cst_71 : f32 to vector<5x128xf32>
    %c0_72 = arith.constant 0 : index
    %c0_73 = arith.constant 0 : index
    %120 = vector.load %arg14[%c0_72, %c0_73] : memref<42x128xf32, #tpu.memory_space<vmem>>, vector<5x128xf32>
    tpu.vector_store %arg14[%c0_72, %c0_73], %119 {strides = array<i32>} : memref<42x128xf32, #tpu.memory_space<vmem>>, vector<5x128xf32>,
    %c5_74 = arith.constant 5 : index
    %c0_75 = arith.constant 0 : index
    %121 = vector.load %arg14[%c5_74, %c0_75] : memref<42x128xf32, #tpu.memory_space<vmem>>, vector<32x128xf32>
    tpu.vector_store %arg14[%c5_74, %c0_75], %91 {strides = array<i32>} : memref<42x128xf32, #tpu.memory_space<vmem>>, vector<32x128xf32>,
    %c37_76 = arith.constant 37 : index
    %c0_77 = arith.constant 0 : index
    %122 = vector.load %arg14[%c37_76, %c0_77] : memref<42x128xf32, #tpu.memory_space<vmem>>, vector<5x128xf32>
    tpu.vector_store %arg14[%c37_76, %c0_77], %119 {strides = array<i32>} : memref<42x128xf32, #tpu.memory_space<vmem>>, vector<5x128xf32>,
    %c0_78 = arith.constant 0 : index
    %c0_79 = arith.constant 0 : index
    %123 = vector.load %arg14[%c0_78, %c0_79] : memref<42x128xf32, #tpu.memory_space<vmem>>, vector<32x128xf32>
    %c0_80 = arith.constant 0 : index
    %c0_81 = arith.constant 0 : index
    %124 = vector.load %arg9[%c0_80, %c0_81] : memref<32x8xf32, #tpu.memory_space<vmem>>, vector<32x1xf32>
    %125 = vector.broadcast %124 : vector<32x1xf32> to vector<32x128xf32>
    %126 = arith.mulf %123, %125 : vector<32x128xf32>
    %127 = arith.truncf %126 : vector<32x128xf32> to vector<32x128xbf16>
    %c0_82 = arith.constant 0 : index
    %c0_83 = arith.constant 0 : index
    %c0_84 = arith.constant 0 : index
    %128 = vector.load %arg6[%c0_82, %c0_83, %c0_84] : memref<9x128x128xbf16, #tpu.memory_space<vmem>>, vector<1x128x128xbf16>
    %129 = vector.shape_cast %128 : vector<1x128x128xbf16> to vector<128x128xbf16>
    %cst_85 = arith.constant dense<0.000000e+00> : vector<32x128xf32>
    %130 = tpu.matmul %127, %129, %cst_85 {dimension_numbers = #tpu.dot_dimension_numbers<[1], [0], [0], [1], [0, 0, 1, 1], [], []>} : vector<32x128xbf16>, vector<128x128xbf16>, vector<32x128xf32> -> vector<32x128xf32>
    %c1_86 = arith.constant 1 : index
    %c0_87 = arith.constant 0 : index
    %131 = vector.load %arg14[%c1_86, %c0_87] : memref<42x128xf32, #tpu.memory_space<vmem>>, vector<32x128xf32>
    %c0_88 = arith.constant 0 : index
    %c1_89 = arith.constant 1 : index
    %132 = vector.load %arg9[%c0_88, %c1_89] : memref<32x8xf32, #tpu.memory_space<vmem>>, vector<32x1xf32>
    %133 = vector.broadcast %132 : vector<32x1xf32> to vector<32x128xf32>
    %134 = arith.mulf %131, %133 : vector<32x128xf32>
    %135 = arith.truncf %134 : vector<32x128xf32> to vector<32x128xbf16>
    %c1_90 = arith.constant 1 : index
    %c0_91 = arith.constant 0 : index
    %c0_92 = arith.constant 0 : index
    %136 = vector.load %arg6[%c1_90, %c0_91, %c0_92] : memref<9x128x128xbf16, #tpu.memory_space<vmem>>, vector<1x128x128xbf16>
    %137 = vector.shape_cast %136 : vector<1x128x128xbf16> to vector<128x128xbf16>
    %cst_93 = arith.constant dense<0.000000e+00> : vector<32x128xf32>
    %138 = tpu.matmul %135, %137, %cst_93 {dimension_numbers = #tpu.dot_dimension_numbers<[1], [0], [0], [1], [0, 0, 1, 1], [], []>} : vector<32x128xbf16>, vector<128x128xbf16>, vector<32x128xf32> -> vector<32x128xf32>
    %139 = arith.addf %130, %138 : vector<32x128xf32>
    %c2_94 = arith.constant 2 : index
    %c0_95 = arith.constant 0 : index
    %140 = vector.load %arg14[%c2_94, %c0_95] : memref<42x128xf32, #tpu.memory_space<vmem>>, vector<32x128xf32>
    %c0_96 = arith.constant 0 : index
    %c2_97 = arith.constant 2 : index
    %141 = vector.load %arg9[%c0_96, %c2_97] : memref<32x8xf32, #tpu.memory_space<vmem>>, vector<32x1xf32>
    %142 = vector.broadcast %141 : vector<32x1xf32> to vector<32x128xf32>
    %143 = arith.mulf %140, %142 : vector<32x128xf32>
    %144 = arith.truncf %143 : vector<32x128xf32> to vector<32x128xbf16>
    %c2_98 = arith.constant 2 : index
    %c0_99 = arith.constant 0 : index
    %c0_100 = arith.constant 0 : index
    %145 = vector.load %arg6[%c2_98, %c0_99, %c0_100] : memref<9x128x128xbf16, #tpu.memory_space<vmem>>, vector<1x128x128xbf16>
    %146 = vector.shape_cast %145 : vector<1x128x128xbf16> to vector<128x128xbf16>
    %cst_101 = arith.constant dense<0.000000e+00> : vector<32x128xf32>
    %147 = tpu.matmul %144, %146, %cst_101 {dimension_numbers = #tpu.dot_dimension_numbers<[1], [0], [0], [1], [0, 0, 1, 1], [], []>} : vector<32x128xbf16>, vector<128x128xbf16>, vector<32x128xf32> -> vector<32x128xf32>
    %148 = arith.addf %139, %147 : vector<32x128xf32>
    %c4_102 = arith.constant 4 : index
    %c0_103 = arith.constant 0 : index
    %149 = vector.load %arg14[%c4_102, %c0_103] : memref<42x128xf32, #tpu.memory_space<vmem>>, vector<32x128xf32>
    %c0_104 = arith.constant 0 : index
    %c3_105 = arith.constant 3 : index
    %150 = vector.load %arg9[%c0_104, %c3_105] : memref<32x8xf32, #tpu.memory_space<vmem>>, vector<32x1xf32>
    %151 = vector.broadcast %150 : vector<32x1xf32> to vector<32x128xf32>
    %152 = arith.mulf %149, %151 : vector<32x128xf32>
    %153 = arith.truncf %152 : vector<32x128xf32> to vector<32x128xbf16>
    %c3_106 = arith.constant 3 : index
    %c0_107 = arith.constant 0 : index
    %c0_108 = arith.constant 0 : index
    %154 = vector.load %arg6[%c3_106, %c0_107, %c0_108] : memref<9x128x128xbf16, #tpu.memory_space<vmem>>, vector<1x128x128xbf16>
    %155 = vector.shape_cast %154 : vector<1x128x128xbf16> to vector<128x128xbf16>
    %cst_109 = arith.constant dense<0.000000e+00> : vector<32x128xf32>
    %156 = tpu.matmul %153, %155, %cst_109 {dimension_numbers = #tpu.dot_dimension_numbers<[1], [0], [0], [1], [0, 0, 1, 1], [], []>} : vector<32x128xbf16>, vector<128x128xbf16>, vector<32x128xf32> -> vector<32x128xf32>
    %157 = arith.addf %148, %156 : vector<32x128xf32>
    %c5_110 = arith.constant 5 : index
    %c0_111 = arith.constant 0 : index
    %158 = vector.load %arg14[%c5_110, %c0_111] : memref<42x128xf32, #tpu.memory_space<vmem>>, vector<32x128xf32>
    %159 = arith.truncf %158 : vector<32x128xf32> to vector<32x128xbf16>
    %c4_112 = arith.constant 4 : index
    %c0_113 = arith.constant 0 : index
    %c0_114 = arith.constant 0 : index
    %160 = vector.load %arg6[%c4_112, %c0_113, %c0_114] : memref<9x128x128xbf16, #tpu.memory_space<vmem>>, vector<1x128x128xbf16>
    %161 = vector.shape_cast %160 : vector<1x128x128xbf16> to vector<128x128xbf16>
    %cst_115 = arith.constant dense<0.000000e+00> : vector<32x128xf32>
    %162 = tpu.matmul %159, %161, %cst_115 {dimension_numbers = #tpu.dot_dimension_numbers<[1], [0], [0], [1], [0, 0, 1, 1], [], []>} : vector<32x128xbf16>, vector<128x128xbf16>, vector<32x128xf32> -> vector<32x128xf32>
    %163 = arith.addf %157, %162 : vector<32x128xf32>
    %c6_116 = arith.constant 6 : index
    %c0_117 = arith.constant 0 : index
    %164 = vector.load %arg14[%c6_116, %c0_117] : memref<42x128xf32, #tpu.memory_space<vmem>>, vector<32x128xf32>
    %c0_118 = arith.constant 0 : index
    %c4_119 = arith.constant 4 : index
    %165 = vector.load %arg9[%c0_118, %c4_119] : memref<32x8xf32, #tpu.memory_space<vmem>>, vector<32x1xf32>
    %166 = vector.broadcast %165 : vector<32x1xf32> to vector<32x128xf32>
    %167 = arith.mulf %164, %166 : vector<32x128xf32>
    %168 = arith.truncf %167 : vector<32x128xf32> to vector<32x128xbf16>
    %c5_120 = arith.constant 5 : index
    %c0_121 = arith.constant 0 : index
    %c0_122 = arith.constant 0 : index
    %169 = vector.load %arg6[%c5_120, %c0_121, %c0_122] : memref<9x128x128xbf16, #tpu.memory_space<vmem>>, vector<1x128x128xbf16>
    %170 = vector.shape_cast %169 : vector<1x128x128xbf16> to vector<128x128xbf16>
    %cst_123 = arith.constant dense<0.000000e+00> : vector<32x128xf32>
    %171 = tpu.matmul %168, %170, %cst_123 {dimension_numbers = #tpu.dot_dimension_numbers<[1], [0], [0], [1], [0, 0, 1, 1], [], []>} : vector<32x128xbf16>, vector<128x128xbf16>, vector<32x128xf32> -> vector<32x128xf32>
    %172 = arith.addf %163, %171 : vector<32x128xf32>
    %c8_124 = arith.constant 8 : index
    %c0_125 = arith.constant 0 : index
    %173 = vector.load %arg14[%c8_124, %c0_125] : memref<42x128xf32, #tpu.memory_space<vmem>>, vector<32x128xf32>
    %c0_126 = arith.constant 0 : index
    %c5_127 = arith.constant 5 : index
    %174 = vector.load %arg9[%c0_126, %c5_127] : memref<32x8xf32, #tpu.memory_space<vmem>>, vector<32x1xf32>
    %175 = vector.broadcast %174 : vector<32x1xf32> to vector<32x128xf32>
    %176 = arith.mulf %173, %175 : vector<32x128xf32>
    %177 = arith.truncf %176 : vector<32x128xf32> to vector<32x128xbf16>
    %c6_128 = arith.constant 6 : index
    %c0_129 = arith.constant 0 : index
    %c0_130 = arith.constant 0 : index
    %178 = vector.load %arg6[%c6_128, %c0_129, %c0_130] : memref<9x128x128xbf16, #tpu.memory_space<vmem>>, vector<1x128x128xbf16>
    %179 = vector.shape_cast %178 : vector<1x128x128xbf16> to vector<128x128xbf16>
    %cst_131 = arith.constant dense<0.000000e+00> : vector<32x128xf32>
    %180 = tpu.matmul %177, %179, %cst_131 {dimension_numbers = #tpu.dot_dimension_numbers<[1], [0], [0], [1], [0, 0, 1, 1], [], []>} : vector<32x128xbf16>, vector<128x128xbf16>, vector<32x128xf32> -> vector<32x128xf32>
    %181 = arith.addf %172, %180 : vector<32x128xf32>
    %c9 = arith.constant 9 : index
    %c0_132 = arith.constant 0 : index
    %182 = vector.load %arg14[%c9, %c0_132] : memref<42x128xf32, #tpu.memory_space<vmem>>, vector<32x128xf32>
    %c0_133 = arith.constant 0 : index
    %c6_134 = arith.constant 6 : index
    %183 = vector.load %arg9[%c0_133, %c6_134] : memref<32x8xf32, #tpu.memory_space<vmem>>, vector<32x1xf32>
    %184 = vector.broadcast %183 : vector<32x1xf32> to vector<32x128xf32>
    %185 = arith.mulf %182, %184 : vector<32x128xf32>
    %186 = arith.truncf %185 : vector<32x128xf32> to vector<32x128xbf16>
    %c7_135 = arith.constant 7 : index
    %c0_136 = arith.constant 0 : index
    %c0_137 = arith.constant 0 : index
    %187 = vector.load %arg6[%c7_135, %c0_136, %c0_137] : memref<9x128x128xbf16, #tpu.memory_space<vmem>>, vector<1x128x128xbf16>
    %188 = vector.shape_cast %187 : vector<1x128x128xbf16> to vector<128x128xbf16>
    %cst_138 = arith.constant dense<0.000000e+00> : vector<32x128xf32>
    %189 = tpu.matmul %186, %188, %cst_138 {dimension_numbers = #tpu.dot_dimension_numbers<[1], [0], [0], [1], [0, 0, 1, 1], [], []>} : vector<32x128xbf16>, vector<128x128xbf16>, vector<32x128xf32> -> vector<32x128xf32>
    %190 = arith.addf %181, %189 : vector<32x128xf32>
    %c10 = arith.constant 10 : index
    %c0_139 = arith.constant 0 : index
    %191 = vector.load %arg14[%c10, %c0_139] : memref<42x128xf32, #tpu.memory_space<vmem>>, vector<32x128xf32>
    %c0_140 = arith.constant 0 : index
    %c7_141 = arith.constant 7 : index
    %192 = vector.load %arg9[%c0_140, %c7_141] : memref<32x8xf32, #tpu.memory_space<vmem>>, vector<32x1xf32>
    %193 = vector.broadcast %192 : vector<32x1xf32> to vector<32x128xf32>
    %194 = arith.mulf %191, %193 : vector<32x128xf32>
    %195 = arith.truncf %194 : vector<32x128xf32> to vector<32x128xbf16>
    %c8_142 = arith.constant 8 : index
    %c0_143 = arith.constant 0 : index
    %c0_144 = arith.constant 0 : index
    %196 = vector.load %arg6[%c8_142, %c0_143, %c0_144] : memref<9x128x128xbf16, #tpu.memory_space<vmem>>, vector<1x128x128xbf16>
    %197 = vector.shape_cast %196 : vector<1x128x128xbf16> to vector<128x128xbf16>
    %cst_145 = arith.constant dense<0.000000e+00> : vector<32x128xf32>
    %198 = tpu.matmul %195, %197, %cst_145 {dimension_numbers = #tpu.dot_dimension_numbers<[1], [0], [0], [1], [0, 0, 1, 1], [], []>} : vector<32x128xbf16>, vector<128x128xbf16>, vector<32x128xf32> -> vector<32x128xf32>
    %199 = arith.addf %190, %198 : vector<32x128xf32>
    %c0_146 = arith.constant 0 : index
    %c0_147 = arith.constant 0 : index
    %200 = vector.load %arg7[%c0_146, %c0_147] : memref<1x128xf32, #tpu.memory_space<vmem>>, vector<1x128xf32>
    %c0_148 = arith.constant 0 : index
    %c0_149 = arith.constant 0 : index
    %201 = vector.load %arg8[%c0_148, %c0_149] : memref<1x128xf32, #tpu.memory_space<vmem>>, vector<1x128xf32>
    %cst_150 = arith.constant dense<0.000000e+00> : vector<128xf32>
    %202 = vector.multi_reduction <add>, %199, %cst_150 [0] : vector<32x128xf32> to vector<128xf32>
    %203 = vector.shape_cast %202 : vector<128xf32> to vector<1x128xf32>
    %cst_151 = arith.constant 3.125000e-02 : f32
    %204 = vector.broadcast %cst_151 : f32 to vector<1x128xf32>
    %205 = arith.mulf %203, %204 : vector<1x128xf32>
    %206 = vector.broadcast %205 : vector<1x128xf32> to vector<32x128xf32>
    %207 = arith.subf %199, %206 : vector<32x128xf32>
    %208 = arith.mulf %207, %207 : vector<32x128xf32>
    %cst_152 = arith.constant dense<0.000000e+00> : vector<128xf32>
    %209 = vector.multi_reduction <add>, %208, %cst_152 [0] : vector<32x128xf32> to vector<128xf32>
    %210 = vector.shape_cast %209 : vector<128xf32> to vector<1x128xf32>
    %cst_153 = arith.constant 3.125000e-02 : f32
    %211 = vector.broadcast %cst_153 : f32 to vector<1x128xf32>
    %212 = arith.mulf %210, %211 : vector<1x128xf32>
    %cst_154 = arith.constant 9.99999974E-6 : f32
    %213 = vector.broadcast %cst_154 : f32 to vector<1x128xf32>
    %214 = arith.addf %212, %213 : vector<1x128xf32>
    %215 = math.rsqrt %214 : vector<1x128xf32>
    %216 = vector.broadcast %215 : vector<1x128xf32> to vector<32x128xf32>
    %217 = arith.mulf %207, %216 : vector<32x128xf32>
    %218 = vector.broadcast %200 : vector<1x128xf32> to vector<32x128xf32>
    %219 = arith.mulf %217, %218 : vector<32x128xf32>
    %220 = vector.broadcast %201 : vector<1x128xf32> to vector<32x128xf32>
    %221 = arith.addf %219, %220 : vector<32x128xf32>
    %222 = arith.addf %221, %118 : vector<32x128xf32>
    %cst_155 = arith.constant 0.000000e+00 : f32
    %223 = vector.broadcast %cst_155 : f32 to vector<32x128xf32>
    %224 = arith.maximumf %222, %223 : vector<32x128xf32>
    %225 = arith.truncf %224 : vector<32x128xf32> to vector<32x128xbf16>
    %c0_156 = arith.constant 0 : index
    %c0_157 = arith.constant 0 : index
    %226 = vector.load %arg13[%c0_156, %c0_157] : memref<32x128xbf16, #tpu.memory_space<vmem>>, vector<32x128xbf16>
    tpu.vector_store %arg13[%c0_156, %c0_157], %225 {strides = array<i32>} : memref<32x128xbf16, #tpu.memory_space<vmem>>, vector<32x128xbf16>,
    return
  }
  func.func @transform_0(%arg0: i32) -> (i32, i32) {
    %c0_i32 = arith.constant 0 : i32
    %c0_i32_0 = arith.constant 0 : i32
    %c0_i32_1 = arith.constant 0 : i32
    return %c0_i32, %c0_i32_0 : i32, i32
  }
  func.func @transform_1(%arg0: i32) -> (i32, i32, i32) {
    %c0_i32 = arith.constant 0 : i32
    %c0_i32_0 = arith.constant 0 : i32
    %c0_i32_1 = arith.constant 0 : i32
    %c0_i32_2 = arith.constant 0 : i32
    return %c0_i32, %c0_i32_0, %c0_i32_1 : i32, i32, i32
  }
  func.func @transform_2(%arg0: i32) -> (i32, i32) {
    %c0_i32 = arith.constant 0 : i32
    %c0_i32_0 = arith.constant 0 : i32
    %c0_i32_1 = arith.constant 0 : i32
    return %c0_i32, %c0_i32_0 : i32, i32
  }
  func.func @transform_3(%arg0: i32) -> (i32, i32) {
    %c0_i32 = arith.constant 0 : i32
    %c0_i32_0 = arith.constant 0 : i32
    %c0_i32_1 = arith.constant 0 : i32
    return %c0_i32, %c0_i32_0 : i32, i32
  }
  func.func @transform_4(%arg0: i32) -> (i32, i32) {
    %c0_i32 = arith.constant 0 : i32
    %c0_i32_0 = arith.constant 0 : i32
    %c0_i32_1 = arith.constant 0 : i32
    return %c0_i32, %c0_i32_0 : i32, i32
  }
  func.func @transform_5(%arg0: i32) -> (i32, i32, i32) {
    %c0_i32 = arith.constant 0 : i32
    %c0_i32_0 = arith.constant 0 : i32
    %c0_i32_1 = arith.constant 0 : i32
    return %c0_i32, %c0_i32_0, %arg0 : i32, i32, i32
  }
  func.func @transform_6(%arg0: i32) -> (i32, i32) {
    %c0_i32 = arith.constant 0 : i32
    %c0_i32_0 = arith.constant 0 : i32
    return %c0_i32, %arg0 : i32, i32
  }
  func.func @transform_7(%arg0: i32) -> (i32, i32) {
    %c0_i32 = arith.constant 0 : i32
    %c0_i32_0 = arith.constant 0 : i32
    return %c0_i32, %arg0 : i32, i32
  }
  func.func @transform_8(%arg0: i32) -> (i32, i32) {
    %c0_i32 = arith.constant 0 : i32
    %c0_i32_0 = arith.constant 0 : i32
    %c0_i32_1 = arith.constant 0 : i32
    return %c0_i32, %c0_i32_0 : i32, i32
  }
  func.func @transform_9(%arg0: i32) -> (i32, i32, i32) {
    %c0_i32 = arith.constant 0 : i32
    %c0_i32_0 = arith.constant 0 : i32
    %c0_i32_1 = arith.constant 0 : i32
    return %c0_i32, %c0_i32_0, %arg0 : i32, i32, i32
  }
  func.func @transform_10(%arg0: i32) -> (i32, i32) {
    %c0_i32 = arith.constant 0 : i32
    %c0_i32_0 = arith.constant 0 : i32
    return %c0_i32, %arg0 : i32, i32
  }
  func.func @transform_11(%arg0: i32) -> (i32, i32) {
    %c0_i32 = arith.constant 0 : i32
    %c0_i32_0 = arith.constant 0 : i32
    return %c0_i32, %arg0 : i32, i32
  }
  func.func @transform_12(%arg0: i32) -> (i32, i32) {
    %c0_i32 = arith.constant 0 : i32
    %c0_i32_0 = arith.constant 0 : i32
    return %c0_i32, %arg0 : i32, i32
  }
}

module attributes {stable_mosaic.version = 11 : i64} {
  func.func @kernel(%arg0: i32, %arg1: memref<38x128xf32, #tpu.memory_space<vmem>>, %arg2: memref<9x128x256xbf16, #tpu.memory_space<vmem>>, %arg3: memref<1x256xf32, #tpu.memory_space<vmem>>, %arg4: memref<1x256xf32, #tpu.memory_space<vmem>>, %arg5: memref<8x5xf32, #tpu.memory_space<vmem>>, %arg6: memref<9x256x128xbf16, #tpu.memory_space<vmem>>, %arg7: memref<1x128xf32, #tpu.memory_space<vmem>>, %arg8: memref<1x128xf32, #tpu.memory_space<vmem>>, %arg9: memref<8x8xf32, #tpu.memory_space<vmem>>, %arg10: memref<1x128x128xbf16, #tpu.memory_space<vmem>>, %arg11: memref<1x128xf32, #tpu.memory_space<vmem>>, %arg12: memref<1x128xf32, #tpu.memory_space<vmem>>, %arg13: memref<8x128xbf16, #tpu.memory_space<vmem>>, %arg14: memref<14x256xf32, #tpu.memory_space<vmem>>) attributes {dimension_semantics = [#tpu.dimension_semantics<parallel>], iteration_bounds = array<i64: 2>, scalar_prefetch = 0 : i64, scratch_operands = 1 : i64, tpu.core_type = #tpu.core_type<tc>, window_params = [{pipeline_mode = #tpu.pipeline_mode<synchronous>, transform_indices = @transform_0, window_bounds = array<i64: 38, 128>}, {pipeline_mode = #tpu.pipeline_mode<synchronous>, transform_indices = @transform_1, window_bounds = array<i64: 9, 128, 256>}, {pipeline_mode = #tpu.pipeline_mode<synchronous>, transform_indices = @transform_2, window_bounds = array<i64: 1, 256>}, {pipeline_mode = #tpu.pipeline_mode<synchronous>, transform_indices = @transform_3, window_bounds = array<i64: 1, 256>}, {pipeline_mode = #tpu.pipeline_mode<synchronous>, transform_indices = @transform_4, window_bounds = array<i64: 8, 5>}, {transform_indices = @transform_5, window_bounds = array<i64: 9, 256, 128>}, {transform_indices = @transform_6, window_bounds = array<i64: 1, 128>}, {transform_indices = @transform_7, window_bounds = array<i64: 1, 128>}, {pipeline_mode = #tpu.pipeline_mode<synchronous>, transform_indices = @transform_8, window_bounds = array<i64: 8, 8>}, {transform_indices = @transform_9, window_bounds = array<i64: 1, 128, 128>}, {transform_indices = @transform_10, window_bounds = array<i64: 1, 128>}, {transform_indices = @transform_11, window_bounds = array<i64: 1, 128>}, {transform_indices = @transform_12, window_bounds = array<i64: 8, 128>}]} {
    %c24 = arith.constant 24 : index
    %c0 = arith.constant 0 : index
    %0 = vector.load %arg1[%c24, %c0] : memref<38x128xf32, #tpu.memory_space<vmem>>, vector<8x128xf32>
    %c0_0 = arith.constant 0 : index
    %c0_1 = arith.constant 0 : index
    %1 = vector.load %arg5[%c0_0, %c0_1] : memref<8x5xf32, #tpu.memory_space<vmem>>, vector<8x1xf32>
    %2 = vector.broadcast %1 : vector<8x1xf32> to vector<8x128xf32>
    %3 = arith.mulf %0, %2 : vector<8x128xf32>
    %4 = arith.truncf %3 : vector<8x128xf32> to vector<8x128xbf16>
    %c0_2 = arith.constant 0 : index
    %c0_3 = arith.constant 0 : index
    %c0_4 = arith.constant 0 : index
    %5 = vector.load %arg2[%c0_2, %c0_3, %c0_4] : memref<9x128x256xbf16, #tpu.memory_space<vmem>>, vector<1x128x256xbf16>
    %6 = vector.shape_cast %5 : vector<1x128x256xbf16> to vector<128x256xbf16>
    %cst = arith.constant dense<0.000000e+00> : vector<8x256xf32>
    %7 = tpu.matmul %4, %6, %cst {dimension_numbers = #tpu.dot_dimension_numbers<[1], [0], [0], [1], [0, 0, 1, 1], [], []>} : vector<8x128xbf16>, vector<128x256xbf16>, vector<8x256xf32> -> vector<8x256xf32>
    %c17 = arith.constant 17 : index
    %c0_5 = arith.constant 0 : index
    %8 = vector.load %arg1[%c17, %c0_5] : memref<38x128xf32, #tpu.memory_space<vmem>>, vector<8x128xf32>
    %c0_6 = arith.constant 0 : index
    %c1 = arith.constant 1 : index
    %9 = vector.load %arg5[%c0_6, %c1] : memref<8x5xf32, #tpu.memory_space<vmem>>, vector<8x1xf32>
    %10 = vector.broadcast %9 : vector<8x1xf32> to vector<8x128xf32>
    %11 = arith.mulf %8, %10 : vector<8x128xf32>
    %12 = arith.truncf %11 : vector<8x128xf32> to vector<8x128xbf16>
    %c1_7 = arith.constant 1 : index
    %c0_8 = arith.constant 0 : index
    %c0_9 = arith.constant 0 : index
    %13 = vector.load %arg2[%c1_7, %c0_8, %c0_9] : memref<9x128x256xbf16, #tpu.memory_space<vmem>>, vector<1x128x256xbf16>
    %14 = vector.shape_cast %13 : vector<1x128x256xbf16> to vector<128x256xbf16>
    %cst_10 = arith.constant dense<0.000000e+00> : vector<8x256xf32>
    %15 = tpu.matmul %12, %14, %cst_10 {dimension_numbers = #tpu.dot_dimension_numbers<[1], [0], [0], [1], [0, 0, 1, 1], [], []>} : vector<8x128xbf16>, vector<128x256xbf16>, vector<8x256xf32> -> vector<8x256xf32>
    %16 = arith.addf %7, %15 : vector<8x256xf32>
    %c25 = arith.constant 25 : index
    %c0_11 = arith.constant 0 : index
    %17 = vector.load %arg1[%c25, %c0_11] : memref<38x128xf32, #tpu.memory_space<vmem>>, vector<8x128xf32>
    %c0_12 = arith.constant 0 : index
    %c2 = arith.constant 2 : index
    %18 = vector.load %arg5[%c0_12, %c2] : memref<8x5xf32, #tpu.memory_space<vmem>>, vector<8x1xf32>
    %19 = vector.broadcast %18 : vector<8x1xf32> to vector<8x128xf32>
    %20 = arith.mulf %17, %19 : vector<8x128xf32>
    %21 = arith.truncf %20 : vector<8x128xf32> to vector<8x128xbf16>
    %c2_13 = arith.constant 2 : index
    %c0_14 = arith.constant 0 : index
    %c0_15 = arith.constant 0 : index
    %22 = vector.load %arg2[%c2_13, %c0_14, %c0_15] : memref<9x128x256xbf16, #tpu.memory_space<vmem>>, vector<1x128x256xbf16>
    %23 = vector.shape_cast %22 : vector<1x128x256xbf16> to vector<128x256xbf16>
    %cst_16 = arith.constant dense<0.000000e+00> : vector<8x256xf32>
    %24 = tpu.matmul %21, %23, %cst_16 {dimension_numbers = #tpu.dot_dimension_numbers<[1], [0], [0], [1], [0, 0, 1, 1], [], []>} : vector<8x128xbf16>, vector<128x256xbf16>, vector<8x256xf32> -> vector<8x256xf32>
    %25 = arith.addf %16, %24 : vector<8x256xf32>
    %c10 = arith.constant 10 : index
    %c0_17 = arith.constant 0 : index
    %26 = vector.load %arg1[%c10, %c0_17] : memref<38x128xf32, #tpu.memory_space<vmem>>, vector<8x128xf32>
    %c0_18 = arith.constant 0 : index
    %c3 = arith.constant 3 : index
    %27 = vector.load %arg5[%c0_18, %c3] : memref<8x5xf32, #tpu.memory_space<vmem>>, vector<8x1xf32>
    %28 = vector.broadcast %27 : vector<8x1xf32> to vector<8x128xf32>
    %29 = arith.mulf %26, %28 : vector<8x128xf32>
    %30 = arith.truncf %29 : vector<8x128xf32> to vector<8x128xbf16>
    %c3_19 = arith.constant 3 : index
    %c0_20 = arith.constant 0 : index
    %c0_21 = arith.constant 0 : index
    %31 = vector.load %arg2[%c3_19, %c0_20, %c0_21] : memref<9x128x256xbf16, #tpu.memory_space<vmem>>, vector<1x128x256xbf16>
    %32 = vector.shape_cast %31 : vector<1x128x256xbf16> to vector<128x256xbf16>
    %cst_22 = arith.constant dense<0.000000e+00> : vector<8x256xf32>
    %33 = tpu.matmul %30, %32, %cst_22 {dimension_numbers = #tpu.dot_dimension_numbers<[1], [0], [0], [1], [0, 0, 1, 1], [], []>} : vector<8x128xbf16>, vector<128x256xbf16>, vector<8x256xf32> -> vector<8x256xf32>
    %34 = arith.addf %25, %33 : vector<8x256xf32>
    %c3_23 = arith.constant 3 : index
    %c0_24 = arith.constant 0 : index
    %35 = vector.load %arg1[%c3_23, %c0_24] : memref<38x128xf32, #tpu.memory_space<vmem>>, vector<8x128xf32>
    %36 = arith.truncf %35 : vector<8x128xf32> to vector<8x128xbf16>
    %c4 = arith.constant 4 : index
    %c0_25 = arith.constant 0 : index
    %c0_26 = arith.constant 0 : index
    %37 = vector.load %arg2[%c4, %c0_25, %c0_26] : memref<9x128x256xbf16, #tpu.memory_space<vmem>>, vector<1x128x256xbf16>
    %38 = vector.shape_cast %37 : vector<1x128x256xbf16> to vector<128x256xbf16>
    %cst_27 = arith.constant dense<0.000000e+00> : vector<8x256xf32>
    %39 = tpu.matmul %36, %38, %cst_27 {dimension_numbers = #tpu.dot_dimension_numbers<[1], [0], [0], [1], [0, 0, 1, 1], [], []>} : vector<8x128xbf16>, vector<128x256xbf16>, vector<8x256xf32> -> vector<8x256xf32>
    %40 = arith.addf %34, %39 : vector<8x256xf32>
    %c11 = arith.constant 11 : index
    %c0_28 = arith.constant 0 : index
    %41 = vector.load %arg1[%c11, %c0_28] : memref<38x128xf32, #tpu.memory_space<vmem>>, vector<8x128xf32>
    %42 = arith.truncf %41 : vector<8x128xf32> to vector<8x128xbf16>
    %c5 = arith.constant 5 : index
    %c0_29 = arith.constant 0 : index
    %c0_30 = arith.constant 0 : index
    %43 = vector.load %arg2[%c5, %c0_29, %c0_30] : memref<9x128x256xbf16, #tpu.memory_space<vmem>>, vector<1x128x256xbf16>
    %44 = vector.shape_cast %43 : vector<1x128x256xbf16> to vector<128x256xbf16>
    %cst_31 = arith.constant dense<0.000000e+00> : vector<8x256xf32>
    %45 = tpu.matmul %42, %44, %cst_31 {dimension_numbers = #tpu.dot_dimension_numbers<[1], [0], [0], [1], [0, 0, 1, 1], [], []>} : vector<8x128xbf16>, vector<128x256xbf16>, vector<8x256xf32> -> vector<8x256xf32>
    %46 = arith.addf %40, %45 : vector<8x256xf32>
    %c26 = arith.constant 26 : index
    %c0_32 = arith.constant 0 : index
    %47 = vector.load %arg1[%c26, %c0_32] : memref<38x128xf32, #tpu.memory_space<vmem>>, vector<8x128xf32>
    %c0_33 = arith.constant 0 : index
    %c4_34 = arith.constant 4 : index
    %48 = vector.load %arg5[%c0_33, %c4_34] : memref<8x5xf32, #tpu.memory_space<vmem>>, vector<8x1xf32>
    %49 = vector.broadcast %48 : vector<8x1xf32> to vector<8x128xf32>
    %50 = arith.mulf %47, %49 : vector<8x128xf32>
    %51 = arith.truncf %50 : vector<8x128xf32> to vector<8x128xbf16>
    %c6 = arith.constant 6 : index
    %c0_35 = arith.constant 0 : index
    %c0_36 = arith.constant 0 : index
    %52 = vector.load %arg2[%c6, %c0_35, %c0_36] : memref<9x128x256xbf16, #tpu.memory_space<vmem>>, vector<1x128x256xbf16>
    %53 = vector.shape_cast %52 : vector<1x128x256xbf16> to vector<128x256xbf16>
    %cst_37 = arith.constant dense<0.000000e+00> : vector<8x256xf32>
    %54 = tpu.matmul %51, %53, %cst_37 {dimension_numbers = #tpu.dot_dimension_numbers<[1], [0], [0], [1], [0, 0, 1, 1], [], []>} : vector<8x128xbf16>, vector<128x256xbf16>, vector<8x256xf32> -> vector<8x256xf32>
    %55 = arith.addf %46, %54 : vector<8x256xf32>
    %c19 = arith.constant 19 : index
    %c0_38 = arith.constant 0 : index
    %56 = vector.load %arg1[%c19, %c0_38] : memref<38x128xf32, #tpu.memory_space<vmem>>, vector<8x128xf32>
    %57 = arith.truncf %56 : vector<8x128xf32> to vector<8x128xbf16>
    %c7 = arith.constant 7 : index
    %c0_39 = arith.constant 0 : index
    %c0_40 = arith.constant 0 : index
    %58 = vector.load %arg2[%c7, %c0_39, %c0_40] : memref<9x128x256xbf16, #tpu.memory_space<vmem>>, vector<1x128x256xbf16>
    %59 = vector.shape_cast %58 : vector<1x128x256xbf16> to vector<128x256xbf16>
    %cst_41 = arith.constant dense<0.000000e+00> : vector<8x256xf32>
    %60 = tpu.matmul %57, %59, %cst_41 {dimension_numbers = #tpu.dot_dimension_numbers<[1], [0], [0], [1], [0, 0, 1, 1], [], []>} : vector<8x128xbf16>, vector<128x256xbf16>, vector<8x256xf32> -> vector<8x256xf32>
    %61 = arith.addf %55, %60 : vector<8x256xf32>
    %c27 = arith.constant 27 : index
    %c0_42 = arith.constant 0 : index
    %62 = vector.load %arg1[%c27, %c0_42] : memref<38x128xf32, #tpu.memory_space<vmem>>, vector<8x128xf32>
    %63 = arith.truncf %62 : vector<8x128xf32> to vector<8x128xbf16>
    %c8 = arith.constant 8 : index
    %c0_43 = arith.constant 0 : index
    %c0_44 = arith.constant 0 : index
    %64 = vector.load %arg2[%c8, %c0_43, %c0_44] : memref<9x128x256xbf16, #tpu.memory_space<vmem>>, vector<1x128x256xbf16>
    %65 = vector.shape_cast %64 : vector<1x128x256xbf16> to vector<128x256xbf16>
    %cst_45 = arith.constant dense<0.000000e+00> : vector<8x256xf32>
    %66 = tpu.matmul %63, %65, %cst_45 {dimension_numbers = #tpu.dot_dimension_numbers<[1], [0], [0], [1], [0, 0, 1, 1], [], []>} : vector<8x128xbf16>, vector<128x256xbf16>, vector<8x256xf32> -> vector<8x256xf32>
    %67 = arith.addf %61, %66 : vector<8x256xf32>
    %c0_46 = arith.constant 0 : index
    %c0_47 = arith.constant 0 : index
    %68 = vector.load %arg3[%c0_46, %c0_47] : memref<1x256xf32, #tpu.memory_space<vmem>>, vector<1x256xf32>
    %c0_48 = arith.constant 0 : index
    %c0_49 = arith.constant 0 : index
    %69 = vector.load %arg4[%c0_48, %c0_49] : memref<1x256xf32, #tpu.memory_space<vmem>>, vector<1x256xf32>
    %cst_50 = arith.constant dense<0.000000e+00> : vector<256xf32>
    %70 = vector.multi_reduction <add>, %67, %cst_50 [0] : vector<8x256xf32> to vector<256xf32>
    %71 = vector.shape_cast %70 : vector<256xf32> to vector<1x256xf32>
    %cst_51 = arith.constant 1.250000e-01 : f32
    %72 = vector.broadcast %cst_51 : f32 to vector<1x256xf32>
    %73 = arith.mulf %71, %72 : vector<1x256xf32>
    %74 = vector.broadcast %73 : vector<1x256xf32> to vector<8x256xf32>
    %75 = arith.subf %67, %74 : vector<8x256xf32>
    %76 = arith.mulf %75, %75 : vector<8x256xf32>
    %cst_52 = arith.constant dense<0.000000e+00> : vector<256xf32>
    %77 = vector.multi_reduction <add>, %76, %cst_52 [0] : vector<8x256xf32> to vector<256xf32>
    %78 = vector.shape_cast %77 : vector<256xf32> to vector<1x256xf32>
    %cst_53 = arith.constant 1.250000e-01 : f32
    %79 = vector.broadcast %cst_53 : f32 to vector<1x256xf32>
    %80 = arith.mulf %78, %79 : vector<1x256xf32>
    %cst_54 = arith.constant 9.99999974E-6 : f32
    %81 = vector.broadcast %cst_54 : f32 to vector<1x256xf32>
    %82 = arith.addf %80, %81 : vector<1x256xf32>
    %83 = math.rsqrt %82 : vector<1x256xf32>
    %84 = vector.broadcast %83 : vector<1x256xf32> to vector<8x256xf32>
    %85 = arith.mulf %75, %84 : vector<8x256xf32>
    %86 = vector.broadcast %68 : vector<1x256xf32> to vector<8x256xf32>
    %87 = arith.mulf %85, %86 : vector<8x256xf32>
    %88 = vector.broadcast %69 : vector<1x256xf32> to vector<8x256xf32>
    %89 = arith.addf %87, %88 : vector<8x256xf32>
    %cst_55 = arith.constant 0.000000e+00 : f32
    %90 = vector.broadcast %cst_55 : f32 to vector<8x256xf32>
    %91 = arith.maximumf %89, %90 : vector<8x256xf32>
    %c3_56 = arith.constant 3 : index
    %c0_57 = arith.constant 0 : index
    %92 = vector.load %arg1[%c3_56, %c0_57] : memref<38x128xf32, #tpu.memory_space<vmem>>, vector<8x128xf32>
    %93 = arith.truncf %92 : vector<8x128xf32> to vector<8x128xbf16>
    %c0_58 = arith.constant 0 : index
    %c0_59 = arith.constant 0 : index
    %c0_60 = arith.constant 0 : index
    %94 = vector.load %arg10[%c0_58, %c0_59, %c0_60] : memref<1x128x128xbf16, #tpu.memory_space<vmem>>, vector<1x128x128xbf16>
    %95 = vector.shape_cast %94 : vector<1x128x128xbf16> to vector<128x128xbf16>
    %cst_61 = arith.constant dense<0.000000e+00> : vector<8x128xf32>
    %96 = tpu.matmul %93, %95, %cst_61 {dimension_numbers = #tpu.dot_dimension_numbers<[1], [0], [0], [1], [0, 0, 1, 1], [], []>} : vector<8x128xbf16>, vector<128x128xbf16>, vector<8x128xf32> -> vector<8x128xf32>
    %c0_62 = arith.constant 0 : index
    %c0_63 = arith.constant 0 : index
    %97 = vector.load %arg11[%c0_62, %c0_63] : memref<1x128xf32, #tpu.memory_space<vmem>>, vector<1x128xf32>
    %c0_64 = arith.constant 0 : index
    %c0_65 = arith.constant 0 : index
    %98 = vector.load %arg12[%c0_64, %c0_65] : memref<1x128xf32, #tpu.memory_space<vmem>>, vector<1x128xf32>
    %cst_66 = arith.constant dense<0.000000e+00> : vector<128xf32>
    %99 = vector.multi_reduction <add>, %96, %cst_66 [0] : vector<8x128xf32> to vector<128xf32>
    %100 = vector.shape_cast %99 : vector<128xf32> to vector<1x128xf32>
    %cst_67 = arith.constant 1.250000e-01 : f32
    %101 = vector.broadcast %cst_67 : f32 to vector<1x128xf32>
    %102 = arith.mulf %100, %101 : vector<1x128xf32>
    %103 = vector.broadcast %102 : vector<1x128xf32> to vector<8x128xf32>
    %104 = arith.subf %96, %103 : vector<8x128xf32>
    %105 = arith.mulf %104, %104 : vector<8x128xf32>
    %cst_68 = arith.constant dense<0.000000e+00> : vector<128xf32>
    %106 = vector.multi_reduction <add>, %105, %cst_68 [0] : vector<8x128xf32> to vector<128xf32>
    %107 = vector.shape_cast %106 : vector<128xf32> to vector<1x128xf32>
    %cst_69 = arith.constant 1.250000e-01 : f32
    %108 = vector.broadcast %cst_69 : f32 to vector<1x128xf32>
    %109 = arith.mulf %107, %108 : vector<1x128xf32>
    %cst_70 = arith.constant 9.99999974E-6 : f32
    %110 = vector.broadcast %cst_70 : f32 to vector<1x128xf32>
    %111 = arith.addf %109, %110 : vector<1x128xf32>
    %112 = math.rsqrt %111 : vector<1x128xf32>
    %113 = vector.broadcast %112 : vector<1x128xf32> to vector<8x128xf32>
    %114 = arith.mulf %104, %113 : vector<8x128xf32>
    %115 = vector.broadcast %97 : vector<1x128xf32> to vector<8x128xf32>
    %116 = arith.mulf %114, %115 : vector<8x128xf32>
    %117 = vector.broadcast %98 : vector<1x128xf32> to vector<8x128xf32>
    %118 = arith.addf %116, %117 : vector<8x128xf32>
    %cst_71 = arith.constant 0.000000e+00 : f32
    %119 = vector.broadcast %cst_71 : f32 to vector<3x256xf32>
    %c0_72 = arith.constant 0 : index
    %c0_73 = arith.constant 0 : index
    %120 = vector.load %arg14[%c0_72, %c0_73] : memref<14x256xf32, #tpu.memory_space<vmem>>, vector<3x256xf32>
    tpu.vector_store %arg14[%c0_72, %c0_73], %119 {strides = array<i32>} : memref<14x256xf32, #tpu.memory_space<vmem>>, vector<3x256xf32>,
    %c3_74 = arith.constant 3 : index
    %c0_75 = arith.constant 0 : index
    %121 = vector.load %arg14[%c3_74, %c0_75] : memref<14x256xf32, #tpu.memory_space<vmem>>, vector<8x256xf32>
    tpu.vector_store %arg14[%c3_74, %c0_75], %91 {strides = array<i32>} : memref<14x256xf32, #tpu.memory_space<vmem>>, vector<8x256xf32>,
    %c11_76 = arith.constant 11 : index
    %c0_77 = arith.constant 0 : index
    %122 = vector.load %arg14[%c11_76, %c0_77] : memref<14x256xf32, #tpu.memory_space<vmem>>, vector<3x256xf32>
    tpu.vector_store %arg14[%c11_76, %c0_77], %119 {strides = array<i32>} : memref<14x256xf32, #tpu.memory_space<vmem>>, vector<3x256xf32>,
    %c0_78 = arith.constant 0 : index
    %c0_79 = arith.constant 0 : index
    %123 = vector.load %arg14[%c0_78, %c0_79] : memref<14x256xf32, #tpu.memory_space<vmem>>, vector<8x256xf32>
    %c0_80 = arith.constant 0 : index
    %c0_81 = arith.constant 0 : index
    %124 = vector.load %arg9[%c0_80, %c0_81] : memref<8x8xf32, #tpu.memory_space<vmem>>, vector<8x1xf32>
    %125 = vector.broadcast %124 : vector<8x1xf32> to vector<8x256xf32>
    %126 = arith.mulf %123, %125 : vector<8x256xf32>
    %127 = arith.truncf %126 : vector<8x256xf32> to vector<8x256xbf16>
    %c0_82 = arith.constant 0 : index
    %c0_83 = arith.constant 0 : index
    %c0_84 = arith.constant 0 : index
    %128 = vector.load %arg6[%c0_82, %c0_83, %c0_84] : memref<9x256x128xbf16, #tpu.memory_space<vmem>>, vector<1x256x128xbf16>
    %129 = vector.shape_cast %128 : vector<1x256x128xbf16> to vector<256x128xbf16>
    %cst_85 = arith.constant dense<0.000000e+00> : vector<8x128xf32>
    %130 = tpu.matmul %127, %129, %cst_85 {dimension_numbers = #tpu.dot_dimension_numbers<[1], [0], [0], [1], [0, 0, 1, 1], [], []>} : vector<8x256xbf16>, vector<256x128xbf16>, vector<8x128xf32> -> vector<8x128xf32>
    %c1_86 = arith.constant 1 : index
    %c0_87 = arith.constant 0 : index
    %131 = vector.load %arg14[%c1_86, %c0_87] : memref<14x256xf32, #tpu.memory_space<vmem>>, vector<8x256xf32>
    %c0_88 = arith.constant 0 : index
    %c1_89 = arith.constant 1 : index
    %132 = vector.load %arg9[%c0_88, %c1_89] : memref<8x8xf32, #tpu.memory_space<vmem>>, vector<8x1xf32>
    %133 = vector.broadcast %132 : vector<8x1xf32> to vector<8x256xf32>
    %134 = arith.mulf %131, %133 : vector<8x256xf32>
    %135 = arith.truncf %134 : vector<8x256xf32> to vector<8x256xbf16>
    %c1_90 = arith.constant 1 : index
    %c0_91 = arith.constant 0 : index
    %c0_92 = arith.constant 0 : index
    %136 = vector.load %arg6[%c1_90, %c0_91, %c0_92] : memref<9x256x128xbf16, #tpu.memory_space<vmem>>, vector<1x256x128xbf16>
    %137 = vector.shape_cast %136 : vector<1x256x128xbf16> to vector<256x128xbf16>
    %cst_93 = arith.constant dense<0.000000e+00> : vector<8x128xf32>
    %138 = tpu.matmul %135, %137, %cst_93 {dimension_numbers = #tpu.dot_dimension_numbers<[1], [0], [0], [1], [0, 0, 1, 1], [], []>} : vector<8x256xbf16>, vector<256x128xbf16>, vector<8x128xf32> -> vector<8x128xf32>
    %139 = arith.addf %130, %138 : vector<8x128xf32>
    %c2_94 = arith.constant 2 : index
    %c0_95 = arith.constant 0 : index
    %140 = vector.load %arg14[%c2_94, %c0_95] : memref<14x256xf32, #tpu.memory_space<vmem>>, vector<8x256xf32>
    %c0_96 = arith.constant 0 : index
    %c2_97 = arith.constant 2 : index
    %141 = vector.load %arg9[%c0_96, %c2_97] : memref<8x8xf32, #tpu.memory_space<vmem>>, vector<8x1xf32>
    %142 = vector.broadcast %141 : vector<8x1xf32> to vector<8x256xf32>
    %143 = arith.mulf %140, %142 : vector<8x256xf32>
    %144 = arith.truncf %143 : vector<8x256xf32> to vector<8x256xbf16>
    %c2_98 = arith.constant 2 : index
    %c0_99 = arith.constant 0 : index
    %c0_100 = arith.constant 0 : index
    %145 = vector.load %arg6[%c2_98, %c0_99, %c0_100] : memref<9x256x128xbf16, #tpu.memory_space<vmem>>, vector<1x256x128xbf16>
    %146 = vector.shape_cast %145 : vector<1x256x128xbf16> to vector<256x128xbf16>
    %cst_101 = arith.constant dense<0.000000e+00> : vector<8x128xf32>
    %147 = tpu.matmul %144, %146, %cst_101 {dimension_numbers = #tpu.dot_dimension_numbers<[1], [0], [0], [1], [0, 0, 1, 1], [], []>} : vector<8x256xbf16>, vector<256x128xbf16>, vector<8x128xf32> -> vector<8x128xf32>
    %148 = arith.addf %139, %147 : vector<8x128xf32>
    %c2_102 = arith.constant 2 : index
    %c0_103 = arith.constant 0 : index
    %149 = vector.load %arg14[%c2_102, %c0_103] : memref<14x256xf32, #tpu.memory_space<vmem>>, vector<8x256xf32>
    %c0_104 = arith.constant 0 : index
    %c3_105 = arith.constant 3 : index
    %150 = vector.load %arg9[%c0_104, %c3_105] : memref<8x8xf32, #tpu.memory_space<vmem>>, vector<8x1xf32>
    %151 = vector.broadcast %150 : vector<8x1xf32> to vector<8x256xf32>
    %152 = arith.mulf %149, %151 : vector<8x256xf32>
    %153 = arith.truncf %152 : vector<8x256xf32> to vector<8x256xbf16>
    %c3_106 = arith.constant 3 : index
    %c0_107 = arith.constant 0 : index
    %c0_108 = arith.constant 0 : index
    %154 = vector.load %arg6[%c3_106, %c0_107, %c0_108] : memref<9x256x128xbf16, #tpu.memory_space<vmem>>, vector<1x256x128xbf16>
    %155 = vector.shape_cast %154 : vector<1x256x128xbf16> to vector<256x128xbf16>
    %cst_109 = arith.constant dense<0.000000e+00> : vector<8x128xf32>
    %156 = tpu.matmul %153, %155, %cst_109 {dimension_numbers = #tpu.dot_dimension_numbers<[1], [0], [0], [1], [0, 0, 1, 1], [], []>} : vector<8x256xbf16>, vector<256x128xbf16>, vector<8x128xf32> -> vector<8x128xf32>
    %157 = arith.addf %148, %156 : vector<8x128xf32>
    %c3_110 = arith.constant 3 : index
    %c0_111 = arith.constant 0 : index
    %158 = vector.load %arg14[%c3_110, %c0_111] : memref<14x256xf32, #tpu.memory_space<vmem>>, vector<8x256xf32>
    %159 = arith.truncf %158 : vector<8x256xf32> to vector<8x256xbf16>
    %c4_112 = arith.constant 4 : index
    %c0_113 = arith.constant 0 : index
    %c0_114 = arith.constant 0 : index
    %160 = vector.load %arg6[%c4_112, %c0_113, %c0_114] : memref<9x256x128xbf16, #tpu.memory_space<vmem>>, vector<1x256x128xbf16>
    %161 = vector.shape_cast %160 : vector<1x256x128xbf16> to vector<256x128xbf16>
    %cst_115 = arith.constant dense<0.000000e+00> : vector<8x128xf32>
    %162 = tpu.matmul %159, %161, %cst_115 {dimension_numbers = #tpu.dot_dimension_numbers<[1], [0], [0], [1], [0, 0, 1, 1], [], []>} : vector<8x256xbf16>, vector<256x128xbf16>, vector<8x128xf32> -> vector<8x128xf32>
    %163 = arith.addf %157, %162 : vector<8x128xf32>
    %c4_116 = arith.constant 4 : index
    %c0_117 = arith.constant 0 : index
    %164 = vector.load %arg14[%c4_116, %c0_117] : memref<14x256xf32, #tpu.memory_space<vmem>>, vector<8x256xf32>
    %c0_118 = arith.constant 0 : index
    %c4_119 = arith.constant 4 : index
    %165 = vector.load %arg9[%c0_118, %c4_119] : memref<8x8xf32, #tpu.memory_space<vmem>>, vector<8x1xf32>
    %166 = vector.broadcast %165 : vector<8x1xf32> to vector<8x256xf32>
    %167 = arith.mulf %164, %166 : vector<8x256xf32>
    %168 = arith.truncf %167 : vector<8x256xf32> to vector<8x256xbf16>
    %c5_120 = arith.constant 5 : index
    %c0_121 = arith.constant 0 : index
    %c0_122 = arith.constant 0 : index
    %169 = vector.load %arg6[%c5_120, %c0_121, %c0_122] : memref<9x256x128xbf16, #tpu.memory_space<vmem>>, vector<1x256x128xbf16>
    %170 = vector.shape_cast %169 : vector<1x256x128xbf16> to vector<256x128xbf16>
    %cst_123 = arith.constant dense<0.000000e+00> : vector<8x128xf32>
    %171 = tpu.matmul %168, %170, %cst_123 {dimension_numbers = #tpu.dot_dimension_numbers<[1], [0], [0], [1], [0, 0, 1, 1], [], []>} : vector<8x256xbf16>, vector<256x128xbf16>, vector<8x128xf32> -> vector<8x128xf32>
    %172 = arith.addf %163, %171 : vector<8x128xf32>
    %c4_124 = arith.constant 4 : index
    %c0_125 = arith.constant 0 : index
    %173 = vector.load %arg14[%c4_124, %c0_125] : memref<14x256xf32, #tpu.memory_space<vmem>>, vector<8x256xf32>
    %c0_126 = arith.constant 0 : index
    %c5_127 = arith.constant 5 : index
    %174 = vector.load %arg9[%c0_126, %c5_127] : memref<8x8xf32, #tpu.memory_space<vmem>>, vector<8x1xf32>
    %175 = vector.broadcast %174 : vector<8x1xf32> to vector<8x256xf32>
    %176 = arith.mulf %173, %175 : vector<8x256xf32>
    %177 = arith.truncf %176 : vector<8x256xf32> to vector<8x256xbf16>
    %c6_128 = arith.constant 6 : index
    %c0_129 = arith.constant 0 : index
    %c0_130 = arith.constant 0 : index
    %178 = vector.load %arg6[%c6_128, %c0_129, %c0_130] : memref<9x256x128xbf16, #tpu.memory_space<vmem>>, vector<1x256x128xbf16>
    %179 = vector.shape_cast %178 : vector<1x256x128xbf16> to vector<256x128xbf16>
    %cst_131 = arith.constant dense<0.000000e+00> : vector<8x128xf32>
    %180 = tpu.matmul %177, %179, %cst_131 {dimension_numbers = #tpu.dot_dimension_numbers<[1], [0], [0], [1], [0, 0, 1, 1], [], []>} : vector<8x256xbf16>, vector<256x128xbf16>, vector<8x128xf32> -> vector<8x128xf32>
    %181 = arith.addf %172, %180 : vector<8x128xf32>
    %c5_132 = arith.constant 5 : index
    %c0_133 = arith.constant 0 : index
    %182 = vector.load %arg14[%c5_132, %c0_133] : memref<14x256xf32, #tpu.memory_space<vmem>>, vector<8x256xf32>
    %c0_134 = arith.constant 0 : index
    %c6_135 = arith.constant 6 : index
    %183 = vector.load %arg9[%c0_134, %c6_135] : memref<8x8xf32, #tpu.memory_space<vmem>>, vector<8x1xf32>
    %184 = vector.broadcast %183 : vector<8x1xf32> to vector<8x256xf32>
    %185 = arith.mulf %182, %184 : vector<8x256xf32>
    %186 = arith.truncf %185 : vector<8x256xf32> to vector<8x256xbf16>
    %c7_136 = arith.constant 7 : index
    %c0_137 = arith.constant 0 : index
    %c0_138 = arith.constant 0 : index
    %187 = vector.load %arg6[%c7_136, %c0_137, %c0_138] : memref<9x256x128xbf16, #tpu.memory_space<vmem>>, vector<1x256x128xbf16>
    %188 = vector.shape_cast %187 : vector<1x256x128xbf16> to vector<256x128xbf16>
    %cst_139 = arith.constant dense<0.000000e+00> : vector<8x128xf32>
    %189 = tpu.matmul %186, %188, %cst_139 {dimension_numbers = #tpu.dot_dimension_numbers<[1], [0], [0], [1], [0, 0, 1, 1], [], []>} : vector<8x256xbf16>, vector<256x128xbf16>, vector<8x128xf32> -> vector<8x128xf32>
    %190 = arith.addf %181, %189 : vector<8x128xf32>
    %c6_140 = arith.constant 6 : index
    %c0_141 = arith.constant 0 : index
    %191 = vector.load %arg14[%c6_140, %c0_141] : memref<14x256xf32, #tpu.memory_space<vmem>>, vector<8x256xf32>
    %c0_142 = arith.constant 0 : index
    %c7_143 = arith.constant 7 : index
    %192 = vector.load %arg9[%c0_142, %c7_143] : memref<8x8xf32, #tpu.memory_space<vmem>>, vector<8x1xf32>
    %193 = vector.broadcast %192 : vector<8x1xf32> to vector<8x256xf32>
    %194 = arith.mulf %191, %193 : vector<8x256xf32>
    %195 = arith.truncf %194 : vector<8x256xf32> to vector<8x256xbf16>
    %c8_144 = arith.constant 8 : index
    %c0_145 = arith.constant 0 : index
    %c0_146 = arith.constant 0 : index
    %196 = vector.load %arg6[%c8_144, %c0_145, %c0_146] : memref<9x256x128xbf16, #tpu.memory_space<vmem>>, vector<1x256x128xbf16>
    %197 = vector.shape_cast %196 : vector<1x256x128xbf16> to vector<256x128xbf16>
    %cst_147 = arith.constant dense<0.000000e+00> : vector<8x128xf32>
    %198 = tpu.matmul %195, %197, %cst_147 {dimension_numbers = #tpu.dot_dimension_numbers<[1], [0], [0], [1], [0, 0, 1, 1], [], []>} : vector<8x256xbf16>, vector<256x128xbf16>, vector<8x128xf32> -> vector<8x128xf32>
    %199 = arith.addf %190, %198 : vector<8x128xf32>
    %c0_148 = arith.constant 0 : index
    %c0_149 = arith.constant 0 : index
    %200 = vector.load %arg7[%c0_148, %c0_149] : memref<1x128xf32, #tpu.memory_space<vmem>>, vector<1x128xf32>
    %c0_150 = arith.constant 0 : index
    %c0_151 = arith.constant 0 : index
    %201 = vector.load %arg8[%c0_150, %c0_151] : memref<1x128xf32, #tpu.memory_space<vmem>>, vector<1x128xf32>
    %cst_152 = arith.constant dense<0.000000e+00> : vector<128xf32>
    %202 = vector.multi_reduction <add>, %199, %cst_152 [0] : vector<8x128xf32> to vector<128xf32>
    %203 = vector.shape_cast %202 : vector<128xf32> to vector<1x128xf32>
    %cst_153 = arith.constant 1.250000e-01 : f32
    %204 = vector.broadcast %cst_153 : f32 to vector<1x128xf32>
    %205 = arith.mulf %203, %204 : vector<1x128xf32>
    %206 = vector.broadcast %205 : vector<1x128xf32> to vector<8x128xf32>
    %207 = arith.subf %199, %206 : vector<8x128xf32>
    %208 = arith.mulf %207, %207 : vector<8x128xf32>
    %cst_154 = arith.constant dense<0.000000e+00> : vector<128xf32>
    %209 = vector.multi_reduction <add>, %208, %cst_154 [0] : vector<8x128xf32> to vector<128xf32>
    %210 = vector.shape_cast %209 : vector<128xf32> to vector<1x128xf32>
    %cst_155 = arith.constant 1.250000e-01 : f32
    %211 = vector.broadcast %cst_155 : f32 to vector<1x128xf32>
    %212 = arith.mulf %210, %211 : vector<1x128xf32>
    %cst_156 = arith.constant 9.99999974E-6 : f32
    %213 = vector.broadcast %cst_156 : f32 to vector<1x128xf32>
    %214 = arith.addf %212, %213 : vector<1x128xf32>
    %215 = math.rsqrt %214 : vector<1x128xf32>
    %216 = vector.broadcast %215 : vector<1x128xf32> to vector<8x128xf32>
    %217 = arith.mulf %207, %216 : vector<8x128xf32>
    %218 = vector.broadcast %200 : vector<1x128xf32> to vector<8x128xf32>
    %219 = arith.mulf %217, %218 : vector<8x128xf32>
    %220 = vector.broadcast %201 : vector<1x128xf32> to vector<8x128xf32>
    %221 = arith.addf %219, %220 : vector<8x128xf32>
    %222 = arith.addf %221, %118 : vector<8x128xf32>
    %cst_157 = arith.constant 0.000000e+00 : f32
    %223 = vector.broadcast %cst_157 : f32 to vector<8x128xf32>
    %224 = arith.maximumf %222, %223 : vector<8x128xf32>
    %225 = arith.truncf %224 : vector<8x128xf32> to vector<8x128xbf16>
    %c0_158 = arith.constant 0 : index
    %c0_159 = arith.constant 0 : index
    %226 = vector.load %arg13[%c0_158, %c0_159] : memref<8x128xbf16, #tpu.memory_space<vmem>>, vector<8x128xbf16>
    tpu.vector_store %arg13[%c0_158, %c0_159], %225 {strides = array<i32>} : memref<8x128xbf16, #tpu.memory_space<vmem>>, vector<8x128xbf16>,
    return
  }
  func.func @transform_0(%arg0: i32) -> (i32, i32) {
    %c0_i32 = arith.constant 0 : i32
    %c0_i32_0 = arith.constant 0 : i32
    %c0_i32_1 = arith.constant 0 : i32
    return %c0_i32, %c0_i32_0 : i32, i32
  }
  func.func @transform_1(%arg0: i32) -> (i32, i32, i32) {
    %c0_i32 = arith.constant 0 : i32
    %c0_i32_0 = arith.constant 0 : i32
    %c0_i32_1 = arith.constant 0 : i32
    %c0_i32_2 = arith.constant 0 : i32
    return %c0_i32, %c0_i32_0, %c0_i32_1 : i32, i32, i32
  }
  func.func @transform_2(%arg0: i32) -> (i32, i32) {
    %c0_i32 = arith.constant 0 : i32
    %c0_i32_0 = arith.constant 0 : i32
    %c0_i32_1 = arith.constant 0 : i32
    return %c0_i32, %c0_i32_0 : i32, i32
  }
  func.func @transform_3(%arg0: i32) -> (i32, i32) {
    %c0_i32 = arith.constant 0 : i32
    %c0_i32_0 = arith.constant 0 : i32
    %c0_i32_1 = arith.constant 0 : i32
    return %c0_i32, %c0_i32_0 : i32, i32
  }
  func.func @transform_4(%arg0: i32) -> (i32, i32) {
    %c0_i32 = arith.constant 0 : i32
    %c0_i32_0 = arith.constant 0 : i32
    %c0_i32_1 = arith.constant 0 : i32
    return %c0_i32, %c0_i32_0 : i32, i32
  }
  func.func @transform_5(%arg0: i32) -> (i32, i32, i32) {
    %c0_i32 = arith.constant 0 : i32
    %c0_i32_0 = arith.constant 0 : i32
    %c0_i32_1 = arith.constant 0 : i32
    return %c0_i32, %c0_i32_0, %arg0 : i32, i32, i32
  }
  func.func @transform_6(%arg0: i32) -> (i32, i32) {
    %c0_i32 = arith.constant 0 : i32
    %c0_i32_0 = arith.constant 0 : i32
    return %c0_i32, %arg0 : i32, i32
  }
  func.func @transform_7(%arg0: i32) -> (i32, i32) {
    %c0_i32 = arith.constant 0 : i32
    %c0_i32_0 = arith.constant 0 : i32
    return %c0_i32, %arg0 : i32, i32
  }
  func.func @transform_8(%arg0: i32) -> (i32, i32) {
    %c0_i32 = arith.constant 0 : i32
    %c0_i32_0 = arith.constant 0 : i32
    %c0_i32_1 = arith.constant 0 : i32
    return %c0_i32, %c0_i32_0 : i32, i32
  }
  func.func @transform_9(%arg0: i32) -> (i32, i32, i32) {
    %c0_i32 = arith.constant 0 : i32
    %c0_i32_0 = arith.constant 0 : i32
    %c0_i32_1 = arith.constant 0 : i32
    return %c0_i32, %c0_i32_0, %arg0 : i32, i32, i32
  }
  func.func @transform_10(%arg0: i32) -> (i32, i32) {
    %c0_i32 = arith.constant 0 : i32
    %c0_i32_0 = arith.constant 0 : i32
    return %c0_i32, %arg0 : i32, i32
  }
  func.func @transform_11(%arg0: i32) -> (i32, i32) {
    %c0_i32 = arith.constant 0 : i32
    %c0_i32_0 = arith.constant 0 : i32
    return %c0_i32, %arg0 : i32, i32
  }
  func.func @transform_12(%arg0: i32) -> (i32, i32) {
    %c0_i32 = arith.constant 0 : i32
    %c0_i32_0 = arith.constant 0 : i32
    return %c0_i32, %arg0 : i32, i32
  }
}

module attributes {stable_mosaic.version = 11 : i64} {
  func.func @kernel(%arg0: i32, %arg1: memref<12x256xf32, #tpu.memory_space<vmem>>, %arg2: memref<4x256x512xbf16, #tpu.memory_space<vmem>>, %arg3: memref<1x512xf32, #tpu.memory_space<vmem>>, %arg4: memref<1x512xf32, #tpu.memory_space<vmem>>, %arg5: memref<1x512x128xbf16, #tpu.memory_space<vmem>>, %arg6: memref<1x128xf32, #tpu.memory_space<vmem>>, %arg7: memref<1x128xf32, #tpu.memory_space<vmem>>, %arg8: memref<1x256x128xbf16, #tpu.memory_space<vmem>>, %arg9: memref<1x128xf32, #tpu.memory_space<vmem>>, %arg10: memref<1x128xf32, #tpu.memory_space<vmem>>, %arg11: memref<2x128xbf16, #tpu.memory_space<vmem>>) attributes {dimension_semantics = [#tpu.dimension_semantics<parallel>], iteration_bounds = array<i64: 4>, scalar_prefetch = 0 : i64, scratch_operands = 0 : i64, tpu.core_type = #tpu.core_type<tc>, window_params = [{pipeline_mode = #tpu.pipeline_mode<synchronous>, transform_indices = @transform_0, window_bounds = array<i64: 12, 256>}, {pipeline_mode = #tpu.pipeline_mode<synchronous>, transform_indices = @transform_1, window_bounds = array<i64: 4, 256, 512>}, {pipeline_mode = #tpu.pipeline_mode<synchronous>, transform_indices = @transform_2, window_bounds = array<i64: 1, 512>}, {pipeline_mode = #tpu.pipeline_mode<synchronous>, transform_indices = @transform_3, window_bounds = array<i64: 1, 512>}, {transform_indices = @transform_4, window_bounds = array<i64: 1, 512, 128>}, {transform_indices = @transform_5, window_bounds = array<i64: 1, 128>}, {transform_indices = @transform_6, window_bounds = array<i64: 1, 128>}, {transform_indices = @transform_7, window_bounds = array<i64: 1, 256, 128>}, {transform_indices = @transform_8, window_bounds = array<i64: 1, 128>}, {transform_indices = @transform_9, window_bounds = array<i64: 1, 128>}, {transform_indices = @transform_10, window_bounds = array<i64: 2, 128>}]} {
    %c2 = arith.constant 2 : index
    %c0 = arith.constant 0 : index
    %0 = vector.load %arg1[%c2, %c0] : memref<12x256xf32, #tpu.memory_space<vmem>>, vector<2x256xf32>
    %1 = arith.truncf %0 : vector<2x256xf32> to vector<2x256xbf16>
    %c0_0 = arith.constant 0 : index
    %c0_1 = arith.constant 0 : index
    %c0_2 = arith.constant 0 : index
    %2 = vector.load %arg2[%c0_0, %c0_1, %c0_2] : memref<4x256x512xbf16, #tpu.memory_space<vmem>>, vector<1x256x512xbf16>
    %3 = vector.shape_cast %2 : vector<1x256x512xbf16> to vector<256x512xbf16>
    %cst = arith.constant dense<0.000000e+00> : vector<2x512xf32>
    %4 = tpu.matmul %1, %3, %cst {dimension_numbers = #tpu.dot_dimension_numbers<[1], [0], [0], [1], [0, 0, 1, 1], [], []>} : vector<2x256xbf16>, vector<256x512xbf16>, vector<2x512xf32> -> vector<2x512xf32>
    %c4 = arith.constant 4 : index
    %c0_3 = arith.constant 0 : index
    %5 = vector.load %arg1[%c4, %c0_3] : memref<12x256xf32, #tpu.memory_space<vmem>>, vector<2x256xf32>
    %6 = arith.truncf %5 : vector<2x256xf32> to vector<2x256xbf16>
    %c1 = arith.constant 1 : index
    %c0_4 = arith.constant 0 : index
    %c0_5 = arith.constant 0 : index
    %7 = vector.load %arg2[%c1, %c0_4, %c0_5] : memref<4x256x512xbf16, #tpu.memory_space<vmem>>, vector<1x256x512xbf16>
    %8 = vector.shape_cast %7 : vector<1x256x512xbf16> to vector<256x512xbf16>
    %cst_6 = arith.constant dense<0.000000e+00> : vector<2x512xf32>
    %9 = tpu.matmul %6, %8, %cst_6 {dimension_numbers = #tpu.dot_dimension_numbers<[1], [0], [0], [1], [0, 0, 1, 1], [], []>} : vector<2x256xbf16>, vector<256x512xbf16>, vector<2x512xf32> -> vector<2x512xf32>
    %10 = arith.addf %4, %9 : vector<2x512xf32>
    %c6 = arith.constant 6 : index
    %c0_7 = arith.constant 0 : index
    %11 = vector.load %arg1[%c6, %c0_7] : memref<12x256xf32, #tpu.memory_space<vmem>>, vector<2x256xf32>
    %12 = arith.truncf %11 : vector<2x256xf32> to vector<2x256xbf16>
    %c2_8 = arith.constant 2 : index
    %c0_9 = arith.constant 0 : index
    %c0_10 = arith.constant 0 : index
    %13 = vector.load %arg2[%c2_8, %c0_9, %c0_10] : memref<4x256x512xbf16, #tpu.memory_space<vmem>>, vector<1x256x512xbf16>
    %14 = vector.shape_cast %13 : vector<1x256x512xbf16> to vector<256x512xbf16>
    %cst_11 = arith.constant dense<0.000000e+00> : vector<2x512xf32>
    %15 = tpu.matmul %12, %14, %cst_11 {dimension_numbers = #tpu.dot_dimension_numbers<[1], [0], [0], [1], [0, 0, 1, 1], [], []>} : vector<2x256xbf16>, vector<256x512xbf16>, vector<2x512xf32> -> vector<2x512xf32>
    %16 = arith.addf %10, %15 : vector<2x512xf32>
    %c8 = arith.constant 8 : index
    %c0_12 = arith.constant 0 : index
    %17 = vector.load %arg1[%c8, %c0_12] : memref<12x256xf32, #tpu.memory_space<vmem>>, vector<2x256xf32>
    %18 = arith.truncf %17 : vector<2x256xf32> to vector<2x256xbf16>
    %c3 = arith.constant 3 : index
    %c0_13 = arith.constant 0 : index
    %c0_14 = arith.constant 0 : index
    %19 = vector.load %arg2[%c3, %c0_13, %c0_14] : memref<4x256x512xbf16, #tpu.memory_space<vmem>>, vector<1x256x512xbf16>
    %20 = vector.shape_cast %19 : vector<1x256x512xbf16> to vector<256x512xbf16>
    %cst_15 = arith.constant dense<0.000000e+00> : vector<2x512xf32>
    %21 = tpu.matmul %18, %20, %cst_15 {dimension_numbers = #tpu.dot_dimension_numbers<[1], [0], [0], [1], [0, 0, 1, 1], [], []>} : vector<2x256xbf16>, vector<256x512xbf16>, vector<2x512xf32> -> vector<2x512xf32>
    %22 = arith.addf %16, %21 : vector<2x512xf32>
    %c0_16 = arith.constant 0 : index
    %c0_17 = arith.constant 0 : index
    %23 = vector.load %arg3[%c0_16, %c0_17] : memref<1x512xf32, #tpu.memory_space<vmem>>, vector<1x512xf32>
    %c0_18 = arith.constant 0 : index
    %c0_19 = arith.constant 0 : index
    %24 = vector.load %arg4[%c0_18, %c0_19] : memref<1x512xf32, #tpu.memory_space<vmem>>, vector<1x512xf32>
    %cst_20 = arith.constant dense<0.000000e+00> : vector<512xf32>
    %25 = vector.multi_reduction <add>, %22, %cst_20 [0] : vector<2x512xf32> to vector<512xf32>
    %26 = vector.shape_cast %25 : vector<512xf32> to vector<1x512xf32>
    %cst_21 = arith.constant 5.000000e-01 : f32
    %27 = vector.broadcast %cst_21 : f32 to vector<1x512xf32>
    %28 = arith.mulf %26, %27 : vector<1x512xf32>
    %29 = vector.broadcast %28 : vector<1x512xf32> to vector<2x512xf32>
    %30 = arith.subf %22, %29 : vector<2x512xf32>
    %31 = arith.mulf %30, %30 : vector<2x512xf32>
    %cst_22 = arith.constant dense<0.000000e+00> : vector<512xf32>
    %32 = vector.multi_reduction <add>, %31, %cst_22 [0] : vector<2x512xf32> to vector<512xf32>
    %33 = vector.shape_cast %32 : vector<512xf32> to vector<1x512xf32>
    %cst_23 = arith.constant 5.000000e-01 : f32
    %34 = vector.broadcast %cst_23 : f32 to vector<1x512xf32>
    %35 = arith.mulf %33, %34 : vector<1x512xf32>
    %cst_24 = arith.constant 9.99999974E-6 : f32
    %36 = vector.broadcast %cst_24 : f32 to vector<1x512xf32>
    %37 = arith.addf %35, %36 : vector<1x512xf32>
    %38 = math.rsqrt %37 : vector<1x512xf32>
    %39 = vector.broadcast %38 : vector<1x512xf32> to vector<2x512xf32>
    %40 = arith.mulf %30, %39 : vector<2x512xf32>
    %41 = vector.broadcast %23 : vector<1x512xf32> to vector<2x512xf32>
    %42 = arith.mulf %40, %41 : vector<2x512xf32>
    %43 = vector.broadcast %24 : vector<1x512xf32> to vector<2x512xf32>
    %44 = arith.addf %42, %43 : vector<2x512xf32>
    %cst_25 = arith.constant 0.000000e+00 : f32
    %45 = vector.broadcast %cst_25 : f32 to vector<2x512xf32>
    %46 = arith.maximumf %44, %45 : vector<2x512xf32>
    %c2_26 = arith.constant 2 : index
    %c0_27 = arith.constant 0 : index
    %47 = vector.load %arg1[%c2_26, %c0_27] : memref<12x256xf32, #tpu.memory_space<vmem>>, vector<2x256xf32>
    %48 = arith.truncf %47 : vector<2x256xf32> to vector<2x256xbf16>
    %c0_28 = arith.constant 0 : index
    %c0_29 = arith.constant 0 : index
    %c0_30 = arith.constant 0 : index
    %49 = vector.load %arg8[%c0_28, %c0_29, %c0_30] : memref<1x256x128xbf16, #tpu.memory_space<vmem>>, vector<1x256x128xbf16>
    %50 = vector.shape_cast %49 : vector<1x256x128xbf16> to vector<256x128xbf16>
    %cst_31 = arith.constant dense<0.000000e+00> : vector<2x128xf32>
    %51 = tpu.matmul %48, %50, %cst_31 {dimension_numbers = #tpu.dot_dimension_numbers<[1], [0], [0], [1], [0, 0, 1, 1], [], []>} : vector<2x256xbf16>, vector<256x128xbf16>, vector<2x128xf32> -> vector<2x128xf32>
    %c0_32 = arith.constant 0 : index
    %c0_33 = arith.constant 0 : index
    %52 = vector.load %arg9[%c0_32, %c0_33] : memref<1x128xf32, #tpu.memory_space<vmem>>, vector<1x128xf32>
    %c0_34 = arith.constant 0 : index
    %c0_35 = arith.constant 0 : index
    %53 = vector.load %arg10[%c0_34, %c0_35] : memref<1x128xf32, #tpu.memory_space<vmem>>, vector<1x128xf32>
    %cst_36 = arith.constant dense<0.000000e+00> : vector<128xf32>
    %54 = vector.multi_reduction <add>, %51, %cst_36 [0] : vector<2x128xf32> to vector<128xf32>
    %55 = vector.shape_cast %54 : vector<128xf32> to vector<1x128xf32>
    %cst_37 = arith.constant 5.000000e-01 : f32
    %56 = vector.broadcast %cst_37 : f32 to vector<1x128xf32>
    %57 = arith.mulf %55, %56 : vector<1x128xf32>
    %58 = vector.broadcast %57 : vector<1x128xf32> to vector<2x128xf32>
    %59 = arith.subf %51, %58 : vector<2x128xf32>
    %60 = arith.mulf %59, %59 : vector<2x128xf32>
    %cst_38 = arith.constant dense<0.000000e+00> : vector<128xf32>
    %61 = vector.multi_reduction <add>, %60, %cst_38 [0] : vector<2x128xf32> to vector<128xf32>
    %62 = vector.shape_cast %61 : vector<128xf32> to vector<1x128xf32>
    %cst_39 = arith.constant 5.000000e-01 : f32
    %63 = vector.broadcast %cst_39 : f32 to vector<1x128xf32>
    %64 = arith.mulf %62, %63 : vector<1x128xf32>
    %cst_40 = arith.constant 9.99999974E-6 : f32
    %65 = vector.broadcast %cst_40 : f32 to vector<1x128xf32>
    %66 = arith.addf %64, %65 : vector<1x128xf32>
    %67 = math.rsqrt %66 : vector<1x128xf32>
    %68 = vector.broadcast %67 : vector<1x128xf32> to vector<2x128xf32>
    %69 = arith.mulf %59, %68 : vector<2x128xf32>
    %70 = vector.broadcast %52 : vector<1x128xf32> to vector<2x128xf32>
    %71 = arith.mulf %69, %70 : vector<2x128xf32>
    %72 = vector.broadcast %53 : vector<1x128xf32> to vector<2x128xf32>
    %73 = arith.addf %71, %72 : vector<2x128xf32>
    %74 = arith.truncf %46 : vector<2x512xf32> to vector<2x512xbf16>
    %c0_41 = arith.constant 0 : index
    %c0_42 = arith.constant 0 : index
    %c0_43 = arith.constant 0 : index
    %75 = vector.load %arg5[%c0_41, %c0_42, %c0_43] : memref<1x512x128xbf16, #tpu.memory_space<vmem>>, vector<1x512x128xbf16>
    %76 = vector.shape_cast %75 : vector<1x512x128xbf16> to vector<512x128xbf16>
    %cst_44 = arith.constant dense<0.000000e+00> : vector<2x128xf32>
    %77 = tpu.matmul %74, %76, %cst_44 {dimension_numbers = #tpu.dot_dimension_numbers<[1], [0], [0], [1], [0, 0, 1, 1], [], []>} : vector<2x512xbf16>, vector<512x128xbf16>, vector<2x128xf32> -> vector<2x128xf32>
    %c0_45 = arith.constant 0 : index
    %c0_46 = arith.constant 0 : index
    %78 = vector.load %arg6[%c0_45, %c0_46] : memref<1x128xf32, #tpu.memory_space<vmem>>, vector<1x128xf32>
    %c0_47 = arith.constant 0 : index
    %c0_48 = arith.constant 0 : index
    %79 = vector.load %arg7[%c0_47, %c0_48] : memref<1x128xf32, #tpu.memory_space<vmem>>, vector<1x128xf32>
    %cst_49 = arith.constant dense<0.000000e+00> : vector<128xf32>
    %80 = vector.multi_reduction <add>, %77, %cst_49 [0] : vector<2x128xf32> to vector<128xf32>
    %81 = vector.shape_cast %80 : vector<128xf32> to vector<1x128xf32>
    %cst_50 = arith.constant 5.000000e-01 : f32
    %82 = vector.broadcast %cst_50 : f32 to vector<1x128xf32>
    %83 = arith.mulf %81, %82 : vector<1x128xf32>
    %84 = vector.broadcast %83 : vector<1x128xf32> to vector<2x128xf32>
    %85 = arith.subf %77, %84 : vector<2x128xf32>
    %86 = arith.mulf %85, %85 : vector<2x128xf32>
    %cst_51 = arith.constant dense<0.000000e+00> : vector<128xf32>
    %87 = vector.multi_reduction <add>, %86, %cst_51 [0] : vector<2x128xf32> to vector<128xf32>
    %88 = vector.shape_cast %87 : vector<128xf32> to vector<1x128xf32>
    %cst_52 = arith.constant 5.000000e-01 : f32
    %89 = vector.broadcast %cst_52 : f32 to vector<1x128xf32>
    %90 = arith.mulf %88, %89 : vector<1x128xf32>
    %cst_53 = arith.constant 9.99999974E-6 : f32
    %91 = vector.broadcast %cst_53 : f32 to vector<1x128xf32>
    %92 = arith.addf %90, %91 : vector<1x128xf32>
    %93 = math.rsqrt %92 : vector<1x128xf32>
    %94 = vector.broadcast %93 : vector<1x128xf32> to vector<2x128xf32>
    %95 = arith.mulf %85, %94 : vector<2x128xf32>
    %96 = vector.broadcast %78 : vector<1x128xf32> to vector<2x128xf32>
    %97 = arith.mulf %95, %96 : vector<2x128xf32>
    %98 = vector.broadcast %79 : vector<1x128xf32> to vector<2x128xf32>
    %99 = arith.addf %97, %98 : vector<2x128xf32>
    %100 = arith.addf %99, %73 : vector<2x128xf32>
    %cst_54 = arith.constant 0.000000e+00 : f32
    %101 = vector.broadcast %cst_54 : f32 to vector<2x128xf32>
    %102 = arith.maximumf %100, %101 : vector<2x128xf32>
    %103 = arith.truncf %102 : vector<2x128xf32> to vector<2x128xbf16>
    %c0_55 = arith.constant 0 : index
    %c0_56 = arith.constant 0 : index
    %104 = vector.load %arg11[%c0_55, %c0_56] : memref<2x128xbf16, #tpu.memory_space<vmem>>, vector<2x128xbf16>
    tpu.vector_store %arg11[%c0_55, %c0_56], %103 {strides = array<i32>} : memref<2x128xbf16, #tpu.memory_space<vmem>>, vector<2x128xbf16>,
    return
  }
  func.func @transform_0(%arg0: i32) -> (i32, i32) {
    %c0_i32 = arith.constant 0 : i32
    %c0_i32_0 = arith.constant 0 : i32
    %c0_i32_1 = arith.constant 0 : i32
    return %c0_i32, %c0_i32_0 : i32, i32
  }
  func.func @transform_1(%arg0: i32) -> (i32, i32, i32) {
    %c0_i32 = arith.constant 0 : i32
    %c0_i32_0 = arith.constant 0 : i32
    %c0_i32_1 = arith.constant 0 : i32
    %c0_i32_2 = arith.constant 0 : i32
    return %c0_i32, %c0_i32_0, %c0_i32_1 : i32, i32, i32
  }
  func.func @transform_2(%arg0: i32) -> (i32, i32) {
    %c0_i32 = arith.constant 0 : i32
    %c0_i32_0 = arith.constant 0 : i32
    %c0_i32_1 = arith.constant 0 : i32
    return %c0_i32, %c0_i32_0 : i32, i32
  }
  func.func @transform_3(%arg0: i32) -> (i32, i32) {
    %c0_i32 = arith.constant 0 : i32
    %c0_i32_0 = arith.constant 0 : i32
    %c0_i32_1 = arith.constant 0 : i32
    return %c0_i32, %c0_i32_0 : i32, i32
  }
  func.func @transform_4(%arg0: i32) -> (i32, i32, i32) {
    %c0_i32 = arith.constant 0 : i32
    %c0_i32_0 = arith.constant 0 : i32
    %c0_i32_1 = arith.constant 0 : i32
    return %c0_i32, %c0_i32_0, %arg0 : i32, i32, i32
  }
  func.func @transform_5(%arg0: i32) -> (i32, i32) {
    %c0_i32 = arith.constant 0 : i32
    %c0_i32_0 = arith.constant 0 : i32
    return %c0_i32, %arg0 : i32, i32
  }
  func.func @transform_6(%arg0: i32) -> (i32, i32) {
    %c0_i32 = arith.constant 0 : i32
    %c0_i32_0 = arith.constant 0 : i32
    return %c0_i32, %arg0 : i32, i32
  }
  func.func @transform_7(%arg0: i32) -> (i32, i32, i32) {
    %c0_i32 = arith.constant 0 : i32
    %c0_i32_0 = arith.constant 0 : i32
    %c0_i32_1 = arith.constant 0 : i32
    return %c0_i32, %c0_i32_0, %arg0 : i32, i32, i32
  }
  func.func @transform_8(%arg0: i32) -> (i32, i32) {
    %c0_i32 = arith.constant 0 : i32
    %c0_i32_0 = arith.constant 0 : i32
    return %c0_i32, %arg0 : i32, i32
  }
  func.func @transform_9(%arg0: i32) -> (i32, i32) {
    %c0_i32 = arith.constant 0 : i32
    %c0_i32_0 = arith.constant 0 : i32
    return %c0_i32, %arg0 : i32, i32
  }
  func.func @transform_10(%arg0: i32) -> (i32, i32) {
    %c0_i32 = arith.constant 0 : i32
    %c0_i32_0 = arith.constant 0 : i32
    return %c0_i32, %arg0 : i32, i32
  }
}

module attributes {stable_mosaic.version = 11 : i64} {
  func.func @kernel(%arg0: i32, %arg1: memref<6x512xf32, #tpu.memory_space<vmem>>, %arg2: memref<1x512x512xbf16, #tpu.memory_space<vmem>>, %arg3: memref<1x512xf32, #tpu.memory_space<vmem>>, %arg4: memref<1x512xf32, #tpu.memory_space<vmem>>, %arg5: memref<1x512x128xbf16, #tpu.memory_space<vmem>>, %arg6: memref<1x128xf32, #tpu.memory_space<vmem>>, %arg7: memref<1x128xf32, #tpu.memory_space<vmem>>, %arg8: memref<2x128xbf16, #tpu.memory_space<vmem>>, %arg9: memref<128x128xbf16, #tpu.memory_space<vmem>>, %arg10: memref<1x2x128xf32, #tpu.memory_space<vmem>>) attributes {dimension_semantics = [#tpu.dimension_semantics<parallel>], iteration_bounds = array<i64: 4>, scalar_prefetch = 0 : i64, scratch_operands = 0 : i64, tpu.core_type = #tpu.core_type<tc>, window_params = [{pipeline_mode = #tpu.pipeline_mode<synchronous>, transform_indices = @transform_0, window_bounds = array<i64: 6, 512>}, {pipeline_mode = #tpu.pipeline_mode<synchronous>, transform_indices = @transform_1, window_bounds = array<i64: 1, 512, 512>}, {pipeline_mode = #tpu.pipeline_mode<synchronous>, transform_indices = @transform_2, window_bounds = array<i64: 1, 512>}, {pipeline_mode = #tpu.pipeline_mode<synchronous>, transform_indices = @transform_3, window_bounds = array<i64: 1, 512>}, {transform_indices = @transform_4, window_bounds = array<i64: 1, 512, 128>}, {transform_indices = @transform_5, window_bounds = array<i64: 1, 128>}, {transform_indices = @transform_6, window_bounds = array<i64: 1, 128>}, {transform_indices = @transform_7, window_bounds = array<i64: 2, 128>}, {transform_indices = @transform_8, window_bounds = array<i64: 128, 128>}, {transform_indices = @transform_9, window_bounds = array<i64: 1, 2, 128>}]} {
    %c2 = arith.constant 2 : index
    %c0 = arith.constant 0 : index
    %0 = vector.load %arg1[%c2, %c0] : memref<6x512xf32, #tpu.memory_space<vmem>>, vector<2x512xf32>
    %1 = arith.truncf %0 : vector<2x512xf32> to vector<2x512xbf16>
    %c0_0 = arith.constant 0 : index
    %c0_1 = arith.constant 0 : index
    %c0_2 = arith.constant 0 : index
    %2 = vector.load %arg2[%c0_0, %c0_1, %c0_2] : memref<1x512x512xbf16, #tpu.memory_space<vmem>>, vector<1x512x512xbf16>
    %3 = vector.shape_cast %2 : vector<1x512x512xbf16> to vector<512x512xbf16>
    %cst = arith.constant dense<0.000000e+00> : vector<2x512xf32>
    %4 = tpu.matmul %1, %3, %cst {dimension_numbers = #tpu.dot_dimension_numbers<[1], [0], [0], [1], [0, 0, 1, 1], [], []>} : vector<2x512xbf16>, vector<512x512xbf16>, vector<2x512xf32> -> vector<2x512xf32>
    %c0_3 = arith.constant 0 : index
    %c0_4 = arith.constant 0 : index
    %5 = vector.load %arg3[%c0_3, %c0_4] : memref<1x512xf32, #tpu.memory_space<vmem>>, vector<1x512xf32>
    %c0_5 = arith.constant 0 : index
    %c0_6 = arith.constant 0 : index
    %6 = vector.load %arg4[%c0_5, %c0_6] : memref<1x512xf32, #tpu.memory_space<vmem>>, vector<1x512xf32>
    %cst_7 = arith.constant dense<0.000000e+00> : vector<512xf32>
    %7 = vector.multi_reduction <add>, %4, %cst_7 [0] : vector<2x512xf32> to vector<512xf32>
    %8 = vector.shape_cast %7 : vector<512xf32> to vector<1x512xf32>
    %cst_8 = arith.constant 5.000000e-01 : f32
    %9 = vector.broadcast %cst_8 : f32 to vector<1x512xf32>
    %10 = arith.mulf %8, %9 : vector<1x512xf32>
    %11 = vector.broadcast %10 : vector<1x512xf32> to vector<2x512xf32>
    %12 = arith.subf %4, %11 : vector<2x512xf32>
    %13 = arith.mulf %12, %12 : vector<2x512xf32>
    %cst_9 = arith.constant dense<0.000000e+00> : vector<512xf32>
    %14 = vector.multi_reduction <add>, %13, %cst_9 [0] : vector<2x512xf32> to vector<512xf32>
    %15 = vector.shape_cast %14 : vector<512xf32> to vector<1x512xf32>
    %cst_10 = arith.constant 5.000000e-01 : f32
    %16 = vector.broadcast %cst_10 : f32 to vector<1x512xf32>
    %17 = arith.mulf %15, %16 : vector<1x512xf32>
    %cst_11 = arith.constant 9.99999974E-6 : f32
    %18 = vector.broadcast %cst_11 : f32 to vector<1x512xf32>
    %19 = arith.addf %17, %18 : vector<1x512xf32>
    %20 = math.rsqrt %19 : vector<1x512xf32>
    %21 = vector.broadcast %20 : vector<1x512xf32> to vector<2x512xf32>
    %22 = arith.mulf %12, %21 : vector<2x512xf32>
    %23 = vector.broadcast %5 : vector<1x512xf32> to vector<2x512xf32>
    %24 = arith.mulf %22, %23 : vector<2x512xf32>
    %25 = vector.broadcast %6 : vector<1x512xf32> to vector<2x512xf32>
    %26 = arith.addf %24, %25 : vector<2x512xf32>
    %cst_12 = arith.constant 0.000000e+00 : f32
    %27 = vector.broadcast %cst_12 : f32 to vector<2x512xf32>
    %28 = arith.maximumf %26, %27 : vector<2x512xf32>
    %c0_13 = arith.constant 0 : index
    %c0_14 = arith.constant 0 : index
    %29 = vector.load %arg8[%c0_13, %c0_14] : memref<2x128xbf16, #tpu.memory_space<vmem>>, vector<2x128xbf16>
    %30 = arith.extf %29 : vector<2x128xbf16> to vector<2x128xf32>
    %31 = arith.truncf %28 : vector<2x512xf32> to vector<2x512xbf16>
    %c0_15 = arith.constant 0 : index
    %c0_16 = arith.constant 0 : index
    %c0_17 = arith.constant 0 : index
    %32 = vector.load %arg5[%c0_15, %c0_16, %c0_17] : memref<1x512x128xbf16, #tpu.memory_space<vmem>>, vector<1x512x128xbf16>
    %33 = vector.shape_cast %32 : vector<1x512x128xbf16> to vector<512x128xbf16>
    %cst_18 = arith.constant dense<0.000000e+00> : vector<2x128xf32>
    %34 = tpu.matmul %31, %33, %cst_18 {dimension_numbers = #tpu.dot_dimension_numbers<[1], [0], [0], [1], [0, 0, 1, 1], [], []>} : vector<2x512xbf16>, vector<512x128xbf16>, vector<2x128xf32> -> vector<2x128xf32>
    %c0_19 = arith.constant 0 : index
    %c0_20 = arith.constant 0 : index
    %35 = vector.load %arg6[%c0_19, %c0_20] : memref<1x128xf32, #tpu.memory_space<vmem>>, vector<1x128xf32>
    %c0_21 = arith.constant 0 : index
    %c0_22 = arith.constant 0 : index
    %36 = vector.load %arg7[%c0_21, %c0_22] : memref<1x128xf32, #tpu.memory_space<vmem>>, vector<1x128xf32>
    %cst_23 = arith.constant dense<0.000000e+00> : vector<128xf32>
    %37 = vector.multi_reduction <add>, %34, %cst_23 [0] : vector<2x128xf32> to vector<128xf32>
    %38 = vector.shape_cast %37 : vector<128xf32> to vector<1x128xf32>
    %cst_24 = arith.constant 5.000000e-01 : f32
    %39 = vector.broadcast %cst_24 : f32 to vector<1x128xf32>
    %40 = arith.mulf %38, %39 : vector<1x128xf32>
    %41 = vector.broadcast %40 : vector<1x128xf32> to vector<2x128xf32>
    %42 = arith.subf %34, %41 : vector<2x128xf32>
    %43 = arith.mulf %42, %42 : vector<2x128xf32>
    %cst_25 = arith.constant dense<0.000000e+00> : vector<128xf32>
    %44 = vector.multi_reduction <add>, %43, %cst_25 [0] : vector<2x128xf32> to vector<128xf32>
    %45 = vector.shape_cast %44 : vector<128xf32> to vector<1x128xf32>
    %cst_26 = arith.constant 5.000000e-01 : f32
    %46 = vector.broadcast %cst_26 : f32 to vector<1x128xf32>
    %47 = arith.mulf %45, %46 : vector<1x128xf32>
    %cst_27 = arith.constant 9.99999974E-6 : f32
    %48 = vector.broadcast %cst_27 : f32 to vector<1x128xf32>
    %49 = arith.addf %47, %48 : vector<1x128xf32>
    %50 = math.rsqrt %49 : vector<1x128xf32>
    %51 = vector.broadcast %50 : vector<1x128xf32> to vector<2x128xf32>
    %52 = arith.mulf %42, %51 : vector<2x128xf32>
    %53 = vector.broadcast %35 : vector<1x128xf32> to vector<2x128xf32>
    %54 = arith.mulf %52, %53 : vector<2x128xf32>
    %55 = vector.broadcast %36 : vector<1x128xf32> to vector<2x128xf32>
    %56 = arith.addf %54, %55 : vector<2x128xf32>
    %57 = arith.addf %56, %30 : vector<2x128xf32>
    %cst_28 = arith.constant 0.000000e+00 : f32
    %58 = vector.broadcast %cst_28 : f32 to vector<2x128xf32>
    %59 = arith.maximumf %57, %58 : vector<2x128xf32>
    %60 = arith.truncf %59 : vector<2x128xf32> to vector<2x128xbf16>
    %c0_29 = arith.constant 0 : index
    %c0_30 = arith.constant 0 : index
    %61 = vector.load %arg9[%c0_29, %c0_30] : memref<128x128xbf16, #tpu.memory_space<vmem>>, vector<128x128xbf16>
    %cst_31 = arith.constant dense<0.000000e+00> : vector<2x128xf32>
    %62 = tpu.matmul %60, %61, %cst_31 {dimension_numbers = #tpu.dot_dimension_numbers<[1], [0], [0], [1], [0, 0, 1, 1], [], []>} : vector<2x128xbf16>, vector<128x128xbf16>, vector<2x128xf32> -> vector<2x128xf32>
    %63 = vector.shape_cast %62 : vector<2x128xf32> to vector<1x2x128xf32>
    %c0_32 = arith.constant 0 : index
    %c0_33 = arith.constant 0 : index
    %c0_34 = arith.constant 0 : index
    %64 = vector.load %arg10[%c0_32, %c0_33, %c0_34] : memref<1x2x128xf32, #tpu.memory_space<vmem>>, vector<1x2x128xf32>
    tpu.vector_store %arg10[%c0_32, %c0_33, %c0_34], %63 {strides = array<i32>} : memref<1x2x128xf32, #tpu.memory_space<vmem>>, vector<1x2x128xf32>,
    return
  }
  func.func @transform_0(%arg0: i32) -> (i32, i32) {
    %c0_i32 = arith.constant 0 : i32
    %c0_i32_0 = arith.constant 0 : i32
    %c0_i32_1 = arith.constant 0 : i32
    return %c0_i32, %c0_i32_0 : i32, i32
  }
  func.func @transform_1(%arg0: i32) -> (i32, i32, i32) {
    %c0_i32 = arith.constant 0 : i32
    %c0_i32_0 = arith.constant 0 : i32
    %c0_i32_1 = arith.constant 0 : i32
    %c0_i32_2 = arith.constant 0 : i32
    return %c0_i32, %c0_i32_0, %c0_i32_1 : i32, i32, i32
  }
  func.func @transform_2(%arg0: i32) -> (i32, i32) {
    %c0_i32 = arith.constant 0 : i32
    %c0_i32_0 = arith.constant 0 : i32
    %c0_i32_1 = arith.constant 0 : i32
    return %c0_i32, %c0_i32_0 : i32, i32
  }
  func.func @transform_3(%arg0: i32) -> (i32, i32) {
    %c0_i32 = arith.constant 0 : i32
    %c0_i32_0 = arith.constant 0 : i32
    %c0_i32_1 = arith.constant 0 : i32
    return %c0_i32, %c0_i32_0 : i32, i32
  }
  func.func @transform_4(%arg0: i32) -> (i32, i32, i32) {
    %c0_i32 = arith.constant 0 : i32
    %c0_i32_0 = arith.constant 0 : i32
    %c0_i32_1 = arith.constant 0 : i32
    return %c0_i32, %c0_i32_0, %arg0 : i32, i32, i32
  }
  func.func @transform_5(%arg0: i32) -> (i32, i32) {
    %c0_i32 = arith.constant 0 : i32
    %c0_i32_0 = arith.constant 0 : i32
    return %c0_i32, %arg0 : i32, i32
  }
  func.func @transform_6(%arg0: i32) -> (i32, i32) {
    %c0_i32 = arith.constant 0 : i32
    %c0_i32_0 = arith.constant 0 : i32
    return %c0_i32, %arg0 : i32, i32
  }
  func.func @transform_7(%arg0: i32) -> (i32, i32) {
    %c0_i32 = arith.constant 0 : i32
    %c0_i32_0 = arith.constant 0 : i32
    return %c0_i32, %arg0 : i32, i32
  }
  func.func @transform_8(%arg0: i32) -> (i32, i32) {
    %c0_i32 = arith.constant 0 : i32
    %c0_i32_0 = arith.constant 0 : i32
    return %arg0, %c0_i32 : i32, i32
  }
  func.func @transform_9(%arg0: i32) -> (i32, i32, i32) {
    %c0_i32 = arith.constant 0 : i32
    %c0_i32_0 = arith.constant 0 : i32
    %c0_i32_1 = arith.constant 0 : i32
    return %arg0, %c0_i32, %c0_i32_0 : i32, i32, i32
  }
}

</mosaic_0001>

<bundles_post_ra>
// kernel: resnet18_forward.5
= control target key start
LH: loop header
LB: loop body
LE: loop exit
PB: predicated region body
PF: predicated region fallthrough
CT: control target
= control target key end

     0   :  { %10 = vsyncpa [#allocation3], 0  ;;  %s3907_s0 = inlined_call_operand.vmem [shape: f32[530,3], index: 0, kind: input, shape index: {}]   ;;  %s3908_s1 = inlined_call_operand.hbm [shape: bf16[9,3,64], index: 1, kind: input, shape index: {}]   ;;  %s3909_s2 = inlined_call_operand.hbm [shape: f32[1,64], index: 2, kind: input, shape index: {}]   ;;  %s3910_s3 = inlined_call_operand.hbm [shape: f32[1,64], index: 3, kind: input, shape index: {}]   ;;  %s3911_s4 = inlined_call_operand.hbm [shape: f32[128,5], index: 4, kind: input, shape index: {}]   ;;  %s3912_s5 = inlined_call_operand.vmem [shape: bf16[128,64], index: 5, kind: output, shape index: {}]  }
   0x1   :  { %11 = vsyncpa [#allocation5], 0 }
   0x2   :  { %12 = vsyncpa [#allocation8], 0  ;;  %s2862_s18 = smov [#allocation4]   ;;  %s2863_s20 = smov [#allocation2]  }
   0x3   :  { %s33_s19 = sshll.u32 %s2862_s18, 4  ;;  %s20_s21 = sshll.u32 %s2863_s20, 4  ;;  %s34_s19 = int_to_ptr.vmem [resolvable:$true] %s33_s19  ;;  %s2906_s21 = int_to_ptr.vmem [resolvable:$true] %s20_s21 }
   0x4   :  { %s2768_s24 = scalar_lea.hbm %s3909_s2, 16 }
   0x5   :  { %p2769_p0 = scmp.ne.s32.totalorder %s3909_s2, %s2768_s24  ;;  %p2772_p1 = scmp.lt.u32.totalorder %s2768_s24, %s3909_s2 }
   0x7   :  { %p2774_p2 = pnand %p2772_p1, %p2769_p0 }
   0x9   :  { %2777 = shalt.err (!%p2774_p2)
}
   0xa   :  { %s2778_s29 = scalar_lea.vmem %s34_s19, 16  ;;  %s2782_s30 = scalar_lea.vmem %s34_s19, 32 }
   0xb   :  { %p2779_p3 = scmp.ne.s32.totalorder %s34_s19, %s2778_s29  ;;  %p2783_p4 = scmp.lt.s32.totalorder %s34_s19, %s34_s19 }
   0xc   :  { %p2784_p5 = scmp.lt.s32.totalorder %s2782_s30, %s2778_s29 }
   0xe   :  { %p2785_p6 = por %p2784_p5, %p2783_p4 }
  0x10   :  { %p2786_p7 = pnand %p2785_p6, %p2779_p3 }
  0x12   :  { %2789 = shalt.err (!%p2786_p7)
}
  0x13   :  { %36 = dma.hbm_to_vmem [thread:$0]  %s3909_s2, 16, %s34_s19, [#allocation5]  }
  0x14   :  { %s2790_s10 = scalar_lea.hbm %s3908_s1, 288 }
  0x15   :  { %p2791_p8 = scmp.ne.s32.totalorder %s3908_s1, %s2790_s10  ;;  %p2794_p9 = scmp.lt.u32.totalorder %s2790_s10, %s3908_s1 }
  0x17   :  { %p2796_p10 = pnand %p2794_p9, %p2791_p8 }
  0x19   :  { %2799 = shalt.err (!%p2796_p10)
}
  0x1a   :  { %s2800_s15 = scalar_lea.vmem %s2906_s21, 288  ;;  %p2805_p12 = scmp.lt.s32.totalorder %s2906_s21, %s2906_s21 }
  0x1b   :  { %p2801_p11 = scmp.ne.s32.totalorder %s2906_s21, %s2800_s15  ;;  %p2806_p13 = scmp.lt.s32.totalorder %s2800_s15, %s2800_s15 }
  0x1d   :  { %p2807_p0 = por %p2806_p13, %p2805_p12 }
  0x1f   :  { %p2808_p1 = pnand %p2807_p0, %p2801_p11 }
  0x21   :  { %2811 = shalt.err (!%p2808_p1)
}
  0x22   :  { %s2864_s2 = smov 32   ;;  %s2865_s16 = smov 2  }
  0x23   :  { %26 = dma.hbm_to_vmem [thread:$0]  %s3908_s1, 288, %s2906_s21, [#allocation3], %s2864_s2, %s2864_s2, %s2865_s16  }
  0x24   :  { %s2866_s19 = smov [#allocation6]   ;;  %s2867_s22 = smov [#allocation7]  }
  0x25   :  { %s43_s20 = sshll.u32 %s2866_s19, 4  ;;  %s52_s23 = sshll.u32 %s2867_s22, 4  ;;  %s44_s20 = int_to_ptr.vmem [resolvable:$true] %s43_s20  ;;  %s2937_s23 = int_to_ptr.vmem [resolvable:$true] %s52_s23 }
  0x26   :  { %s2812_s26 = scalar_lea.hbm %s3910_s3, 16 }
  0x27   :  { %p2813_p2 = scmp.ne.s32.totalorder %s3910_s3, %s2812_s26  ;;  %p2816_p3 = scmp.lt.u32.totalorder %s2812_s26, %s3910_s3 }
  0x29   :  { %p2818_p4 = pnand %p2816_p3, %p2813_p2 }
  0x2b   :  { %2821 = shalt.err (!%p2818_p4)
}
  0x2c   :  { %s2822_s1 = scalar_lea.vmem %s44_s20, 16  ;;  %s2826_s21 = scalar_lea.vmem %s44_s20, 32 }
  0x2d   :  { %p2823_p5 = scmp.ne.s32.totalorder %s44_s20, %s2822_s1  ;;  %p2827_p6 = scmp.lt.s32.totalorder %s44_s20, %s44_s20 }
  0x2e   :  { %p2828_p7 = scmp.lt.s32.totalorder %s2826_s21, %s2822_s1 }
  0x30   :  { %p2829_p8 = por %p2828_p7, %p2827_p6 }
  0x32   :  { %p2830_p9 = pnand %p2829_p8, %p2823_p5 }
  0x34   :  { %2833 = shalt.err (!%p2830_p9)
}
  0x35   :  { %46 = dma.hbm_to_vmem [thread:$0]  %s3910_s3, 16, %s44_s20, [#allocation5]  }
  0x36   :  { %s2834_s10 = scalar_lea.hbm %s3911_s4, 2048 }
  0x37   :  { %p2835_p10 = scmp.ne.s32.totalorder %s3911_s4, %s2834_s10  ;;  %p2838_p11 = scmp.lt.u32.totalorder %s2834_s10, %s3911_s4 }
  0x39   :  { %p2840_p12 = pnand %p2838_p11, %p2835_p10 }
  0x3b   :  { %2843 = shalt.err (!%p2840_p12)
}
  0x3c   :  { %s2844_s15 = scalar_lea.vmem %s2937_s23, 2048  ;;  %p2849_p0 = scmp.lt.s32.totalorder %s2937_s23, %s2937_s23 }
  0x3d   :  { %p2845_p13 = scmp.ne.s32.totalorder %s2937_s23, %s2844_s15  ;;  %p2850_p1 = scmp.lt.s32.totalorder %s2844_s15, %s2844_s15 }
  0x3f   :  { %p2851_p2 = por %p2850_p1, %p2849_p0 }
  0x41   :  { %p2852_p3 = pnand %p2851_p2, %p2845_p13 }
  0x43   :  { %2855 = shalt.err (!%p2852_p3)
}
  0x44   :  { %s2868_s3 = smov 128   ;;  %s2869_s2 = smov 8  }
  0x45   :  { %58 = dma.hbm_to_vmem [thread:$0]  %s3911_s4, 2048, %s2937_s23, [#allocation8], %s2868_s3, %s2868_s3, %s2869_s2  }
  0x46   :  { %2856 = dma.done.wait [#allocation3], 288  }
  0x47   :  { %2857 = vsyncadd [#allocation3], 4294967008 }
  0x48   :  { %2858 = dma.done.wait [#allocation5], 32  }
  0x49   :  { %2859 = vsyncadd [#allocation5], 4294967264 }
  0x4a   :  { %2860 = dma.done.wait [#allocation8], 2048  }
  0x4b   :  { %2861 = vsyncadd [#allocation8], 4294965248  ;;  %v2870_v0 = vmov 1   ;;  %v2968_v1 = vld [vmem:[#allocation7 + $0x10] sm:$0xff]  ;;  %v2970_v2 = vld [vmem:[#allocation7] sm:$0xff]  ;;  %vm340_vm0 = vcmask 1040384  }
  0x4c   :  { %2741 = vset.pattern.permute.xlu1 %v2870_v0  ;;  %2740 = vset.pattern.permute.xlu0 %v2870_v0  ;;  %v2974_v3 = vld [vmem:[#allocation7 + $0x18] sm:$0xff]  ;;  %v2976_v4 = vld [vmem:[#allocation7 + $0x8] sm:$0xff]  ;;  %vm341_vm1 = vcmask 1041408   ;;  %v2871_v5 = vmov 65535   ;;  %v2984_v9 = vld [vmem:[#allocation7 + $0x20] sm:$0xff]  ;;  %vm315_vm2 = vcmask 23552  }
  0x4d   :  { %234 = vperm.xlu1 %2741, %v2968_v1   ;;  %226 = vperm.xlu0 %2740, %v2970_v2   ;;  %v342_v6 = vsel %vm340_vm0, 4294967295, %v2871_v5  ;;  %v2982_v8 = vld [vmem:[#allocation7 + $0x28] sm:$0xff]  ;;  %v2989_v12 = vld [vmem:[#allocation7 + $0x38] sm:$0xff]  ;;  %v2991_v13 = vld [vmem:[#allocation7 + $0x30] sm:$0xff]  ;;  %v2872_v36 = vmov 0   ;;  %v2873_v55 = vmov 4  }
  0x4e   :  { %v2978_v7 = vsel %vm341_vm1, %v342_v6, 0  ;;  %v314_v10 = vld [vmem:[#allocation2 + $0x2] sm:$0x3]  ;;  %v2997_v15 = vld [vmem:[#allocation7 + $0x40] sm:$0xff]  ;;  %v3001_v16 = vld [vmem:[#allocation7 + $0x58] sm:$0xff]  ;;  %v2874_v60 = vmov 2  }
  0x4f   :  { %v345_v11 = vand.u32 %v2978_v7, %v314_v10  ;;  %v2995_v14 = vld [vmem:[#allocation7 + $0x48] sm:$0xff]  ;;  %v3003_v17 = vld [vmem:[#allocation7 + $0x50] sm:$0xff]  ;;  %v1061_v22 = vld [vmem:[%s3907_s0 + $0x11] sm:$0xff]  ;;  %vm1972_vm3 = vcmask 523264   ;;  %vm2223_vm4 = vcmask 519168  }
  0x50   :  { %v1085_v18 = vld [vmem:[#allocation2 + $0x8] sm:$0x3]  ;;  %v3010_v20 = vld [vmem:[#allocation7 + $0x68] sm:$0xff]  ;;  %v3018_v23 = vld [vmem:[#allocation7 + $0x60] sm:$0xff] }
  0x51   :  { %238 = vperm.xlu1 %2741, %v2974_v3   ;;  %230 = vperm.xlu0 %2740, %v2976_v4   ;;  %v3006_v19 = vand.u32 %v1085_v18, %v2978_v7  ;;  %v1060_v21 = vld [vmem:[%s3907_s0 + $0x9] sm:$0xff]  ;;  %v1062_v25 = vld [vmem:[%s3907_s0 + $0x19] sm:$0xff]  ;;  %v1063_v26 = vld [vmem:[%s3907_s0 + $0x21] sm:$0xff]  ;;  %v2875_v18 = vmov 3  }
  0x52   :  { %2434 = vmatprep.subr.bf16.mxu1 %v345_v11  ;;  %v1076_v24 = vpack.c.bf16 %v1061_v22, %v1060_v21  ;;  %v1077_v27 = vpack.c.bf16 %v1063_v26, %v1062_v25  ;;  %v3031_v28 = vld [vmem:[#allocation7 + $0x78] sm:$0xff]  ;;  %v3033_v29 = vld [vmem:[#allocation7 + $0x70] sm:$0xff]  ;;  %v1066_v33 = vld [vmem:[%s3907_s0 + $0x39] sm:$0xff] }
  0x53   :  { %2435 = vmatpush3.bf16.msra.mxu1 %v345_v11  ;;  %2506 = vmatprep.subr.bf16.mxu0 %v3006_v19  ;;  %v1064_v30 = vld [vmem:[%s3907_s0 + $0x29] sm:$0xff]  ;;  %v1065_v31 = vld [vmem:[%s3907_s0 + $0x31] sm:$0xff]  ;;  %v1067_v34 = vld [vmem:[%s3907_s0 + $0x41] sm:$0xff] }
  0x54   :  { %2507 = vmatpush3.bf16.msra.mxu0 %v3006_v19  ;;  %2508 = vmatprep.mubr.msk.bf16.mxu0 %vm315_vm2, %v1076_v24  ;;  %v1078_v32 = vpack.c.bf16 %v1065_v31, %v1064_v30  ;;  %v1079_v35 = vpack.c.bf16 %v1067_v34, %v1066_v33  ;;  %v1251_v37 = vld [vmem:[#allocation2 + $0xa] sm:$0x3]  ;;  %v208_v39 = vld [vmem:[#allocation2] sm:$0x3]  ;;  %v1227_v42 = vld [vmem:[%s3907_s0 + $0x91] sm:$0xff] }
  0x55   :  { %246 = vperm.xlu1 %2741, %v2982_v8   ;;  %242 = vperm.xlu0 %2740, %v2984_v9   ;;  %v1277_v38 = vand.u32 %v1251_v37, %v2978_v7  ;;  %v3058_v40 = vand.u32 %v2978_v7, %v208_v39  ;;  %v1226_v41 = vld [vmem:[%s3907_s0 + $0x89] sm:$0xff]  ;;  %v1228_v43 = vld [vmem:[%s3907_s0 + $0x99] sm:$0xff]  ;;  %v1229_v44 = vld [vmem:[%s3907_s0 + $0xa1] sm:$0xff] }
  0x56   :  { %v1242_v45 = vpack.c.bf16 %v1227_v42, %v1226_v41  ;;  %v1243_v46 = vpack.c.bf16 %v1229_v44, %v1228_v43  ;;  %v1230_v47 = vld [vmem:[%s3907_s0 + $0xa9] sm:$0xff]  ;;  %v1231_v48 = vld [vmem:[%s3907_s0 + $0xb1] sm:$0xff]  ;;  %v1232_v49 = vld [vmem:[%s3907_s0 + $0xb9] sm:$0xff] }
  0x57   :  { %2509 = vmatmul.mubr.msk.bf16.vlgmr.msra.gmra.mrb[0].mxu0 %vm315_vm2, %v1077_v27  ;;  %2524 = vmatprep.subr.bf16.mxu0 %v1277_v38  ;;  %v1233_v50 = vld [vmem:[%s3907_s0 + $0xc1] sm:$0xff]  ;;  %v1244_v51 = vpack.c.bf16 %v1231_v48, %v1230_v47  ;;  %v1234_v53 = vld [vmem:[%s3907_s0 + $0xc9] sm:$0xff]  ;;  %v1235_v54 = vld [vmem:[%s3907_s0 + $0xd1] sm:$0xff] }
  0x58   :  { %2512 = vmatprep.mubr.msk.bf16.mxu0 %vm315_vm2, %v1078_v32  ;;  %2452 = vmatprep.subr.bf16.mxu1 %v3058_v40  ;;  %v1245_v52 = vpack.c.bf16 %v1233_v50, %v1232_v49  ;;  %v1246_v56 = vpack.c.bf16 %v1235_v54, %v1234_v53  ;;  %v1236_v57 = vld [vmem:[%s3907_s0 + $0xd9] sm:$0xff]  ;;  %v1237_v58 = vld [vmem:[%s3907_s0 + $0xe1] sm:$0xff]  ;;  %v1238_v61 = vld [vmem:[%s3907_s0 + $0xe9] sm:$0xff] }
  0x59   :  { %254 = vperm.xlu1 %2741, %v2989_v12   ;;  %250 = vperm.xlu0 %2740, %v2991_v13   ;;  %v1247_v59 = vpack.c.bf16 %v1237_v58, %v1236_v57  ;;  %v1239_v62 = vld [vmem:[%s3907_s0 + $0xf1] sm:$0xff]  ;;  %v1240_v0 = vld [vmem:[%s3907_s0 + $0xf9] sm:$0xff]  ;;  %v209_v5 = vld [vmem:[%s3907_s0 + $0x101] sm:$0xff] }
  0x5a   :  { %2525 = vmatpush3.bf16.msra.mxu0 %v1277_v38  ;;  %v1248_v63 = vpack.c.bf16 %v1239_v62, %v1238_v61  ;;  %v1249_v6 = vpack.c.bf16 %v209_v5, %v1240_v0  ;;  %v1497_v10 = vld [vmem:[#allocation2 + $0xc] sm:$0x3]  ;;  %v1663_v21 = vld [vmem:[#allocation2 + $0xe] sm:$0x3]  ;;  %v3184_v25 = vld [vmem:[%s3907_s0 + $0x111] sm:$0xff] }
  0x5b   :  { %v1523_v11 = vand.u32 %v1497_v10, %v2978_v7  ;;  %v3175_v22 = vand.u32 %v1663_v21, %v2978_v7  ;;  %v3194_v26 = vld [vmem:[%s3907_s0 + $0x109] sm:$0xff]  ;;  %v3224_v44 = vld [vmem:[%s3907_s0 + $0x139] sm:$0xff] }
  0x5c   :  { %v3258_v58 = vld [vmem:[%s3907_s0 + $0x159] sm:$0xff] }
  0x5d   :  { %262 = vperm.xlu1 %2741, %v2995_v14   ;;  %258 = vperm.xlu0 %2740, %v2997_v15  }
  0x5e   :  { %2542 = vmatprep.subr.bf16.mxu0 %v1523_v11 }
  0x5f   :  { %2513 = vmatmul.mubr.msk.bf16.gmra.mrb[4].mxu0 %vm315_vm2, %v1079_v35  ;;  %v673_v35 = vld [vmem:[#allocation2 + $0x4] sm:$0x3] }
  0x60   :  { %2526 = vmatprep.mubr.msk.bf16.mxu0 %vm315_vm2, %v1242_v45  ;;  %v3215_v41 = vand.u32 %v673_v35, %v2978_v7  ;;  %v3229_v45 = vld [vmem:[%s3907_s0 + $0x131] sm:$0xff] }
  0x61   :  { %270 = vperm.xlu1 %2741, %v3001_v16   ;;  %266 = vperm.xlu0 %2740, %v3003_v17  }
  0x65   :  { %278 = vperm.xlu1 %2741, %v3010_v20   ;;  %274 = vperm.xlu0 %2740, %v3018_v23  }
  0x67   :  { %2527 = vmatmul.mubr.msk.bf16.vlgmr.msra.gmra.mrb[0].mxu0 %vm315_vm2, %v1243_v46 }
  0x68   :  { %2530 = vmatprep.mubr.msk.bf16.mxu0 %vm315_vm2, %v1244_v51  ;;  %2543 = vmatpush3.bf16.msra.mxu0 %v1523_v11  ;;  %v3242_v51 = vld [vmem:[%s3907_s0 + $0x149] sm:$0xff] }
  0x69   :  { %286 = vperm.xlu1 %2741, %v3031_v28   ;;  %282 = vperm.xlu0 %2740, %v3033_v29  }
  0x6a   :  { %2560 = vmatprep.subr.bf16.mxu0 %v3175_v22 }
  0x6d   :  { %2743 = vset.pattern.permute.xlu1 %v2872_v36  ;;  %2742 = vset.pattern.permute.xlu0 %v2872_v36 }
  0x6e   :  { %111 = vperm.xlu1 %2743, %v2976_v4   ;;  %106 = vperm.xlu0 %2742, %v2970_v2  }
  0x6f   :  { %2531 = vmatmul.mubr.msk.bf16.gmra.mrb[4].mxu0 %vm315_vm2, %v1245_v52 }
  0x70   :  { %2534 = vmatprep.mubr.msk.bf16.mxu0 %vm315_vm2, %v1246_v56 }
  0x72   :  { %116 = vperm.xlu1 %2743, %v2968_v1   ;;  %121 = vperm.xlu0 %2742, %v2974_v3  }
  0x76   :  { %126 = vperm.xlu1 %2743, %v2984_v9   ;;  %131 = vperm.xlu0 %2742, %v2982_v8  }
  0x77   :  { %2535 = vmatmul.mubr.msk.bf16.gmra.mrb[8].mxu0 %vm315_vm2, %v1247_v59  ;;  %v3263_v59 = vld [vmem:[%s3907_s0 + $0x151] sm:$0xff] }
  0x78   :  { %2538 = vmatprep.mubr.msk.bf16.mxu0 %vm315_vm2, %v1248_v63 }
  0x7a   :  { %136 = vperm.xlu1 %2743, %v2991_v13   ;;  %141 = vperm.xlu0 %2742, %v2989_v12  }
  0x7e   :  { %146 = vperm.xlu1 %2743, %v2997_v15   ;;  %151 = vperm.xlu0 %2742, %v2995_v14  }
  0x7f   :  { %2539 = vmatmul.mubr.msk.bf16.gmra.mrb[12].mxu0 %vm315_vm2, %v1249_v6  ;;  %v3278_v6 = vld [vmem:[%s3907_s0 + $0x161] sm:$0xff] }
  0x82   :  { %2744 = vset.pattern.permute.xlu1 %v2873_v55  ;;  %166 = vperm.xlu0 %2742, %v3018_v23  }
  0x83   :  { %1409 = vperm.xlu1 %2744, %v2970_v2  }
  0x86   :  { %2751 = vset.pattern.permute.xlu0 %v2874_v60 }
  0x87   :  { %2745 = vset.pattern.permute.xlu1 %v2872_v36  ;;  %585 = vperm.xlu0 %2751, %v2970_v2  }
  0x88   :  { %156 = vperm.xlu1 %2745, %v3003_v17  }
  0x8b   :  { %2752 = vset.pattern.permute.xlu0 %v2873_v55 }
  0x8c   :  { %161 = vperm.xlu1 %2745, %v3001_v16   ;;  %1413 = vperm.xlu0 %2752, %v2976_v4  }
  0x90   :  { %2746 = vset.pattern.permute.xlu1 %v2873_v55  ;;  %1417 = vperm.xlu0 %2752, %v2968_v1  }
  0x91   :  { %1421 = vperm.xlu1 %2746, %v2974_v3  }
  0x94   :  { %1429 = vperm.xlu0 %2752, %v2982_v8  }
  0x95   :  { %2747 = vset.pattern.permute.xlu1 %v2872_v36 }
  0x96   :  { %171 = vperm.xlu1 %2747, %v3010_v20  }
  0x98   :  { %1433 = vperm.xlu0 %2752, %v2991_v13  }
  0x9a   :  { %2748 = vset.pattern.permute.xlu1 %v2873_v55 }
  0x9b   :  { %1425 = vperm.xlu1 %2748, %v2984_v9  }
  0x9c   :  { %1445 = vperm.xlu0 %2752, %v2995_v14  }
  0x9f   :  { %2749 = vset.pattern.permute.xlu1 %v2872_v36  ;;  %v3205_v36 = vld [vmem:[%s3907_s0 + $0x129] sm:$0xff] }
  0xa0   :  { %176 = vperm.xlu1 %2749, %v3033_v29   ;;  %1449 = vperm.xlu0 %2752, %v3003_v17  }
  0xa4   :  { %181 = vperm.xlu1 %2749, %v3031_v28   ;;  %1461 = vperm.xlu0 %2752, %v3010_v20  }
  0xa8   :  { %2750 = vset.pattern.permute.xlu1 %v2873_v55  ;;  %1465 = vperm.xlu0 %2752, %v3033_v29  }
  0xa9   :  { %1437 = vperm.xlu1 %2750, %v2989_v12  }
  0xac   :  { %2760 = vset.pattern.permute.xlu0 %v2874_v60 }
  0xad   :  { %2753 = vset.pattern.permute.xlu1 %v2874_v60  ;;  %601 = vperm.xlu0 %2760, %v2984_v9  }
  0xae   :  { %589 = vperm.xlu1 %2753, %v2976_v4  }
  0xb1   :  { %617 = vperm.xlu0 %2760, %v2997_v15  }
  0xb2   :  { %2754 = vset.pattern.permute.xlu1 %v2873_v55 }
  0xb3   :  { %1441 = vperm.xlu1 %2754, %v2997_v15  }
  0xb5   :  { %629 = vperm.xlu0 %2760, %v3001_v16  }
  0xb7   :  { %2755 = vset.pattern.permute.xlu1 %v2874_v60 }
  0xb8   :  { %593 = vperm.xlu1 %2755, %v2968_v1  }
  0xb9   :  { %637 = vperm.xlu0 %2760, %v3010_v20  }
  0xbc   :  { %597 = vperm.xlu1 %2755, %v2974_v3  }
  0xbd   :  { %645 = vperm.xlu0 %2760, %v3031_v28  }
  0xc0   :  { %2756 = vset.pattern.permute.xlu1 %v2873_v55 }
  0xc1   :  { %1453 = vperm.xlu1 %2756, %v3001_v16   ;;  %2764 = vset.pattern.permute.xlu0 %v2875_v18 }
  0xc2   :  { %835 = vperm.xlu0 %2764, %v2976_v4  }
  0xc5   :  { %2757 = vset.pattern.permute.xlu1 %v2874_v60 }
  0xc6   :  { %605 = vperm.xlu1 %2757, %v2982_v8   ;;  %847 = vperm.xlu0 %2764, %v2984_v9   ;;  %v3189_v9 = vld [vmem:[%s3907_s0 + $0x119] sm:$0xff] }
  0xca   :  { %2758 = vset.pattern.permute.xlu1 %v2873_v55  ;;  %855 = vperm.xlu0 %2764, %v2991_v13  }
  0xcb   :  { %1457 = vperm.xlu1 %2758, %v3018_v23  }
  0xcc   :  { %v235_v24 = vpop.permute.xlu1 %234  ;;  %v227_v4 = vpop.permute.xlu0 %226 }
  0xcd   :  { %v289_v27 = vmul.f32 %v227_v4, %v209_v5  ;;  %v291_v32 = vmul.f32 %v235_v24, %v3184_v25  ;;  %v3273_v5 = vld [vmem:[%s3907_s0 + $0x169] sm:$0xff] }
  0xce   :  { %863 = vperm.xlu0 %2764, %v2997_v15   ;;  %v3210_v15 = vld [vmem:[%s3907_s0 + $0x121] sm:$0xff] }
  0xcf   :  { %2759 = vset.pattern.permute.xlu1 %v2874_v60  ;;  %v1655_v11 = vpack.c.bf16 %v3210_v15, %v3189_v9 }
  0xd0   :  { %v239_v30 = vpop.permute.xlu1 %238  ;;  %609 = vperm.xlu1 %2759, %v2991_v13   ;;  %v231_v31 = vpop.permute.xlu0 %230 }
  0xd1   :  { %v292_v33 = vmul.f32 %v239_v30, %v3189_v9  ;;  %v290_v34 = vmul.f32 %v231_v31, %v3194_v26  ;;  %v3296_v30 = vld [vmem:[%s3907_s0 + $0x171] sm:$0xff] }
  0xd2   :  { %871 = vperm.xlu0 %2764, %v3003_v17  }
  0xd3   :  { %v306_v13 = vpack.c.bf16 %v292_v33, %v291_v32  ;;  %v305_v37 = vpack.c.bf16 %v290_v34, %v289_v27  ;;  %v3291_v27 = vld [vmem:[%s3907_s0 + $0x179] sm:$0xff] }
  0xd4   :  { %v247_v38 = vpop.permute.xlu1 %246  ;;  %613 = vperm.xlu1 %2759, %v2989_v12   ;;  %v243_v39 = vpop.permute.xlu0 %242 }
  0xd5   :  { %v294_v42 = vmul.f32 %v247_v38, %v3205_v36  ;;  %v293_v43 = vmul.f32 %v243_v39, %v3210_v15  ;;  %2436 = vmatprep.mubr.msk.bf16.mxu1 %vm315_vm2, %v305_v37  ;;  %v3307_v37 = vld [vmem:[%s3907_s0 + $0x188] sm:$0xff]  ;;  %v72_v38 = vld [vmem:[%s3907_s0 + $0x180] sm:$0xff] }
  0xd6   :  { %2437 = vmatmul.mubr.msk.bf16.vlgmr.msra.gmra.mrb[0].mxu1 %vm315_vm2, %v306_v13  ;;  %879 = vperm.xlu0 %2764, %v3018_v23  }
  0xd7   :  { %v307_v46 = vpack.c.bf16 %v294_v42, %v293_v43  ;;  %2453 = vmatpush3.bf16.msra.mxu1 %v3058_v40  ;;  %v3247_v40 = vld [vmem:[%s3907_s0 + $0x141] sm:$0xff] }
  0xd8   :  { %v255_v47 = vpop.permute.xlu1 %254  ;;  %2761 = vset.pattern.permute.xlu1 %v2873_v55  ;;  %v251_v48 = vpop.permute.xlu0 %250  ;;  %2470 = vmatprep.subr.bf16.mxu1 %v3215_v41  ;;  %v1657_v39 = vpack.c.bf16 %v3247_v40, %v3224_v44 }
  0xd9   :  { %v296_v49 = vmul.f32 %v255_v47, %v3224_v44  ;;  %v295_v50 = vmul.f32 %v251_v48, %v3229_v45  ;;  %1469 = vperm.xlu1 %2761, %v3031_v28   ;;  %2440 = vmatprep.mubr.msk.bf16.mxu1 %vm315_vm2, %v307_v46  ;;  %v3321_v47 = vld [vmem:[%s3907_s0 + $0x190] sm:$0xff]  ;;  %v3326_v48 = vld [vmem:[%s3907_s0 + $0x198] sm:$0xff] }
  0xda   :  { %887 = vperm.xlu0 %2764, %v3033_v29   ;;  %v816_v44 = vld [vmem:[%s3907_s0 + $0x98] sm:$0xff] }
  0xdb   :  { %v308_v52 = vpack.c.bf16 %v296_v49, %v295_v50 }
  0xdc   :  { %v263_v53 = vpop.permute.xlu1 %262  ;;  %v259_v54 = vpop.permute.xlu0 %258 }
  0xdd   :  { %v298_v56 = vmul.f32 %v263_v53, %v3242_v51  ;;  %v297_v57 = vmul.f32 %v259_v54, %v3247_v40  ;;  %2762 = vset.pattern.permute.xlu1 %v2874_v60  ;;  %v919_v53 = vld [vmem:[#allocation2 + $0x6] sm:$0x3] }
  0xde   :  { %621 = vperm.xlu1 %2762, %v2995_v14   ;;  %2441 = vmatmul.mubr.msk.bf16.gmra.mrb[4].mxu1 %vm315_vm2, %v308_v52  ;;  %v817_v40 = vld [vmem:[%s3907_s0 + $0xa0] sm:$0xff] }
  0xdf   :  { %v309_v61 = vpack.c.bf16 %v298_v56, %v297_v57  ;;  %2765 = vset.pattern.permute.xlu0 %v2873_v55  ;;  %v1654_v55 = vpack.c.bf16 %v3184_v25, %v3194_v26  ;;  %v3337_v56 = vld [vmem:[%s3907_s0 + $0x1a0] sm:$0xff]  ;;  %v3342_v57 = vld [vmem:[%s3907_s0 + $0x1a8] sm:$0xff] }
  0xe0   :  { %v271_v62 = vpop.permute.xlu1 %270  ;;  %v267_v63 = vpop.permute.xlu0 %266  ;;  %v3538_v25 = vld [vmem:[%s3907_s0 + $0x1e9] sm:$0xff]  ;;  %v3543_v26 = vld [vmem:[%s3907_s0 + $0x1e1] sm:$0xff] }
  0xe1   :  { %v300_v60 = vmul.f32 %v271_v62, %v3258_v58  ;;  %v299_v0 = vmul.f32 %v267_v63, %v3263_v59  ;;  %2444 = vmatprep.mubr.msk.bf16.mxu1 %vm315_vm2, %v309_v61  ;;  %v1659_v61 = vpack.c.bf16 %v3278_v6, %v3258_v58  ;;  %v3347_v63 = vand.u32 %v919_v53, %v2978_v7 }
  0xe2   :  { %625 = vperm.xlu1 %2762, %v3003_v17  }
  0xe3   :  { %v310_v10 = vpack.c.bf16 %v300_v60, %v299_v0 }
  0xe4   :  { %v279_v21 = vpop.permute.xlu1 %278  ;;  %v275_v24 = vpop.permute.xlu0 %274 }
  0xe5   :  { %v302_v17 = vmul.f32 %v279_v21, %v3273_v5  ;;  %v301_v4 = vmul.f32 %v275_v24, %v3278_v6  ;;  %v3356_v21 = vld [vmem:[%s3907_s0 + $0x1b0] sm:$0xff]  ;;  %v3361_v24 = vld [vmem:[%s3907_s0 + $0x1b8] sm:$0xff] }
  0xe6   :  { %633 = vperm.xlu1 %2762, %v3018_v23   ;;  %2445 = vmatmul.mubr.msk.bf16.gmra.mrb[8].mxu1 %vm315_vm2, %v310_v10  ;;  %v1656_v23 = vpack.c.bf16 %v3229_v45, %v3205_v36  ;;  %v814_v36 = vld [vmem:[%s3907_s0 + $0x88] sm:$0xff] }
  0xe7   :  { %v311_v31 = vpack.c.bf16 %v302_v17, %v301_v4 }
  0xe8   :  { %v287_v32 = vpop.permute.xlu1 %286  ;;  %v283_v33 = vpop.permute.xlu0 %282 }
  0xe9   :  { %v304_v34 = vmul.f32 %v287_v32, %v3291_v27  ;;  %v303_v35 = vmul.f32 %v283_v33, %v3296_v30  ;;  %2448 = vmatprep.mubr.msk.bf16.mxu1 %vm315_vm2, %v311_v31  ;;  %v3371_v33 = vld [vmem:[%s3907_s0 + $0x181] sm:$0xff] }
  0xea   :  { %641 = vperm.xlu1 %2762, %v3033_v29  }
  0xeb   :  { %v312_v13 = vpack.c.bf16 %v304_v34, %v303_v35  ;;  %v1660_v34 = vpack.c.bf16 %v3296_v30, %v3273_v5  ;;  %v3384_v35 = vld [vmem:[%s3907_s0 + $0x1c8] sm:$0xff]  ;;  %v820_v5 = vld [vmem:[%s3907_s0 + $0xb8] sm:$0xff]  ;;  %v821_v30 = vld [vmem:[%s3907_s0 + $0xc0] sm:$0xff] }
  0xed   :  { %v112_v42 = vpop.permute.xlu1 %111  ;;  %v107_v43 = vpop.permute.xlu0 %106 }
  0xee   :  { %v185_v29 = vmul.f32 %v112_v42, %v3307_v37  ;;  %v184_v46 = vmul.f32 %v107_v43, %v72_v38  ;;  %2763 = vset.pattern.permute.xlu1 %v2875_v18  ;;  %2449 = vmatmul.mubr.msk.bf16.gmra.mrb[12].mxu1 %vm315_vm2, %v312_v13  ;;  %v1661_v13 = vpack.c.bf16 %v3371_v33, %v3291_v27  ;;  %v823_v27 = vld [vmem:[%s3907_s0 + $0xd0] sm:$0xff] }
  0xef   :  { %831 = vperm.xlu1 %2763, %v2970_v2   ;;  %v1658_v2 = vpack.c.bf16 %v3263_v59, %v3242_v51 }
  0xf0   :  { %v200_v49 = vpack.c.bf16 %v185_v29, %v184_v46 }
  0xf1   :  { %v117_v50 = vpop.permute.xlu1 %116  ;;  %v122_v52 = vpop.permute.xlu0 %121 }
  0xf2   :  { %v186_v18 = vmul.f32 %v117_v50, %v3321_v47  ;;  %v187_v54 = vmul.f32 %v122_v52, %v3326_v48  ;;  %2454 = vmatprep.mubr.msk.bf16.mxu1 %vm315_vm2, %v200_v49  ;;  %v3395_v50 = vld [vmem:[%s3907_s0 + $0x189] sm:$0xff]  ;;  %v3400_v52 = vld [vmem:[%s3907_s0 + $0x191] sm:$0xff] }
  0xf3   :  { %839 = vperm.xlu1 %2763, %v2968_v1  }
  0xf4   :  { %v201_v62 = vpack.c.bf16 %v187_v54, %v186_v18  ;;  %v1820_v18 = vpack.c.bf16 %v3400_v52, %v3395_v50 }
  0xf5   :  { %v127_v60 = vpop.permute.xlu1 %126  ;;  %v132_v0 = vpop.permute.xlu0 %131 }
  0xf6   :  { %v188_v1 = vmul.f32 %v127_v60, %v3337_v56  ;;  %v189_v10 = vmul.f32 %v132_v0, %v3342_v57  ;;  %2455 = vmatmul.mubr.msk.bf16.vlgmr.msra.gmra.mrb[0].mxu1 %vm315_vm2, %v201_v62  ;;  %v82_v62 = vld [vmem:[%s3907_s0 + $0x1d0] sm:$0xff]  ;;  %v3413_v60 = vld [vmem:[%s3907_s0 + $0x1d8] sm:$0xff] }
  0xf7   :  { %843 = vperm.xlu1 %2763, %v2974_v3   ;;  %2471 = vmatpush3.bf16.msra.mxu1 %v3215_v41  ;;  %v3379_v41 = vld [vmem:[%s3907_s0 + $0x1c0] sm:$0xff] }
  0xf8   :  { %v202_v17 = vpack.c.bf16 %v189_v10, %v188_v1  ;;  %2488 = vmatprep.subr.bf16.mxu1 %v3347_v63 }
  0xf9   :  { %v137_v4 = vpop.permute.xlu1 %136  ;;  %v142_v31 = vpop.permute.xlu0 %141 }
  0xfa   :  { %v190_v32 = vmul.f32 %v137_v4, %v3356_v21  ;;  %v191_v3 = vmul.f32 %v142_v31, %v3361_v24  ;;  %2458 = vmatprep.mubr.msk.bf16.mxu1 %vm315_vm2, %v202_v17 }
  0xfb   :  { %851 = vperm.xlu1 %2763, %v2982_v8  }
  0xfc   :  { %v203_v38 = vpack.c.bf16 %v191_v3, %v190_v32 }
  0xfd   :  { %v147_v42 = vpop.permute.xlu1 %146  ;;  %v152_v43 = vpop.permute.xlu0 %151 }
  0xfe   :  { %v192_v29 = vmul.f32 %v147_v42, %v3379_v41  ;;  %v193_v8 = vmul.f32 %v152_v43, %v3384_v35  ;;  %2459 = vmatmul.mubr.msk.bf16.gmra.mrb[4].mxu1 %vm315_vm2, %v203_v38 }
  0xff   :  { %859 = vperm.xlu1 %2763, %v2989_v12  }
 0x100   :  { %v204_v46 = vpack.c.bf16 %v193_v8, %v192_v29 }
 0x101   :  { %v167_v49 = vpop.permute.xlu0 %166 }
 0x102   :  { %v1410_v53 = vpop.permute.xlu1 %1409  ;;  %2462 = vmatprep.mubr.msk.bf16.mxu1 %vm315_vm2, %v204_v46 }
 0x103   :  { %867 = vperm.xlu1 %2763, %v2995_v14   ;;  %v1472_v10 = vmul.f32 %v1410_v53, %v3307_v37  ;;  %v84_v37 = vld [vmem:[%s3907_s0 + $0x1e0] sm:$0xff] }
 0x104   :  { %v196_v29 = vmul.f32 %v167_v49, %v84_v37 }
 0x106   :  { %v586_v12 = vpop.permute.xlu0 %585 }
 0x107   :  { %875 = vperm.xlu1 %2763, %v3001_v16   ;;  %v157_v54 = vpop.permute.xlu1 %156 }
 0x108   :  { %v194_v14 = vmul.f32 %v157_v54, %v82_v62 }
 0x10b   :  { %883 = vperm.xlu1 %2763, %v3010_v20   ;;  %v162_v0 = vpop.permute.xlu1 %161  ;;  %v1414_v1 = vpop.permute.xlu0 %1413  ;;  %v1829_v20 = vld [vmem:[#allocation2 + $0x10] sm:$0x3] }
 0x10c   :  { %v195_v17 = vmul.f32 %v162_v0, %v3413_v60  ;;  %v1473_v16 = vmul.f32 %v1414_v1, %v3321_v47  ;;  %v3433_v43 = vand.u32 %v1829_v20, %v2978_v7  ;;  %v86_v1 = vld [vmem:[%s3907_s0 + $0x1f0] sm:$0xff] }
 0x10e   :  { %v205_v4 = vpack.c.bf16 %v195_v17, %v194_v14  ;;  %v1488_v31 = vpack.c.bf16 %v1473_v16, %v1472_v10 }
 0x10f   :  { %891 = vperm.xlu1 %2763, %v3031_v28   ;;  %v1418_v32 = vpop.permute.xlu0 %1417  ;;  %v3430_v28 = vld [vmem:[%s3907_s0 + $0x1e8] sm:$0xff] }
 0x110   :  { %v1422_v3 = vpop.permute.xlu1 %1421  ;;  %2544 = vmatprep.mubr.msk.bf16.mxu0 %vm315_vm2, %v1488_v31  ;;  %v1474_v38 = vmul.f32 %v1418_v32, %v3326_v48  ;;  %2463 = vmatmul.mubr.msk.bf16.gmra.mrb[8].mxu1 %vm315_vm2, %v205_v4 }
 0x111   :  { %v1475_v42 = vmul.f32 %v1422_v3, %v3337_v56 }
 0x113   :  { %v1489_v47 = vpack.c.bf16 %v1475_v42, %v1474_v38  ;;  %v1430_v46 = vpop.permute.xlu0 %1429  ;;  %v648_v38 = vmul.f32 %v586_v12, %v3371_v33  ;;  %v3464_v12 = vld [vmem:[%s3907_s0 + $0x199] sm:$0xff] }
 0x114   :  { %v1477_v53 = vmul.f32 %v1430_v46, %v3356_v21 }
 0x115   :  { %v172_v48 = vpop.permute.xlu1 %171  ;;  %2545 = vmatmul.mubr.msk.bf16.vlgmr.msra.gmra.mrb[0].mxu0 %vm315_vm2, %v1489_v47 }
 0x116   :  { %v197_v8 = vmul.f32 %v172_v48, %v3430_v28  ;;  %2561 = vmatpush3.bf16.msra.mxu0 %v3175_v22  ;;  %v3449_v22 = vld [vmem:[%s3907_s0 + $0x1f8] sm:$0xff] }
 0x117   :  { %2578 = vmatprep.subr.bf16.mxu0 %v3433_v43  ;;  %v1434_v17 = vpop.permute.xlu0 %1433 }
 0x118   :  { %v206_v56 = vpack.c.bf16 %v197_v8, %v196_v29 }
 0x11a   :  { %v1426_v54 = vpop.permute.xlu1 %1425  ;;  %2466 = vmatprep.mubr.msk.bf16.mxu1 %vm315_vm2, %v206_v56 }
 0x11b   :  { %v1476_v7 = vmul.f32 %v1426_v54, %v3342_v57  ;;  %v1478_v57 = vmul.f32 %v1434_v17, %v3361_v24  ;;  %v1446_v3 = vpop.permute.xlu0 %1445 }
 0x11c   :  { %v1481_v29 = vmul.f32 %v1446_v3, %v82_v62 }
 0x11d   :  { %v1490_v0 = vpack.c.bf16 %v1477_v53, %v1476_v7 }
 0x11f   :  { %v177_v49 = vpop.permute.xlu1 %176  ;;  %2548 = vmatprep.mubr.msk.bf16.mxu0 %vm315_vm2, %v1490_v0  ;;  %v1450_v48 = vpop.permute.xlu0 %1449 }
 0x120   :  { %v198_v21 = vmul.f32 %v177_v49, %v86_v1 }
 0x123   :  { %v182_v10 = vpop.permute.xlu1 %181 }
 0x124   :  { %v199_v14 = vmul.f32 %v182_v10, %v3449_v22 }
 0x126   :  { %v207_v16 = vpack.c.bf16 %v199_v14, %v198_v21  ;;  %v3473_v21 = vld [vmem:[%s3907_s0 + $0x1a1] sm:$0xff] }
 0x128   :  { %v1438_v4 = vpop.permute.xlu1 %1437  ;;  %2467 = vmatmul.mubr.msk.bf16.gmra.mrb[12].mxu1 %vm315_vm2, %v207_v16  ;;  %v3480_v16 = vld [vmem:[%s3907_s0 + $0x1a9] sm:$0xff] }
 0x129   :  { %v1479_v31 = vmul.f32 %v1438_v4, %v3379_v41  ;;  %v1462_v41 = vpop.permute.xlu0 %1461 }
 0x12b   :  { %v1491_v32 = vpack.c.bf16 %v1479_v31, %v1478_v57 }
 0x12d   :  { %v590_v20 = vpop.permute.xlu1 %589  ;;  %2549 = vmatmul.mubr.msk.bf16.gmra.mrb[4].mxu0 %vm315_vm2, %v1491_v32  ;;  %v1466_v7 = vpop.permute.xlu0 %1465 }
 0x12e   :  { %v649_v42 = vmul.f32 %v590_v20, %v3395_v50 }
 0x130   :  { %v664_v47 = vpack.c.bf16 %v649_v42, %v648_v38  ;;  %v3491_v42 = vld [vmem:[%s3907_s0 + $0x1b1] sm:$0xff] }
 0x131   :  { %v602_v14 = vpop.permute.xlu0 %601 }
 0x132   :  { %v1442_v8 = vpop.permute.xlu1 %1441  ;;  %2472 = vmatprep.mubr.msk.bf16.mxu1 %vm315_vm2, %v664_v47  ;;  %v652_v57 = vmul.f32 %v602_v14, %v3473_v21  ;;  %v3496_v47 = vld [vmem:[%s3907_s0 + $0x1b9] sm:$0xff] }
 0x133   :  { %v1480_v24 = vmul.f32 %v1442_v8, %v3384_v35  ;;  %v1482_v35 = vmul.f32 %v1450_v48, %v3413_v60 }
 0x135   :  { %v1492_v46 = vpack.c.bf16 %v1481_v29, %v1480_v24  ;;  %v618_v20 = vpop.permute.xlu0 %617  ;;  %v1407_v24 = vld [vmem:[%s3907_s0 + $0x200] sm:$0xff] }
 0x137   :  { %v594_v56 = vpop.permute.xlu1 %593  ;;  %2552 = vmatprep.mubr.msk.bf16.mxu0 %vm315_vm2, %v1492_v46 }
 0x138   :  { %v650_v54 = vmul.f32 %v594_v56, %v3400_v52  ;;  %v1486_v56 = vmul.f32 %v1466_v7, %v3449_v22  ;;  %v3525_v7 = vld [vmem:[%s3907_s0 + $0x1d9] sm:$0xff]  ;;  %v1822_v52 = vpack.c.bf16 %v3491_v42, %v3480_v16 }
 0x139   :  { %v630_v48 = vpop.permute.xlu0 %629 }
 0x13b   :  { %v598_v53 = vpop.permute.xlu1 %597 }
 0x13c   :  { %v651_v62 = vmul.f32 %v598_v53, %v3464_v12 }
 0x13e   :  { %v665_v0 = vpack.c.bf16 %v651_v62, %v650_v54  ;;  %v3513_v62 = vld [vmem:[%s3907_s0 + $0x1c9] sm:$0xff] }
 0x140   :  { %v1454_v49 = vpop.permute.xlu1 %1453  ;;  %2473 = vmatmul.mubr.msk.bf16.vlgmr.msra.gmra.mrb[0].mxu1 %vm315_vm2, %v665_v0 }
 0x141   :  { %v1483_v10 = vmul.f32 %v1454_v49, %v84_v37  ;;  %2489 = vmatpush3.bf16.msra.mxu1 %v3347_v63  ;;  %v1485_v63 = vmul.f32 %v1462_v41, %v86_v1  ;;  %v3508_v41 = vld [vmem:[%s3907_s0 + $0x1c1] sm:$0xff]  ;;  %v638_v49 = vpop.permute.xlu0 %637 }
 0x142   :  { %2596 = vmatprep.subr.bf16.mxu1 %v3006_v19  ;;  %v656_v0 = vmul.f32 %v618_v20, %v3508_v41 }
 0x143   :  { %v1493_v17 = vpack.c.bf16 %v1483_v10, %v1482_v35  ;;  %v3530_v10 = vld [vmem:[%s3907_s0 + $0x1d1] sm:$0xff] }
 0x145   :  { %v606_v60 = vpop.permute.xlu1 %605  ;;  %2553 = vmatmul.mubr.msk.bf16.gmra.mrb[8].mxu0 %vm315_vm2, %v1493_v17 }
 0x146   :  { %v653_v37 = vmul.f32 %v606_v60, %v3480_v16  ;;  %v646_v60 = vpop.permute.xlu0 %645 }
 0x148   :  { %v666_v4 = vpack.c.bf16 %v653_v37, %v652_v57  ;;  %v659_v57 = vmul.f32 %v630_v48, %v3525_v7 }
 0x14a   :  { %v1458_v31 = vpop.permute.xlu1 %1457  ;;  %2476 = vmatprep.mubr.msk.bf16.mxu1 %vm315_vm2, %v666_v4  ;;  %v836_v9 = vpop.permute.xlu0 %835 }
 0x14b   :  { %v1484_v32 = vmul.f32 %v1458_v31, %v3430_v28  ;;  %v661_v31 = vmul.f32 %v638_v49, %v3538_v25 }
 0x14d   :  { %v1494_v3 = vpack.c.bf16 %v1485_v63, %v1484_v32  ;;  %v3556_v32 = vld [vmem:[%s3907_s0 + $0x1f9] sm:$0xff] }
 0x14f   :  { %v610_v38 = vpop.permute.xlu1 %609  ;;  %2556 = vmatprep.mubr.msk.bf16.mxu0 %vm315_vm2, %v1494_v3  ;;  %v3561_v3 = vld [vmem:[%s3907_s0 + $0x1f1] sm:$0xff] }
 0x150   :  { %v654_v1 = vmul.f32 %v610_v38, %v3491_v42  ;;  %v815_v38 = vld [vmem:[%s3907_s0 + $0x90] sm:$0xff] }
 0x151   :  { %v895_v45 = vmul.f32 %v836_v9, %v815_v38  ;;  %v829_v38 = vld [vmem:[%s3907_s0 + $0x100] sm:$0xff] }
 0x153   :  { %v614_v29 = vpop.permute.xlu1 %613 }
 0x154   :  { %v655_v28 = vmul.f32 %v614_v29, %v3496_v47 }
 0x156   :  { %v667_v8 = vpack.c.bf16 %v655_v28, %v654_v1 }
 0x158   :  { %v1470_v46 = vpop.permute.xlu1 %1469  ;;  %2477 = vmatmul.mubr.msk.bf16.gmra.mrb[4].mxu1 %vm315_vm2, %v667_v8 }
 0x159   :  { %v1487_v53 = vmul.f32 %v1470_v46, %v1407_v24  ;;  %v819_v46 = vld [vmem:[%s3907_s0 + $0xb0] sm:$0xff] }
 0x15b   :  { %v1495_v54 = vpack.c.bf16 %v1487_v53, %v1486_v56 }
 0x15d   :  { %v622_v35 = vpop.permute.xlu1 %621  ;;  %2557 = vmatmul.mubr.msk.bf16.gmra.mrb[12].mxu0 %vm315_vm2, %v1495_v54 }
 0x15e   :  { %v657_v22 = vmul.f32 %v622_v35, %v3513_v62  ;;  %2562 = vmatprep.mubr.msk.bf16.mxu0 %vm315_vm2, %v1654_v55 }
 0x160   :  { %v668_v14 = vpack.c.bf16 %v657_v22, %v656_v0 }
 0x161   :  { %v626_v17 = vpop.permute.xlu1 %625 }
 0x162   :  { %v658_v37 = vmul.f32 %v626_v17, %v3530_v10  ;;  %2480 = vmatprep.mubr.msk.bf16.mxu1 %vm315_vm2, %v668_v14  ;;  %v824_v14 = vld [vmem:[%s3907_s0 + $0xd8] sm:$0xff]  ;;  %v825_v17 = vld [vmem:[%s3907_s0 + $0xe0] sm:$0xff] }
 0x164   :  { %v669_v55 = vpack.c.bf16 %v659_v57, %v658_v37  ;;  %v827_v37 = vld [vmem:[%s3907_s0 + $0xf0] sm:$0xff] }
 0x165   :  { %v634_v4 = vpop.permute.xlu1 %633  ;;  %2563 = vmatmul.mubr.msk.bf16.vlgmr.msra.gmra.mrb[0].mxu0 %vm315_vm2, %v1655_v11 }
 0x166   :  { %v660_v63 = vmul.f32 %v634_v4, %v3543_v26  ;;  %2481 = vmatmul.mubr.msk.bf16.gmra.mrb[8].mxu1 %vm315_vm2, %v669_v55  ;;  %2579 = vmatpush3.bf16.msra.mxu0 %v3433_v43  ;;  %v663_v43 = vmul.f32 %v646_v60, %v3556_v32  ;;  %v826_v60 = vld [vmem:[%s3907_s0 + $0xe8] sm:$0xff]  ;;  %v1823_v4 = vpack.c.bf16 %v3508_v41, %v3496_v47  ;;  %v1069_v41 = vld [vmem:[%s3907_s0 + $0x51] sm:$0xff] }
 0x167   :  { %2566 = vmatprep.mubr.msk.bf16.mxu0 %vm315_vm2, %v1656_v23  ;;  %v848_v23 = vpop.permute.xlu0 %847  ;;  %v1068_v47 = vld [vmem:[%s3907_s0 + $0x49] sm:$0xff] }
 0x168   :  { %v670_v15 = vpack.c.bf16 %v661_v31, %v660_v63  ;;  %v1824_v63 = vpack.c.bf16 %v3530_v10, %v3513_v62 }
 0x169   :  { %v642_v11 = vpop.permute.xlu1 %641 }
 0x16a   :  { %v662_v20 = vmul.f32 %v642_v11, %v3561_v3  ;;  %2484 = vmatprep.mubr.msk.bf16.mxu1 %vm315_vm2, %v670_v15  ;;  %v828_v11 = vld [vmem:[%s3907_s0 + $0xf8] sm:$0xff] }
 0x16b   :  { %v856_v24 = vpop.permute.xlu0 %855 }
 0x16c   :  { %v671_v29 = vpack.c.bf16 %v663_v43, %v662_v20  ;;  %v900_v0 = vmul.f32 %v856_v24, %v820_v5 }
 0x16d   :  { %2567 = vmatmul.mubr.msk.bf16.gmra.mrb[4].mxu0 %vm315_vm2, %v1657_v39 }
 0x16e   :  { %v832_v1 = vpop.permute.xlu1 %831  ;;  %2485 = vmatmul.mubr.msk.bf16.gmra.mrb[12].mxu1 %vm315_vm2, %v671_v29  ;;  %2570 = vmatprep.mubr.msk.bf16.mxu0 %vm315_vm2, %v1658_v2  ;;  %v818_v2 = vld [vmem:[%s3907_s0 + $0xa8] sm:$0xff] }
 0x16f   :  { %v894_v28 = vmul.f32 %v832_v1, %v814_v36  ;;  %v864_v58 = vpop.permute.xlu0 %863  ;;  %v1080_v36 = vpack.c.bf16 %v1069_v41, %v1068_v47  ;;  %v1826_v1 = vpack.c.bf16 %v3561_v3, %v3538_v25  ;;  %v1073_v25 = vld [vmem:[%s3907_s0 + $0x71] sm:$0xff] }
 0x171   :  { %v910_v48 = vpack.c.bf16 %v895_v45, %v894_v28  ;;  %v1070_v28 = vld [vmem:[%s3907_s0 + $0x59] sm:$0xff] }
 0x172   :  { %v840_v8 = vpop.permute.xlu1 %839 }
 0x173   :  { %2490 = vmatprep.mubr.msk.bf16.mxu1 %vm315_vm2, %v910_v48  ;;  %v896_v59 = vmul.f32 %v840_v8, %v816_v44  ;;  %v872_v35 = vpop.permute.xlu0 %871  ;;  %v1071_v48 = vld [vmem:[%s3907_s0 + $0x61] sm:$0xff]  ;;  %v1074_v44 = vld [vmem:[%s3907_s0 + $0x79] sm:$0xff] }
 0x174   :  { %v904_v16 = vmul.f32 %v872_v35, %v824_v14  ;;  %v1081_v3 = vpack.c.bf16 %v1071_v48, %v1070_v28 }
 0x175   :  { %2571 = vmatmul.mubr.msk.bf16.gmra.mrb[8].mxu0 %vm315_vm2, %v1659_v61  ;;  %v898_v61 = vmul.f32 %v848_v23, %v818_v2  ;;  %v1825_v23 = vpack.c.bf16 %v3543_v26, %v3525_v7  ;;  %v1072_v7 = vld [vmem:[%s3907_s0 + $0x69] sm:$0xff]  ;;  %v1819_v26 = vld [vmem:[%s3907_s0 + $0x201] sm:$0xff] }
 0x176   :  { %v844_v51 = vpop.permute.xlu1 %843  ;;  %2574 = vmatprep.mubr.msk.bf16.mxu0 %vm315_vm2, %v1660_v34  ;;  %v1082_v8 = vpack.c.bf16 %v1073_v25, %v1072_v7  ;;  %v1827_v24 = vpack.c.bf16 %v1819_v26, %v3556_v32 }
 0x177   :  { %v897_v39 = vmul.f32 %v844_v51, %v817_v40  ;;  %v1075_v40 = vld [vmem:[%s3907_s0 + $0x81] sm:$0xff] }
 0x178   :  { %v1083_v51 = vpack.c.bf16 %v1075_v40, %v1074_v44 }
 0x179   :  { %v911_v56 = vpack.c.bf16 %v897_v39, %v896_v59 }
 0x17a   :  { %v852_v6 = vpop.permute.xlu1 %851 }
 0x17b   :  { %v899_v53 = vmul.f32 %v852_v6, %v819_v46  ;;  %2491 = vmatmul.mubr.msk.bf16.vlgmr.msra.gmra.mrb[0].mxu1 %vm315_vm2, %v911_v56 }
 0x17c   :  { %2597 = vmatpush3.bf16.msra.mxu1 %v3006_v19  ;;  %v822_v19 = vld [vmem:[%s3907_s0 + $0xc8] sm:$0xff] }
 0x17d   :  { %v912_v34 = vpack.c.bf16 %v899_v53, %v898_v61  ;;  %2575 = vmatmul.mubr.msk.bf16.gmra.mrb[12].mxu0 %vm315_vm2, %v1661_v13  ;;  %v1821_v13 = vpack.c.bf16 %v3473_v21, %v3464_v12  ;;  %v880_v12 = vpop.permute.xlu0 %879 }
 0x17e   :  { %v860_v54 = vpop.permute.xlu1 %859  ;;  %2580 = vmatprep.mubr.msk.bf16.mxu0 %vm315_vm2, %v1820_v18  ;;  %v902_v18 = vmul.f32 %v864_v58, %v822_v19  ;;  %v906_v9 = vmul.f32 %v880_v12, %v826_v60 }
 0x17f   :  { %v901_v49 = vmul.f32 %v860_v54, %v821_v30  ;;  %2494 = vmatprep.mubr.msk.bf16.mxu1 %vm315_vm2, %v912_v34 }
 0x181   :  { %v913_v33 = vpack.c.bf16 %v901_v49, %v900_v0  ;;  %v888_v43 = vpop.permute.xlu0 %887 }
 0x182   :  { %v868_v50 = vpop.permute.xlu1 %867  ;;  %v908_v10 = vmul.f32 %v888_v43, %v828_v11 }
 0x183   :  { %v903_v22 = vmul.f32 %v868_v50, %v823_v27  ;;  %2495 = vmatmul.mubr.msk.bf16.gmra.mrb[4].mxu1 %vm315_vm2, %v913_v33 }
 0x185   :  { %v914_v57 = vpack.c.bf16 %v903_v22, %v902_v18  ;;  %2581 = vmatmul.mubr.msk.bf16.vlgmr.msra.gmra.mrb[0].mxu0 %vm315_vm2, %v1821_v13 }
 0x186   :  { %v876_v21 = vpop.permute.xlu1 %875  ;;  %2584 = vmatprep.mubr.msk.bf16.mxu0 %vm315_vm2, %v1822_v52 }
 0x187   :  { %v905_v42 = vmul.f32 %v876_v21, %v825_v17  ;;  %2498 = vmatprep.mubr.msk.bf16.mxu1 %vm315_vm2, %v914_v57 }
 0x189   :  { %v915_v55 = vpack.c.bf16 %v905_v42, %v904_v16 }
 0x18a   :  { %v884_v31 = vpop.permute.xlu1 %883 }
 0x18b   :  { %v907_v15 = vmul.f32 %v884_v31, %v827_v37  ;;  %2499 = vmatmul.mubr.msk.bf16.gmra.mrb[8].mxu1 %vm315_vm2, %v915_v55 }
 0x18d   :  { %v916_v20 = vpack.c.bf16 %v907_v15, %v906_v9  ;;  %2585 = vmatmul.mubr.msk.bf16.gmra.mrb[4].mxu0 %vm315_vm2, %v1823_v4 }
 0x18e   :  { %v892_v62 = vpop.permute.xlu1 %891  ;;  %2588 = vmatprep.mubr.msk.bf16.mxu0 %vm315_vm2, %v1824_v63 }
 0x18f   :  { %v909_v29 = vmul.f32 %v892_v62, %v829_v38  ;;  %2502 = vmatprep.mubr.msk.bf16.mxu1 %vm315_vm2, %v916_v20 }
 0x191   :  { %v917_v45 = vpack.c.bf16 %v909_v29, %v908_v10 }
 0x193   :  { %2503 = vmatmul.mubr.msk.bf16.gmra.mrb[12].mxu1 %vm315_vm2, %v917_v45 }
 0x194   :  { %2516 = vmatprep.mubr.msk.bf16.mxu1 %vm315_vm2, %v1080_v36 }
 0x195   :  { %2589 = vmatmul.mubr.msk.bf16.gmra.mrb[8].mxu0 %vm315_vm2, %v1825_v23 }
 0x196   :  { %2592 = vmatprep.mubr.msk.bf16.mxu0 %vm315_vm2, %v1826_v1 }
 0x19b   :  { %2517 = vmatmul.mubr.msk.bf16.vlgmr.msra.gmra.mrb[8].mxu1 %vm315_vm2, %v1081_v3 }
 0x19c   :  { %2520 = vmatprep.mubr.msk.bf16.mxu1 %vm315_vm2, %v1082_v8 }
 0x19d   :  { %2593 = vmatmul.mubr.msk.bf16.gmra.mrb[12].mxu0 %vm315_vm2, %v1827_v24 }
 0x1a3   :  { %2521 = vmatmul.mubr.msk.bf16.gmra.mrb[12].mxu1 %vm315_vm2, %v1083_v51 }
 0x24e   :  { %v2492_v59 = vpop.f32.mrb[0].mxu1 }
 0x24f   :  { %v981_v39 = vpop.f32.mrb[1].mxu1 }
 0x250   :  { %v2493_v32 = vpop.f32.mrb[2].mxu1 }
 0x251   :  { %v984_v2 = vpop.f32.mrb[3].mxu1 }
 0x256   :  { %v2496_v46 = vpop.f32.mrb[4].mxu1 }
 0x257   :  { %v997_v56 = vpop.f32.mrb[5].mxu1 }
 0x258   :  { %v2497_v58 = vpop.f32.mrb[6].mxu1  ;;  %v2582_v6 = vpop.f32.mrb[0].mxu0 }
 0x259   :  { %v3703_v61 = vadd.f32 %v2582_v6, %v2492_v59  ;;  %v1000_v53 = vpop.f32.mrb[7].mxu1  ;;  %v1891_v5 = vpop.f32.mrb[1].mxu0 }
 0x25a   :  { %v3705_v30 = vadd.f32 %v1891_v5, %v981_v39  ;;  %v2583_v34 = vpop.f32.mrb[2].mxu0 }
 0x25b   :  { %v3707_v54 = vadd.f32 %v2583_v34, %v2493_v32  ;;  %v1894_v0 = vpop.f32.mrb[3].mxu0  ;;  %v1976_v33 = vsel %vm1972_vm3, %v3703_v61, 0.0 }
 0x25c   :  { %v3709_v49 = vadd.f32 %v1894_v0, %v984_v2  ;;  %v1973_v19 = vsel %vm1972_vm3, %v3705_v30, 0.0 }
 0x25d   :  { %v1978_v22 = vsel %vm1972_vm3, %v3707_v54, 0.0 }
 0x25e   :  { %v1974_v35 = vsel %vm1972_vm3, %v3709_v49, 0.0 }
 0x25f   :  { %v1975_v27 = vadd.f32 %v1974_v35, %v1973_v19 }
 0x260   :  { %v2586_v13 = vpop.f32.mrb[4].mxu0 }
 0x261   :  { %v1977_v50 = vadd.f32 %v1976_v33, %v1975_v27  ;;  %v3717_v52 = vadd.f32 %v2586_v13, %v2496_v46  ;;  %v1907_v18 = vpop.f32.mrb[5].mxu0 }
 0x262   :  { %v3721_v14 = vadd.f32 %v1907_v18, %v997_v56  ;;  %v2587_v17 = vpop.f32.mrb[6].mxu0 }
 0x263   :  { %v1979_v57 = vadd.f32 %v1978_v22, %v1977_v50  ;;  %v3723_v12 = vadd.f32 %v2587_v17, %v2497_v58  ;;  %v1910_v21 = vpop.f32.mrb[7].mxu0  ;;  %v1984_v4 = vsel %vm1972_vm3, %v3717_v52, 0.0 }
 0x264   :  { %v1980_v16 = vsel %vm1972_vm3, %v3721_v14, 0.0  ;;  %v2605_v42 = vadd.f32 %v1910_v21, %v1000_v53 }
 0x265   :  { %v1981_v60 = vadd.f32 %v1980_v16, %v1979_v57  ;;  %v1986_v15 = vsel %vm1972_vm3, %v3723_v12, 0.0 }
 0x266   :  { %v1982_v37 = vsel %vm1972_vm3, %v2605_v42, 0.0 }
 0x267   :  { %v1983_v55 = vadd.f32 %v1982_v37, %v1981_v60 }
 0x268   :  { %v2590_v31 = vpop.f32.mrb[8].mxu0 }
 0x269   :  { %v1985_v63 = vadd.f32 %v1984_v4, %v1983_v55  ;;  %v1923_v9 = vpop.f32.mrb[9].mxu0 }
 0x26a   :  { %v2591_v11 = vpop.f32.mrb[10].mxu0 }
 0x26b   :  { %v1926_v43 = vpop.f32.mrb[11].mxu0  ;;  %v1987_v38 = vadd.f32 %v1986_v15, %v1985_v63 }
 0x26e   :  { %v2518_v20 = vpop.f32.mrb[8].mxu1 }
 0x26f   :  { %v2606_v47 = vadd.f32 %v2590_v31, %v2518_v20  ;;  %v1179_v41 = vpop.f32.mrb[9].mxu1 }
 0x270   :  { %v2607_v62 = vadd.f32 %v1923_v9, %v1179_v41  ;;  %v2519_v10 = vpop.f32.mrb[10].mxu1  ;;  %v2594_v29 = vpop.f32.mrb[12].mxu0 }
 0x271   :  { %v2608_v36 = vadd.f32 %v2591_v11, %v2519_v10  ;;  %v1182_v45 = vpop.f32.mrb[11].mxu1  ;;  %v1939_v23 = vpop.f32.mrb[13].mxu0  ;;  %v1992_v8 = vsel %vm1972_vm3, %v2606_v47, 0.0 }
 0x272   :  { %v1988_v1 = vsel %vm1972_vm3, %v2607_v62, 0.0  ;;  %v2609_v28 = vadd.f32 %v1926_v43, %v1182_v45  ;;  %v2595_v48 = vpop.f32.mrb[14].mxu0 }
 0x273   :  { %v1989_v7 = vadd.f32 %v1988_v1, %v1987_v38  ;;  %v1942_v25 = vpop.f32.mrb[15].mxu0  ;;  %v1994_v59 = vsel %vm1972_vm3, %v2608_v36, 0.0 }
 0x274   :  { %v1990_v26 = vsel %vm1972_vm3, %v2609_v28, 0.0 }
 0x275   :  { %v1991_v3 = vadd.f32 %v1990_v26, %v1989_v7 }
 0x276   :  { %v2522_v24 = vpop.f32.mrb[12].mxu1 }
 0x277   :  { %v1993_v44 = vadd.f32 %v1992_v8, %v1991_v3  ;;  %v2610_v40 = vadd.f32 %v2594_v29, %v2522_v24  ;;  %v1195_v51 = vpop.f32.mrb[13].mxu1 }
 0x278   :  { %v2611_v39 = vadd.f32 %v1939_v23, %v1195_v51  ;;  %v2523_v32 = vpop.f32.mrb[14].mxu1 }
 0x279   :  { %v1995_v2 = vadd.f32 %v1994_v59, %v1993_v44  ;;  %v2612_v46 = vadd.f32 %v2595_v48, %v2523_v32  ;;  %v1198_v56 = vpop.f32.mrb[15].mxu1  ;;  %v2000_v0 = vsel %vm1972_vm3, %v2610_v40, 0.0 }
 0x27a   :  { %v1996_v58 = vsel %vm1972_vm3, %v2611_v39, 0.0  ;;  %v2613_v6 = vadd.f32 %v1942_v25, %v1198_v56 }
 0x27b   :  { %v1997_v53 = vadd.f32 %v1996_v58, %v1995_v2  ;;  %v2002_v35 = vsel %vm1972_vm3, %v2612_v46, 0.0 }
 0x27c   :  { %v1998_v5 = vsel %vm1972_vm3, %v2613_v6, 0.0 }
 0x27d   :  { %v1999_v34 = vadd.f32 %v1998_v5, %v1997_v53 }
 0x27f   :  { %v2001_v19 = vadd.f32 %v2000_v0, %v1999_v34 }
 0x281   :  { %v2003_v27 = vadd.f32 %v2002_v35, %v2001_v19 }
 0x283   :  { %v2004_v33 = vrot.slane %v2003_v27, 4 }
 0x285   :  { %v2005_v13 = vadd.f32 %v2004_v33, %v2003_v27 }
 0x287   :  { %v2006_v50 = vrot.slane %v2005_v13, 2 }
 0x289   :  { %v2007_v18 = vadd.f32 %v2006_v50, %v2005_v13 }
 0x28b   :  { %v2008_v22 = vrot.slane %v2007_v18, 1 }
 0x28d   :  { %v2009_v17 = vadd.f32 %v2008_v22, %v2007_v18 }
 0x28f   :  { %v2010_v57 = vmul.f32 0.0078125, %v2009_v17 }
 0x291   :  { %v3741_v21 = vsub.f32 %v3705_v30, %v2010_v57  ;;  %v3744_v16 = vsub.f32 %v3709_v49, %v2010_v57  ;;  %v3747_v60 = vsub.f32 %v3703_v61, %v2010_v57  ;;  %v3750_v37 = vsub.f32 %v3707_v54, %v2010_v57 }
 0x292   :  { %v3753_v55 = vsub.f32 %v3721_v14, %v2010_v57  ;;  %v3755_v4 = vsub.f32 %v2605_v42, %v2010_v57  ;;  %v3758_v31 = vsub.f32 %v3717_v52, %v2010_v57  ;;  %v3761_v30 = vsub.f32 %v3723_v12, %v2010_v57 }
 0x293   :  { %v3763_v63 = vsub.f32 %v2607_v62, %v2010_v57  ;;  %v3765_v49 = vsub.f32 %v2609_v28, %v2010_v57  ;;  %v3767_v61 = vsub.f32 %v2606_v47, %v2010_v57  ;;  %v3769_v9 = vsub.f32 %v2608_v36, %v2010_v57 }
 0x294   :  { %v3771_v54 = vsub.f32 %v2611_v39, %v2010_v57  ;;  %v3773_v14 = vsub.f32 %v2613_v6, %v2010_v57  ;;  %v3775_v42 = vsub.f32 %v2610_v40, %v2010_v57  ;;  %v3777_v15 = vsub.f32 %v2612_v46, %v2010_v57 }
 0x295   :  { %v2027_v52 = vmul.f32 %v3741_v21, %v3741_v21  ;;  %v2028_v12 = vmul.f32 %v3744_v16, %v3744_v16  ;;  %v2029_v11 = vmul.f32 %v3747_v60, %v3747_v60  ;;  %v2030_v43 = vmul.f32 %v3750_v37, %v3750_v37 }
 0x296   :  { %v2031_v41 = vmul.f32 %v3753_v55, %v3753_v55  ;;  %v2032_v29 = vmul.f32 %v3755_v4, %v3755_v4  ;;  %v2033_v23 = vmul.f32 %v3758_v31, %v3758_v31  ;;  %v2034_v48 = vmul.f32 %v3761_v30, %v3761_v30 }
 0x297   :  { %v2043_v38 = vsel %vm1972_vm3, %v2027_v52, 0.0  ;;  %v2044_v20 = vsel %vm1972_vm3, %v2028_v12, 0.0  ;;  %v2046_v62 = vsel %vm1972_vm3, %v2029_v11, 0.0  ;;  %v2048_v36 = vsel %vm1972_vm3, %v2030_v43, 0.0 }
 0x298   :  { %v2045_v47 = vadd.f32 %v2044_v20, %v2043_v38  ;;  %v2050_v1 = vsel %vm1972_vm3, %v2031_v41, 0.0  ;;  %v2052_v7 = vsel %vm1972_vm3, %v2032_v29, 0.0  ;;  %v2035_v26 = vmul.f32 %v3763_v63, %v3763_v63 }
 0x299   :  { %v2054_v3 = vsel %vm1972_vm3, %v2033_v23, 0.0  ;;  %v2036_v24 = vmul.f32 %v3765_v49, %v3765_v49  ;;  %v2056_v44 = vsel %vm1972_vm3, %v2034_v48, 0.0  ;;  %v2037_v51 = vmul.f32 %v3767_v61, %v3767_v61 }
 0x29a   :  { %v2047_v10 = vadd.f32 %v2046_v62, %v2045_v47  ;;  %v2058_v59 = vsel %vm1972_vm3, %v2035_v26, 0.0  ;;  %v2038_v32 = vmul.f32 %v3769_v9, %v3769_v9  ;;  %v2039_v56 = vmul.f32 %v3771_v54, %v3771_v54 }
 0x29b   :  { %v2060_v2 = vsel %vm1972_vm3, %v2036_v24, 0.0  ;;  %v2062_v58 = vsel %vm1972_vm3, %v2037_v51, 0.0  ;;  %v2040_v53 = vmul.f32 %v3773_v14, %v3773_v14  ;;  %v2041_v0 = vmul.f32 %v3775_v42, %v3775_v42 }
 0x29c   :  { %v2049_v45 = vadd.f32 %v2048_v36, %v2047_v10  ;;  %v2064_v5 = vsel %vm1972_vm3, %v2038_v32, 0.0  ;;  %v2066_v19 = vsel %vm1972_vm3, %v2039_v56, 0.0  ;;  %v2042_v27 = vmul.f32 %v3777_v15, %v3777_v15 }
 0x29d   :  { %v2068_v33 = vsel %vm1972_vm3, %v2040_v53, 0.0  ;;  %v2070_v50 = vsel %vm1972_vm3, %v2041_v0, 0.0 }
 0x29e   :  { %v2051_v28 = vadd.f32 %v2050_v1, %v2049_v45  ;;  %v2072_v22 = vsel %vm1972_vm3, %v2042_v27, 0.0  ;;  %v2319_v45 = vld [vmem:[#allocation4] ss:$0 sm:$0xff] }
 0x2a0   :  { %v2053_v25 = vadd.f32 %v2052_v7, %v2051_v28 }
 0x2a2   :  { %v2055_v8 = vadd.f32 %v2054_v3, %v2053_v25 }
 0x2a4   :  { %v2057_v40 = vadd.f32 %v2056_v44, %v2055_v8  ;;  %v2320_v8 = vld [vmem:[#allocation6] ss:$0 sm:$0xff] }
 0x2a6   :  { %v2059_v39 = vadd.f32 %v2058_v59, %v2057_v40 }
 0x2a8   :  { %v2061_v46 = vadd.f32 %v2060_v2, %v2059_v39 }
 0x2aa   :  { %v2063_v6 = vadd.f32 %v2062_v58, %v2061_v46 }
 0x2ac   :  { %v2065_v34 = vadd.f32 %v2064_v5, %v2063_v6 }
 0x2ae   :  { %v2067_v35 = vadd.f32 %v2066_v19, %v2065_v34 }
 0x2b0   :  { %v2069_v13 = vadd.f32 %v2068_v33, %v2067_v35 }
 0x2b2   :  { %v2071_v18 = vadd.f32 %v2070_v50, %v2069_v13 }
 0x2b4   :  { %v2073_v17 = vadd.f32 %v2072_v22, %v2071_v18 }
 0x2b6   :  { %v2074_v57 = vrot.slane %v2073_v17, 4 }
 0x2b8   :  { %v2075_v52 = vadd.f32 %v2074_v57, %v2073_v17 }
 0x2ba   :  { %v2076_v12 = vrot.slane %v2075_v52, 2 }
 0x2bc   :  { %v2077_v11 = vadd.f32 %v2076_v12, %v2075_v52 }
 0x2be   :  { %v2078_v43 = vrot.slane %v2077_v11, 1 }
 0x2c0   :  { %v2079_v38 = vadd.f32 %v2078_v43, %v2077_v11 }
 0x2c2   :  { %v2080_v20 = vmul.f32 0.0078125, %v2079_v38 }
 0x2c4   :  { %v2081_v47 = vadd.f32 1e-05, %v2080_v20 }
 0x2c6   :  { %2766 = vrsqrt.f32 %v2081_v47 }
 0x2d0   :  { %v2767_v41 = vpop.eup %2766 }
 0x2d1   :  { %v2083_v62 = vmul.f32 %v2767_v41, %v3741_v21  ;;  %v2084_v10 = vmul.f32 %v2767_v41, %v3744_v16  ;;  %v2085_v29 = vmul.f32 %v2767_v41, %v3747_v60  ;;  %v2086_v36 = vmul.f32 %v2767_v41, %v3750_v37 }
 0x2d2   :  { %v2087_v23 = vmul.f32 %v2767_v41, %v3753_v55  ;;  %v2088_v1 = vmul.f32 %v2767_v41, %v3755_v4  ;;  %v2089_v28 = vmul.f32 %v2767_v41, %v3758_v31  ;;  %v2090_v48 = vmul.f32 %v2767_v41, %v3761_v30 }
 0x2d3   :  { %v2091_v7 = vmul.f32 %v2767_v41, %v3763_v63  ;;  %v2092_v25 = vmul.f32 %v2767_v41, %v3765_v49  ;;  %v2093_v21 = vmul.f32 %v2767_v41, %v3767_v61  ;;  %v2094_v16 = vmul.f32 %v2767_v41, %v3769_v9 }
 0x2d4   :  { %v2095_v60 = vmul.f32 %v2767_v41, %v3771_v54  ;;  %v2096_v37 = vmul.f32 %v2767_v41, %v3773_v14  ;;  %v2097_v55 = vmul.f32 %v2767_v41, %v3775_v42  ;;  %v2098_v4 = vmul.f32 %v2767_v41, %v3777_v15 }
 0x2d5   :  { %v2105_v26 = vmul.f32 %v2319_v45, %v2083_v62  ;;  %v2106_v31 = vmul.f32 %v2319_v45, %v2084_v10  ;;  %v2107_v3 = vmul.f32 %v2319_v45, %v2085_v29  ;;  %v2108_v30 = vmul.f32 %v2319_v45, %v2086_v36 }
 0x2d6   :  { %v2109_v63 = vmul.f32 %v2319_v45, %v2087_v23  ;;  %v2110_v24 = vmul.f32 %v2319_v45, %v2088_v1  ;;  %v2111_v49 = vmul.f32 %v2319_v45, %v2089_v28  ;;  %v2112_v44 = vmul.f32 %v2319_v45, %v2090_v48 }
 0x2d7   :  { %v2113_v61 = vmul.f32 %v2319_v45, %v2091_v7  ;;  %v2114_v40 = vmul.f32 %v2319_v45, %v2092_v25  ;;  %v2115_v9 = vmul.f32 %v2319_v45, %v2093_v21  ;;  %v2116_v51 = vmul.f32 %v2319_v45, %v2094_v16 }
 0x2d8   :  { %v2117_v54 = vmul.f32 %v2319_v45, %v2095_v60  ;;  %v2118_v59 = vmul.f32 %v2319_v45, %v2096_v37  ;;  %v2119_v14 = vmul.f32 %v2319_v45, %v2097_v55  ;;  %v2120_v39 = vmul.f32 %v2319_v45, %v2098_v4 }
 0x2d9   :  { %v2127_v42 = vadd.f32 %v2320_v8, %v2105_v26  ;;  %v2128_v15 = vadd.f32 %v2320_v8, %v2106_v31  ;;  %v2129_v32 = vadd.f32 %v2320_v8, %v2107_v3  ;;  %v2130_v2 = vadd.f32 %v2320_v8, %v2108_v30 }
 0x2da   :  { %v2131_v46 = vadd.f32 %v2320_v8, %v2109_v63  ;;  %v2132_v56 = vadd.f32 %v2320_v8, %v2110_v24  ;;  %v2133_v58 = vadd.f32 %v2320_v8, %v2111_v49  ;;  %v2134_v6 = vadd.f32 %v2320_v8, %v2112_v44 }
 0x2db   :  { %v2135_v53 = vadd.f32 %v2320_v8, %v2113_v61  ;;  %v2136_v5 = vadd.f32 %v2320_v8, %v2114_v40  ;;  %v2137_v34 = vadd.f32 %v2320_v8, %v2115_v9  ;;  %v2138_v0 = vadd.f32 %v2320_v8, %v2116_v51 }
 0x2dc   :  { %v2139_v19 = vadd.f32 %v2320_v8, %v2117_v54  ;;  %v2140_v35 = vadd.f32 %v2320_v8, %v2118_v59  ;;  %v2141_v27 = vadd.f32 %v2320_v8, %v2119_v14  ;;  %v2142_v33 = vadd.f32 %v2320_v8, %v2120_v39 }
 0x2dd   :  { %v2143_v13 = vmax.f32 %v2127_v42, 0.0  ;;  %v2144_v50 = vmax.f32 %v2128_v15, 0.0  ;;  %v2145_v18 = vmax.f32 %v2129_v32, 0.0  ;;  %v2146_v22 = vmax.f32 %v2130_v2, 0.0 }
 0x2de   :  { %v2147_v17 = vmax.f32 %v2131_v46, 0.0  ;;  %v2148_v57 = vmax.f32 %v2132_v56, 0.0  ;;  %v2149_v52 = vmax.f32 %v2133_v58, 0.0  ;;  %v2150_v12 = vmax.f32 %v2134_v6, 0.0 }
 0x2df   :  { %v2151_v11 = vmax.f32 %v2135_v53, 0.0  ;;  %v2152_v43 = vmax.f32 %v2136_v5, 0.0  ;;  %v2153_v38 = vmax.f32 %v2137_v34, 0.0  ;;  %v2154_v20 = vmax.f32 %v2138_v0, 0.0 }
 0x2e0   :  { %v2155_v47 = vmax.f32 %v2139_v19, 0.0  ;;  %v2156_v41 = vmax.f32 %v2140_v35, 0.0  ;;  %v2157_v62 = vmax.f32 %v2141_v27, 0.0  ;;  %v2158_v10 = vmax.f32 %v2142_v33, 0.0 }
 0x2e1   :  { %v2337_v29 = vpack.c.bf16 %v2143_v13, %v2143_v13  ;;  %v2338_v36 = vpack.c.bf16 %v2144_v50, %v2144_v50  ;;  %v2339_v45 = vpack.c.bf16 %v2145_v18, %v2145_v18  ;;  %v2340_v23 = vpack.c.bf16 %v2146_v22, %v2146_v22 }
 0x2e2   :  { %v2341_v1 = vpack.c.bf16 %v2147_v17, %v2147_v17  ;;  %v2342_v28 = vpack.c.bf16 %v2148_v57, %v2148_v57  ;;  %v2343_v48 = vpack.c.bf16 %v2149_v52, %v2149_v52  ;;  %v2344_v7 = vpack.c.bf16 %v2150_v12, %v2150_v12 }
 0x2e3   :  { %v2345_v25 = vpack.c.bf16 %v2151_v11, %v2151_v11  ;;  %v2346_v21 = vpack.c.bf16 %v2152_v43, %v2152_v43  ;;  %v2347_v16 = vpack.c.bf16 %v2153_v38, %v2153_v38  ;;  %v2348_v60 = vpack.c.bf16 %v2154_v20, %v2154_v20  ;;  %2224 = vst.msk [vmem:[%s3912_s5] sm:$0xf] %vm2223_vm4, %v2337_v29 }
 0x2e4   :  { %2225 = vst.msk [vmem:[%s3912_s5 + $0x4] sm:$0xf] %vm2223_vm4, %v2338_v36  ;;  %2226 = vst.msk [vmem:[%s3912_s5 + $0x8] sm:$0xf] %vm2223_vm4, %v2339_v45  ;;  %v2349_v37 = vpack.c.bf16 %v2155_v47, %v2155_v47  ;;  %v2350_v55 = vpack.c.bf16 %v2156_v41, %v2156_v41  ;;  %v2351_v4 = vpack.c.bf16 %v2157_v62, %v2157_v62 }
 0x2e5   :  { %2227 = vst.msk [vmem:[%s3912_s5 + $0xc] sm:$0xf] %vm2223_vm4, %v2340_v23  ;;  %v2352_v26 = vpack.c.bf16 %v2158_v10, %v2158_v10  ;;  %2228 = vst.msk [vmem:[%s3912_s5 + $0x10] sm:$0xf] %vm2223_vm4, %v2341_v1 }
 0x2e6   :  { %2229 = vst.msk [vmem:[%s3912_s5 + $0x14] sm:$0xf] %vm2223_vm4, %v2342_v28  ;;  %2230 = vst.msk [vmem:[%s3912_s5 + $0x18] sm:$0xf] %vm2223_vm4, %v2343_v48 }
 0x2e7   :  { %2231 = vst.msk [vmem:[%s3912_s5 + $0x1c] sm:$0xf] %vm2223_vm4, %v2344_v7  ;;  %2232 = vst.msk [vmem:[%s3912_s5 + $0x20] sm:$0xf] %vm2223_vm4, %v2345_v25 }
 0x2e8   :  { %2233 = vst.msk [vmem:[%s3912_s5 + $0x24] sm:$0xf] %vm2223_vm4, %v2346_v21  ;;  %2234 = vst.msk [vmem:[%s3912_s5 + $0x28] sm:$0xf] %vm2223_vm4, %v2347_v16 }
 0x2e9   :  { %2235 = vst.msk [vmem:[%s3912_s5 + $0x2c] sm:$0xf] %vm2223_vm4, %v2348_v60  ;;  %2236 = vst.msk [vmem:[%s3912_s5 + $0x30] sm:$0xf] %vm2223_vm4, %v2349_v37 }
 0x2ea   :  { %2237 = vst.msk [vmem:[%s3912_s5 + $0x34] sm:$0xf] %vm2223_vm4, %v2350_v55  ;;  %2238 = vst.msk [vmem:[%s3912_s5 + $0x38] sm:$0xf] %vm2223_vm4, %v2351_v4 }
 0x2eb   :  { %2239 = vst.msk [vmem:[%s3912_s5 + $0x3c] sm:$0xf] %vm2223_vm4, %v2352_v26 }
 0x2ec   :  { %2244 = vsyncpa [#allocation3], 1 }
 0x2ed   :  { %2245 = vsyncpa [#allocation5], 1 }
 0x2ee   :  { %2246 = vsyncpa [#allocation8], 1 }

// kernel: resnet18_forward.6
= control target key start
LH: loop header
LB: loop body
LE: loop exit
PB: predicated region body
PF: predicated region fallthrough
CT: control target
= control target key end

     0   :  { %17 = vsyncpa [#allocation4], 0  ;;  %s4421_s0 = inlined_call_operand.vmem [shape: f32[138,64], index: 0, kind: input, shape index: {}]   ;;  %s4422_s1 = inlined_call_operand.hbm [shape: bf16[9,64,128], index: 1, kind: input, shape index: {}]   ;;  %s4423_s2 = inlined_call_operand.hbm [shape: f32[1,128], index: 2, kind: input, shape index: {}]   ;;  %s4424_s3 = inlined_call_operand.hbm [shape: f32[1,128], index: 3, kind: input, shape index: {}]   ;;  %s4425_s4 = inlined_call_operand.hbm [shape: f32[32,5], index: 4, kind: input, shape index: {}]   ;;  %s4426_s5 = inlined_call_operand.hbm [shape: bf16[9,128,128], index: 5, kind: input, shape index: {}]   ;;  %s4427_s6 = inlined_call_operand.hbm [shape: f32[1,128], index: 6, kind: input, shape index: {}]   ;;  %s4428_s7 = inlined_call_operand.hbm [shape: f32[1,128], index: 7, kind: input, shape index: {}]   ;;  %s4429_s8 = inlined_call_operand.hbm [shape: f32[32,8], index: 8, kind: input, shape index: {}]   ;;  %s4430_s9 = inlined_call_operand.hbm [shape: bf16[1,64,128], index: 9, kind: input, shape index: {}]   ;;  %s4431_s10 = inlined_call_operand.hbm [shape: f32[1,128], index: 10, kind: input, shape index: {}]   ;;  %s4432_s11 = inlined_call_operand.hbm [shape: f32[1,128], index: 11, kind: input, shape index: {}]   ;;  %s4433_s12 = inlined_call_operand.vmem [shape: bf16[32,128], index: 12, kind: output, shape index: {}]  }
   0x1   :  { %18 = vsyncpa [#allocation6], 0 }
   0x2   :  { %19 = vsyncpa [#allocation9], 0 }
   0x3   :  { %20 = vsyncpa [#allocation12], 0 }
   0x4   :  { %21 = vsyncpa [#allocation15], 0 }
   0x5   :  { %22 = vsyncpa [#allocation18], 0  ;;  %s3830_s21 = smov [#allocation5]   ;;  %s3831_s23 = smov [#allocation8]  }
   0x6   :  { %s43_s22 = sshll.u32 %s3830_s21, 4  ;;  %s62_s24 = sshll.u32 %s3831_s23, 4  ;;  %s44_s22 = int_to_ptr.vmem [resolvable:$true] %s43_s22  ;;  %s3919_s24 = int_to_ptr.vmem [resolvable:$true] %s62_s24 }
   0x7   :  { %s3576_s27 = scalar_lea.hbm %s4423_s2, 16 }
   0x8   :  { %p3577_p0 = scmp.ne.s32.totalorder %s4423_s2, %s3576_s27  ;;  %p3580_p1 = scmp.lt.u32.totalorder %s3576_s27, %s4423_s2 }
   0xa   :  { %p3582_p2 = pnand %p3580_p1, %p3577_p0 }
   0xc   :  { %3585 = shalt.err (!%p3582_p2)
}
   0xd   :  { %s3586_s14 = scalar_lea.vmem %s44_s22, 16  ;;  %s3590_s15 = scalar_lea.vmem %s44_s22, 32 }
   0xe   :  { %p3587_p3 = scmp.ne.s32.totalorder %s44_s22, %s3586_s14  ;;  %p3591_p4 = scmp.lt.s32.totalorder %s44_s22, %s44_s22 }
   0xf   :  { %p3592_p5 = scmp.lt.s32.totalorder %s3590_s15, %s3586_s14 }
  0x11   :  { %p3593_p6 = por %p3592_p5, %p3591_p4 }
  0x13   :  { %p3594_p7 = pnand %p3593_p6, %p3587_p3 }
  0x15   :  { %3597 = shalt.err (!%p3594_p7)
}
  0x16   :  { %46 = dma.hbm_to_vmem [thread:$0]  %s4423_s2, 16, %s44_s22, [#allocation6]  }
  0x17   :  { %s3598_s20 = scalar_lea.hbm %s4425_s4, 512 }
  0x18   :  { %p3599_p8 = scmp.ne.s32.totalorder %s4425_s4, %s3598_s20  ;;  %p3602_p9 = scmp.lt.u32.totalorder %s3598_s20, %s4425_s4 }
  0x1a   :  { %p3604_p10 = pnand %p3602_p9, %p3599_p8 }
  0x1c   :  { %3607 = shalt.err (!%p3604_p10)
}
  0x1d   :  { %s3608_s27 = scalar_lea.vmem %s3919_s24, 512  ;;  %p3613_p12 = scmp.lt.s32.totalorder %s3919_s24, %s3919_s24 }
  0x1e   :  { %p3609_p11 = scmp.ne.s32.totalorder %s3919_s24, %s3608_s27  ;;  %p3614_p13 = scmp.lt.s32.totalorder %s3608_s27, %s3608_s27 }
  0x20   :  { %p3615_p0 = por %p3614_p13, %p3613_p12 }
  0x22   :  { %p3616_p1 = pnand %p3615_p0, %p3609_p11 }
  0x24   :  { %3619 = shalt.err (!%p3616_p1)
}
  0x25   :  { %s3832_s2 = smov 128   ;;  %s3833_s22 = smov 8  }
  0x26   :  { %68 = dma.hbm_to_vmem [thread:$0]  %s4425_s4, 512, %s3919_s24, [#allocation9], %s3832_s2, %s3832_s2, %s3833_s22  }
  0x27   :  { %s3834_s30 = smov [#allocation11]   ;;  %s3835_s14 = smov [#allocation14]  }
  0x28   :  { %s87_s13 = sshll.u32 %s3834_s30, 4  ;;  %s106_s15 = sshll.u32 %s3835_s14, 4  ;;  %s88_s13 = int_to_ptr.vmem [resolvable:$true] %s87_s13  ;;  %s3953_s15 = int_to_ptr.vmem [resolvable:$true] %s106_s15 }
  0x29   :  { %s3620_s18 = scalar_lea.hbm %s4427_s6, 16 }
  0x2a   :  { %p3621_p2 = scmp.ne.s32.totalorder %s4427_s6, %s3620_s18  ;;  %p3624_p3 = scmp.lt.u32.totalorder %s3620_s18, %s4427_s6 }
  0x2c   :  { %p3626_p4 = pnand %p3624_p3, %p3621_p2 }
  0x2e   :  { %3629 = shalt.err (!%p3626_p4)
}
  0x2f   :  { %s3630_s4 = scalar_lea.vmem %s88_s13, 16  ;;  %s3634_s24 = scalar_lea.vmem %s88_s13, 32 }
  0x30   :  { %p3631_p5 = scmp.ne.s32.totalorder %s88_s13, %s3630_s4  ;;  %p3635_p6 = scmp.lt.s32.totalorder %s88_s13, %s88_s13 }
  0x31   :  { %p3636_p7 = scmp.lt.s32.totalorder %s3634_s24, %s3630_s4 }
  0x33   :  { %p3637_p8 = por %p3636_p7, %p3635_p6 }
  0x35   :  { %p3638_p9 = pnand %p3637_p8, %p3631_p5 }
  0x37   :  { %3641 = shalt.err (!%p3638_p9)
}
  0x38   :  { %90 = dma.hbm_to_vmem [thread:$0]  %s4427_s6, 16, %s88_s13, [#allocation12]  }
  0x39   :  { %s3642_s29 = scalar_lea.hbm %s4429_s8, 512 }
  0x3a   :  { %p3643_p10 = scmp.ne.s32.totalorder %s4429_s8, %s3642_s29  ;;  %p3646_p11 = scmp.lt.u32.totalorder %s3642_s29, %s4429_s8 }
  0x3c   :  { %p3648_p12 = pnand %p3646_p11, %p3643_p10 }
  0x3e   :  { %3651 = shalt.err (!%p3648_p12)
}
  0x3f   :  { %s3652_s18 = scalar_lea.vmem %s3953_s15, 512  ;;  %p3657_p0 = scmp.lt.s32.totalorder %s3953_s15, %s3953_s15 }
  0x40   :  { %p3653_p13 = scmp.ne.s32.totalorder %s3953_s15, %s3652_s18  ;;  %p3658_p1 = scmp.lt.s32.totalorder %s3652_s18, %s3652_s18 }
  0x42   :  { %p3659_p2 = por %p3658_p1, %p3657_p0 }
  0x44   :  { %p3660_p3 = pnand %p3659_p2, %p3653_p13 }
  0x46   :  { %3663 = shalt.err (!%p3660_p3)
}
  0x47   :  { %112 = dma.hbm_to_vmem [thread:$0]  %s4429_s8, 512, %s3953_s15, [#allocation15], %s3832_s2, %s3832_s2, %s3833_s22  }
  0x48   :  { %s3836_s19 = smov [#allocation17]   ;;  %s3837_s21 = smov [#allocation3]  }
  0x49   :  { %s131_s20 = sshll.u32 %s3836_s19, 4  ;;  %s30_s23 = sshll.u32 %s3837_s21, 4  ;;  %s132_s20 = int_to_ptr.vmem [resolvable:$true] %s131_s20  ;;  %s3987_s23 = int_to_ptr.vmem [resolvable:$true] %s30_s23 }
  0x4a   :  { %s3664_s25 = scalar_lea.hbm %s4431_s10, 16 }
  0x4b   :  { %p3665_p4 = scmp.ne.s32.totalorder %s4431_s10, %s3664_s25  ;;  %p3668_p5 = scmp.lt.u32.totalorder %s3664_s25, %s4431_s10 }
  0x4d   :  { %p3670_p6 = pnand %p3668_p5, %p3665_p4 }
  0x4f   :  { %3673 = shalt.err (!%p3670_p6)
}
  0x50   :  { %s3674_s8 = scalar_lea.vmem %s132_s20, 16  ;;  %s3678_s2 = scalar_lea.vmem %s132_s20, 32 }
  0x51   :  { %p3675_p7 = scmp.ne.s32.totalorder %s132_s20, %s3674_s8  ;;  %p3679_p8 = scmp.lt.s32.totalorder %s132_s20, %s132_s20 }
  0x52   :  { %p3680_p9 = scmp.lt.s32.totalorder %s3678_s2, %s3674_s8 }
  0x54   :  { %p3681_p10 = por %p3680_p9, %p3679_p8 }
  0x56   :  { %p3682_p11 = pnand %p3681_p10, %p3675_p7 }
  0x58   :  { %3685 = shalt.err (!%p3682_p11)
}
  0x59   :  { %134 = dma.hbm_to_vmem [thread:$0]  %s4431_s10, 16, %s132_s20, [#allocation18]  }
  0x5a   :  { %s3686_s16 = scalar_lea.hbm %s4422_s1, 4608 }
  0x5b   :  { %p3687_p12 = scmp.ne.s32.totalorder %s4422_s1, %s3686_s16  ;;  %p3690_p13 = scmp.lt.u32.totalorder %s3686_s16, %s4422_s1 }
  0x5d   :  { %p3692_p0 = pnand %p3690_p13, %p3687_p12 }
  0x5f   :  { %3695 = shalt.err (!%p3692_p0)
}
  0x60   :  { %s3696_s19 = scalar_lea.vmem %s3987_s23, 4608  ;;  %p3701_p2 = scmp.lt.s32.totalorder %s3987_s23, %s3987_s23 }
  0x61   :  { %p3697_p1 = scmp.ne.s32.totalorder %s3987_s23, %s3696_s19  ;;  %p3702_p3 = scmp.lt.s32.totalorder %s3696_s19, %s3696_s19 }
  0x63   :  { %p3703_p4 = por %p3702_p3, %p3701_p2 }
  0x65   :  { %p3704_p5 = pnand %p3703_p4, %p3697_p1 }
  0x67   :  { %3707 = shalt.err (!%p3704_p5)
}
  0x68   :  { %s3838_s10 = smov 64   ;;  %s3839_s20 = smov 4  }
  0x69   :  { %36 = dma.hbm_to_vmem [thread:$0]  %s4422_s1, 4608, %s3987_s23, [#allocation4], %s3838_s10, %s3838_s10, %s3839_s20  }
  0x6a   :  { %s3840_s24 = smov [#allocation7]   ;;  %s3841_s26 = smov [#allocation10]  }
  0x6b   :  { %s53_s25 = sshll.u32 %s3840_s24, 4  ;;  %s74_s27 = sshll.u32 %s3841_s26, 4  ;;  %s54_s25 = int_to_ptr.vmem [resolvable:$true] %s53_s25  ;;  %s4021_s27 = int_to_ptr.vmem [resolvable:$true] %s74_s27 }
  0x6c   :  { %s3708_s8 = scalar_lea.hbm %s4424_s3, 16 }
  0x6d   :  { %p3709_p6 = scmp.ne.s32.totalorder %s4424_s3, %s3708_s8  ;;  %p3712_p7 = scmp.lt.u32.totalorder %s3708_s8, %s4424_s3 }
  0x6f   :  { %p3714_p8 = pnand %p3712_p7, %p3709_p6 }
  0x71   :  { %3717 = shalt.err (!%p3714_p8)
}
  0x72   :  { %s3718_s1 = scalar_lea.vmem %s54_s25, 16  ;;  %s3722_s23 = scalar_lea.vmem %s54_s25, 32 }
  0x73   :  { %p3719_p9 = scmp.ne.s32.totalorder %s54_s25, %s3718_s1  ;;  %p3723_p10 = scmp.lt.s32.totalorder %s54_s25, %s54_s25 }
  0x74   :  { %p3724_p11 = scmp.lt.s32.totalorder %s3722_s23, %s3718_s1 }
  0x76   :  { %p3725_p12 = por %p3724_p11, %p3723_p10 }
  0x78   :  { %p3726_p13 = pnand %p3725_p12, %p3719_p9 }
  0x7a   :  { %3729 = shalt.err (!%p3726_p13)
}
  0x7b   :  { %56 = dma.hbm_to_vmem [thread:$0]  %s4424_s3, 16, %s54_s25, [#allocation6]  }
  0x7c   :  { %s3730_s6 = scalar_lea.hbm %s4426_s5, 9216 }
  0x7d   :  { %p3731_p0 = scmp.ne.s32.totalorder %s4426_s5, %s3730_s6  ;;  %p3734_p1 = scmp.lt.u32.totalorder %s3730_s6, %s4426_s5 }
  0x7f   :  { %p3736_p2 = pnand %p3734_p1, %p3731_p0 }
  0x81   :  { %3739 = shalt.err (!%p3736_p2)
}
  0x82   :  { %s3740_s24 = scalar_lea.vmem %s4021_s27, 9216  ;;  %p3745_p4 = scmp.lt.s32.totalorder %s4021_s27, %s4021_s27 }
  0x83   :  { %p3741_p3 = scmp.ne.s32.totalorder %s4021_s27, %s3740_s24  ;;  %p3746_p5 = scmp.lt.s32.totalorder %s3740_s24, %s3740_s24 }
  0x85   :  { %p3747_p6 = por %p3746_p5, %p3745_p4 }
  0x87   :  { %p3748_p7 = pnand %p3747_p6, %p3741_p3 }
  0x89   :  { %3751 = shalt.err (!%p3748_p7)
}
  0x8a   :  { %80 = dma.hbm_to_vmem [thread:$0]  %s4426_s5, 9216, %s4021_s27, [#allocation9], %s3838_s10, %s3838_s10, %s3839_s20  }
  0x8b   :  { %s3842_s26 = smov [#allocation13]   ;;  %s3843_s29 = smov [#allocation16]  }
  0x8c   :  { %s97_s28 = sshll.u32 %s3842_s26, 4  ;;  %s118_s8 = sshll.u32 %s3843_s29, 4  ;;  %s98_s28 = int_to_ptr.vmem [resolvable:$true] %s97_s28  ;;  %s4055_s8 = int_to_ptr.vmem [resolvable:$true] %s118_s8 }
  0x8d   :  { %s3752_s15 = scalar_lea.hbm %s4428_s7, 16 }
  0x8e   :  { %p3753_p8 = scmp.ne.s32.totalorder %s4428_s7, %s3752_s15  ;;  %p3756_p9 = scmp.lt.u32.totalorder %s3752_s15, %s4428_s7 }
  0x90   :  { %p3758_p10 = pnand %p3756_p9, %p3753_p8 }
  0x92   :  { %3761 = shalt.err (!%p3758_p10)
}
  0x93   :  { %s3762_s5 = scalar_lea.vmem %s98_s28, 16  ;;  %s3766_s27 = scalar_lea.vmem %s98_s28, 32 }
  0x94   :  { %p3763_p11 = scmp.ne.s32.totalorder %s98_s28, %s3762_s5  ;;  %p3767_p12 = scmp.lt.s32.totalorder %s98_s28, %s98_s28 }
  0x95   :  { %p3768_p13 = scmp.lt.s32.totalorder %s3766_s27, %s3762_s5 }
  0x97   :  { %p3769_p0 = por %p3768_p13, %p3767_p12 }
  0x99   :  { %p3770_p1 = pnand %p3769_p0, %p3763_p11 }
  0x9b   :  { %3773 = shalt.err (!%p3770_p1)
}
  0x9c   :  { %100 = dma.hbm_to_vmem [thread:$0]  %s4428_s7, 16, %s98_s28, [#allocation12]  }
  0x9d   :  { %s3774_s13 = scalar_lea.hbm %s4430_s9, 512 }
  0x9e   :  { %p3775_p2 = scmp.ne.s32.totalorder %s4430_s9, %s3774_s13  ;;  %p3778_p3 = scmp.lt.u32.totalorder %s3774_s13, %s4430_s9 }
  0xa0   :  { %p3780_p4 = pnand %p3778_p3, %p3775_p2 }
  0xa2   :  { %3783 = shalt.err (!%p3780_p4)
}
  0xa3   :  { %s3784_s3 = scalar_lea.vmem %s4055_s8, 512  ;;  %p3789_p6 = scmp.lt.s32.totalorder %s4055_s8, %s4055_s8 }
  0xa4   :  { %p3785_p5 = scmp.ne.s32.totalorder %s4055_s8, %s3784_s3  ;;  %p3790_p7 = scmp.lt.s32.totalorder %s3784_s3, %s3784_s3 }
  0xa6   :  { %p3791_p8 = por %p3790_p7, %p3789_p6 }
  0xa8   :  { %p3792_p9 = pnand %p3791_p8, %p3785_p5 }
  0xaa   :  { %3795 = shalt.err (!%p3792_p9)
}
  0xab   :  { %124 = dma.hbm_to_vmem [thread:$0]  %s4430_s9, 512, %s4055_s8, [#allocation15], %s3838_s10, %s3838_s10, %s3839_s20  }
  0xac   :  { %s3844_s26 = smov [#allocation19]   ;;  %s3796_s22 = scalar_lea.hbm %s4432_s11, 16 }
  0xad   :  { %s141_s28 = sshll.u32 %s3844_s26, 4  ;;  %p3797_p10 = scmp.ne.s32.totalorder %s4432_s11, %s3796_s22  ;;  %s142_s28 = int_to_ptr.vmem [resolvable:$true] %s141_s28 }
  0xae   :  { %p3800_p11 = scmp.lt.u32.totalorder %s3796_s22, %s4432_s11 }
  0xb0   :  { %p3802_p12 = pnand %p3800_p11, %p3797_p10 }
  0xb2   :  { %3805 = shalt.err (!%p3802_p12)
}
  0xb3   :  { %s3806_s14 = scalar_lea.vmem %s142_s28, 16  ;;  %s3810_s9 = scalar_lea.vmem %s142_s28, 32 }
  0xb4   :  { %p3807_p13 = scmp.ne.s32.totalorder %s142_s28, %s3806_s14  ;;  %p3811_p0 = scmp.lt.s32.totalorder %s142_s28, %s142_s28 }
  0xb5   :  { %p3812_p1 = scmp.lt.s32.totalorder %s3810_s9, %s3806_s14 }
  0xb7   :  { %p3813_p2 = por %p3812_p1, %p3811_p0 }
  0xb9   :  { %p3814_p3 = pnand %p3813_p2, %p3807_p13 }
  0xbb   :  { %3817 = shalt.err (!%p3814_p3)
}
  0xbc   :  { %144 = dma.hbm_to_vmem [thread:$0]  %s4432_s11, 16, %s142_s28, [#allocation18]  }
  0xbd   :  { %3818 = dma.done.wait [#allocation4], 4608  }
  0xbe   :  { %3819 = vsyncadd [#allocation4], 4294962688 }
  0xbf   :  { %3820 = dma.done.wait [#allocation6], 32  }
  0xc0   :  { %3821 = vsyncadd [#allocation6], 4294967264 }
  0xc1   :  { %3822 = dma.done.wait [#allocation9], 9728  }
  0xc2   :  { %3823 = vsyncadd [#allocation9], 4294957568 }
  0xc3   :  { %3824 = dma.done.wait [#allocation12], 32  }
  0xc4   :  { %3825 = vsyncadd [#allocation12], 4294967264 }
  0xc5   :  { %3826 = dma.done.wait [#allocation15], 1024  }
  0xc6   :  { %3827 = vsyncadd [#allocation15], 4294966272 }
  0xc7   :  { %3828 = dma.done.wait [#allocation18], 32  }
  0xc8   :  { %3829 = vsyncadd [#allocation18], 4294967264  ;;  %v3845_v0 = vmov 1   ;;  %v185_v1 = vld [vmem:[#allocation8 + $0x10] sm:$0xff]  ;;  %v183_v2 = vld [vmem:[#allocation8] sm:$0xff]  ;;  %v3846_v8 = vmov 0  }
  0xc9   :  { %3429 = vset.pattern.permute.xlu1 %v3845_v0  ;;  %3428 = vset.pattern.permute.xlu0 %v3845_v0  ;;  %v186_v3 = vld [vmem:[#allocation8 + $0x18] sm:$0xff]  ;;  %v184_v4 = vld [vmem:[#allocation8 + $0x8] sm:$0xff]  ;;  %v3847_v11 = vmov 2   ;;  %v3848_v12 = vmov 3   ;;  %v3849_v13 = vmov 4   ;;  %vm280_vm0 = vcmask 523264  }
  0xca   :  { %234 = vperm.xlu1 %3429, %v185_v1   ;;  %226 = vperm.xlu0 %3428, %v183_v2   ;;  %v3458_v5 = vld [vmem:[#allocation3 + $0x20] sm:$0xff]   ;;  %v3459_v6 = vld [vmem:[#allocation3 + $0x28] sm:$0xff]   ;;  %v3460_v7 = vld [vmem:[#allocation3 + $0x30] sm:$0xff]  }
  0xcb   :  { %3040 = vmatprep.subr.bf16.mxu0 %v3458_v5  ;;  %v3461_v9 = vld [vmem:[#allocation3 + $0x38] sm:$0xff]   ;;  %v3462_v10 = vld [vmem:[#allocation3] sm:$0xff]   ;;  %v224_v18 = vld [vmem:[%s4421_s0 + $0x59] sm:$0xff] }
  0xcc   :  { %3041 = vmatpush3.bf16.msra.mxu0 %v3458_v5  ;;  %v223_v16 = vld [vmem:[%s4421_s0 + $0x51] sm:$0xff]  ;;  %v221_v17 = vld [vmem:[%s4421_s0 + $0x41] sm:$0xff]  ;;  %v222_v19 = vld [vmem:[%s4421_s0 + $0x49] sm:$0xff] }
  0xcd   :  { %3042 = vmatprep.subr.bf16.mxu0 %v3459_v6  ;;  %v180_v28 = vld [vmem:[%s4421_s0 + $0x68] sm:$0xff]  ;;  %v179_v29 = vld [vmem:[%s4421_s0 + $0x60] sm:$0xff]  ;;  %v3463_v30 = vld [vmem:[#allocation3 + $0x8] sm:$0xff]  }
  0xce   :  { %238 = vperm.xlu1 %3429, %v186_v3   ;;  %230 = vperm.xlu0 %3428, %v184_v4   ;;  %v4129_v35 = vld [vmem:[#allocation14 + $0x8] sm:$0xff]  ;;  %v4132_v36 = vld [vmem:[#allocation14] sm:$0xff]  ;;  %v4134_v39 = vld [vmem:[#allocation14 + $0x10] sm:$0xff] }
  0xcf   :  { %v3464_v38 = vld [vmem:[#allocation3 + $0x10] sm:$0xff]   ;;  %v4139_v42 = vld [vmem:[#allocation14 + $0x18] sm:$0xff]  ;;  %v3465_v44 = vld [vmem:[#allocation3 + $0x18] sm:$0xff]  }
  0xd0   :  { %3043 = vmatpush3.bf16.msra.mxu0 %v3459_v6  ;;  %v415_v43 = vld [vmem:[%s4421_s0 + $0x61] sm:$0xff]  ;;  %v416_v45 = vld [vmem:[%s4421_s0 + $0x69] sm:$0xff]  ;;  %v182_v47 = vld [vmem:[%s4421_s0 + $0x78] sm:$0xff] }
  0xd1   :  { %3044 = vmatprep.subr.bf16.mxu0 %v3460_v7  ;;  %v181_v46 = vld [vmem:[%s4421_s0 + $0x70] sm:$0xff]  ;;  %v3467_v58 = vld [vmem:[#allocation3 + $0x48] sm:$0xff]   ;;  %v3468_v59 = vld [vmem:[#allocation3 + $0x50] sm:$0xff]  }
  0xd2   :  { %3431 = vset.pattern.permute.xlu1 %v3846_v8  ;;  %3430 = vset.pattern.permute.xlu0 %v3846_v8  ;;  %v3466_v54 = vld [vmem:[#allocation3 + $0x40] sm:$0xff]   ;;  %v3469_v61 = vld [vmem:[#allocation3 + $0x58] sm:$0xff]  }
  0xd3   :  { %194 = vperm.xlu1 %3431, %v184_v4   ;;  %189 = vperm.xlu0 %3430, %v183_v2   ;;  %v534_v62 = vld [vmem:[%s4421_s0 + $0x2c] sm:$0xff]  ;;  %v533_v63 = vld [vmem:[%s4421_s0 + $0x24] sm:$0xff] }
  0xd4   :  { %3045 = vmatpush3.bf16.msra.mxu0 %v3460_v7 }
  0xd5   :  { %3046 = vmatprep.subr.bf16.mxu0 %v3461_v9 }
  0xd7   :  { %199 = vperm.xlu1 %3431, %v185_v1   ;;  %204 = vperm.xlu0 %3430, %v186_v3  }
  0xd8   :  { %3047 = vmatpush3.bf16.msra.mxu0 %v3461_v9 }
  0xd9   :  { %3052 = vmatprep.subr.bf16.mxu0 %v3462_v10 }
  0xdb   :  { %3432 = vset.pattern.permute.xlu1 %v3847_v11  ;;  %3433 = vset.pattern.permute.xlu0 %v3847_v11 }
  0xdc   :  { %420 = vperm.xlu1 %3432, %v183_v2   ;;  %424 = vperm.xlu0 %3433, %v184_v4  }
  0xe0   :  { %428 = vperm.xlu1 %3432, %v185_v1   ;;  %3434 = vset.pattern.permute.xlu0 %v3848_v12 }
  0xe1   :  { %538 = vperm.xlu0 %3434, %v183_v2  }
  0xe4   :  { %432 = vperm.xlu1 %3432, %v186_v3  }
  0xe5   :  { %550 = vperm.xlu0 %3434, %v186_v3  }
  0xe8   :  { %3435 = vset.pattern.permute.xlu1 %v3848_v12 }
  0xe9   :  { %542 = vperm.xlu1 %3435, %v184_v4   ;;  %3437 = vset.pattern.permute.xlu0 %v3849_v13 }
  0xea   :  { %856 = vperm.xlu0 %3437, %v184_v4  }
  0xed   :  { %546 = vperm.xlu1 %3435, %v185_v1  }
  0xee   :  { %3438 = vset.pattern.permute.xlu0 %v3847_v11 }
  0xef   :  { %1656 = vperm.xlu0 %3438, %v4132_v36  }
  0xf1   :  { %3436 = vset.pattern.permute.xlu1 %v3849_v13 }
  0xf2   :  { %852 = vperm.xlu1 %3436, %v183_v2   ;;  %v418_v2 = vld [vmem:[%s4421_s0 + $0x79] sm:$0xff] }
  0xf3   :  { %1668 = vperm.xlu0 %3438, %v4139_v42  }
  0xf6   :  { %860 = vperm.xlu1 %3436, %v185_v1   ;;  %v417_v1 = vld [vmem:[%s4421_s0 + $0x71] sm:$0xff] }
  0xf7   :  { %3441 = vset.pattern.permute.xlu0 %v3848_v12 }
  0xf8   :  { %1804 = vperm.xlu0 %3441, %v4129_v35  }
  0xfa   :  { %864 = vperm.xlu1 %3436, %v186_v3  }
  0xfc   :  { %3442 = vset.pattern.permute.xlu0 %v3849_v13 }
  0xfd   :  { %2068 = vperm.xlu0 %3442, %v4132_v36  }
  0xfe   :  { %3439 = vset.pattern.permute.xlu1 %v3847_v11  ;;  %v3850_v11 = vmov 5  }
  0xff   :  { %1660 = vperm.xlu1 %3439, %v4129_v35  }
 0x101   :  { %2080 = vperm.xlu0 %3442, %v4139_v42  }
 0x103   :  { %1664 = vperm.xlu1 %3439, %v4134_v39  }
 0x105   :  { %3445 = vset.pattern.permute.xlu0 %v3850_v11 }
 0x106   :  { %2216 = vperm.xlu0 %3445, %v4129_v35  }
 0x107   :  { %3440 = vset.pattern.permute.xlu1 %v3848_v12 }
 0x108   :  { %1800 = vperm.xlu1 %3440, %v4132_v36  }
 0x10a   :  { %3446 = vset.pattern.permute.xlu0 %v3845_v0 }
 0x10b   :  { %1419 = vperm.xlu0 %3446, %v4132_v36  }
 0x10c   :  { %1808 = vperm.xlu1 %3440, %v4134_v39  }
 0x110   :  { %1812 = vperm.xlu1 %3440, %v4139_v42  }
 0x114   :  { %3443 = vset.pattern.permute.xlu1 %v3849_v13 }
 0x115   :  { %2072 = vperm.xlu1 %3443, %v4129_v35  }
 0x119   :  { %2076 = vperm.xlu1 %3443, %v4134_v39  }
 0x11d   :  { %3444 = vset.pattern.permute.xlu1 %v3850_v11  ;;  %v1064_v11 = vld [vmem:[%s4421_s0 + $0x6d] sm:$0xff] }
 0x11e   :  { %2212 = vperm.xlu1 %3444, %v4132_v36  }
 0x122   :  { %2220 = vperm.xlu1 %3444, %v4134_v39  }
 0x126   :  { %2224 = vperm.xlu1 %3444, %v4139_v42  }
 0x12a   :  { %3447 = vset.pattern.permute.xlu1 %v3845_v0 }
 0x12b   :  { %1423 = vperm.xlu1 %3447, %v4129_v35  }
 0x149   :  { %v235_v14 = vpop.permute.xlu1 %234  ;;  %v227_v15 = vpop.permute.xlu0 %226 }
 0x14a   :  { %v243_v22 = vmul.f32 %v235_v14, %v223_v16  ;;  %v241_v23 = vmul.f32 %v227_v15, %v221_v17  ;;  %v3471_v14 = vld [vmem:[#allocation3 + $0x68] sm:$0xff]   ;;  %v3472_v15 = vld [vmem:[#allocation3 + $0x70] sm:$0xff]   ;;  %v3473_v16 = vld [vmem:[#allocation3 + $0x78] sm:$0xff]  }
 0x14b   :  { %v535_v17 = vld [vmem:[%s4421_s0 + $0x34] sm:$0xff] }
 0x14d   :  { %v239_v20 = vpop.permute.xlu1 %238  ;;  %v231_v21 = vpop.permute.xlu0 %230 }
 0x14e   :  { %v244_v24 = vmul.f32 %v239_v20, %v224_v18  ;;  %v242_v25 = vmul.f32 %v231_v21, %v222_v19  ;;  %v536_v19 = vld [vmem:[%s4421_s0 + $0x3c] sm:$0xff]  ;;  %v3851_v21 = vmov 6  }
 0x14f   :  { %3449 = vset.pattern.permute.xlu0 %v3851_v21  ;;  %3448 = vset.pattern.permute.xlu1 %v3851_v21 }
 0x150   :  { %v246_v26 = vpack.c.bf16 %v244_v24, %v243_v22  ;;  %v245_v27 = vpack.c.bf16 %v242_v25, %v241_v23  ;;  %2360 = vperm.xlu0 %3449, %v4129_v35   ;;  %v3474_v24 = vld [vmem:[#allocation3 + $0x80] sm:$0xff]   ;;  %v651_v25 = vld [vmem:[%s4421_s0 + $0x5] sm:$0xff]  ;;  %2356 = vperm.xlu1 %3448, %v4132_v36  }
 0x152   :  { %3048 = vmatprep.mubr.msk.bf16.mxu0 %vm280_vm0, %v245_v27  ;;  %v195_v31 = vpop.permute.xlu1 %194  ;;  %v190_v32 = vpop.permute.xlu0 %189 }
 0x153   :  { %3049 = vmatmul.mubr.msk.bf16.vlgmr.msra.gmra.mrb[0].mxu0 %vm280_vm0, %v246_v26  ;;  %v208_v33 = vmul.f32 %v195_v31, %v180_v28  ;;  %v207_v34 = vmul.f32 %v190_v32, %v179_v29  ;;  %v652_v26 = vld [vmem:[%s4421_s0 + $0xd] sm:$0xff]  ;;  %v3475_v29 = vld [vmem:[#allocation3 + $0x88] sm:$0xff]   ;;  %v3852_v32 = vmov 7  }
 0x154   :  { %3053 = vmatpush3.bf16.msra.mxu0 %v3462_v10  ;;  %v3470_v10 = vld [vmem:[#allocation3 + $0x60] sm:$0xff]   ;;  %2364 = vperm.xlu0 %3449, %v4134_v39   ;;  %v4203_v27 = vpack.c.bf16 %v652_v26, %v651_v25  ;;  %v3477_v31 = vld [vmem:[#allocation3 + $0x98] sm:$0xff]   ;;  %v3500_v26 = vld [vmem:[#allocation10 + $0x48] sm:$0xff]  }
 0x155   :  { %3054 = vmatprep.subr.bf16.mxu0 %v3463_v30  ;;  %v211_v37 = vpack.c.bf16 %v208_v33, %v207_v34  ;;  %3450 = vset.pattern.permute.xlu1 %v3845_v0  ;;  %v653_v33 = vld [vmem:[%s4421_s0 + $0x15] sm:$0xff]  ;;  %v654_v34 = vld [vmem:[%s4421_s0 + $0x1d] sm:$0xff]  ;;  %v749_v0 = vld [vmem:[%s4421_s0 + $0x25] sm:$0xff] }
 0x156   :  { %v200_v40 = vpop.permute.xlu1 %199  ;;  %v205_v41 = vpop.permute.xlu0 %204  ;;  %1427 = vperm.xlu1 %3450, %v4134_v39   ;;  %v3499_v25 = vld [vmem:[#allocation10 + $0x80] sm:$0xff]  }
 0x157   :  { %3060 = vmatprep.mubr.msk.bf16.mxu0 %vm280_vm0, %v211_v37  ;;  %v209_v52 = vmul.f32 %v200_v40, %v181_v46  ;;  %v210_v53 = vmul.f32 %v205_v41, %v182_v47  ;;  %v3478_v37 = vld [vmem:[#allocation3 + $0xa0] sm:$0xff]   ;;  %v4228_v40 = vpack.c.bf16 %v654_v34, %v653_v33  ;;  %v3481_v46 = vld [vmem:[#allocation3 + $0xb8] sm:$0xff]   ;;  %3200 = vmatprep.subr.bf16.mxu1 %v3499_v25 }
 0x158   :  { %3055 = vmatpush3.bf16.msra.mxu0 %v3463_v30  ;;  %3452 = vset.pattern.permute.xlu0 %v3846_v8  ;;  %v3476_v30 = vld [vmem:[#allocation3 + $0x90] sm:$0xff]   ;;  %v848_v47 = vld [vmem:[%s4421_s0 + $0x6c] sm:$0xff]  ;;  %v3506_v33 = vld [vmem:[#allocation10 + $0x60] sm:$0xff]  }
 0x159   :  { %3056 = vmatprep.subr.bf16.mxu0 %v3464_v38  ;;  %v212_v56 = vpack.c.bf16 %v210_v53, %v209_v52  ;;  %1374 = vperm.xlu0 %3452, %v4132_v36   ;;  %v752_v52 = vld [vmem:[%s4421_s0 + $0x3d] sm:$0xff]  ;;  %v3507_v34 = vld [vmem:[#allocation10 + $0xa0] sm:$0xff]  }
 0x15a   :  { %1431 = vperm.xlu1 %3450, %v4139_v42   ;;  %3201 = vmatpush3.bf16.msra.mxu1 %v3499_v25 }
 0x15b   :  { %v421_v48 = vpop.permute.xlu1 %420  ;;  %v425_v49 = vpop.permute.xlu0 %424 }
 0x15c   :  { %3057 = vmatpush3.bf16.msra.mxu0 %v3464_v38  ;;  %v435_v50 = vmul.f32 %v421_v48, %v415_v43  ;;  %v436_v51 = vmul.f32 %v425_v49, %v416_v45  ;;  %v750_v38 = vld [vmem:[%s4421_s0 + $0x2d] sm:$0xff]  ;;  %v3479_v43 = vld [vmem:[#allocation3 + $0xa8] sm:$0xff]   ;;  %v847_v45 = vld [vmem:[%s4421_s0 + $0x64] sm:$0xff] }
 0x15d   :  { %3058 = vmatprep.subr.bf16.mxu0 %v3465_v44  ;;  %3455 = vset.pattern.permute.xlu0 %v3852_v32  ;;  %v753_v41 = vpack.c.bf16 %v750_v38, %v749_v0  ;;  %v3509_v0 = vld [vmem:[#allocation10 + $0xa8] sm:$0xff]   ;;  %v3510_v38 = vld [vmem:[#allocation10 + $0x70] sm:$0xff]  }
 0x15e   :  { %v439_v55 = vpack.c.bf16 %v436_v51, %v435_v50  ;;  %2504 = vperm.xlu0 %3455, %v4129_v35   ;;  %3451 = vset.pattern.permute.xlu1 %v3851_v21  ;;  %v751_v51 = vld [vmem:[%s4421_s0 + $0x35] sm:$0xff]  ;;  %v3495_v21 = vld [vmem:[#allocation16 + $0x8] sm:$0xff]  }
 0x15f   :  { %v429_v57 = vpop.permute.xlu1 %428  ;;  %2368 = vperm.xlu1 %3451, %v4139_v42  }
 0x160   :  { %3059 = vmatpush3.bf16.msra.mxu0 %v3465_v44  ;;  %v539_v4 = vpop.permute.xlu0 %538  ;;  %v437_v7 = vmul.f32 %v429_v57, %v417_v1  ;;  %v3480_v44 = vld [vmem:[#allocation3 + $0xb0] sm:$0xff]   ;;  %v966_v1 = vld [vmem:[%s4421_s0 + $0x4d] sm:$0xff] }
 0x161   :  { %3064 = vmatprep.subr.bf16.mxu0 %v3466_v54  ;;  %v553_v6 = vmul.f32 %v539_v4, %v533_v63  ;;  %v3486_v63 = vld [vmem:[#allocation3 + $0xe0] sm:$0xff]   ;;  %v3487_v4 = vld [vmem:[#allocation3 + $0xe8] sm:$0xff]  }
 0x162   :  { %2508 = vperm.xlu0 %3455, %v4134_v39  }
 0x163   :  { %3061 = vmatmul.mubr.msk.bf16.vlgmr.msra.gmra.mrb[0].mxu0 %vm280_vm0, %v212_v56  ;;  %v433_v60 = vpop.permute.xlu1 %432  ;;  %3453 = vset.pattern.permute.xlu1 %v3846_v8  ;;  %v3483_v56 = vld [vmem:[#allocation3 + $0xc8] sm:$0xff]  }
 0x164   :  { %3065 = vmatpush3.bf16.msra.mxu0 %v3466_v54  ;;  %3072 = vmatprep.mubr.msk.bf16.mxu0 %vm280_vm0, %v439_v55  ;;  %v438_v9 = vmul.f32 %v433_v60, %v418_v2  ;;  %v551_v20 = vpop.permute.xlu0 %550  ;;  %v3482_v54 = vld [vmem:[#allocation3 + $0xc0] sm:$0xff]   ;;  %v754_v55 = vpack.c.bf16 %v752_v52, %v751_v51 }
 0x165   :  { %3066 = vmatprep.subr.bf16.mxu0 %v3467_v58  ;;  %v556_v23 = vmul.f32 %v551_v20, %v536_v19  ;;  %1379 = vperm.xlu1 %3453, %v4129_v35   ;;  %v3494_v20 = vld [vmem:[#allocation16] sm:$0xff]  }
 0x166   :  { %v440_v13 = vpack.c.bf16 %v438_v9, %v437_v7  ;;  %v968_v7 = vld [vmem:[%s4421_s0 + $0x5d] sm:$0xff]  ;;  %v3490_v9 = vld [vmem:[#allocation3 + $0x100] sm:$0xff]  }
 0x168   :  { %3067 = vmatpush3.bf16.msra.mxu0 %v3467_v58  ;;  %v543_v3 = vpop.permute.xlu1 %542  ;;  %v3484_v58 = vld [vmem:[#allocation3 + $0xd0] sm:$0xff]  }
 0x169   :  { %3068 = vmatprep.subr.bf16.mxu0 %v3468_v59  ;;  %v554_v5 = vmul.f32 %v543_v3, %v534_v62  ;;  %v857_v48 = vpop.permute.xlu0 %856  ;;  %3454 = vset.pattern.permute.xlu1 %v3852_v32 }
 0x16a   :  { %v868_v53 = vmul.f32 %v857_v48, %v848_v47  ;;  %2500 = vperm.xlu1 %3454, %v4132_v36   ;;  %v849_v36 = vld [vmem:[%s4421_s0 + $0x74] sm:$0xff] }
 0x16b   :  { %v557_v12 = vpack.c.bf16 %v554_v5, %v553_v6  ;;  %v3488_v5 = vld [vmem:[#allocation3 + $0xf0] sm:$0xff]   ;;  %v3489_v6 = vld [vmem:[#allocation3 + $0xf8] sm:$0xff]  }
 0x16c   :  { %3069 = vmatpush3.bf16.msra.mxu0 %v3468_v59  ;;  %v547_v18 = vpop.permute.xlu1 %546  ;;  %v3485_v59 = vld [vmem:[#allocation3 + $0xd8] sm:$0xff]  }
 0x16d   :  { %3070 = vmatprep.subr.bf16.mxu0 %v3469_v61  ;;  %v555_v22 = vmul.f32 %v547_v18, %v535_v17  ;;  %v1065_v17 = vld [vmem:[%s4421_s0 + $0x75] sm:$0xff]  ;;  %v1066_v18 = vld [vmem:[%s4421_s0 + $0x7d] sm:$0xff] }
 0x16e   :  { %3456 = vset.pattern.permute.xlu1 %v3846_v8  ;;  %v850_v8 = vld [vmem:[%s4421_s0 + $0x7c] sm:$0xff]  ;;  %v1068_v19 = vpack.c.bf16 %v1066_v18, %v1065_v17 }
 0x16f   :  { %v558_v28 = vpack.c.bf16 %v556_v23, %v555_v22  ;;  %1384 = vperm.xlu1 %3456, %v4134_v39   ;;  %v965_v39 = vld [vmem:[%s4421_s0 + $0x45] sm:$0xff]  ;;  %v3497_v23 = vld [vmem:[#allocation16 + $0x18] sm:$0xff]  }
 0x170   :  { %3071 = vmatpush3.bf16.msra.mxu0 %v3469_v61  ;;  %v969_v2 = vpack.c.bf16 %v966_v1, %v965_v39  ;;  %v3496_v22 = vld [vmem:[#allocation16 + $0x10] sm:$0xff]  }
 0x171   :  { %3076 = vmatprep.subr.bf16.mxu0 %v3470_v10  ;;  %v853_v49 = vpop.permute.xlu1 %852 }
 0x172   :  { %v867_v50 = vmul.f32 %v853_v49, %v847_v45  ;;  %v4300_v45 = vld [vmem:[#allocation10 + $0xc0] sm:$0xff]  }
 0x173   :  { %3073 = vmatmul.mubr.msk.bf16.vlgmr.msra.gmra.mrb[0].mxu0 %vm280_vm0, %v440_v13  ;;  %1389 = vperm.xlu1 %3456, %v4139_v42  }
 0x174   :  { %3077 = vmatpush3.bf16.msra.mxu0 %v3470_v10  ;;  %3084 = vmatprep.mubr.msk.bf16.mxu0 %vm280_vm0, %v557_v12  ;;  %v871_v35 = vpack.c.bf16 %v868_v53, %v867_v50  ;;  %v1063_v10 = vld [vmem:[%s4421_s0 + $0x65] sm:$0xff] }
 0x175   :  { %3078 = vmatprep.subr.bf16.mxu0 %v3471_v14  ;;  %v861_v57 = vpop.permute.xlu1 %860  ;;  %v1067_v13 = vpack.c.bf16 %v1064_v11, %v1063_v10 }
 0x176   :  { %v869_v61 = vmul.f32 %v861_v57, %v849_v36 }
 0x177   :  { %3457 = vset.pattern.permute.xlu1 %v3852_v32  ;;  %v3853_v32 = vmov 0.0  }
 0x178   :  { %3079 = vmatpush3.bf16.msra.mxu0 %v3471_v14  ;;  %2512 = vperm.xlu1 %3457, %v4139_v42   ;;  %v967_v42 = vld [vmem:[%s4421_s0 + $0x55] sm:$0xff]  ;;  %1358 = vst [vmem:[#allocation2] sm:$0x1f] %v3853_v32  ;;  %1363 = vst [vmem:[#allocation2 + $0x25] sm:$0x1f] %v3853_v32 }
 0x179   :  { %3080 = vmatprep.subr.bf16.mxu0 %v3472_v15  ;;  %v865_v60 = vpop.permute.xlu1 %864  ;;  %v970_v12 = vpack.c.bf16 %v968_v7, %v967_v42  ;;  %v3491_v14 = vld [vmem:[#allocation3 + $0x108] sm:$0xff]   ;;  %v2787_v32 = vld [vmem:[#allocation5] ss:$0 sm:$0xff] }
 0x17a   :  { %v870_v62 = vmul.f32 %v865_v60, %v850_v8 }
 0x17c   :  { %3081 = vmatpush3.bf16.msra.mxu0 %v3472_v15  ;;  %v872_v3 = vpack.c.bf16 %v870_v62, %v869_v61  ;;  %v3492_v15 = vld [vmem:[#allocation3 + $0x110] sm:$0xff]  }
 0x17d   :  { %3082 = vmatprep.subr.bf16.mxu0 %v3473_v16 }
 0x180   :  { %3083 = vmatpush3.bf16.msra.mxu0 %v3473_v16  ;;  %v3493_v16 = vld [vmem:[#allocation3 + $0x118] sm:$0xff]  }
 0x181   :  { %3088 = vmatprep.subr.bf16.mxu0 %v3474_v24 }
 0x183   :  { %3085 = vmatmul.mubr.msk.bf16.vlgmr.msra.gmra.mrb[0].mxu0 %vm280_vm0, %v558_v28  ;;  %v3502_v28 = vld [vmem:[#allocation10 + $0x50] sm:$0xff]  }
 0x184   :  { %3089 = vmatpush3.bf16.msra.mxu0 %v3474_v24  ;;  %3096 = vmatprep.mubr.msk.bf16.mxu0 %vm280_vm0, %v4203_v27  ;;  %v3498_v24 = vld [vmem:[#allocation10 + $0x40] sm:$0xff]  }
 0x185   :  { %3090 = vmatprep.subr.bf16.mxu0 %v3475_v29 }
 0x188   :  { %3091 = vmatpush3.bf16.msra.mxu0 %v3475_v29  ;;  %v3503_v29 = vld [vmem:[#allocation10 + $0x90] sm:$0xff]  }
 0x189   :  { %3092 = vmatprep.subr.bf16.mxu0 %v3476_v30 }
 0x18c   :  { %3093 = vmatpush3.bf16.msra.mxu0 %v3476_v30  ;;  %v3504_v30 = vld [vmem:[#allocation10 + $0x58] sm:$0xff]  }
 0x18d   :  { %3094 = vmatprep.subr.bf16.mxu0 %v3477_v31 }
 0x190   :  { %3095 = vmatpush3.bf16.msra.mxu0 %v3477_v31  ;;  %v3505_v31 = vld [vmem:[#allocation10 + $0x98] sm:$0xff]  }
 0x191   :  { %3100 = vmatprep.subr.bf16.mxu0 %v3478_v37 }
 0x193   :  { %3097 = vmatmul.mubr.msk.bf16.vlgmr.msra.gmra.mrb[0].mxu0 %vm280_vm0, %v4228_v40 }
 0x194   :  { %3101 = vmatpush3.bf16.msra.mxu0 %v3478_v37  ;;  %3108 = vmatprep.mubr.msk.bf16.mxu0 %vm280_vm0, %v753_v41  ;;  %v3508_v37 = vld [vmem:[#allocation10 + $0x68] sm:$0xff]   ;;  %v3512_v41 = vld [vmem:[#allocation10 + $0x78] sm:$0xff]  }
 0x195   :  { %3102 = vmatprep.subr.bf16.mxu0 %v3479_v43 }
 0x198   :  { %3103 = vmatpush3.bf16.msra.mxu0 %v3479_v43  ;;  %v3513_v43 = vld [vmem:[#allocation10 + $0xb8] sm:$0xff]  }
 0x199   :  { %3104 = vmatprep.subr.bf16.mxu0 %v3480_v44 }
 0x19c   :  { %3105 = vmatpush3.bf16.msra.mxu0 %v3480_v44  ;;  %v4298_v44 = vld [vmem:[#allocation10] sm:$0xff]  }
 0x19d   :  { %3106 = vmatprep.subr.bf16.mxu0 %v3481_v46 }
 0x1a0   :  { %3107 = vmatpush3.bf16.msra.mxu0 %v3481_v46  ;;  %v4304_v46 = vpop.permute.xlu1 %1660 }
 0x1a1   :  { %3112 = vmatprep.subr.bf16.mxu0 %v3482_v54 }
 0x1a3   :  { %3109 = vmatmul.mubr.msk.bf16.vlgmr.msra.gmra.mrb[0].mxu0 %vm280_vm0, %v754_v55 }
 0x1a4   :  { %3113 = vmatpush3.bf16.msra.mxu0 %v3482_v54  ;;  %3120 = vmatprep.mubr.msk.bf16.mxu0 %vm280_vm0, %v871_v35  ;;  %v4306_v47 = vpop.permute.xlu1 %1664 }
 0x1a5   :  { %3114 = vmatprep.subr.bf16.mxu0 %v3483_v56 }
 0x1a8   :  { %3115 = vmatpush3.bf16.msra.mxu0 %v3483_v56  ;;  %v4308_v49 = vpop.permute.xlu1 %1800 }
 0x1a9   :  { %3116 = vmatprep.subr.bf16.mxu0 %v3484_v58 }
 0x1ac   :  { %3117 = vmatpush3.bf16.msra.mxu0 %v3484_v58  ;;  %v4310_v55 = vpop.permute.xlu1 %1808 }
 0x1ad   :  { %3118 = vmatprep.subr.bf16.mxu0 %v3485_v59 }
 0x1b0   :  { %3119 = vmatpush3.bf16.msra.mxu0 %v3485_v59  ;;  %v4312_v58 = vpop.permute.xlu1 %1812 }
 0x1b1   :  { %3124 = vmatprep.subr.bf16.mxu0 %v3486_v63 }
 0x1b3   :  { %3121 = vmatmul.mubr.msk.bf16.vlgmr.msra.gmra.mrb[0].mxu0 %vm280_vm0, %v872_v3 }
 0x1b4   :  { %3125 = vmatpush3.bf16.msra.mxu0 %v3486_v63  ;;  %3132 = vmatprep.mubr.msk.bf16.mxu0 %vm280_vm0, %v969_v2  ;;  %v4314_v60 = vpop.permute.xlu1 %2072  ;;  %v4316_v63 = vpop.permute.xlu0 %1656 }
 0x1b5   :  { %3126 = vmatprep.subr.bf16.mxu0 %v3487_v4 }
 0x1b8   :  { %3127 = vmatpush3.bf16.msra.mxu0 %v3487_v4  ;;  %v4318_v4 = vpop.permute.xlu1 %2076 }
 0x1b9   :  { %3128 = vmatprep.subr.bf16.mxu0 %v3488_v5 }
 0x1bc   :  { %3129 = vmatpush3.bf16.msra.mxu0 %v3488_v5 }
 0x1bd   :  { %3130 = vmatprep.subr.bf16.mxu0 %v3489_v6 }
 0x1c0   :  { %3131 = vmatpush3.bf16.msra.mxu0 %v3489_v6 }
 0x1c1   :  { %3136 = vmatprep.subr.bf16.mxu0 %v3490_v9 }
 0x1c3   :  { %3133 = vmatmul.mubr.msk.bf16.vlgmr.msra.gmra.mrb[0].mxu0 %vm280_vm0, %v970_v12  ;;  %v2213_v12 = vpop.permute.xlu1 %2212 }
 0x1c4   :  { %3137 = vmatpush3.bf16.msra.mxu0 %v3490_v9  ;;  %3144 = vmatprep.mubr.msk.bf16.mxu0 %vm280_vm0, %v1067_v13  ;;  %v4320_v9 = vpop.permute.xlu0 %1668 }
 0x1c5   :  { %3138 = vmatprep.subr.bf16.mxu0 %v3491_v14 }
 0x1c7   :  { %v4324_v17 = vpop.permute.xlu1 %2220 }
 0x1c8   :  { %3139 = vmatpush3.bf16.msra.mxu0 %v3491_v14 }
 0x1c9   :  { %3140 = vmatprep.subr.bf16.mxu0 %v3492_v15 }
 0x1cc   :  { %3141 = vmatpush3.bf16.msra.mxu0 %v3492_v15  ;;  %v4322_v15 = vpop.permute.xlu0 %1804 }
 0x1cd   :  { %3142 = vmatprep.subr.bf16.mxu0 %v3493_v16 }
 0x1d0   :  { %3143 = vmatpush3.bf16.msra.mxu0 %v3493_v16 }
 0x1d1   :  { %3148 = vmatprep.subr.bf16.mxu0 %v3494_v20 }
 0x1d3   :  { %3145 = vmatmul.mubr.msk.bf16.vlgmr.msra.gmra.mrb[0].mxu0 %vm280_vm0, %v1068_v19 }
 0x1d4   :  { %3156 = vmatprep.mubr.msk.bf16.mxu0 %vm280_vm0, %v4203_v27  ;;  %3149 = vmatpush3.bf16.msra.mxu0 %v3494_v20  ;;  %v3501_v27 = vld [vmem:[#allocation10 + $0x88] sm:$0xff]   ;;  %v4326_v20 = vpop.permute.xlu0 %2068 }
 0x1d5   :  { %3150 = vmatprep.subr.bf16.mxu0 %v3495_v21  ;;  %3202 = vmatprep.subr.bf16.mxu1 %v3501_v27 }
 0x1d6   :  { %3203 = vmatpush3.bf16.msra.mxu1 %v3501_v27 }
 0x1d7   :  { %3204 = vmatprep.subr.bf16.mxu1 %v3503_v29 }
 0x1d8   :  { %3151 = vmatpush3.bf16.msra.mxu0 %v3495_v21  ;;  %v4330_v25 = vpop.permute.xlu0 %2080 }
 0x1d9   :  { %3152 = vmatprep.subr.bf16.mxu0 %v3496_v22 }
 0x1da   :  { %3205 = vmatpush3.bf16.msra.mxu1 %v3503_v29 }
 0x1db   :  { %3206 = vmatprep.subr.bf16.mxu1 %v3505_v31 }
 0x1dc   :  { %3153 = vmatpush3.bf16.msra.mxu0 %v3496_v22  ;;  %v4328_v22 = vpop.permute.xlu1 %2224 }
 0x1dd   :  { %3154 = vmatprep.subr.bf16.mxu0 %v3497_v23 }
 0x1de   :  { %3207 = vmatpush3.bf16.msra.mxu1 %v3505_v31 }
 0x1df   :  { %3208 = vmatprep.subr.bf16.mxu1 %v3507_v34 }
 0x1e0   :  { %3155 = vmatpush3.bf16.msra.mxu0 %v3497_v23  ;;  %v1424_v27 = vpop.permute.xlu1 %1423 }
 0x1e1   :  { %3160 = vmatprep.subr.bf16.mxu0 %v3498_v24 }
 0x1e2   :  { %3209 = vmatpush3.bf16.msra.mxu1 %v3507_v34 }
 0x1e3   :  { %3157 = vmatmul.mubr.msk.bf16.vlgmr.msra.gmra.mrb[4].mxu0 %vm280_vm0, %v4228_v40  ;;  %3210 = vmatprep.subr.bf16.mxu1 %v3509_v0  ;;  %v3511_v40 = vld [vmem:[#allocation10 + $0xb0] sm:$0xff]  }
 0x1e4   :  { %3161 = vmatpush3.bf16.msra.mxu0 %v3498_v24  ;;  %v2357_v29 = vpop.permute.xlu1 %2356 }
 0x1e5   :  { %3162 = vmatprep.subr.bf16.mxu0 %v3500_v26 }
 0x1e6   :  { %3211 = vmatpush3.bf16.msra.mxu1 %v3509_v0 }
 0x1e7   :  { %3212 = vmatprep.subr.bf16.mxu1 %v3511_v40 }
 0x1e8   :  { %3163 = vmatpush3.bf16.msra.mxu0 %v3500_v26 }
 0x1e9   :  { %3164 = vmatprep.subr.bf16.mxu0 %v3502_v28 }
 0x1ea   :  { %3213 = vmatpush3.bf16.msra.mxu1 %v3511_v40  ;;  %v2788_v40 = vld [vmem:[#allocation7] ss:$0 sm:$0xff] }
 0x1eb   :  { %3214 = vmatprep.subr.bf16.mxu1 %v3513_v43 }
 0x1ec   :  { %3165 = vmatpush3.bf16.msra.mxu0 %v3502_v28  ;;  %v2217_v28 = vpop.permute.xlu0 %2216 }
 0x1ed   :  { %3166 = vmatprep.subr.bf16.mxu0 %v3504_v30 }
 0x1ee   :  { %3215 = vmatpush3.bf16.msra.mxu1 %v3513_v43 }
 0x1ef   :  { %3220 = vmatprep.subr.bf16.mxu1 %v4300_v45 }
 0x1f0   :  { %3167 = vmatpush3.bf16.msra.mxu0 %v3504_v30  ;;  %v1420_v30 = vpop.permute.xlu0 %1419 }
 0x1f1   :  { %3168 = vmatprep.subr.bf16.mxu0 %v3506_v33 }
 0x1f4   :  { %3169 = vmatpush3.bf16.msra.mxu0 %v3506_v33  ;;  %v1428_v33 = vpop.permute.xlu1 %1427 }
 0x1f5   :  { %3170 = vmatprep.subr.bf16.mxu0 %v3508_v37 }
 0x1f8   :  { %3171 = vmatpush3.bf16.msra.mxu0 %v3508_v37 }
 0x1f9   :  { %3172 = vmatprep.subr.bf16.mxu0 %v3510_v38 }
 0x1fc   :  { %3173 = vmatpush3.bf16.msra.mxu0 %v3510_v38 }
 0x1fd   :  { %3174 = vmatprep.subr.bf16.mxu0 %v3512_v41 }
 0x200   :  { %3175 = vmatpush3.bf16.msra.mxu0 %v3512_v41 }
 0x201   :  { %3180 = vmatprep.subr.bf16.mxu0 %v4298_v44 }
 0x2a6   :  { %v3146_v48 = vpop.f32.mrb[0].mxu0 }
 0x2a7   :  { %v1142_v50 = vpop.f32.mrb[1].mxu0 }
 0x2a8   :  { %v3147_v51 = vpop.f32.mrb[2].mxu0 }
 0x2a9   :  { %v1145_v52 = vpop.f32.mrb[3].mxu0 }
 0x2aa   :  { %v1163_v53 = vadd.f32 %v1145_v52, %v1142_v50 }
 0x2ac   :  { %v1164_v54 = vadd.f32 %v3146_v48, %v1163_v53 }
 0x2ae   :  { %v1165_v35 = vadd.f32 %v3147_v51, %v1164_v54 }
 0x2b0   :  { %v1166_v56 = vrot.slane %v1165_v35, 4 }
 0x2b2   :  { %v1167_v57 = vadd.f32 %v1166_v56, %v1165_v35  ;;  %v1432_v56 = vpop.permute.xlu1 %1431 }
 0x2b4   :  { %v1168_v59 = vrot.slane %v1167_v57, 2 }
 0x2b6   :  { %v1169_v36 = vadd.f32 %v1168_v59, %v1167_v57 }
 0x2b8   :  { %v1170_v8 = vrot.slane %v1169_v36, 1 }
 0x2ba   :  { %v1171_v61 = vadd.f32 %v1170_v8, %v1169_v36 }
 0x2bc   :  { %v1172_v62 = vmul.f32 0.03125, %v1171_v61 }
 0x2be   :  { %v1173_v39 = vsub.f32 %v1142_v50, %v1172_v62  ;;  %v1174_v1 = vsub.f32 %v1145_v52, %v1172_v62  ;;  %v1175_v2 = vsub.f32 %v3146_v48, %v1172_v62  ;;  %v1176_v3 = vsub.f32 %v3147_v51, %v1172_v62  ;;  %v2361_v51 = vpop.permute.xlu0 %2360 }
 0x2c0   :  { %v1177_v5 = vmul.f32 %v1173_v39, %v1173_v39  ;;  %v1178_v6 = vmul.f32 %v1174_v1, %v1174_v1  ;;  %v1179_v42 = vmul.f32 %v1175_v2, %v1175_v2  ;;  %v1180_v10 = vmul.f32 %v1176_v3, %v1176_v3 }
 0x2c2   :  { %v1181_v7 = vadd.f32 %v1178_v6, %v1177_v5 }
 0x2c4   :  { %v1182_v11 = vadd.f32 %v1181_v7, %v1179_v42 }
 0x2c6   :  { %v1183_v13 = vadd.f32 %v1182_v11, %v1180_v10 }
 0x2c8   :  { %v1184_v14 = vrot.slane %v1183_v13, 4 }
 0x2ca   :  { %v1185_v16 = vadd.f32 %v1184_v14, %v1183_v13 }
 0x2cc   :  { %v1186_v18 = vrot.slane %v1185_v16, 2 }
 0x2ce   :  { %v1187_v19 = vadd.f32 %v1186_v18, %v1185_v16 }
 0x2d0   :  { %v1188_v21 = vrot.slane %v1187_v19, 1 }
 0x2d2   :  { %v1189_v23 = vadd.f32 %v1188_v21, %v1187_v19 }
 0x2d4   :  { %v1190_v24 = vmul.f32 0.03125, %v1189_v23 }
 0x2d6   :  { %v1191_v26 = vadd.f32 1e-05, %v1190_v24 }
 0x2d8   :  { %3570 = vrsqrt.f32 %v1191_v26 }
 0x2e2   :  { %v3571_v31 = vpop.eup %3570 }
 0x2e3   :  { %v1193_v34 = vmul.f32 %v3571_v31, %v1173_v39  ;;  %v1194_v37 = vmul.f32 %v3571_v31, %v1174_v1  ;;  %v1195_v0 = vmul.f32 %v3571_v31, %v1175_v2  ;;  %v1196_v38 = vmul.f32 %v3571_v31, %v1176_v3  ;;  %v4336_v39 = vpop.permute.xlu0 %2364  ;;  %v4338_v1 = vpop.permute.xlu1 %2368 }
 0x2e5   :  { %v1203_v41 = vmul.f32 %v2787_v32, %v1193_v34  ;;  %v1204_v43 = vmul.f32 %v2787_v32, %v1194_v37  ;;  %v1205_v48 = vmul.f32 %v2787_v32, %v1195_v0  ;;  %v1206_v50 = vmul.f32 %v2787_v32, %v1196_v38 }
 0x2e7   :  { %v1213_v52 = vadd.f32 %v2788_v40, %v1203_v41  ;;  %v1214_v53 = vadd.f32 %v2788_v40, %v1204_v43  ;;  %v1215_v54 = vadd.f32 %v2788_v40, %v1205_v48  ;;  %v1216_v35 = vadd.f32 %v2788_v40, %v1206_v50  ;;  %v1375_v2 = vpop.permute.xlu0 %1374  ;;  %v1380_v5 = vpop.permute.xlu1 %1379 }
 0x2e9   :  { %v1217_v57 = vmax.f32 %v1213_v52, 0.0  ;;  %v1218_v59 = vmax.f32 %v1214_v53, 0.0  ;;  %v1219_v36 = vmax.f32 %v1215_v54, 0.0  ;;  %v1220_v8 = vmax.f32 %v1216_v35, 0.0  ;;  %v3516_v53 = vld [vmem:[#allocation10 + $0x8] sm:$0xff]  }
 0x2eb   :  { %1359 = vst [vmem:[#allocation2 + $0x5] sm:$0xff] %v1217_v57  ;;  %1360 = vst [vmem:[#allocation2 + $0xd] sm:$0xff] %v1218_v59  ;;  %v4332_v61 = vpack.c.bf16 %v1218_v59, %v1217_v57  ;;  %v4334_v62 = vpack.c.bf16 %v1220_v8, %v1219_v36  ;;  %v2505_v26 = vpop.permute.xlu0 %2504  ;;  %v3517_v59 = vld [vmem:[#allocation10 + $0xc8] sm:$0xff]  }
 0x2ec   :  { %1361 = vst [vmem:[#allocation2 + $0x15] sm:$0xff] %v1219_v36  ;;  %1362 = vst [vmem:[#allocation2 + $0x1d] sm:$0xff] %v1220_v8  ;;  %v3518_v8 = vld [vmem:[#allocation10 + $0x10] sm:$0xff]  }
 0x2f2   :  { %v2207_v3 = vld [vmem:[#allocation2 + $0x8] sm:$0xff] }
 0x2f3   :  { %v1415_v6 = vld [vmem:[#allocation2 + $0x9] sm:$0xff]  ;;  %v1653_v42 = vld [vmem:[#allocation2 + $0x12] sm:$0xff]  ;;  %v4340_v10 = vmul.f32 %v2213_v12, %v2207_v3  ;;  %v4346_v16 = vld [vmem:[#allocation2 + $0x1a] sm:$0xff]  ;;  %v1393_v0 = vmul.f32 %v2207_v3, %v1380_v5 }
 0x2f4   :  { %v1416_v7 = vld [vmem:[#allocation2 + $0x11] sm:$0xff]  ;;  %v4342_v13 = vld [vmem:[#allocation2 + $0x19] sm:$0xff]  ;;  %v1435_v18 = vmul.f32 %v1424_v27, %v1415_v6  ;;  %v4348_v19 = vmul.f32 %v2357_v29, %v1415_v6  ;;  %v1414_v23 = vld [vmem:[#allocation2 + $0x1] sm:$0xff]  ;;  %v1673_v34 = vmul.f32 %v4306_v47, %v1653_v42  ;;  %v2501_v27 = vpop.permute.xlu1 %2500  ;;  %v1674_v40 = vmul.f32 %v4320_v9, %v4346_v16 }
 0x2f5   :  { %v1436_v11 = vmul.f32 %v1428_v33, %v1416_v7  ;;  %v4344_v14 = vld [vmem:[#allocation2 + $0x10] sm:$0xff]  ;;  %v1437_v21 = vmul.f32 %v1432_v56, %v4342_v13  ;;  %v1651_v31 = vld [vmem:[#allocation2 + $0x2] sm:$0xff]  ;;  %v4354_v33 = vmul.f32 %v2505_v26, %v1653_v42  ;;  %v1434_v37 = vmul.f32 %v1420_v30, %v1414_v23 }
 0x2f6   :  { %v2495_v24 = vld [vmem:[#allocation2 + $0xa] sm:$0xff]  ;;  %v4352_v32 = vmul.f32 %v2217_v28, %v4344_v14  ;;  %v1364_v12 = vld [vmem:[#allocation2] sm:$0xff]  ;;  %v4357_v38 = vmul.f32 %v2361_v51, %v1416_v7  ;;  %v1671_v50 = vmul.f32 %v4316_v63, %v1651_v31  ;;  %v1676_v57 = vpack.c.bf16 %v1674_v40, %v1673_v34  ;;  %v1797_v23 = vld [vmem:[#allocation2 + $0x14] sm:$0xff] }
 0x2f7   :  { %v1795_v29 = vld [vmem:[#allocation2 + $0x4] sm:$0xff]  ;;  %v1796_v41 = vld [vmem:[#allocation2 + $0xc] sm:$0xff]  ;;  %v1439_v43 = vpack.c.bf16 %v1437_v21, %v1436_v11  ;;  %v4363_v48 = vmul.f32 %v2501_v27, %v2495_v24  ;;  %v1438_v52 = vpack.c.bf16 %v1435_v18, %v1434_v37  ;;  %v1392_v30 = vmul.f32 %v1375_v2, %v1364_v12  ;;  %v3523_v2 = vld [vmem:[#allocation10 + $0xe0] sm:$0xff]  }
 0x2f8   :  { %v2231_v28 = vpack.c.bf16 %v4352_v32, %v4340_v10  ;;  %v2375_v47 = vpack.c.bf16 %v4357_v38, %v4348_v19  ;;  %v1815_v9 = vmul.f32 %v4308_v49, %v1795_v29  ;;  %v1816_v54 = vmul.f32 %v4322_v15, %v1796_v41  ;;  %v3519_v49 = vld [vmem:[#allocation10 + $0xd0] sm:$0xff]   ;;  %v3521_v15 = vld [vmem:[#allocation10 + $0xd8] sm:$0xff]   ;;  %v3524_v3 = vld [vmem:[#allocation10 + $0x28] sm:$0xff]   ;;  %v1385_v6 = vpop.permute.xlu1 %1384 }
 0x2f9   :  { %v2519_v51 = vpack.c.bf16 %v4354_v33, %v4363_v48  ;;  %v1396_v35 = vpack.c.bf16 %v1393_v0, %v1392_v30  ;;  %3176 = vmatprep.mubr.bf16.mxu0 %v1438_v52  ;;  %v1672_v56 = vmul.f32 %v2495_v24, %v4304_v46  ;;  %v3520_v46 = vld [vmem:[#allocation10 + $0x18] sm:$0xff]   ;;  %v3526_v5 = vld [vmem:[#allocation10 + $0x30] sm:$0xff]   ;;  %v4375_v11 = vld [vmem:[#allocation2 + $0x18] sm:$0xff]  ;;  %v1394_v26 = vmul.f32 %v4344_v14, %v1385_v6  ;;  %v2509_v48 = vpop.permute.xlu0 %2508 }
 0x2fa   :  { %3177 = vmatmul.mubr.bf16.vlgmr.msra.gmra.mrb[8].mxu0 %v1439_v43  ;;  %v1819_v36 = vpack.c.bf16 %v1816_v54, %v1815_v9  ;;  %v3527_v42 = vld [vmem:[#allocation10 + $0xf0] sm:$0xff]   ;;  %v3528_v7 = vld [vmem:[#allocation10 + $0x38] sm:$0xff]   ;;  %v1798_v24 = vld [vmem:[#allocation2 + $0x1c] sm:$0xff]  ;;  %v1817_v12 = vmul.f32 %v4310_v55, %v1797_v23  ;;  %v2373_v38 = vmul.f32 %v4336_v39, %v4342_v13 }
 0x2fb   :  { %v1675_v63 = vpack.c.bf16 %v1672_v56, %v1671_v50  ;;  %3181 = vmatpush3.bf16.msra.mxu0 %v4298_v44  ;;  %3196 = vmatprep.mubr.bf16.mxu0 %v1396_v35  ;;  %v3522_v44 = vld [vmem:[#allocation10 + $0x20] sm:$0xff]   ;;  %v3529_v21 = vld [vmem:[#allocation10 + $0xf8] sm:$0xff]   ;;  %v1818_v34 = vmul.f32 %v4312_v58, %v1798_v24  ;;  %v3531_v29 = vld [vmem:[#allocation10 + $0x108] sm:$0xff]   ;;  %v3158_v35 = vpop.f32.mrb[4].mxu0 }
 0x2fc   :  { %3182 = vmatprep.subr.bf16.mxu0 %v3516_v53  ;;  %v1390_v18 = vpop.permute.xlu1 %1389  ;;  %v3530_v37 = vld [vmem:[#allocation10 + $0x100] sm:$0xff]   ;;  %v3532_v14 = vld [vmem:[#allocation10 + $0x110] sm:$0xff]   ;;  %v3533_v55 = vld [vmem:[#allocation10 + $0x118] sm:$0xff]   ;;  %v1287_v56 = vpop.f32.mrb[5].mxu0 }
 0x2fd   :  { %3216 = vmatprep.mubr.bf16.mxu1 %v1675_v63  ;;  %v1395_v31 = vmul.f32 %v4375_v11, %v1390_v18  ;;  %v1820_v27 = vpack.c.bf16 %v1818_v34, %v1817_v12  ;;  %v3534_v58 = vld [vmem:[#allocation10 + $0x120] sm:$0xff]   ;;  %v3535_v40 = vld [vmem:[#allocation10 + $0x128] sm:$0xff]   ;;  %v3536_v41 = vld [vmem:[#allocation10 + $0x130] sm:$0xff]   ;;  %v3159_v63 = vpop.f32.mrb[6].mxu0 }
 0x2fe   :  { %3217 = vmatmul.mubr.bf16.vlgmr.msra.gmra.mrb[0].mxu1 %v1676_v57  ;;  %v3537_v43 = vld [vmem:[#allocation10 + $0x138] sm:$0xff]   ;;  %v3539_v9 = vld [vmem:[#allocation10 + $0x148] sm:$0xff]   ;;  %v3540_v57 = vld [vmem:[#allocation10 + $0x150] sm:$0xff]  }
 0x2ff   :  { %3221 = vmatpush3.bf16.msra.mxu1 %v4300_v45  ;;  %3236 = vmatprep.mubr.bf16.mxu1 %v1819_v36  ;;  %v3525_v45 = vld [vmem:[#allocation10 + $0xe8] sm:$0xff]   ;;  %v1397_v0 = vpack.c.bf16 %v1395_v31, %v1394_v26  ;;  %v2064_v50 = vld [vmem:[#allocation2 + $0xe] sm:$0xff]  ;;  %v2063_v52 = vld [vmem:[#allocation2 + $0x6] sm:$0xff] }
 0x300   :  { %3222 = vmatprep.subr.bf16.mxu1 %v3517_v59  ;;  %3183 = vmatpush3.bf16.msra.mxu0 %v3516_v53  ;;  %v2084_v30 = vmul.f32 %v4314_v60, %v2064_v50  ;;  %v2083_v53 = vmul.f32 %v4326_v20, %v2063_v52  ;;  %v3541_v60 = vld [vmem:[#allocation10 + $0x158] sm:$0xff]   ;;  %v2065_v6 = vld [vmem:[#allocation2 + $0x16] sm:$0xff]  ;;  %v2066_v18 = vld [vmem:[#allocation2 + $0x1e] sm:$0xff] }
 0x301   :  { %3184 = vmatprep.subr.bf16.mxu0 %v3518_v8  ;;  %v2085_v31 = vmul.f32 %v4318_v4, %v2065_v6  ;;  %v2086_v12 = vmul.f32 %v4330_v25, %v2066_v18  ;;  %v3546_v34 = vld [vmem:[#allocation10 + $0x180] sm:$0xff]   ;;  %v3548_v4 = vld [vmem:[#allocation10 + $0x190] sm:$0xff]   ;;  %v3549_v50 = vld [vmem:[#allocation10 + $0x198] sm:$0xff]   ;;  %v2513_v18 = vpop.permute.xlu1 %2512 }
 0x302   :  { %v2087_v54 = vpack.c.bf16 %v2084_v30, %v2083_v53  ;;  %v3550_v30 = vld [vmem:[#allocation10 + $0x1a0] sm:$0xff]   ;;  %v3552_v32 = vld [vmem:[#allocation10 + $0x1b0] sm:$0xff]   ;;  %v3567_v13 = vld [vmem:[#allocation10 + $0x228] sm:$0xff]  }
 0x303   :  { %3223 = vmatpush3.bf16.msra.mxu1 %v3517_v59  ;;  %v1290_v59 = vpop.f32.mrb[7].mxu0  ;;  %v3564_v6 = vld [vmem:[#allocation10 + $0x210] sm:$0xff]   ;;  %v3566_v39 = vld [vmem:[#allocation10 + $0x220] sm:$0xff]  }
 0x304   :  { %3224 = vmatprep.subr.bf16.mxu1 %v3519_v49  ;;  %3185 = vmatpush3.bf16.msra.mxu0 %v3518_v8  ;;  %v1304_v36 = vadd.f32 %v1290_v59, %v1287_v56  ;;  %v2498_v33 = vld [vmem:[#allocation2 + $0x22] sm:$0xff] }
 0x305   :  { %3186 = vmatprep.subr.bf16.mxu0 %v3520_v46 }
 0x306   :  { %v1305_v8 = vadd.f32 %v3158_v35, %v1304_v36 }
 0x307   :  { %3225 = vmatpush3.bf16.msra.mxu1 %v3519_v49  ;;  %v3542_v49 = vld [vmem:[#allocation10 + $0x160] sm:$0xff]  }
 0x308   :  { %3226 = vmatprep.subr.bf16.mxu1 %v3521_v15  ;;  %3187 = vmatpush3.bf16.msra.mxu0 %v3520_v46  ;;  %v1306_v20 = vadd.f32 %v3159_v63, %v1305_v8 }
 0x309   :  { %3188 = vmatprep.subr.bf16.mxu0 %v3522_v44 }
 0x30a   :  { %v1307_v46 = vrot.slane %v1306_v20, 4 }
 0x30b   :  { %3227 = vmatpush3.bf16.msra.mxu1 %v3521_v15 }
 0x30c   :  { %3228 = vmatprep.subr.bf16.mxu1 %v3523_v2  ;;  %3189 = vmatpush3.bf16.msra.mxu0 %v3522_v44  ;;  %v1308_v15 = vadd.f32 %v1307_v46, %v1306_v20 }
 0x30d   :  { %3190 = vmatprep.subr.bf16.mxu0 %v3524_v3 }
 0x30e   :  { %v1309_v44 = vrot.slane %v1308_v15, 2 }
 0x30f   :  { %3229 = vmatpush3.bf16.msra.mxu1 %v3523_v2 }
 0x310   :  { %3230 = vmatprep.subr.bf16.mxu1 %v3525_v45  ;;  %3191 = vmatpush3.bf16.msra.mxu0 %v3524_v3  ;;  %v1310_v2 = vadd.f32 %v1309_v44, %v1308_v15  ;;  %v3544_v3 = vld [vmem:[#allocation10 + $0x170] sm:$0xff]   ;;  %v3555_v15 = vld [vmem:[#allocation10 + $0x1c8] sm:$0xff]  }
 0x311   :  { %3192 = vmatprep.subr.bf16.mxu0 %v3526_v5  ;;  %v3560_v44 = vld [vmem:[#allocation10 + $0x1f0] sm:$0xff]  }
 0x313   :  { %3231 = vmatpush3.bf16.msra.mxu1 %v3525_v45  ;;  %v1311_v45 = vrot.slane %v1310_v2, 1 }
 0x314   :  { %3232 = vmatprep.subr.bf16.mxu1 %v3527_v42  ;;  %3193 = vmatpush3.bf16.msra.mxu0 %v3526_v5 }
 0x315   :  { %3194 = vmatprep.subr.bf16.mxu0 %v3528_v7  ;;  %v1312_v5 = vadd.f32 %v1311_v45, %v1310_v2  ;;  %v3561_v2 = vld [vmem:[#allocation10 + $0x1f8] sm:$0xff]  }
 0x317   :  { %3233 = vmatpush3.bf16.msra.mxu1 %v3527_v42  ;;  %v3545_v42 = vld [vmem:[#allocation10 + $0x178] sm:$0xff]  }
 0x318   :  { %3234 = vmatprep.subr.bf16.mxu1 %v3529_v21  ;;  %3195 = vmatpush3.bf16.msra.mxu0 %v3528_v7  ;;  %v1313_v7 = vmul.f32 0.03125, %v1312_v5  ;;  %v3563_v5 = vld [vmem:[#allocation10 + $0x208] sm:$0xff]  }
 0x31a   :  { %v1315_v23 = vsub.f32 %v1290_v59, %v1313_v7  ;;  %v1316_v24 = vsub.f32 %v3158_v35, %v1313_v7  ;;  %v1317_v26 = vsub.f32 %v3159_v63, %v1313_v7  ;;  %v3554_v59 = vld [vmem:[#allocation10 + $0x1c0] sm:$0xff]  }
 0x31b   :  { %3235 = vmatpush3.bf16.msra.mxu1 %v3529_v21  ;;  %3197 = vmatmul.mubr.bf16.vlgmr.msra.gmra.mrb[8].mxu0 %v1397_v0  ;;  %v1314_v21 = vsub.f32 %v1287_v56, %v1313_v7  ;;  %v2210_v56 = vld [vmem:[#allocation2 + $0x20] sm:$0xff]  ;;  %v3569_v7 = vld [vmem:[#allocation10 + $0x238] sm:$0xff]  }
 0x31c   :  { %3240 = vmatprep.subr.bf16.mxu1 %v3530_v37  ;;  %v1319_v0 = vmul.f32 %v1315_v23, %v1315_v23  ;;  %v2230_v63 = vmul.f32 %v4328_v22, %v2210_v56  ;;  %v3557_v22 = vld [vmem:[#allocation10 + $0x1d8] sm:$0xff]  }
 0x31e   :  { %3237 = vmatmul.mubr.bf16.vlgmr.msra.gmra.mrb[0].mxu1 %v1820_v27  ;;  %v1320_v27 = vmul.f32 %v1316_v24, %v1316_v24 }
 0x31f   :  { %3241 = vmatpush3.bf16.msra.mxu1 %v3530_v37  ;;  %3256 = vmatprep.mubr.bf16.mxu1 %v4332_v61  ;;  %v3538_v61 = vld [vmem:[#allocation10 + $0x140] sm:$0xff]   ;;  %v1318_v37 = vmul.f32 %v1314_v21, %v1314_v21 }
 0x320   :  { %3242 = vmatprep.subr.bf16.mxu1 %v3531_v29 }
 0x323   :  { %3243 = vmatpush3.bf16.msra.mxu1 %v3531_v29  ;;  %v1321_v29 = vmul.f32 %v1317_v26, %v1317_v26 }
 0x324   :  { %3244 = vmatprep.subr.bf16.mxu1 %v3532_v14 }
 0x327   :  { %3245 = vmatpush3.bf16.msra.mxu1 %v3532_v14  ;;  %v1322_v14 = vadd.f32 %v1319_v0, %v1318_v37 }
 0x328   :  { %3246 = vmatprep.subr.bf16.mxu1 %v3533_v55 }
 0x32b   :  { %3247 = vmatpush3.bf16.msra.mxu1 %v3533_v55  ;;  %v2088_v55 = vpack.c.bf16 %v2086_v12, %v2085_v31 }
 0x32c   :  { %3248 = vmatprep.subr.bf16.mxu1 %v3534_v58 }
 0x32f   :  { %3249 = vmatpush3.bf16.msra.mxu1 %v3534_v58  ;;  %v3547_v58 = vld [vmem:[#allocation10 + $0x188] sm:$0xff]  }
 0x330   :  { %3250 = vmatprep.subr.bf16.mxu1 %v3535_v40 }
 0x333   :  { %3251 = vmatpush3.bf16.msra.mxu1 %v3535_v40  ;;  %v1323_v40 = vadd.f32 %v1322_v14, %v1320_v27 }
 0x334   :  { %3252 = vmatprep.subr.bf16.mxu1 %v3536_v41 }
 0x337   :  { %3253 = vmatpush3.bf16.msra.mxu1 %v3536_v41  ;;  %v1324_v41 = vadd.f32 %v1323_v40, %v1321_v29 }
 0x338   :  { %3254 = vmatprep.subr.bf16.mxu1 %v3537_v43 }
 0x339   :  { %v1325_v25 = vrot.slane %v1324_v41, 4 }
 0x33b   :  { %3255 = vmatpush3.bf16.msra.mxu1 %v3537_v43  ;;  %v1326_v43 = vadd.f32 %v1325_v25, %v1324_v41 }
 0x33c   :  { %3260 = vmatprep.subr.bf16.mxu1 %v3538_v61 }
 0x33d   :  { %v1327_v52 = vrot.slane %v1326_v43, 2 }
 0x33e   :  { %3257 = vmatmul.mubr.bf16.vlgmr.msra.gmra.mrb[0].mxu1 %v4334_v62  ;;  %v3543_v62 = vld [vmem:[#allocation10 + $0x168] sm:$0xff]  }
 0x33f   :  { %3261 = vmatpush3.bf16.msra.mxu1 %v3538_v61  ;;  %3276 = vmatprep.mubr.bf16.mxu1 %v2087_v54  ;;  %v1328_v61 = vadd.f32 %v1327_v52, %v1326_v43  ;;  %v3551_v54 = vld [vmem:[#allocation10 + $0x1a8] sm:$0xff]  }
 0x340   :  { %3262 = vmatprep.subr.bf16.mxu1 %v3539_v9 }
 0x341   :  { %v1329_v53 = vrot.slane %v1328_v61, 1 }
 0x343   :  { %3263 = vmatpush3.bf16.msra.mxu1 %v3539_v9  ;;  %v1330_v9 = vadd.f32 %v1329_v53, %v1328_v61 }
 0x344   :  { %3264 = vmatprep.subr.bf16.mxu1 %v3540_v57 }
 0x345   :  { %v1331_v35 = vmul.f32 0.03125, %v1330_v9 }
 0x347   :  { %3265 = vmatpush3.bf16.msra.mxu1 %v3540_v57  ;;  %v1332_v10 = vadd.f32 1e-05, %v1331_v35  ;;  %v2229_v57 = vmul.f32 %v4324_v17, %v4375_v11  ;;  %v3556_v17 = vld [vmem:[#allocation10 + $0x1d0] sm:$0xff]   ;;  %v3558_v11 = vld [vmem:[#allocation10 + $0x1e0] sm:$0xff]  }
 0x348   :  { %3266 = vmatprep.subr.bf16.mxu1 %v3541_v60 }
 0x349   :  { %3572 = vrsqrt.f32 %v1332_v10  ;;  %v2232_v46 = vpack.c.bf16 %v2230_v63, %v2229_v57 }
 0x34b   :  { %3267 = vmatpush3.bf16.msra.mxu1 %v3541_v60 }
 0x34c   :  { %3268 = vmatprep.subr.bf16.mxu1 %v3542_v49 }
 0x34f   :  { %3269 = vmatpush3.bf16.msra.mxu1 %v3542_v49 }
 0x350   :  { %3270 = vmatprep.subr.bf16.mxu1 %v3543_v62 }
 0x353   :  { %3271 = vmatpush3.bf16.msra.mxu1 %v3543_v62  ;;  %v3573_v36 = vpop.eup %3572  ;;  %v3559_v62 = vld [vmem:[#allocation10 + $0x1e8] sm:$0xff]  }
 0x354   :  { %3272 = vmatprep.subr.bf16.mxu1 %v3544_v3  ;;  %v4393_v60 = vmul.f32 %v3573_v36, %v1314_v21  ;;  %v4395_v8 = vmul.f32 %v3573_v36, %v1315_v23  ;;  %v4397_v20 = vmul.f32 %v3573_v36, %v1316_v24  ;;  %v4399_v49 = vmul.f32 %v3573_v36, %v1317_v26 }
 0x355   :  { %v2517_v21 = vmul.f32 %v2509_v48, %v4346_v16 }
 0x357   :  { %3273 = vmatpush3.bf16.msra.mxu1 %v3544_v3  ;;  %v2354_v3 = vld [vmem:[#allocation2 + $0x21] sm:$0xff] }
 0x358   :  { %3274 = vmatprep.subr.bf16.mxu1 %v3545_v42  ;;  %v2374_v19 = vmul.f32 %v4338_v1, %v2354_v3  ;;  %v3565_v1 = vld [vmem:[#allocation10 + $0x218] sm:$0xff]  }
 0x35a   :  { %v2376_v45 = vpack.c.bf16 %v2374_v19, %v2373_v38 }
 0x35b   :  { %3275 = vmatpush3.bf16.msra.mxu1 %v3545_v42  ;;  %v3568_v42 = vld [vmem:[#allocation10 + $0x230] sm:$0xff]  }
 0x35c   :  { %3280 = vmatprep.subr.bf16.mxu1 %v3546_v34 }
 0x35e   :  { %3277 = vmatmul.mubr.bf16.vlgmr.msra.gmra.mrb[0].mxu1 %v2088_v55 }
 0x35f   :  { %3281 = vmatpush3.bf16.msra.mxu1 %v3546_v34  ;;  %3296 = vmatprep.mubr.bf16.mxu1 %v2231_v28  ;;  %v3553_v28 = vld [vmem:[#allocation10 + $0x1b8] sm:$0xff]  }
 0x360   :  { %3282 = vmatprep.subr.bf16.mxu1 %v3547_v58 }
 0x363   :  { %3283 = vmatpush3.bf16.msra.mxu1 %v3547_v58 }
 0x364   :  { %3284 = vmatprep.subr.bf16.mxu1 %v3548_v4 }
 0x367   :  { %3285 = vmatpush3.bf16.msra.mxu1 %v3548_v4 }
 0x368   :  { %3286 = vmatprep.subr.bf16.mxu1 %v3549_v50 }
 0x36b   :  { %3287 = vmatpush3.bf16.msra.mxu1 %v3549_v50 }
 0x36c   :  { %3288 = vmatprep.subr.bf16.mxu1 %v3550_v30 }
 0x36f   :  { %3289 = vmatpush3.bf16.msra.mxu1 %v3550_v30 }
 0x370   :  { %3290 = vmatprep.subr.bf16.mxu1 %v3551_v54 }
 0x373   :  { %3291 = vmatpush3.bf16.msra.mxu1 %v3551_v54 }
 0x374   :  { %3292 = vmatprep.subr.bf16.mxu1 %v3552_v32 }
 0x377   :  { %3293 = vmatpush3.bf16.msra.mxu1 %v3552_v32 }
 0x378   :  { %3294 = vmatprep.subr.bf16.mxu1 %v3553_v28 }
 0x37b   :  { %3295 = vmatpush3.bf16.msra.mxu1 %v3553_v28 }
 0x37c   :  { %3300 = vmatprep.subr.bf16.mxu1 %v3554_v59 }
 0x37e   :  { %3297 = vmatmul.mubr.bf16.vlgmr.msra.gmra.mrb[0].mxu1 %v2232_v46 }
 0x37f   :  { %3301 = vmatpush3.bf16.msra.mxu1 %v3554_v59  ;;  %3316 = vmatprep.mubr.bf16.mxu1 %v2375_v47  ;;  %v3562_v47 = vld [vmem:[#allocation10 + $0x200] sm:$0xff]  }
 0x380   :  { %3302 = vmatprep.subr.bf16.mxu1 %v3555_v15 }
 0x383   :  { %3303 = vmatpush3.bf16.msra.mxu1 %v3555_v15 }
 0x384   :  { %3304 = vmatprep.subr.bf16.mxu1 %v3556_v17 }
 0x387   :  { %3305 = vmatpush3.bf16.msra.mxu1 %v3556_v17 }
 0x388   :  { %3306 = vmatprep.subr.bf16.mxu1 %v3557_v22 }
 0x38b   :  { %3307 = vmatpush3.bf16.msra.mxu1 %v3557_v22 }
 0x38c   :  { %3308 = vmatprep.subr.bf16.mxu1 %v3558_v11 }
 0x38f   :  { %3309 = vmatpush3.bf16.msra.mxu1 %v3558_v11 }
 0x390   :  { %3310 = vmatprep.subr.bf16.mxu1 %v3559_v62 }
 0x393   :  { %3311 = vmatpush3.bf16.msra.mxu1 %v3559_v62 }
 0x394   :  { %3312 = vmatprep.subr.bf16.mxu1 %v3560_v44 }
 0x397   :  { %3313 = vmatpush3.bf16.msra.mxu1 %v3560_v44 }
 0x398   :  { %3314 = vmatprep.subr.bf16.mxu1 %v3561_v2 }
 0x39b   :  { %3315 = vmatpush3.bf16.msra.mxu1 %v3561_v2  ;;  %v2795_v2 = vld [vmem:[#allocation17] ss:$0 sm:$0xff] }
 0x39c   :  { %3320 = vmatprep.subr.bf16.mxu1 %v3562_v47  ;;  %v1344_v19 = vmul.f32 %v2795_v2, %v4393_v60  ;;  %v1345_v38 = vmul.f32 %v2795_v2, %v4395_v8 }
 0x39e   :  { %3317 = vmatmul.mubr.bf16.vlgmr.msra.gmra.mrb[0].mxu1 %v2376_v45  ;;  %v1347_v45 = vmul.f32 %v2795_v2, %v4399_v49 }
 0x39f   :  { %3321 = vmatpush3.bf16.msra.mxu1 %v3562_v47  ;;  %3336 = vmatprep.mubr.bf16.mxu1 %v2519_v51  ;;  %v2518_v51 = vmul.f32 %v2513_v18, %v2498_v33  ;;  %v1346_v47 = vmul.f32 %v2795_v2, %v4397_v20 }
 0x3a0   :  { %3322 = vmatprep.subr.bf16.mxu1 %v3563_v5 }
 0x3a1   :  { %v2520_v23 = vpack.c.bf16 %v2518_v51, %v2517_v21 }
 0x3a3   :  { %3323 = vmatpush3.bf16.msra.mxu1 %v3563_v5  ;;  %v2869_v5 = vld [vmem:[#allocation11] ss:$0 sm:$0xff] }
 0x3a4   :  { %3324 = vmatprep.subr.bf16.mxu1 %v3564_v6 }
 0x3a7   :  { %3325 = vmatpush3.bf16.msra.mxu1 %v3564_v6  ;;  %v2796_v6 = vld [vmem:[#allocation19] ss:$0 sm:$0xff] }
 0x3a8   :  { %3326 = vmatprep.subr.bf16.mxu1 %v3565_v1  ;;  %v1354_v21 = vadd.f32 %v2796_v6, %v1344_v19  ;;  %v1356_v60 = vadd.f32 %v2796_v6, %v1346_v47 }
 0x3ab   :  { %3327 = vmatpush3.bf16.msra.mxu1 %v3565_v1 }
 0x3ac   :  { %3328 = vmatprep.subr.bf16.mxu1 %v3566_v39 }
 0x3af   :  { %3329 = vmatpush3.bf16.msra.mxu1 %v3566_v39 }
 0x3b0   :  { %3330 = vmatprep.subr.bf16.mxu1 %v3567_v13 }
 0x3b3   :  { %3331 = vmatpush3.bf16.msra.mxu1 %v3567_v13 }
 0x3b4   :  { %3332 = vmatprep.subr.bf16.mxu1 %v3568_v42 }
 0x3b7   :  { %3333 = vmatpush3.bf16.msra.mxu1 %v3568_v42 }
 0x3b8   :  { %3334 = vmatprep.subr.bf16.mxu1 %v3569_v7 }
 0x3bb   :  { %3335 = vmatpush3.bf16.msra.mxu1 %v3569_v7  ;;  %v2870_v7 = vld [vmem:[#allocation13] ss:$0 sm:$0xff] }
 0x3be   :  { %3337 = vmatmul.mubr.bf16.vlgmr.msra.gmra.mrb[0].mxu1 %v2520_v23  ;;  %v1355_v23 = vadd.f32 %v2796_v6, %v1345_v38 }
 0x3ee   :  { %v3198_v24 = vpop.f32.mrb[8].mxu0 }
 0x3ef   :  { %v1636_v26 = vpop.f32.mrb[9].mxu0 }
 0x3f0   :  { %v3199_v31 = vpop.f32.mrb[10].mxu0 }
 0x3f1   :  { %v1639_v12 = vpop.f32.mrb[11].mxu0 }
 0x491   :  { %v3338_v34 = vpop.f32.mrb[0].mxu1 }
 0x492   :  { %v3340_v37 = vadd.f32 %v3338_v34, %v3198_v24  ;;  %v2620_v0 = vpop.f32.mrb[1].mxu1  ;;  %v1357_v24 = vadd.f32 %v2796_v6, %v1347_v45 }
 0x493   :  { %v3341_v27 = vadd.f32 %v2620_v0, %v1636_v26  ;;  %v3339_v29 = vpop.f32.mrb[2].mxu1 }
 0x494   :  { %v3342_v14 = vadd.f32 %v3339_v29, %v3199_v31  ;;  %v2623_v55 = vpop.f32.mrb[3].mxu1 }
 0x495   :  { %v3343_v58 = vadd.f32 %v2623_v55, %v1639_v12 }
 0x497   :  { %v2641_v40 = vadd.f32 %v3343_v58, %v3341_v27 }
 0x499   :  { %v2642_v41 = vadd.f32 %v3340_v37, %v2641_v40 }
 0x49b   :  { %v2643_v4 = vadd.f32 %v3342_v14, %v2642_v41 }
 0x49d   :  { %v2644_v16 = vrot.slane %v2643_v4, 4 }
 0x49f   :  { %v2645_v25 = vadd.f32 %v2644_v16, %v2643_v4 }
 0x4a1   :  { %v2646_v43 = vrot.slane %v2645_v25, 2 }
 0x4a3   :  { %v2647_v50 = vadd.f32 %v2646_v43, %v2645_v25 }
 0x4a5   :  { %v2648_v52 = vrot.slane %v2647_v50, 1 }
 0x4a7   :  { %v2649_v61 = vadd.f32 %v2648_v52, %v2647_v50 }
 0x4a9   :  { %v2650_v30 = vmul.f32 0.03125, %v2649_v61 }
 0x4ab   :  { %v2651_v53 = vsub.f32 %v3341_v27, %v2650_v30  ;;  %v2652_v9 = vsub.f32 %v3343_v58, %v2650_v30  ;;  %v2653_v54 = vsub.f32 %v3340_v37, %v2650_v30  ;;  %v2654_v35 = vsub.f32 %v3342_v14, %v2650_v30 }
 0x4ad   :  { %v2655_v10 = vmul.f32 %v2651_v53, %v2651_v53  ;;  %v2656_v32 = vmul.f32 %v2652_v9, %v2652_v9  ;;  %v2657_v28 = vmul.f32 %v2653_v54, %v2653_v54  ;;  %v2658_v57 = vmul.f32 %v2654_v35, %v2654_v35 }
 0x4af   :  { %v2659_v56 = vadd.f32 %v2656_v32, %v2655_v10 }
 0x4b1   :  { %v2660_v63 = vadd.f32 %v2659_v56, %v2657_v28 }
 0x4b3   :  { %v2661_v59 = vadd.f32 %v2660_v63, %v2658_v57 }
 0x4b5   :  { %v2662_v36 = vrot.slane %v2661_v59, 4 }
 0x4b7   :  { %v2663_v46 = vadd.f32 %v2662_v36, %v2661_v59 }
 0x4b9   :  { %v2664_v15 = vrot.slane %v2663_v46, 2 }
 0x4bb   :  { %v2665_v17 = vadd.f32 %v2664_v15, %v2663_v46 }
 0x4bd   :  { %v2666_v22 = vrot.slane %v2665_v17, 1 }
 0x4bf   :  { %v2667_v11 = vadd.f32 %v2666_v22, %v2665_v17 }
 0x4c1   :  { %v2668_v62 = vmul.f32 0.03125, %v2667_v11 }
 0x4c3   :  { %v2669_v44 = vadd.f32 1e-05, %v2668_v62 }
 0x4c5   :  { %3574 = vrsqrt.f32 %v2669_v44 }
 0x4cf   :  { %v3575_v3 = vpop.eup %3574 }
 0x4d0   :  { %v2671_v1 = vmul.f32 %v3575_v3, %v2651_v53  ;;  %v2672_v39 = vmul.f32 %v3575_v3, %v2652_v9  ;;  %v2673_v13 = vmul.f32 %v3575_v3, %v2653_v54  ;;  %v2674_v42 = vmul.f32 %v3575_v3, %v2654_v35 }
 0x4d2   :  { %v2681_v18 = vmul.f32 %v2869_v5, %v2671_v1  ;;  %v2682_v33 = vmul.f32 %v2869_v5, %v2672_v39  ;;  %v2683_v48 = vmul.f32 %v2869_v5, %v2673_v13  ;;  %v2684_v51 = vmul.f32 %v2869_v5, %v2674_v42 }
 0x4d4   :  { %v2691_v8 = vadd.f32 %v2870_v7, %v2681_v18  ;;  %v2692_v26 = vadd.f32 %v2870_v7, %v2682_v33  ;;  %v2693_v20 = vadd.f32 %v2870_v7, %v2683_v48  ;;  %v2694_v31 = vadd.f32 %v2870_v7, %v2684_v51 }
 0x4d6   :  { %v2695_v49 = vadd.f32 %v2691_v8, %v1354_v21  ;;  %v2696_v12 = vadd.f32 %v2692_v26, %v1355_v23  ;;  %v2697_v34 = vadd.f32 %v2693_v20, %v1356_v60  ;;  %v2698_v37 = vadd.f32 %v2694_v31, %v1357_v24 }
 0x4d8   :  { %v2699_v0 = vmax.f32 %v2695_v49, 0.0  ;;  %v2700_v27 = vmax.f32 %v2696_v12, 0.0  ;;  %v2701_v29 = vmax.f32 %v2697_v34, 0.0  ;;  %v2702_v14 = vmax.f32 %v2698_v37, 0.0 }
 0x4da   :  { %v2882_v55 = vpack.c.bf16 %v2700_v27, %v2699_v0  ;;  %v2887_v58 = vpack.c.bf16 %v2702_v14, %v2701_v29 }
 0x4dc   :  { %2883 = vst [vmem:[%s4433_s12] sm:$0xff] %v2882_v55   ;;  %2889 = vst [vmem:[%s4433_s12 + $0x8] sm:$0xff] %v2887_v58  }
 0x4dd   :  { %2727 = vsyncpa [#allocation4], 1 }
 0x4de   :  { %2728 = vsyncpa [#allocation6], 1 }
 0x4df   :  { %2729 = vsyncpa [#allocation9], 1 }
 0x4e0   :  { %2730 = vsyncpa [#allocation12], 1 }
 0x4e1   :  { %2731 = vsyncpa [#allocation15], 1 }
 0x4e2   :  { %2732 = vsyncpa [#allocation18], 1 }

// kernel: resnet18_forward.7
= control target key start
LH: loop header
LB: loop body
LE: loop exit
PB: predicated region body
PF: predicated region fallthrough
CT: control target
= control target key end

     0   :  { %s6619_s0 = inlined_call_operand.vmem [shape: f32[38,128], index: 0, kind: input, shape index: {}]   ;;  %s6620_s1 = inlined_call_operand.hbm [shape: bf16[9,128,256], index: 1, kind: input, shape index: {}]   ;;  %s6621_s2 = inlined_call_operand.hbm [shape: f32[1,256], index: 2, kind: input, shape index: {}]   ;;  %s6622_s3 = inlined_call_operand.hbm [shape: f32[1,256], index: 3, kind: input, shape index: {}]   ;;  %s6623_s4 = inlined_call_operand.hbm [shape: f32[8,5], index: 4, kind: input, shape index: {}]   ;;  %s6624_s5 = inlined_call_operand.hbm [shape: bf16[9,256,256], index: 5, kind: input, shape index: {}]   ;;  %s6625_s6 = inlined_call_operand.hbm [shape: f32[1,256], index: 6, kind: input, shape index: {}]   ;;  %s6626_s7 = inlined_call_operand.hbm [shape: f32[1,256], index: 7, kind: input, shape index: {}]   ;;  %s6627_s8 = inlined_call_operand.hbm [shape: f32[8,8], index: 8, kind: input, shape index: {}]   ;;  %s6628_s9 = inlined_call_operand.hbm [shape: bf16[1,128,256], index: 9, kind: input, shape index: {}]   ;;  %s6629_s10 = inlined_call_operand.hbm [shape: f32[1,256], index: 10, kind: input, shape index: {}]   ;;  %s6630_s11 = inlined_call_operand.hbm [shape: f32[1,256], index: 11, kind: input, shape index: {}]   ;;  %s6631_s12 = inlined_call_operand.vmem [shape: bf16[8,256], index: 12, kind: output, shape index: {}]  }
   0x1   :  { %6655 = sst [smem:[#allocation29_spill]] %s6619_s0 }
   0x2   :  { %6656 = sst [smem:[#allocation30_spill]] %s6620_s1 }
   0x3   :  { %6657 = sst [smem:[#allocation31_spill]] %s6621_s2 }
   0x4   :  { %6658 = sst [smem:[#allocation32_spill]] %s6624_s5 }
   0x5   :  { %6659 = sst [smem:[#allocation33_spill]] %s6631_s12 }
   0x6   :  { %17 = vsyncpa [#allocation4], 0 }
   0x7   :  { %18 = vsyncpa [#allocation6], 0 }
   0x8   :  { %19 = vsyncpa [#allocation9], 0  ;;  %s5965_s21 = smov 0   ;;  %s5967_s22 = smov 0  }
   0x9   :  { %s5969_s23 = smov 0   ;;  %s5971_s24 = smov 0  }
   0xa LB: > { %6660 = sst [smem:[#allocation23_spill]] %s5865_s22  ;;  %s5984_s25 = sadd.s32 4294967295, %s5873_s24   ;;  %s5873_s24 = sphi %s5971_s24, %s6706_s24   ;;  %s5869_s23 = sphi %s5969_s23, %s6709_s23   ;;  %s5865_s22 = sphi %s5967_s22, %s6708_s22   ;;  %s5861_s21 = sphi %s5965_s21, %s6707_s21  }
   0xb   : > { %6661 = sst [smem:[#allocation24_spill]] %s5869_s23  ;;  %s5987_s26 = sadd.s32 1, %s5873_s24  }
   0xc   : > { %6662 = sst [smem:[#allocation25_spill]] %s5984_s25  ;;  %s134_s27 = ssub.s32 %s5873_s24, %s5987_s26 }
   0xd   : > { %6663 = sst [smem:[#allocation26_spill]] %s5987_s26  ;;  %s137_s28 = sadd.s32 1, %s5869_s23 }
   0xe   : > { %p135_p0 = scmp.eq.s32.totalorder %s134_s27, 0  ;;  %p144_p1 = scmp.ne.s32.totalorder %s5869_s23, %s5865_s22 }
   0xf   : > { %p145_p2 = scmp.eq.s32.totalorder %s5873_s24, 0  ;;  %p150_p3 = scmp.ne.s32.totalorder %s5865_s22, %s5861_s21 }
  0x10   : > { %s5997_s29 = scalar_select %p135_p0, %s5869_s23, %s137_s28  }
  0x11   : > { %p5999_p4 = por %p145_p2, %p144_p1  ;;  %p6634_p5 = scmp.eq.s32.totalorder %s5984_s25, 0 }
  0x12   : > { %6664 = sst [smem:[#allocation27_spill]] %s5997_s29  ;;  %p4139_p6 = scmp.ge.s32.totalorder %s5873_s24, 1 }
  0x13   : > { %p338_p7 = scmp.lt.s32.totalorder %s5873_s24, 3  ;;  %p6008_p8 = por %p6634_p5, %p150_p3 }
  0x14   : > { %s5875_s15 = smov [#allocation3]   ;;  %p5052_p12 = scmp.lt.s32.totalorder %s5873_s24, 2 }
  0x15   : > { %s6666_s13 = scalar_select %p6008_p8, 1, 0 }
  0x16   : > { %p6012_p9 = pnand %p4139_p6, %p338_p7  ;;  %s353_s16 = sshll.u32 %s5875_s15, 4  ;;  %s354_s16 = int_to_ptr.vmem [resolvable:$true] %s353_s16 }
  0x17   : > { %6667 = sst [smem:[#allocation28_spill]] %s6666_s13  ;;  %s6027_s19 = sand.u32 1, %s5869_s23  }
  0x18   : > { %s6668_s14 = scalar_select %p6012_p9, 1, 0 }
  0x19   : > { %p5012_p10 = pneg %p6012_p9  ;;  %p6031_p13 = pnand %p5052_p12, %p5999_p4 }
  0x1a   : > { %s6671_s1 = sld [smem:[#allocation30_spill]] }
  0x1b   : > { %p6020_p11 = pnand %p5012_p10, %p6634_p5 }
  0x1c   : > { %s6670_s20 = scalar_select %p6031_p13, 1, 0 }
  0x1d   : > { %s6669_s17 = scalar_select %p6020_p11, 1, 0 }
  0x1e   : > { %p6043_p1 = pneg %p6020_p11 }
  0x20   : > { %s5499_s28 = scalar_lea.hbm %s6671_s1, 18432 }
  0x21   : > { %p5500_p0 = scmp.ne.s32.totalorder %s6671_s1, %s5499_s28  ;;  %p5506_p4 = scmp.lt.u32.totalorder %s5499_s28, %s6671_s1 }
  0x22   : > { %s6672_s26 = scalar_select %p6043_p1, 1, 0 }
  0x23   : > { %p5502_p2 = pnand %p6043_p1, %p5500_p0 }
  0x25   : > { %p5503_p3 = pneg %p5502_p2 }
  0x27   : > { %p5508_p6 = pnand %p5506_p4, %p5503_p3 }
  0x29   : > { %5511 = shalt.err (!%p5508_p6)
}
  0x2a   : > { %s5512_s21 = scalar_lea.vmem %s354_s16, 18432  ;;  %p5520_p5 = scmp.lt.s32.totalorder %s354_s16, %s354_s16 }
  0x2b   : > { %p5513_p7 = scmp.ne.s32.totalorder %s354_s16, %s5512_s21  ;;  %p5521_p8 = scmp.lt.s32.totalorder %s5512_s21, %s5512_s21 }
  0x2d   : > { %p5515_p10 = pnand %p5513_p7, %p6043_p1  ;;  %p5522_p9 = por %p5521_p8, %p5520_p5 }
  0x2f   : > { %p5516_p12 = pneg %p5515_p10 }
  0x31   : > { %p5523_p13 = pnand %p5522_p9, %p5516_p12 }
  0x33   : > { %5526 = shalt.err (!%p5523_p13)
}
  0x34   : > { %s6650_s29 = smov 128   ;;  %s5877_s18 = smov 8  }
  0x35   : > { %5015 = dma.hbm_to_vmem [thread:$0]  (!%p6020_p11), %s6671_s1, 18432, %s354_s16, [#allocation4], %s6650_s29, %s6650_s29, %s5877_s18  }
  0x36   : > { %s4978_s15 = smul.u32 1152, %s6027_s19  ;;  %s6643_s30 = sshll.u32 %s5873_s24, 6 }
  0x37   : > { %s6673_s5 = sld [smem:[#allocation32_spill]]  ;;  %s6073_s22 = sshll.u32 %s5873_s24, 4 }
  0x38   : > { %s415_s0 = scalar_lea.vmem [#allocation10], %s4978_s15  ;;  %s6674_s27 = sand.u32 1, %s5873_s24  }
  0x39   : > { %s421_s13 = sshll.u32 %s415_s0, 4  ;;  %s6077_s16 = scalar_lea.sflag [#allocation4], %s6674_s27  ;;  %s6070_s13 = int_to_ptr.vmem [resolvable:$true] %s421_s13 }
  0x3a   : > { %p6675_p8 = scmp.ne.s32.totalorder %s6670_s20, 0 }
  0x3c   : > { %p6083_p9 = pneg %p6675_p8 }
  0x3d   : > { %s6068_s12 = scalar_lea.hbm %s6673_s5, %s6643_s30  ;;  %s5532_s15 = scalar_lea.hbm %s6673_s5, 36864 }
  0x3e   : > { %s5527_s18 = scalar_lea.hbm %s6068_s12, 18432  ;;  %p5533_p2 = scmp.lt.u32.totalorder %s6068_s12, %s6673_s5 }
  0x3f   : > { %p5528_p5 = scmp.ne.s32.totalorder %s6068_s12, %s5527_s18  ;;  %p5534_p3 = scmp.lt.u32.totalorder %s5532_s15, %s5527_s18 }
  0x40   : > { %s6676_s23 = scalar_select %p6083_p9, 1, 0 }
  0x41   : > { %p5530_p13 = pnand %p6083_p9, %p5528_p5  ;;  %p5535_p4 = por %p5534_p3, %p5533_p2 }
  0x42   : > { %p5536_p6 = scmp.lt.u32.totalorder %s5527_s18, %s6068_s12 }
  0x43   : > { %p5531_p0 = pneg %p5530_p13 }
  0x44   : > { %p5537_p7 = por %p5536_p6, %p5535_p4 }
  0x46   : > { %p5538_p10 = pnand %p5537_p7, %p5531_p0 }
  0x48   : > { %5541 = shalt.err (!%p5538_p10)
}
  0x49   : > { %s5542_s27 = scalar_lea.vmem %s6070_s13, 18432  ;;  %s5878_s28 = smov [#allocation10]  }
  0x4a   : > { %p5543_p12 = scmp.ne.s32.totalorder %s6070_s13, %s5542_s27  ;;  %s5547_s0 = sshll.u32 %s5878_s28, 4  ;;  %s5548_s0 = int_to_ptr.vmem [resolvable:$false] %s5547_s0 }
  0x4b   : > { %s5549_s30 = scalar_lea.vmem %s5548_s0, 36864  ;;  %p5550_p11 = scmp.lt.s32.totalorder %s6070_s13, %s5548_s0 }
  0x4c   : > { %p5545_p5 = pnand %p5543_p12, %p6083_p9  ;;  %p5551_p1 = scmp.lt.s32.totalorder %s5549_s30, %s5542_s27 }
  0x4e   : > { %p5546_p13 = pneg %p5545_p5  ;;  %p5552_p2 = por %p5551_p1, %p5550_p11 }
  0x50   : > { %p5553_p3 = pnand %p5552_p2, %p5546_p13 }
  0x52   : > { %5556 = shalt.err (!%p5553_p3)
}
  0x53   : > { %s6652_s18 = smov 64   ;;  %s5880_s15 = smov 4  }
  0x54   : > { %5031 = dma.hbm_to_vmem [thread:$0]  (!%p6675_p8), %s6068_s12, 18432, %s6070_s13, %s6077_s16, %s6650_s29, %s6652_s18, %s5880_s15  }
  0x55   : > { %s6114_s27 = scalar_lea.hbm %s6625_s6, %s6073_s22  ;;  %s434_s0 = scalar_lea.vmem [#allocation11], %s6027_s19 }
  0x56   : > { %s441_s30 = sshll.u32 %s434_s0, 4  ;;  %s5557_s1 = scalar_lea.hbm %s6114_s27, 16  ;;  %s442_s30 = int_to_ptr.vmem [resolvable:$true] %s441_s30 }
  0x57   : > { %p5558_p11 = scmp.ne.s32.totalorder %s6114_s27, %s5557_s1  ;;  %s5562_s12 = scalar_lea.hbm %s6625_s6, 32 }
  0x58   : > { %p5563_p4 = scmp.lt.u32.totalorder %s6114_s27, %s6625_s6  ;;  %p5564_p6 = scmp.lt.u32.totalorder %s5562_s12, %s5557_s1 }
  0x59   : > { %p5560_p1 = pnand %p5558_p11, %p6083_p9  ;;  %p5566_p10 = scmp.lt.u32.totalorder %s5557_s1, %s6114_s27 }
  0x5a   : > { %p5565_p7 = por %p5564_p6, %p5563_p4 }
  0x5b   : > { %p5561_p0 = pneg %p5560_p1 }
  0x5c   : > { %p5567_p12 = por %p5566_p10, %p5565_p7 }
  0x5e   : > { %p5568_p5 = pnand %p5567_p12, %p5561_p0 }
  0x60   : > { %5571 = shalt.err (!%p5568_p5)
}
  0x61   : > { %s5572_s28 = scalar_lea.vmem %s442_s30, 16  ;;  %s5881_s0 = smov [#allocation11]  }
  0x62   : > { %p5573_p13 = scmp.ne.s32.totalorder %s442_s30, %s5572_s28  ;;  %s5577_s29 = sshll.u32 %s5881_s0, 4  ;;  %s5578_s29 = int_to_ptr.vmem [resolvable:$false] %s5577_s29 }
  0x63   : > { %s5579_s5 = scalar_lea.vmem %s5578_s29, 32  ;;  %p5580_p11 = scmp.lt.s32.totalorder %s442_s30, %s5578_s29 }
  0x64   : > { %p5575_p2 = pnand %p5573_p13, %p6083_p9  ;;  %p5581_p1 = scmp.lt.s32.totalorder %s5579_s5, %s5572_s28 }
  0x66   : > { %p5576_p3 = pneg %p5575_p2  ;;  %p5582_p8 = por %p5581_p1, %p5580_p11 }
  0x68   : > { %p5583_p4 = pnand %p5582_p8, %p5576_p3 }
  0x6a   : > { %5586 = shalt.err (!%p5583_p4)
}
  0x6b   : > { %p6677_p6 = scmp.ne.s32.totalorder %s6670_s20, 0  ;;  %s6139_s12 = scalar_lea.hbm %s6626_s7, %s6073_s22 }
  0x6c   : > { %s451_s29 = scalar_lea.vmem [#allocation12], %s6027_s19  ;;  %s5587_s21 = scalar_lea.hbm %s6139_s12, 16 }
  0x6d   : > { %5034 = dma.hbm_to_vmem [thread:$0]  (!%p6677_p6), %s6114_s27, 16, %s442_s30, %s6077_s16  }
  0x6e   : > { %s458_s13 = sshll.u32 %s451_s29, 4  ;;  %p5588_p8 = scmp.ne.s32.totalorder %s6139_s12, %s5587_s21  ;;  %s459_s13 = int_to_ptr.vmem [resolvable:$true] %s458_s13 }
  0x6f   : > { %s5592_s27 = scalar_lea.hbm %s6626_s7, 32  ;;  %p5593_p10 = scmp.lt.u32.totalorder %s6139_s12, %s6626_s7 }
  0x70   : > { %p5590_p0 = pnand %p5588_p8, %p6083_p9  ;;  %p5594_p12 = scmp.lt.u32.totalorder %s5592_s27, %s5587_s21 }
  0x71   : > { %p5596_p13 = scmp.lt.u32.totalorder %s5587_s21, %s6139_s12 }
  0x72   : > { %p5591_p7 = pneg %p5590_p0  ;;  %p5595_p5 = por %p5594_p12, %p5593_p10 }
  0x74   : > { %p5597_p2 = por %p5596_p13, %p5595_p5 }
  0x76   : > { %p5598_p3 = pnand %p5597_p2, %p5591_p7 }
  0x78   : > { %5601 = shalt.err (!%p5598_p3)
}
  0x79   : > { %s5602_s1 = scalar_lea.vmem %s459_s13, 16  ;;  %s5882_s25 = smov [#allocation12]  }
  0x7a   : > { %p5603_p11 = scmp.ne.s32.totalorder %s459_s13, %s5602_s1  ;;  %s5607_s29 = sshll.u32 %s5882_s25, 4  ;;  %s5608_s29 = int_to_ptr.vmem [resolvable:$false] %s5607_s29 }
  0x7b   : > { %s5609_s28 = scalar_lea.vmem %s5608_s29, 32  ;;  %p5610_p8 = scmp.lt.s32.totalorder %s459_s13, %s5608_s29 }
  0x7c   : > { %p5605_p1 = pnand %p5603_p11, %p6083_p9  ;;  %p5611_p0 = scmp.lt.s32.totalorder %s5609_s28, %s5602_s1 }
  0x7e   : > { %p5606_p4 = pneg %p5605_p1  ;;  %p5612_p6 = por %p5611_p0, %p5610_p8 }
  0x80   : > { %p5613_p10 = pnand %p5612_p6, %p5606_p4 }
  0x82   : > { %5616 = shalt.err (!%p5613_p10)
}
  0x83   : > { %p6678_p12 = scmp.ne.s32.totalorder %s6670_s20, 0  ;;  %s5883_s21 = smov [#allocation5]  }
  0x84   : > { %s367_s0 = sshll.u32 %s5883_s21, 4  ;;  %s4149_s27 = sshll.u32 %s6027_s19, 6  ;;  %s368_s0 = int_to_ptr.vmem [resolvable:$true] %s367_s0 }
  0x85   : > { %5037 = dma.hbm_to_vmem [thread:$0]  (!%p6678_p12), %s6139_s12, 16, %s459_s13, %s6077_s16  }
  0x86   : > { %s6679_s2 = sld [smem:[#allocation31_spill]]  ;;  %p6680_p7 = scmp.ne.s32.totalorder %s6672_s26, 0 }
  0x8c   : > { %s5617_s25 = scalar_lea.hbm %s6679_s2, 32 }
  0x8d   : > { %p5618_p6 = scmp.ne.s32.totalorder %s6679_s2, %s5617_s25  ;;  %p5624_p2 = scmp.lt.u32.totalorder %s5617_s25, %s6679_s2 }
  0x8f   : > { %p5620_p5 = pnand %p5618_p6, %p6680_p7 }
  0x91   : > { %p5621_p13 = pneg %p5620_p5 }
  0x93   : > { %p5626_p3 = pnand %p5624_p2, %p5621_p13 }
  0x95   : > { %5629 = shalt.err (!%p5626_p3)
}
  0x96   : > { %s5630_s12 = scalar_lea.vmem %s368_s0, 32  ;;  %p5638_p8 = scmp.lt.s32.totalorder %s368_s0, %s368_s0 }
  0x97   : > { %p5631_p11 = scmp.ne.s32.totalorder %s368_s0, %s5630_s12  ;;  %p5639_p0 = scmp.lt.s32.totalorder %s5630_s12, %s5630_s12 }
  0x99   : > { %p5633_p1 = pnand %p5631_p11, %p6680_p7  ;;  %p5640_p10 = por %p5639_p0, %p5638_p8 }
  0x9b   : > { %p5634_p4 = pneg %p5633_p1 }
  0x9d   : > { %p5641_p12 = pnand %p5640_p10, %p5634_p4 }
  0x9f   : > { %5644 = shalt.err (!%p5641_p12)
}
  0xa0   : > { %p6681_p6 = scmp.ne.s32.totalorder %s6669_s17, 0  ;;  %s6682_s18 = sshll.u32 %s5873_s24, 6 }
  0xa1   : > { %s6184_s25 = scalar_lea.hbm %s6628_s9, %s6682_s18  ;;  %s469_s29 = scalar_lea.vmem [#allocation14], %s4149_s27 }
  0xa2   : > { %5018 = dma.hbm_to_vmem [thread:$0]  (!%p6681_p6), %s6679_s2, 32, %s368_s0, [#allocation6]  }
  0xa3   : > { %s475_s1 = sshll.u32 %s469_s29, 4  ;;  %s5645_s28 = scalar_lea.hbm %s6184_s25, 1024  ;;  %s6186_s1 = int_to_ptr.vmem [resolvable:$true] %s475_s1 }
  0xa4   : > { %p5646_p12 = scmp.ne.s32.totalorder %s6184_s25, %s5645_s28  ;;  %s5650_s12 = scalar_lea.hbm %s6628_s9, 2048 }
  0xa5   : > { %p5651_p2 = scmp.lt.u32.totalorder %s6184_s25, %s6628_s9  ;;  %p5652_p3 = scmp.lt.u32.totalorder %s5650_s12, %s5645_s28 }
  0xa6   : > { %p5648_p5 = pnand %p5646_p12, %p6083_p9  ;;  %p5654_p1 = scmp.lt.u32.totalorder %s5645_s28, %s6184_s25 }
  0xa7   : > { %p5653_p11 = por %p5652_p3, %p5651_p2 }
  0xa8   : > { %p5649_p13 = pneg %p5648_p5 }
  0xa9   : > { %p5655_p4 = por %p5654_p1, %p5653_p11 }
  0xab   : > { %p5656_p8 = pnand %p5655_p4, %p5649_p13 }
  0xad   : > { %5659 = shalt.err (!%p5656_p8)
}
  0xae   : > { %s5660_s27 = scalar_lea.vmem %s6186_s1, 1024  ;;  %s5884_s18 = smov [#allocation14]  }
  0xaf   : > { %p5661_p0 = scmp.ne.s32.totalorder %s6186_s1, %s5660_s27  ;;  %s5665_s30 = sshll.u32 %s5884_s18, 4  ;;  %s5666_s30 = int_to_ptr.vmem [resolvable:$false] %s5665_s30 }
  0xb0   : > { %s5667_s5 = scalar_lea.vmem %s5666_s30, 2048  ;;  %p5668_p5 = scmp.lt.s32.totalorder %s6186_s1, %s5666_s30 }
  0xb1   : > { %p5663_p10 = pnand %p5661_p0, %p6083_p9  ;;  %p5669_p6 = scmp.lt.s32.totalorder %s5667_s5, %s5660_s27 }
  0xb3   : > { %p5664_p12 = pneg %p5663_p10  ;;  %p5670_p2 = por %p5669_p6, %p5668_p5 }
  0xb5   : > { %p5671_p3 = pnand %p5670_p2, %p5664_p12 }
  0xb7   : > { %5674 = shalt.err (!%p5671_p3)
}
  0xb8   : > { %p6683_p13 = scmp.ne.s32.totalorder %s6670_s20, 0  ;;  %s6684_s29 = smov 64  }
  0xb9   : > { %s6685_s28 = smov 128   ;;  %s5885_s0 = smov [#allocation7]  }
  0xba   : > { %5040 = dma.hbm_to_vmem [thread:$0]  (!%p6683_p13), %s6184_s25, 1024, %s6186_s1, %s6077_s16, %s6685_s28, %s6684_s29, %s5880_s15  }
  0xbb   : > { %s378_s24 = sshll.u32 %s5885_s0, 4  ;;  %s6217_s21 = scalar_lea.hbm %s6629_s10, %s6073_s22  ;;  %s379_s24 = int_to_ptr.vmem [resolvable:$true] %s378_s24 }
  0xbc   : > { %s5675_s30 = scalar_lea.hbm %s6622_s3, 32 }
  0xbd   : > { %p5676_p6 = scmp.ne.s32.totalorder %s6622_s3, %s5675_s30  ;;  %p5682_p4 = scmp.lt.u32.totalorder %s5675_s30, %s6622_s3 }
  0xbf   : > { %p5678_p11 = pnand %p5676_p6, %p6680_p7 }
  0xc1   : > { %p5679_p1 = pneg %p5678_p11 }
  0xc3   : > { %p5684_p8 = pnand %p5682_p4, %p5679_p1 }
  0xc5   : > { %5687 = shalt.err (!%p5684_p8)
}
  0xc6   : > { %s5688_s1 = scalar_lea.vmem %s379_s24, 32  ;;  %p5696_p5 = scmp.lt.s32.totalorder %s379_s24, %s379_s24 }
  0xc7   : > { %p5689_p0 = scmp.ne.s32.totalorder %s379_s24, %s5688_s1  ;;  %p5697_p2 = scmp.lt.s32.totalorder %s5688_s1, %s5688_s1 }
  0xc9   : > { %p5691_p10 = pnand %p5689_p0, %p6680_p7  ;;  %p5698_p3 = por %p5697_p2, %p5696_p5 }
  0xcb   : > { %p5692_p12 = pneg %p5691_p10 }
  0xcd   : > { %p5699_p13 = pnand %p5698_p3, %p5692_p12 }
  0xcf   : > { %5702 = shalt.err (!%p5699_p13)
}
  0xd0   : > { %p6686_p6 = scmp.ne.s32.totalorder %s6669_s17, 0  ;;  %s488_s28 = scalar_lea.vmem [#allocation15], %s6027_s19 }
  0xd1   : > { %s495_s0 = sshll.u32 %s488_s28, 4  ;;  %s5886_s12 = smov [#allocation8]   ;;  %s6238_s0 = int_to_ptr.vmem [resolvable:$true] %s495_s0 }
  0xd2   : > { %5021 = dma.hbm_to_vmem [thread:$0]  (!%p6686_p6), %s6622_s3, 32, %s379_s24, [#allocation6]  }
  0xd3   : > { %s389_s13 = sshll.u32 %s5886_s12, 4  ;;  %s5703_s27 = scalar_lea.hbm %s6217_s21, 16  ;;  %s390_s13 = int_to_ptr.vmem [resolvable:$true] %s389_s13 }
  0xd4   : > { %p5704_p13 = scmp.ne.s32.totalorder %s6217_s21, %s5703_s27  ;;  %s5708_s5 = scalar_lea.hbm %s6629_s10, 32 }
  0xd5   : > { %p5709_p4 = scmp.lt.u32.totalorder %s6217_s21, %s6629_s10  ;;  %p5710_p8 = scmp.lt.u32.totalorder %s5708_s5, %s5703_s27 }
  0xd6   : > { %p5706_p11 = pnand %p5704_p13, %p6083_p9  ;;  %p5712_p10 = scmp.lt.u32.totalorder %s5703_s27, %s6217_s21 }
  0xd7   : > { %p5711_p0 = por %p5710_p8, %p5709_p4 }
  0xd8   : > { %p5707_p1 = pneg %p5706_p11 }
  0xd9   : > { %p5713_p12 = por %p5712_p10, %p5711_p0 }
  0xdb   : > { %p5714_p5 = pnand %p5713_p12, %p5707_p1 }
  0xdd   : > { %5717 = shalt.err (!%p5714_p5)
}
  0xde   : > { %s5718_s24 = scalar_lea.vmem %s6238_s0, 16  ;;  %s5887_s1 = smov [#allocation15]  }
  0xdf   : > { %p5719_p2 = scmp.ne.s32.totalorder %s6238_s0, %s5718_s24  ;;  %s5723_s2 = sshll.u32 %s5887_s1, 4  ;;  %s5724_s2 = int_to_ptr.vmem [resolvable:$false] %s5723_s2 }
  0xe0   : > { %s5725_s29 = scalar_lea.vmem %s5724_s2, 32  ;;  %p5726_p11 = scmp.lt.s32.totalorder %s6238_s0, %s5724_s2 }
  0xe1   : > { %p5721_p3 = pnand %p5719_p2, %p6083_p9  ;;  %p5727_p6 = scmp.lt.s32.totalorder %s5725_s29, %s5718_s24 }
  0xe3   : > { %p5722_p13 = pneg %p5721_p3  ;;  %p5728_p4 = por %p5727_p6, %p5726_p11 }
  0xe5   : > { %p5729_p8 = pnand %p5728_p4, %p5722_p13 }
  0xe7   : > { %5732 = shalt.err (!%p5729_p8)
}
  0xe8   : > { %p6687_p1 = scmp.ne.s32.totalorder %s6670_s20, 0  ;;  %s5733_s27 = scalar_lea.hbm %s6623_s4, 128 }
  0xe9   : > { %p5734_p0 = scmp.ne.s32.totalorder %s6623_s4, %s5733_s27  ;;  %p5740_p12 = scmp.lt.u32.totalorder %s5733_s27, %s6623_s4 }
  0xea   : > { %5043 = dma.hbm_to_vmem [thread:$0]  (!%p6687_p1), %s6217_s21, 16, %s6238_s0, %s6077_s16  }
  0xeb   : > { %p5736_p6 = pnand %p5734_p0, %p6680_p7 }
  0xed   : > { %p5737_p10 = pneg %p5736_p6 }
  0xef   : > { %p5742_p5 = pnand %p5740_p12, %p5737_p10 }
  0xf1   : > { %5745 = shalt.err (!%p5742_p5)
}
  0xf2   : > { %s5746_s25 = scalar_lea.vmem %s390_s13, 128  ;;  %p5754_p11 = scmp.lt.s32.totalorder %s390_s13, %s390_s13 }
  0xf3   : > { %p5747_p2 = scmp.ne.s32.totalorder %s390_s13, %s5746_s25  ;;  %p5755_p4 = scmp.lt.s32.totalorder %s5746_s25, %s5746_s25 }
  0xf5   : > { %p5749_p3 = pnand %p5747_p2, %p6680_p7  ;;  %p5756_p8 = por %p5755_p4, %p5754_p11 }
  0xf7   : > { %p5750_p13 = pneg %p5749_p3 }
  0xf9   : > { %p5757_p1 = pnand %p5756_p8, %p5750_p13 }
  0xfb   : > { %5760 = shalt.err (!%p5757_p1)
}
  0xfc   : > { %p6688_p0 = scmp.ne.s32.totalorder %s6669_s17, 0  ;;  %s5888_s24 = smov [#allocation13]  }
  0xfd   : > { %s400_s1 = sshll.u32 %s5888_s24, 4  ;;  %s6284_s28 = scalar_lea.hbm %s6630_s11, %s6073_s22  ;;  %s401_s1 = int_to_ptr.vmem [resolvable:$true] %s400_s1 }
  0xfe   : > { %5024 = dma.hbm_to_vmem [thread:$0]  (!%p6688_p0), %s6623_s4, 128, %s390_s13, [#allocation9]  }
  0xff   : > { %s5761_s18 = scalar_lea.hbm %s6627_s8, 128 }
 0x100   : > { %p5762_p1 = scmp.ne.s32.totalorder %s6627_s8, %s5761_s18  ;;  %p5768_p12 = scmp.lt.u32.totalorder %s5761_s18, %s6627_s8 }
 0x102   : > { %p5764_p6 = pnand %p5762_p1, %p6680_p7 }
 0x104   : > { %p5765_p10 = pneg %p5764_p6 }
 0x106   : > { %p5770_p5 = pnand %p5768_p12, %p5765_p10 }
 0x108   : > { %5773 = shalt.err (!%p5770_p5)
}
 0x109   : > { %s5774_s25 = scalar_lea.vmem %s401_s1, 128  ;;  %p5782_p11 = scmp.lt.s32.totalorder %s401_s1, %s401_s1 }
 0x10a   : > { %p5775_p2 = scmp.ne.s32.totalorder %s401_s1, %s5774_s25  ;;  %p5783_p4 = scmp.lt.s32.totalorder %s5774_s25, %s5774_s25 }
 0x10c   : > { %p5777_p3 = pnand %p5775_p2, %p6680_p7  ;;  %p5784_p8 = por %p5783_p4, %p5782_p11 }
 0x10e   : > { %p5778_p13 = pneg %p5777_p3 }
 0x110   : > { %p5785_p9 = pnand %p5784_p8, %p5778_p13 }
 0x112   : > { %5788 = shalt.err (!%p5785_p9)
}
 0x113   : > { %5027 = dma.hbm_to_vmem [thread:$0]  (!%p6688_p0), %s6627_s8, 128, %s401_s1, [#allocation6]  }
 0x114   : > { %s505_s26 = scalar_lea.vmem [#allocation16], %s6027_s19  ;;  %s5789_s24 = scalar_lea.hbm %s6284_s28, 16 }
 0x115   : > { %s512_s0 = sshll.u32 %s505_s26, 4  ;;  %p5790_p7 = scmp.ne.s32.totalorder %s6284_s28, %s5789_s24  ;;  %s513_s0 = int_to_ptr.vmem [resolvable:$true] %s512_s0 }
 0x116   : > { %p6689_p1 = scmp.ne.s32.totalorder %s6676_s23, 0  ;;  %s5794_s29 = scalar_lea.hbm %s6630_s11, 32 }
 0x117   : > { %p5795_p10 = scmp.lt.u32.totalorder %s6284_s28, %s6630_s11  ;;  %p5796_p12 = scmp.lt.u32.totalorder %s5794_s29, %s5789_s24 }
 0x118   : > { %p5792_p6 = pnand %p5790_p7, %p6689_p1  ;;  %p5798_p2 = scmp.lt.u32.totalorder %s5789_s24, %s6284_s28 }
 0x119   : > { %p5797_p5 = por %p5796_p12, %p5795_p10 }
 0x11a   : > { %p5793_p9 = pneg %p5792_p6 }
 0x11b   : > { %p5799_p0 = por %p5798_p2, %p5797_p5 }
 0x11d   : > { %p5800_p3 = pnand %p5799_p0, %p5793_p9 }
 0x11f   : > { %5803 = shalt.err (!%p5800_p3)
}
 0x120   : > { %s5804_s19 = scalar_lea.vmem %s513_s0, 16  ;;  %s5889_s1 = smov [#allocation16]  }
 0x121   : > { %p5805_p13 = scmp.ne.s32.totalorder %s513_s0, %s5804_s19  ;;  %s5809_s18 = sshll.u32 %s5889_s1, 4  ;;  %s5810_s18 = int_to_ptr.vmem [resolvable:$false] %s5809_s18 }
 0x122   : > { %s5811_s30 = scalar_lea.vmem %s5810_s18, 32  ;;  %p5812_p8 = scmp.lt.s32.totalorder %s513_s0, %s5810_s18 }
 0x123   : > { %p5807_p11 = pnand %p5805_p13, %p6689_p1  ;;  %p5813_p7 = scmp.lt.s32.totalorder %s5811_s30, %s5804_s19 }
 0x125   : > { %p5808_p4 = pneg %p5807_p11  ;;  %p5814_p6 = por %p5813_p7, %p5812_p8 }
 0x127   : > { %p5815_p10 = pnand %p5814_p6, %p5808_p4 }
 0x129   : > { %5818 = shalt.err (!%p5815_p10)
}
 0x12a   : > { %p6690_p12 = scmp.ne.s32.totalorder %s6670_s20, 0  ;;  %p6691_p9 = scmp.ne.s32.totalorder %s6668_s14, 0 }
 0x12b   : > { %s6692_s23 = sld [smem:[#allocation25_spill]] (!%p6691_p9) }
 0x12c   : > { %5046 = dma.hbm_to_vmem [thread:$0]  (!%p6690_p12), %s6284_s28, 16, %s513_s0, %s6077_s16  }
 0x12d   : > { %521 = sbr.rel (%p6691_p9) target bundleno = 1512 (0x5e8), region = 68 }
 0x131   : > { %p6693_p1 = scmp.eq.s32.totalorder (!%p6691_p9), %s6692_s23, 0 }
 0x134   : > { %5836 = dma.done.wait (%p6693_p1), [#allocation4], 18432   ;;  %p6694_p5 = pmov %p6693_p1 }
 0x135   : > { %p6695_p2 = pmov %p6693_p1 }
 0x136   : > { %5838 = vsyncadd (%p6694_p5), [#allocation4], 4294948864 }
 0x137   : > { %5840 = dma.done.wait (%p6695_p2), [#allocation6], 64   ;;  %p6696_p0 = pmov %p6693_p1 }
 0x139   : > { %5842 = vsyncadd (%p6696_p0), [#allocation6], 4294967232  ;;  %p6697_p3 = pmov %p6696_p0 }
 0x13a   : > { %p6698_p13 = pmov %p6696_p0 }
 0x13b   : > { %5844 = dma.done.wait (%p6697_p3), [#allocation9], 128  }
 0x13c   : > { %5846 = vsyncadd (%p6698_p13), [#allocation9], 4294967168  ;;  %s6699_s14 = sld [smem:[#allocation23_spill]]  ;;  %s6700_s20 = sld [smem:[#allocation28_spill]] }
 0x13d   : > { %s539_s16 = sand.u32 1, %s6692_s23  }
 0x13e   : > { %s540_s13 = scalar_lea.sflag [#allocation4], %s539_s16 }
 0x142   : > { %s6339_s28 = sand.u32 1, %s6699_s14   ;;  %p6701_p11 = scmp.ne.s32.totalorder %s6700_s20, 0 }
 0x143   : > { %s4979_s5 = smul.u32 1152, %s6339_s28 }
 0x145   : > { %s6342_s15 = scalar_lea.vmem [#allocation10], %s4979_s5 }
 0x146   : > { %5848 = dma.done.wait (%p6701_p11), %s540_s13, 18464  }
 0x147   : > { %5850 = vsyncadd (%p6701_p11), %s540_s13, 4294948832  ;;  %s551_s25 = scalar_lea.vmem [#allocation11], %s6339_s28  ;;  %s559_s22 = scalar_lea.vmem [#allocation12], %s6339_s28 }
 0x148   : > { %p6702_p4 = pmov %p6696_p0 }
 0x149   : > { %p6703_p8 = pmov %p6696_p0 }
 0x14a   : > { %5852 = dma.done.wait (%p6702_p4), [#allocation6], 128  }
 0x14b   : > { %5854 = vsyncadd (%p6703_p8), [#allocation6], 4294967168  ;;  %s4159_s21 = sshll.u32 %s6339_s28, 6 }
 0x14c   : > { %s6355_s26 = scalar_lea.vmem [#allocation14], %s4159_s21 }
 0x14d   : > { %5856 = dma.done.wait (%p6701_p11), %s540_s13, 1056  }
 0x14e   : > { %5858 = vsyncadd (%p6701_p11), %s540_s13, 4294966240  ;;  %v5890_v0 = vmov 1   ;;  %v5891_v1 = vmov 2   ;;  %v5892_v2 = vmov 0   ;;  %v655_v3 = vld [vmem:[#allocation8] sm:$0xff]  ;;  %v5893_v8 = vmov 3  }
 0x14f   : > { %5109 = vset.pattern.permute.xlu0 %v5890_v0  ;;  %5111 = vset.pattern.permute.xlu1 %v5891_v1  ;;  %v5123_v4 = vld [vmem:[#allocation3 + $0x84] ss:$8 sps:$4 sm:$0xff]   ;;  %v5125_v5 = vld [vmem:[#allocation3 + $0x80] ss:$8 sps:$4 sm:$0xff]   ;;  %v5126_v6 = vld [vmem:[#allocation3 + $0x94] ss:$8 sps:$4 sm:$0xff]  }
 0x150   : > { %815 = vmatprep.mubr.bf16.mxu0 %v5892_v2  ;;  %681 = vperm.xlu0 %5109, %v655_v3   ;;  %v5128_v7 = vld [vmem:[#allocation3 + $0x90] ss:$8 sps:$4 sm:$0xff]   ;;  %v5129_v9 = vld [vmem:[#allocation3 + $0xa4] ss:$8 sps:$4 sm:$0xff]   ;;  %v5131_v10 = vld [vmem:[#allocation3 + $0xa0] ss:$8 sps:$4 sm:$0xff]  }
 0x151   : > { %947 = vperm.xlu1 %5111, %v655_v3   ;;  %783 = vmatprep.subr.bf16.mxu0 %v5123_v4  ;;  %v5132_v11 = vld [vmem:[#allocation3 + $0xb4] ss:$8 sps:$4 sm:$0xff]   ;;  %v5134_v12 = vld [vmem:[#allocation3 + $0xb0] ss:$8 sps:$4 sm:$0xff]   ;;  %v5135_v13 = vld [vmem:[#allocation3 + $0xc4] ss:$8 sps:$4 sm:$0xff]  }
 0x152   : > { %784 = vmatpush1.bf16.msra.mxu0 %v5125_v5  ;;  %v5137_v14 = vld [vmem:[#allocation3 + $0xc0] ss:$8 sps:$4 sm:$0xff]   ;;  %v5138_v15 = vld [vmem:[#allocation3 + $0xd4] ss:$8 sps:$4 sm:$0xff]   ;;  %v5140_v16 = vld [vmem:[#allocation3 + $0xd0] ss:$8 sps:$4 sm:$0xff]  }
 0x153   : > { %785 = vmatprep.subr.bf16.mxu0 %v5126_v6  ;;  %v5141_v17 = vld [vmem:[#allocation3 + $0xe4] ss:$8 sps:$4 sm:$0xff]   ;;  %v5143_v18 = vld [vmem:[#allocation3 + $0xe0] ss:$8 sps:$4 sm:$0xff]   ;;  %v5144_v19 = vld [vmem:[#allocation3 + $0xf4] ss:$8 sps:$4 sm:$0xff]  }
 0x154   : > { %5110 = vset.pattern.permute.xlu0 %v5892_v2  ;;  %v5146_v20 = vld [vmem:[#allocation3 + $0xf0] ss:$8 sps:$4 sm:$0xff]   ;;  %v5149_v21 = vld [vmem:[#allocation3 + $0x4] ss:$8 sps:$4 sm:$0xff]   ;;  %v5894_v22 = vmov 4   ;;  %s6704_s2 = sld [smem:[#allocation29_spill]] }
 0x155   : > { %5112 = vset.pattern.permute.xlu1 %v5893_v8  ;;  %658 = vperm.xlu0 %5110, %v655_v3   ;;  %v5147_v26 = vld [vmem:[#allocation3] ss:$8 sps:$4 sm:$0xff]   ;;  %v5152_v28 = vld [vmem:[#allocation3 + $0x14] ss:$8 sps:$4 sm:$0xff]   ;;  %v5150_v29 = vld [vmem:[#allocation3 + $0x10] ss:$8 sps:$4 sm:$0xff]  }
 0x156   : > { %1094 = vperm.xlu1 %5112, %v655_v3   ;;  %786 = vmatpush1.bf16.msra.mxu0 %v5128_v7  ;;  %v5155_v30 = vld [vmem:[#allocation3 + $0x24] ss:$8 sps:$4 sm:$0xff]   ;;  %v5153_v31 = vld [vmem:[#allocation3 + $0x20] ss:$8 sps:$4 sm:$0xff]   ;;  %v5158_v32 = vld [vmem:[#allocation3 + $0x34] ss:$8 sps:$4 sm:$0xff]  }
 0x157   : > { %787 = vmatprep.subr.bf16.mxu0 %v5129_v9  ;;  %v5156_v33 = vld [vmem:[#allocation3 + $0x30] ss:$8 sps:$4 sm:$0xff]   ;;  %v5161_v34 = vld [vmem:[#allocation3 + $0x44] ss:$8 sps:$4 sm:$0xff]   ;;  %v5159_v35 = vld [vmem:[#allocation3 + $0x40] ss:$8 sps:$4 sm:$0xff]  }
 0x158   : > { %v5164_v36 = vld [vmem:[#allocation3 + $0x54] ss:$8 sps:$4 sm:$0xff]   ;;  %v5162_v37 = vld [vmem:[#allocation3 + $0x50] ss:$8 sps:$4 sm:$0xff]   ;;  %v5167_v38 = vld [vmem:[#allocation3 + $0x64] ss:$8 sps:$4 sm:$0xff]  }
 0x159   : > { %5114 = vset.pattern.permute.xlu0 %v5890_v0  ;;  %v5165_v39 = vld [vmem:[#allocation3 + $0x60] ss:$8 sps:$4 sm:$0xff]   ;;  %v5170_v40 = vld [vmem:[#allocation3 + $0x74] ss:$8 sps:$4 sm:$0xff]   ;;  %v5168_v44 = vld [vmem:[#allocation3 + $0x70] ss:$8 sps:$4 sm:$0xff]  }
 0x15a   : > { %788 = vmatpush1.bf16.msra.mxu0 %v5131_v10  ;;  %5113 = vset.pattern.permute.xlu1 %v5894_v22  ;;  %v679_v23 = vld [vmem:[%s6704_s2 + $0x11] sm:$0xff]  ;;  %v5173_v45 = vld [vmem:[#allocation3 + $0x104] ss:$8 sps:$4 sm:$0xff]   ;;  %v5171_v47 = vld [vmem:[#allocation3 + $0x100] ss:$8 sps:$4 sm:$0xff]   ;;  %vm5899_vm0 = vmmov 0  }
 0x15b   : > { %789 = vmatprep.subr.bf16.mxu0 %v5132_v11  ;;  %1525 = vperm.xlu1 %5113, %v655_v3   ;;  %v654_v42 = vld [vmem:[%s6704_s2 + $0x18] sm:$0xff]  ;;  %v5179_v50 = vld [vmem:[#allocation3 + $0x124] ss:$8 sps:$4 sm:$0xff]   ;;  %v5177_v51 = vld [vmem:[#allocation3 + $0x120] ss:$8 sps:$4 sm:$0xff]   ;;  %p649_p7 = scmp.lt.s32.totalorder %s6692_s23, 1 }
 0x15c   : > { %v5176_v48 = vld [vmem:[#allocation3 + $0x114] ss:$8 sps:$4 sm:$0xff]   ;;  %v5174_v49 = vld [vmem:[#allocation3 + $0x110] ss:$8 sps:$4 sm:$0xff]   ;;  %v5185_v54 = vld [vmem:[#allocation3 + $0x144] ss:$8 sps:$4 sm:$0xff]  }
 0x15d   : > { %v5182_v52 = vld [vmem:[#allocation3 + $0x134] ss:$8 sps:$4 sm:$0xff]   ;;  %v5180_v53 = vld [vmem:[#allocation3 + $0x130] ss:$8 sps:$4 sm:$0xff]   ;;  %v5183_v55 = vld [vmem:[#allocation3 + $0x140] ss:$8 sps:$4 sm:$0xff]  }
 0x15e   : > { %790 = vmatpush1.bf16.msra.mxu0 %v5134_v12  ;;  %v5188_v56 = vld [vmem:[#allocation3 + $0x154] ss:$8 sps:$4 sm:$0xff]   ;;  %v5186_v57 = vld [vmem:[#allocation3 + $0x150] ss:$8 sps:$4 sm:$0xff]   ;;  %v5191_v58 = vld [vmem:[#allocation3 + $0x164] ss:$8 sps:$4 sm:$0xff]  }
 0x15f   : > { %791 = vmatprep.subr.bf16.mxu0 %v5135_v13  ;;  %5115 = vset.pattern.permute.xlu1 %v5892_v2  ;;  %v5189_v59 = vld [vmem:[#allocation3 + $0x160] ss:$8 sps:$4 sm:$0xff]   ;;  %v5194_v62 = vld [vmem:[#allocation3 + $0x174] ss:$8 sps:$4 sm:$0xff]   ;;  %v5192_v0 = vld [vmem:[#allocation3 + $0x170] ss:$8 sps:$4 sm:$0xff]  }
 0x160   : > { %v945_v60 = vld [vmem:[%s6704_s2 + $0x19] sm:$0xff]  ;;  %v5197_v3 = vld [vmem:[#allocation3 + $0x184] ss:$8 sps:$4 sm:$0xff]   ;;  %s588_s24 = scalar_lea.vmem [#allocation16], %s6339_s28  ;;  %s6711_s23 = smov (!%p649_p7, %s6692_s23), 1 }
 0x161   : > { %v5195_v5 = vld [vmem:[#allocation3 + $0x180] ss:$8 sps:$4 sm:$0xff]   ;;  %v5200_v6 = vld [vmem:[#allocation3 + $0x194] ss:$8 sps:$4 sm:$0xff]   ;;  %v5198_v7 = vld [vmem:[#allocation3 + $0x190] ss:$8 sps:$4 sm:$0xff]  }
 0x162   : > { %792 = vmatpush1.bf16.msra.mxu0 %v5137_v14  ;;  %v5203_v9 = vld [vmem:[#allocation3 + $0x1a4] ss:$8 sps:$4 sm:$0xff]   ;;  %v5201_v10 = vld [vmem:[#allocation3 + $0x1a0] ss:$8 sps:$4 sm:$0xff]   ;;  %v5206_v11 = vld [vmem:[#allocation3 + $0x1b4] ss:$8 sps:$4 sm:$0xff]  }
 0x163   : > { %793 = vmatprep.subr.bf16.mxu0 %v5138_v15  ;;  %v5204_v12 = vld [vmem:[#allocation3 + $0x1b0] ss:$8 sps:$4 sm:$0xff]   ;;  %v5209_v13 = vld [vmem:[#allocation3 + $0x1c4] ss:$8 sps:$4 sm:$0xff]   ;;  %v5207_v14 = vld [vmem:[#allocation3 + $0x1c0] ss:$8 sps:$4 sm:$0xff]  }
 0x164   : > { %v5212_v15 = vld [vmem:[#allocation3 + $0x1d4] ss:$8 sps:$4 sm:$0xff]   ;;  %s4160_s17 = sshll.u32 %s6711_s23, 2  ;;  %s6705_s27 = sld [smem:[#allocation33_spill]] }
 0x166   : > { %794 = vmatpush1.bf16.msra.mxu0 %v5140_v16  ;;  %v5210_v16 = vld [vmem:[#allocation3 + $0x1d0] ss:$8 sps:$4 sm:$0xff]  }
 0x167   : > { %795 = vmatprep.subr.bf16.mxu0 %v5141_v17  ;;  %v5215_v17 = vld [vmem:[#allocation3 + $0x1e4] ss:$8 sps:$4 sm:$0xff]  }
 0x16a   : > { %796 = vmatpush1.bf16.msra.mxu0 %v5143_v18  ;;  %v5213_v18 = vld [vmem:[#allocation3 + $0x1e0] ss:$8 sps:$4 sm:$0xff]   ;;  %s652_s19 = scalar_lea.vmem %s6705_s27, %s4160_s17 }
 0x16b   : > { %797 = vmatprep.subr.bf16.mxu0 %v5144_v19  ;;  %v1092_v19 = vld [vmem:[%s6704_s2 + $0xa] sm:$0xff] }
 0x16e   : > { %798 = vmatpush1.bf16.msra.mxu0 %v5146_v20 }
 0x16f   : > { %904 = vmatprep.subr.bf16.mxu0 %v5149_v21  ;;  %v5218_v21 = vld [vmem:[#allocation3 + $0x1f4] ss:$8 sps:$4 sm:$0xff]  }
 0x1cf   : > { %v682_v24 = vpop.permute.xlu0 %681 }
 0x1d0   : > { %v684_v25 = vmul.f32 %v682_v24, %v679_v23  ;;  %v948_v61 = vpop.permute.xlu1 %947  ;;  %v5216_v24 = vld [vmem:[#allocation3 + $0x1f0] ss:$8 sps:$4 sm:$0xff]  }
 0x1d1   : > { %v950_v63 = vmul.f32 %v948_v61, %v945_v60  ;;  %v5897_v60 = vmov 5   ;;  %v5258_v61 = vld [vmem:[#allocation3 + $0x2d0] ss:$8 sps:$4 sm:$0xff]  }
 0x1d2   : > { %v685_v27 = vpack.c.bf16 %v684_v25, %v684_v25  ;;  %v5221_v25 = vld [vmem:[#allocation3 + $0x204] ss:$8 sps:$4 sm:$0xff]  }
 0x1d3   : > { %v951_v4 = vpack.c.bf16 %v950_v63, %v950_v63  ;;  %v5898_v63 = vmov 7  }
 0x1d4   : > { %816 = vmatmul.mubr.bf16.vlgmr.msra.gmra.mrb[0].mxu0 %v685_v27  ;;  %v659_v41 = vpop.permute.xlu0 %658  ;;  %v5219_v27 = vld [vmem:[#allocation3 + $0x200] ss:$8 sps:$4 sm:$0xff]  }
 0x1d5   : > { %905 = vmatpush1.bf16.msra.mxu0 %v5147_v26  ;;  %936 = vmatprep.mubr.bf16.mxu0 %v5892_v2  ;;  %v661_v43 = vmul.f32 %v659_v41, %v654_v42  ;;  %v1095_v20 = vpop.permute.xlu1 %1094  ;;  %v5240_v41 = vld [vmem:[#allocation3 + $0x270] ss:$8 sps:$4 sm:$0xff]   ;;  %v1239_v42 = vld [vmem:[%s6704_s2 + $0x3] sm:$0xff] }
 0x1d6   : > { %906 = vmatprep.subr.bf16.mxu0 %v5152_v28  ;;  %v1097_v23 = vmul.f32 %v1095_v20, %v1092_v19  ;;  %v5224_v28 = vld [vmem:[#allocation3 + $0x214] ss:$8 sps:$4 sm:$0xff]   ;;  %v5281_v19 = vld [vmem:[#allocation3 + $0x344] ss:$8 sps:$4 sm:$0xff]   ;;  %v5279_v20 = vld [vmem:[#allocation3 + $0x340] ss:$8 sps:$4 sm:$0xff]  }
 0x1d7   : > { %v662_v46 = vpack.c.bf16 %v661_v43, %v661_v43  ;;  %v5245_v43 = vld [vmem:[#allocation3 + $0x284] ss:$8 sps:$4 sm:$0xff]  }
 0x1d8   : > { %v1098_v26 = vpack.c.bf16 %v1097_v23, %v1097_v23  ;;  %v5282_v23 = vld [vmem:[#allocation3 + $0x350] ss:$8 sps:$4 sm:$0xff]  }
 0x1d9   : > { %907 = vmatpush1.bf16.msra.mxu0 %v5150_v29  ;;  %v5222_v29 = vld [vmem:[#allocation3 + $0x210] ss:$8 sps:$4 sm:$0xff]  }
 0x1da   : > { %908 = vmatprep.subr.bf16.mxu0 %v5155_v30  ;;  %v5227_v30 = vld [vmem:[#allocation3 + $0x224] ss:$8 sps:$4 sm:$0xff]  }
 0x1dd   : > { %909 = vmatpush1.bf16.msra.mxu0 %v5153_v31  ;;  %v5225_v31 = vld [vmem:[#allocation3 + $0x220] ss:$8 sps:$4 sm:$0xff]  }
 0x1de   : > { %910 = vmatprep.subr.bf16.mxu0 %v5158_v32  ;;  %v5230_v32 = vld [vmem:[#allocation3 + $0x234] ss:$8 sps:$4 sm:$0xff]  }
 0x1e1   : > { %911 = vmatpush1.bf16.msra.mxu0 %v5156_v33  ;;  %v5228_v33 = vld [vmem:[#allocation3 + $0x230] ss:$8 sps:$4 sm:$0xff]  }
 0x1e2   : > { %912 = vmatprep.subr.bf16.mxu0 %v5161_v34  ;;  %v5233_v34 = vld [vmem:[#allocation3 + $0x244] ss:$8 sps:$4 sm:$0xff]  }
 0x1e5   : > { %913 = vmatpush1.bf16.msra.mxu0 %v5159_v35  ;;  %v5231_v35 = vld [vmem:[#allocation3 + $0x240] ss:$8 sps:$4 sm:$0xff]  }
 0x1e6   : > { %914 = vmatprep.subr.bf16.mxu0 %v5164_v36  ;;  %v5236_v36 = vld [vmem:[#allocation3 + $0x254] ss:$8 sps:$4 sm:$0xff]  }
 0x1e9   : > { %915 = vmatpush1.bf16.msra.mxu0 %v5162_v37  ;;  %v5234_v37 = vld [vmem:[#allocation3 + $0x250] ss:$8 sps:$4 sm:$0xff]  }
 0x1ea   : > { %916 = vmatprep.subr.bf16.mxu0 %v5167_v38  ;;  %v5239_v38 = vld [vmem:[#allocation3 + $0x264] ss:$8 sps:$4 sm:$0xff]  }
 0x1ed   : > { %917 = vmatpush1.bf16.msra.mxu0 %v5165_v39  ;;  %v5237_v39 = vld [vmem:[#allocation3 + $0x260] ss:$8 sps:$4 sm:$0xff]  }
 0x1ee   : > { %918 = vmatprep.subr.bf16.mxu0 %v5170_v40  ;;  %v5242_v40 = vld [vmem:[#allocation3 + $0x274] ss:$8 sps:$4 sm:$0xff]  }
 0x1f1   : > { %919 = vmatpush1.bf16.msra.mxu0 %v5168_v44  ;;  %v6386_v44 = vpack.c.bf16 %v1239_v42, %v1239_v42  ;;  %v5308_v42 = vld [vmem:[#allocation3 + $0x3d4] ss:$8 sps:$4 sm:$0xff]  }
 0x1f2   : > { %1049 = vmatprep.subr.bf16.mxu0 %v5173_v45  ;;  %v5243_v45 = vld [vmem:[#allocation3 + $0x280] ss:$8 sps:$4 sm:$0xff]  }
 0x1f4   : > { %937 = vmatmul.mubr.bf16.vlgmr.msra.gmra.mrb[0].mxu0 %v662_v46  ;;  %v5248_v46 = vld [vmem:[#allocation3 + $0x294] ss:$8 sps:$4 sm:$0xff]  }
 0x1f5   : > { %1050 = vmatpush1.bf16.msra.mxu0 %v5171_v47  ;;  %1081 = vmatprep.mubr.bf16.mxu0 %v5892_v2  ;;  %v2177_v47 = vld [vmem:[#allocation13] sm:$0xff] }
 0x1f6   : > { %1051 = vmatprep.subr.bf16.mxu0 %v5176_v48  ;;  %v5339_v48 = vld [vmem:[%s6355_s26] sm:$0xff]   ;;  %2180 = vperm.xlu1 %5115, %v2177_v47  }
 0x1f7   : > { %2224 = vperm.xlu0 %5114, %v2177_v47  }
 0x1f9   : > { %1052 = vmatpush1.bf16.msra.mxu0 %v5174_v49  ;;  %v5246_v49 = vld [vmem:[#allocation3 + $0x290] ss:$8 sps:$4 sm:$0xff]  }
 0x1fa   : > { %1053 = vmatprep.subr.bf16.mxu0 %v5179_v50  ;;  %v5895_v50 = vmov 0.0   ;;  %5116 = vset.pattern.permute.xlu1 %v5891_v1  ;;  %v5255_v1 = vld [vmem:[#allocation3 + $0x2c0] ss:$8 sps:$4 sm:$0xff]  }
 0x1fb   : > { %2161 = vst [vmem:[#allocation2] sm:$0x7] %v5895_v50  ;;  %2162 = vst [vmem:[#allocation2 + $0x8] sm:$0x7] %v5895_v50  ;;  %4926 = vmatprep.subr.bf16.mxu1 %v5895_v50  ;;  %2560 = vperm.xlu1 %5116, %v2177_v47  }
 0x1fc   : > { %2173 = vst [vmem:[#allocation2 + $0x10] sm:$0x38] %v5895_v50  ;;  %2174 = vst [vmem:[#allocation2 + $0x18] sm:$0x38] %v5895_v50  ;;  %4927 = vmatpush3.bf16.msra.mxu1 %v5339_v48  ;;  %5117 = vset.pattern.permute.xlu0 %v5893_v8  ;;  %v5260_v8 = vld [vmem:[#allocation3 + $0x2d4] ss:$8 sps:$4 sm:$0xff]  }
 0x1fd   : > { %1054 = vmatpush1.bf16.msra.mxu0 %v5177_v51  ;;  %v5251_v51 = vld [vmem:[#allocation3 + $0x2a4] ss:$8 sps:$4 sm:$0xff]   ;;  %4928 = vmatprep.subr.bf16.mxu1 %v5895_v50  ;;  %v5312_v48 = vld [vmem:[#allocation3 + $0x3f0] ss:$8 sps:$4 sm:$0xff]  }
 0x1fe   : > { %1055 = vmatprep.subr.bf16.mxu0 %v5182_v52  ;;  %v5340_v52 = vld [vmem:[%s6355_s26 + $0x8] sm:$0xff]   ;;  %2747 = vperm.xlu0 %5117, %v2177_v47  }
 0x1ff   : > { %5118 = vset.pattern.permute.xlu1 %v5894_v22  ;;  %v5263_v22 = vld [vmem:[#allocation3 + $0x2e4] ss:$8 sps:$4 sm:$0xff]   ;;  %4942 = vmatprep.mubr.msk.bf16.mxu1 %vm5899_vm0, %v5895_v50 }
 0x200   : > { %4929 = vmatpush3.bf16.msra.mxu1 %v5340_v52  ;;  %3132 = vperm.xlu1 %5118, %v2177_v47  }
 0x201   : > { %1056 = vmatpush1.bf16.msra.mxu0 %v5180_v53  ;;  %v5249_v53 = vld [vmem:[#allocation3 + $0x2a0] ss:$8 sps:$4 sm:$0xff]   ;;  %4930 = vmatprep.subr.bf16.mxu1 %v5895_v50 }
 0x202   : > { %1057 = vmatprep.subr.bf16.mxu0 %v5185_v54  ;;  %v5254_v54 = vld [vmem:[#allocation3 + $0x2b4] ss:$8 sps:$4 sm:$0xff]  }
 0x204   : > { %5119 = vset.pattern.permute.xlu1 %v5897_v60  ;;  %v5332_v60 = vld [vmem:[#allocation3 + $0x454] ss:$8 sps:$4 sm:$0xff]  }
 0x205   : > { %1058 = vmatpush1.bf16.msra.mxu0 %v5183_v55  ;;  %v5252_v55 = vld [vmem:[#allocation3 + $0x2b0] ss:$8 sps:$4 sm:$0xff]   ;;  %3319 = vperm.xlu1 %5119, %v2177_v47  }
 0x206   : > { %1059 = vmatprep.subr.bf16.mxu0 %v5188_v56  ;;  %v5257_v56 = vld [vmem:[#allocation3 + $0x2c4] ss:$8 sps:$4 sm:$0xff]  }
 0x209   : > { %1060 = vmatpush1.bf16.msra.mxu0 %v5186_v57  ;;  %v5341_v57 = vld [vmem:[%s6355_s26 + $0x10] sm:$0xff]   ;;  %5121 = vset.pattern.permute.xlu1 %v5898_v63 }
 0x20a   : > { %1061 = vmatprep.subr.bf16.mxu0 %v5191_v58  ;;  %v5896_v58 = vmov 6   ;;  %4931 = vmatpush3.bf16.msra.mxu1 %v5341_v57  ;;  %v5321_v57 = vld [vmem:[#allocation3 + $0x420] ss:$8 sps:$4 sm:$0xff]  }
 0x20b   : > { %5120 = vset.pattern.permute.xlu0 %v5896_v58  ;;  %4932 = vmatprep.subr.bf16.mxu1 %v5895_v50  ;;  %v5326_v58 = vld [vmem:[#allocation3 + $0x434] ss:$8 sps:$4 sm:$0xff]  }
 0x20c   : > { %3510 = vperm.xlu0 %5120, %v2177_v47   ;;  %3713 = vperm.xlu1 %5121, %v2177_v47   ;;  %v5314_v47 = vld [vmem:[#allocation3 + $0x3f4] ss:$8 sps:$4 sm:$0xff]  }
 0x20d   : > { %1062 = vmatpush1.bf16.msra.mxu0 %v5189_v59  ;;  %v5342_v59 = vld [vmem:[%s6355_s26 + $0x18] sm:$0xff]  }
 0x20e   : > { %1063 = vmatprep.subr.bf16.mxu0 %v5194_v62  ;;  %4933 = vmatpush3.bf16.msra.mxu1 %v5342_v59  ;;  %v5343_v62 = vld [vmem:[%s6355_s26 + $0x20] sm:$0xff]   ;;  %v5327_v59 = vld [vmem:[#allocation3 + $0x440] ss:$8 sps:$4 sm:$0xff]  }
 0x20f   : > { %4934 = vmatprep.subr.bf16.mxu1 %v5895_v50 }
 0x210   : > { %5122 = vset.pattern.permute.xlu0 %v5898_v63  ;;  %v5336_v63 = vld [vmem:[#allocation3 + $0x470] ss:$8 sps:$4 sm:$0xff]  }
 0x211   : > { %1064 = vmatpush1.bf16.msra.mxu0 %v5192_v0  ;;  %v5261_v0 = vld [vmem:[#allocation3 + $0x2e0] ss:$8 sps:$4 sm:$0xff]  }
 0x212   : > { %1196 = vmatprep.subr.bf16.mxu0 %v5197_v3  ;;  %v5266_v3 = vld [vmem:[#allocation3 + $0x2f4] ss:$8 sps:$4 sm:$0xff]   ;;  %4935 = vmatpush3.bf16.msra.mxu1 %v5343_v62 }
 0x213   : > { %4936 = vmatprep.subr.bf16.mxu1 %v5895_v50  ;;  %v5338_v62 = vld [vmem:[#allocation3 + $0x474] ss:$8 sps:$4 sm:$0xff]  }
 0x214   : > { %1082 = vmatmul.mubr.bf16.vlgmr.msra.gmra.mrb[0].mxu0 %v951_v4  ;;  %v5344_v4 = vld [vmem:[%s6355_s26 + $0x28] sm:$0xff]  }
 0x215   : > { %1197 = vmatpush1.bf16.msra.mxu0 %v5195_v5  ;;  %1228 = vmatprep.mubr.bf16.mxu0 %v5892_v2  ;;  %v5264_v5 = vld [vmem:[#allocation3 + $0x2f0] ss:$8 sps:$4 sm:$0xff]  }
 0x216   : > { %1198 = vmatprep.subr.bf16.mxu0 %v5200_v6  ;;  %v1381_v6 = vld [vmem:[%s6704_s2 + $0xb] sm:$0xff]  ;;  %4937 = vmatpush3.bf16.msra.mxu1 %v5344_v4 }
 0x217   : > { %4938 = vmatprep.subr.bf16.mxu1 %v5895_v50  ;;  %v5347_v4 = vld [vmem:[%s6342_s15 + $0x440] sm:$0xff]  }
 0x219   : > { %1199 = vmatpush1.bf16.msra.mxu0 %v5198_v7  ;;  %v5269_v7 = vld [vmem:[#allocation3 + $0x304] ss:$8 sps:$4 sm:$0xff]  }
 0x21a   : > { %1200 = vmatprep.subr.bf16.mxu0 %v5203_v9  ;;  %v5345_v9 = vld [vmem:[%s6355_s26 + $0x30] sm:$0xff]  }
 0x21b   : > { %4939 = vmatpush3.bf16.msra.mxu1 %v5345_v9  ;;  %v5351_v9 = vld [vmem:[%s6342_s15 + $0x448] sm:$0xff]  }
 0x21c   : > { %4940 = vmatprep.subr.bf16.mxu1 %v5895_v50  ;;  %v5353_v50 = vld [vmem:[%s6342_s15 + $0xc8] sm:$0xff]  }
 0x21d   : > { %1201 = vmatpush1.bf16.msra.mxu0 %v5201_v10  ;;  %v1382_v10 = vpack.c.bf16 %v1381_v6, %v1381_v6  ;;  %v5349_v6 = vld [vmem:[%s6342_s15 + $0xc0] sm:$0xff]  }
 0x21e   : > { %1202 = vmatprep.subr.bf16.mxu0 %v5206_v11  ;;  %v5267_v11 = vld [vmem:[#allocation3 + $0x300] ss:$8 sps:$4 sm:$0xff]  }
 0x221   : > { %1203 = vmatpush1.bf16.msra.mxu0 %v5204_v12  ;;  %v5272_v12 = vld [vmem:[#allocation3 + $0x314] ss:$8 sps:$4 sm:$0xff]  }
 0x222   : > { %1204 = vmatprep.subr.bf16.mxu0 %v5209_v13  ;;  %v5346_v13 = vld [vmem:[%s6355_s26 + $0x38] sm:$0xff]  }
 0x223   : > { %4941 = vmatpush3.bf16.msra.mxu1 %v5346_v13  ;;  %v5357_v13 = vld [vmem:[%s6342_s15 + $0xd0] sm:$0xff]  }
 0x224   : > { %4728 = vmatprep.subr.bf16.mxu1 %v5349_v6 }
 0x225   : > { %1205 = vmatpush1.bf16.msra.mxu0 %v5207_v14  ;;  %v5270_v14 = vld [vmem:[#allocation3 + $0x310] ss:$8 sps:$4 sm:$0xff]  }
 0x226   : > { %1206 = vmatprep.subr.bf16.mxu0 %v5212_v15  ;;  %v5275_v15 = vld [vmem:[#allocation3 + $0x324] ss:$8 sps:$4 sm:$0xff]   ;;  %4943 = vmatmul.mubr.bf16.vlgmr.msra.gmra.mrb[0].mxu1 %v6386_v44 }
 0x229   : > { %1207 = vmatpush1.bf16.msra.mxu0 %v5210_v16  ;;  %v5273_v16 = vld [vmem:[#allocation3 + $0x320] ss:$8 sps:$4 sm:$0xff]  }
 0x22a   : > { %1208 = vmatprep.subr.bf16.mxu0 %v5215_v17  ;;  %v5278_v17 = vld [vmem:[#allocation3 + $0x334] ss:$8 sps:$4 sm:$0xff]  }
 0x22d   : > { %1209 = vmatpush1.bf16.msra.mxu0 %v5213_v18  ;;  %v5276_v18 = vld [vmem:[#allocation3 + $0x330] ss:$8 sps:$4 sm:$0xff]  }
 0x22e   : > { %1210 = vmatprep.subr.bf16.mxu0 %v5218_v21  ;;  %v5284_v21 = vld [vmem:[#allocation3 + $0x354] ss:$8 sps:$4 sm:$0xff]  }
 0x231   : > { %1211 = vmatpush1.bf16.msra.mxu0 %v5216_v24  ;;  %v5287_v24 = vld [vmem:[#allocation3 + $0x364] ss:$8 sps:$4 sm:$0xff]  }
 0x232   : > { %1338 = vmatprep.subr.bf16.mxu0 %v5221_v25  ;;  %v5285_v25 = vld [vmem:[#allocation3 + $0x360] ss:$8 sps:$4 sm:$0xff]  }
 0x234   : > { %1229 = vmatmul.mubr.bf16.vlgmr.msra.gmra.mrb[0].mxu0 %v1098_v26  ;;  %v1523_v26 = vld [vmem:[%s6704_s2 + $0x1a] sm:$0xff] }
 0x235   : > { %1339 = vmatpush1.bf16.msra.mxu0 %v5219_v27  ;;  %1370 = vmatprep.mubr.bf16.mxu0 %v5892_v2  ;;  %v1526_v27 = vpop.permute.xlu1 %1525 }
 0x236   : > { %1340 = vmatprep.subr.bf16.mxu0 %v5224_v28  ;;  %v5290_v28 = vld [vmem:[#allocation3 + $0x374] ss:$8 sps:$4 sm:$0xff]  }
 0x239   : > { %1341 = vmatpush1.bf16.msra.mxu0 %v5222_v29  ;;  %v1528_v29 = vmul.f32 %v1526_v27, %v1523_v26  ;;  %v5369_v26 = vld [vmem:[%s6342_s15 + $0xe8] sm:$0xff]  }
 0x23a   : > { %1342 = vmatprep.subr.bf16.mxu0 %v5227_v30  ;;  %v5288_v30 = vld [vmem:[#allocation3 + $0x370] ss:$8 sps:$4 sm:$0xff]  }
 0x23b   : > { %v5370_v27 = vld [vmem:[%s6342_s15 + $0xa8] sm:$0xff]  }
 0x23d   : > { %1343 = vmatpush1.bf16.msra.mxu0 %v5225_v31  ;;  %v5293_v31 = vld [vmem:[#allocation3 + $0x384] ss:$8 sps:$4 sm:$0xff]  }
 0x23e   : > { %1344 = vmatprep.subr.bf16.mxu0 %v5230_v32  ;;  %v1529_v32 = vpack.c.bf16 %v1528_v29, %v1528_v29  ;;  %v5372_v29 = vld [vmem:[%s6342_s15 + $0x430] sm:$0xff]  }
 0x241   : > { %1345 = vmatpush1.bf16.msra.mxu0 %v5228_v33  ;;  %v5291_v33 = vld [vmem:[#allocation3 + $0x380] ss:$8 sps:$4 sm:$0xff]  }
 0x242   : > { %1346 = vmatprep.subr.bf16.mxu0 %v5233_v34  ;;  %v5296_v34 = vld [vmem:[#allocation3 + $0x394] ss:$8 sps:$4 sm:$0xff]  }
 0x245   : > { %1347 = vmatpush1.bf16.msra.mxu0 %v5231_v35  ;;  %v5294_v35 = vld [vmem:[#allocation3 + $0x390] ss:$8 sps:$4 sm:$0xff]  }
 0x246   : > { %1348 = vmatprep.subr.bf16.mxu0 %v5236_v36  ;;  %v5299_v36 = vld [vmem:[#allocation3 + $0x3a4] ss:$8 sps:$4 sm:$0xff]  }
 0x249   : > { %1349 = vmatpush1.bf16.msra.mxu0 %v5234_v37  ;;  %v5297_v37 = vld [vmem:[#allocation3 + $0x3a0] ss:$8 sps:$4 sm:$0xff]  }
 0x24a   : > { %1350 = vmatprep.subr.bf16.mxu0 %v5239_v38  ;;  %v5302_v38 = vld [vmem:[#allocation3 + $0x3b4] ss:$8 sps:$4 sm:$0xff]  }
 0x24d   : > { %1351 = vmatpush1.bf16.msra.mxu0 %v5237_v39  ;;  %v5300_v39 = vld [vmem:[#allocation3 + $0x3b0] ss:$8 sps:$4 sm:$0xff]  }
 0x24e   : > { %1352 = vmatprep.subr.bf16.mxu0 %v5242_v40  ;;  %v5305_v40 = vld [vmem:[#allocation3 + $0x3c4] ss:$8 sps:$4 sm:$0xff]  }
 0x251   : > { %1353 = vmatpush1.bf16.msra.mxu0 %v5240_v41  ;;  %v5303_v41 = vld [vmem:[#allocation3 + $0x3c0] ss:$8 sps:$4 sm:$0xff]  }
 0x252   : > { %1480 = vmatprep.subr.bf16.mxu0 %v5245_v43  ;;  %v5306_v43 = vld [vmem:[#allocation3 + $0x3d0] ss:$8 sps:$4 sm:$0xff]  }
 0x254   : > { %1371 = vmatmul.mubr.bf16.vlgmr.msra.gmra.mrb[0].mxu0 %v6386_v44  ;;  %v5354_v44 = vld [vmem:[%s6342_s15 + $0x88] sm:$0xff]  }
 0x255   : > { %1481 = vmatpush1.bf16.msra.mxu0 %v5243_v45  ;;  %1512 = vmatprep.mubr.bf16.mxu0 %v5892_v2  ;;  %v5311_v45 = vld [vmem:[#allocation3 + $0x3e4] ss:$8 sps:$4 sm:$0xff]  }
 0x256   : > { %1482 = vmatprep.subr.bf16.mxu0 %v5248_v46  ;;  %v5309_v46 = vld [vmem:[#allocation3 + $0x3e0] ss:$8 sps:$4 sm:$0xff]  }
 0x259   : > { %1483 = vmatpush1.bf16.msra.mxu0 %v5246_v49  ;;  %v1670_v49 = vld [vmem:[%s6704_s2 + $0x13] sm:$0xff] }
 0x25a   : > { %1484 = vmatprep.subr.bf16.mxu0 %v5251_v51  ;;  %v5317_v51 = vld [vmem:[#allocation3 + $0x404] ss:$8 sps:$4 sm:$0xff]   ;;  %v1671_v52 = vpack.c.bf16 %v1670_v49, %v1670_v49 }
 0x25d   : > { %1485 = vmatpush1.bf16.msra.mxu0 %v5249_v53  ;;  %v5315_v53 = vld [vmem:[#allocation3 + $0x400] ss:$8 sps:$4 sm:$0xff]  }
 0x25e   : > { %1486 = vmatprep.subr.bf16.mxu0 %v5254_v54  ;;  %v5320_v54 = vld [vmem:[#allocation3 + $0x414] ss:$8 sps:$4 sm:$0xff]  }
 0x261   : > { %1487 = vmatpush1.bf16.msra.mxu0 %v5252_v55  ;;  %v5318_v55 = vld [vmem:[#allocation3 + $0x410] ss:$8 sps:$4 sm:$0xff]  }
 0x262   : > { %1488 = vmatprep.subr.bf16.mxu0 %v5257_v56  ;;  %v5323_v56 = vld [vmem:[#allocation3 + $0x424] ss:$8 sps:$4 sm:$0xff]  }
 0x265   : > { %1489 = vmatpush1.bf16.msra.mxu0 %v5255_v1  ;;  %v5324_v1 = vld [vmem:[#allocation3 + $0x430] ss:$8 sps:$4 sm:$0xff]  }
 0x266   : > { %1490 = vmatprep.subr.bf16.mxu0 %v5260_v8  ;;  %v5329_v8 = vld [vmem:[#allocation3 + $0x444] ss:$8 sps:$4 sm:$0xff]  }
 0x269   : > { %1491 = vmatpush1.bf16.msra.mxu0 %v5258_v61  ;;  %v5330_v61 = vld [vmem:[#allocation3 + $0x450] ss:$8 sps:$4 sm:$0xff]  }
 0x26a   : > { %1492 = vmatprep.subr.bf16.mxu0 %v5263_v22  ;;  %v5335_v22 = vld [vmem:[#allocation3 + $0x464] ss:$8 sps:$4 sm:$0xff]  }
 0x26d   : > { %1493 = vmatpush1.bf16.msra.mxu0 %v5261_v0  ;;  %v1812_v0 = vld [vmem:[%s6704_s2 + $0x1b] sm:$0xff] }
 0x26e   : > { %1494 = vmatprep.subr.bf16.mxu0 %v5266_v3  ;;  %v1813_v3 = vpack.c.bf16 %v1812_v0, %v1812_v0 }
 0x271   : > { %1495 = vmatpush1.bf16.msra.mxu0 %v5264_v5  ;;  %v5348_v5 = vld [vmem:[%s6342_s15 + $0x400] sm:$0xff]  }
 0x272   : > { %1627 = vmatprep.subr.bf16.mxu0 %v5269_v7  ;;  %v5350_v7 = vld [vmem:[%s6342_s15 + $0x80] sm:$0xff]  }
 0x273   : > { %4729 = vmatpush3.bf16.msra.mxu1 %v5350_v7 }
 0x274   : > { %1513 = vmatmul.mubr.bf16.vlgmr.msra.gmra.mrb[0].mxu0 %v1382_v10  ;;  %v5352_v10 = vld [vmem:[%s6342_s15 + $0x408] sm:$0xff]   ;;  %4730 = vmatprep.subr.bf16.mxu1 %v5353_v50 }
 0x275   : > { %1628 = vmatpush1.bf16.msra.mxu0 %v5267_v11  ;;  %1659 = vmatprep.mubr.bf16.mxu0 %v5892_v2  ;;  %v5355_v11 = vld [vmem:[%s6342_s15 + $0x450] sm:$0xff]  }
 0x276   : > { %1629 = vmatprep.subr.bf16.mxu0 %v5272_v12  ;;  %v5356_v12 = vld [vmem:[%s6342_s15 + $0x410] sm:$0xff]  }
 0x277   : > { %4731 = vmatpush3.bf16.msra.mxu1 %v5354_v44 }
 0x278   : > { %4732 = vmatprep.subr.bf16.mxu1 %v5357_v13 }
 0x279   : > { %1630 = vmatpush1.bf16.msra.mxu0 %v5270_v14  ;;  %v5358_v14 = vld [vmem:[%s6342_s15 + $0x90] sm:$0xff]  }
 0x27a   : > { %1631 = vmatprep.subr.bf16.mxu0 %v5275_v15  ;;  %v5359_v15 = vld [vmem:[%s6342_s15 + $0x458] sm:$0xff]  }
 0x27b   : > { %4733 = vmatpush3.bf16.msra.mxu1 %v5358_v14  ;;  %v1954_v14 = vld [vmem:[#allocation5] sm:$0x3] }
 0x27d   : > { %1632 = vmatpush1.bf16.msra.mxu0 %v5273_v16  ;;  %v5360_v16 = vld [vmem:[%s6342_s15 + $0x418] sm:$0xff]  }
 0x27e   : > { %1633 = vmatprep.subr.bf16.mxu0 %v5278_v17  ;;  %v5361_v17 = vld [vmem:[%s6342_s15 + $0xd8] sm:$0xff]  }
 0x27f   : > { %4734 = vmatprep.subr.bf16.mxu1 %v5361_v17 }
 0x281   : > { %1634 = vmatpush1.bf16.msra.mxu0 %v5276_v18  ;;  %v5362_v18 = vld [vmem:[%s6342_s15 + $0x98] sm:$0xff]  }
 0x282   : > { %1635 = vmatprep.subr.bf16.mxu0 %v5281_v19  ;;  %v5363_v19 = vld [vmem:[%s6342_s15 + $0x460] sm:$0xff]   ;;  %4735 = vmatpush3.bf16.msra.mxu1 %v5362_v18 }
 0x285   : > { %1636 = vmatpush1.bf16.msra.mxu0 %v5279_v20  ;;  %v5364_v20 = vld [vmem:[%s6342_s15 + $0x420] sm:$0xff]  }
 0x286   : > { %1637 = vmatprep.subr.bf16.mxu0 %v5284_v21  ;;  %v5365_v21 = vld [vmem:[%s6342_s15 + $0xe0] sm:$0xff]  }
 0x287   : > { %4736 = vmatprep.subr.bf16.mxu1 %v5365_v21 }
 0x289   : > { %1638 = vmatpush1.bf16.msra.mxu0 %v5282_v23  ;;  %v5366_v23 = vld [vmem:[%s6342_s15 + $0xa0] sm:$0xff]  }
 0x28a   : > { %1639 = vmatprep.subr.bf16.mxu0 %v5287_v24  ;;  %v5367_v24 = vld [vmem:[%s6342_s15 + $0x468] sm:$0xff]   ;;  %4737 = vmatpush3.bf16.msra.mxu1 %v5366_v23 }
 0x28b   : > { %4738 = vmatprep.subr.bf16.mxu1 %v5369_v26 }
 0x28d   : > { %1640 = vmatpush1.bf16.msra.mxu0 %v5285_v25  ;;  %v5368_v25 = vld [vmem:[%s6342_s15 + $0x428] sm:$0xff]  }
 0x28e   : > { %1641 = vmatprep.subr.bf16.mxu0 %v5290_v28  ;;  %v5371_v28 = vld [vmem:[%s6342_s15 + $0x470] sm:$0xff]   ;;  %4739 = vmatpush3.bf16.msra.mxu1 %v5370_v27 }
 0x291   : > { %1642 = vmatpush1.bf16.msra.mxu0 %v5288_v30  ;;  %v5373_v30 = vld [vmem:[%s6342_s15 + $0xf0] sm:$0xff]  }
 0x292   : > { %1769 = vmatprep.subr.bf16.mxu0 %v5293_v31  ;;  %v5374_v31 = vld [vmem:[%s6342_s15 + $0xb0] sm:$0xff]   ;;  %4740 = vmatprep.subr.bf16.mxu1 %v5373_v30 }
 0x293   : > { %4741 = vmatpush3.bf16.msra.mxu1 %v5374_v31 }
 0x294   : > { %1660 = vmatmul.mubr.bf16.vlgmr.msra.gmra.mrb[0].mxu0 %v1529_v32  ;;  %v5375_v32 = vld [vmem:[%s6342_s15 + $0x478] sm:$0xff]  }
 0x295   : > { %1770 = vmatpush1.bf16.msra.mxu0 %v5291_v33  ;;  %1801 = vmatprep.mubr.bf16.mxu0 %v5892_v2  ;;  %v5376_v33 = vld [vmem:[%s6342_s15 + $0x438] sm:$0xff]  }
 0x296   : > { %1771 = vmatprep.subr.bf16.mxu0 %v5296_v34  ;;  %v5377_v34 = vld [vmem:[%s6342_s15 + $0xf8] sm:$0xff]  }
 0x297   : > { %4742 = vmatprep.subr.bf16.mxu1 %v5377_v34 }
 0x299   : > { %1772 = vmatpush1.bf16.msra.mxu0 %v5294_v35  ;;  %v5378_v35 = vld [vmem:[%s6342_s15 + $0xb8] sm:$0xff]  }
 0x29a   : > { %1773 = vmatprep.subr.bf16.mxu0 %v5299_v36  ;;  %4743 = vmatpush3.bf16.msra.mxu1 %v5378_v35  ;;  %v5379_v36 = vld [vmem:[%s6342_s15 + $0x40] sm:$0xff]  }
 0x29b   : > { %4750 = vmatprep.subr.bf16.mxu1 %v5379_v36 }
 0x29d   : > { %1774 = vmatpush1.bf16.msra.mxu0 %v5297_v37 }
 0x29e   : > { %1775 = vmatprep.subr.bf16.mxu0 %v5302_v38 }
 0x2a1   : > { %1776 = vmatpush1.bf16.msra.mxu0 %v5300_v39 }
 0x2a2   : > { %1777 = vmatprep.subr.bf16.mxu0 %v5305_v40 }
 0x2a5   : > { %1778 = vmatpush1.bf16.msra.mxu0 %v5303_v41 }
 0x2a6   : > { %1779 = vmatprep.subr.bf16.mxu0 %v5308_v42 }
 0x2a9   : > { %1780 = vmatpush1.bf16.msra.mxu0 %v5306_v43 }
 0x2aa   : > { %1781 = vmatprep.subr.bf16.mxu0 %v5311_v45 }
 0x2ad   : > { %1782 = vmatpush1.bf16.msra.mxu0 %v5309_v46 }
 0x2ae   : > { %1783 = vmatprep.subr.bf16.mxu0 %v5314_v47 }
 0x2b1   : > { %1784 = vmatpush1.bf16.msra.mxu0 %v5312_v48 }
 0x2b2   : > { %1911 = vmatprep.subr.bf16.mxu0 %v5317_v51 }
 0x2b4   : > { %1802 = vmatmul.mubr.bf16.vlgmr.msra.gmra.mrb[0].mxu0 %v1671_v52 }
 0x2b5   : > { %1912 = vmatpush1.bf16.msra.mxu0 %v5315_v53  ;;  %1943 = vmatprep.mubr.bf16.mxu0 %v5892_v2  ;;  %v5333_v2 = vld [vmem:[#allocation3 + $0x460] ss:$8 sps:$4 sm:$0xff]  }
 0x2b6   : > { %1913 = vmatprep.subr.bf16.mxu0 %v5320_v54 }
 0x2b9   : > { %1914 = vmatpush1.bf16.msra.mxu0 %v5318_v55 }
 0x2ba   : > { %1915 = vmatprep.subr.bf16.mxu0 %v5323_v56 }
 0x2bd   : > { %1916 = vmatpush1.bf16.msra.mxu0 %v5321_v57 }
 0x2be   : > { %1917 = vmatprep.subr.bf16.mxu0 %v5326_v58 }
 0x2c1   : > { %1918 = vmatpush1.bf16.msra.mxu0 %v5324_v1 }
 0x2c2   : > { %1919 = vmatprep.subr.bf16.mxu0 %v5329_v8 }
 0x2c5   : > { %1920 = vmatpush1.bf16.msra.mxu0 %v5327_v59 }
 0x2c6   : > { %1921 = vmatprep.subr.bf16.mxu0 %v5332_v60 }
 0x2c9   : > { %1922 = vmatpush1.bf16.msra.mxu0 %v5330_v61 }
 0x2ca   : > { %1923 = vmatprep.subr.bf16.mxu0 %v5335_v22 }
 0x2cd   : > { %1924 = vmatpush1.bf16.msra.mxu0 %v5333_v2 }
 0x2ce   : > { %1925 = vmatprep.subr.bf16.mxu0 %v5338_v62 }
 0x2d1   : > { %1926 = vmatpush1.bf16.msra.mxu0 %v5336_v63 }
 0x2d2   : > { %4904 = vmatprep.subr.bf16.mxu0 %v5347_v4 }
 0x2d4   : > { %1944 = vmatmul.mubr.bf16.vlgmr.msra.gmra.mrb[0].mxu0 %v1813_v3 }
 0x2d5   : > { %4905 = vmatpush3.bf16.msra.mxu0 %v5348_v5 }
 0x2d6   : > { %4906 = vmatprep.subr.bf16.mxu0 %v5351_v9  ;;  %v1995_v9 = vlaneseq }
 0x2d9   : > { %4907 = vmatpush3.bf16.msra.mxu0 %v5352_v10 }
 0x2da   : > { %4908 = vmatprep.subr.bf16.mxu0 %v5355_v11  ;;  %v1996_v11 = vshrl.u32 %v1995_v9, 7  ;;  %v5380_v9 = vld [vmem:[%s6342_s15] sm:$0xff]  }
 0x2dc   : > { %v1997_v13 = vsub.s32 0, %v1996_v11 }
 0x2dd   : > { %4909 = vmatpush3.bf16.msra.mxu0 %v5356_v12  ;;  %v6463_v12 = vpop.permute.xlu1 %2180 }
 0x2de   : > { %4910 = vmatprep.subr.bf16.mxu0 %v5359_v15  ;;  %v2001_v15 = vsub.s32 1, %v1996_v11  ;;  %v1998_v18 = vrot.slane %v1954_v14, %v1997_v13  ;;  %v5382_v11 = vld [vmem:[%s6342_s15 + $0x8] sm:$0xff]  }
 0x2e1   : > { %4911 = vmatpush3.bf16.msra.mxu0 %v5360_v16  ;;  %v1955_v16 = vld [vmem:[#allocation7] sm:$0x3]  ;;  %v6465_v17 = vpop.permute.xlu1 %2560 }
 0x2e2   : > { %4912 = vmatprep.subr.bf16.mxu0 %v5363_v19  ;;  %v2015_v26 = vrot.slane %v1955_v16, %v2001_v15 }
 0x2e5   : > { %4913 = vmatpush3.bf16.msra.mxu0 %v5364_v20  ;;  %v2002_v20 = vrot.slane %v1954_v14, %v2001_v15  ;;  %v5384_v14 = vld [vmem:[%s6342_s15 + $0x10] sm:$0xff]   ;;  %v5385_v15 = vld [vmem:[%s6342_s15 + $0x58] sm:$0xff]  }
 0x2e6   : > { %4914 = vmatprep.subr.bf16.mxu0 %v5367_v24  ;;  %v2011_v24 = vrot.slane %v1955_v16, %v1997_v13  ;;  %v5383_v13 = vld [vmem:[%s6342_s15 + $0x50] sm:$0xff]  }
 0x2e9   : > { %4915 = vmatpush3.bf16.msra.mxu0 %v5368_v25 }
 0x2ea   : > { %4916 = vmatprep.subr.bf16.mxu0 %v5371_v28 }
 0x2ed   : > { %4917 = vmatpush3.bf16.msra.mxu0 %v5372_v29  ;;  %v6467_v29 = vpop.permute.xlu1 %3132 }
 0x2ee   : > { %4918 = vmatprep.subr.bf16.mxu0 %v5375_v32 }
 0x2f1   : > { %4919 = vmatpush3.bf16.msra.mxu0 %v5376_v33  ;;  %v6469_v36 = vpop.permute.xlu1 %3319 }
 0x2f9   : > { %v6478_v16 = vpop.f32.mrb[0].mxu1 }
 0x3a7   : > { %v1945_v37 = vpop.f32.mrb[0].mxu0 }
 0x3a8   : > { %v1956_v38 = vrot.slane %v1945_v37, 4  ;;  %v1947_v39 = vpop.f32.mrb[1].mxu0 }
 0x3a9   : > { %v1962_v40 = vrot.slane %v1947_v39, 4  ;;  %v1949_v41 = vpop.f32.mrb[2].mxu0 }
 0x3aa   : > { %v1957_v42 = vadd.f32 %v1956_v38, %v1945_v37  ;;  %v1950_v43 = vpop.f32.mrb[3].mxu0  ;;  %v3714_v38 = vpop.permute.xlu1 %3713 }
 0x3ab   : > { %v1963_v45 = vadd.f32 %v1962_v40, %v1947_v39  ;;  %v3715_v40 = vrot.slane %v3714_v38, 2  ;;  %v5394_v38 = vld [vmem:[%s6342_s15 + $0x38] sm:$0xff]  }
 0x3ac   : > { %v1958_v46 = vrot.slane %v1957_v42, 2 }
 0x3ad   : > { %v1964_v47 = vrot.slane %v1963_v45, 2 }
 0x3ae   : > { %v1959_v48 = vadd.f32 %v1958_v46, %v1957_v42 }
 0x3af   : > { %v1965_v49 = vadd.f32 %v1964_v47, %v1963_v45 }
 0x3b0   : > { %v1960_v51 = vrot.slane %v1959_v48, 1 }
 0x3b1   : > { %v1966_v52 = vrot.slane %v1965_v49, 1 }
 0x3b2   : > { %v1961_v53 = vadd.f32 %v1960_v51, %v1959_v48 }
 0x3b3   : > { %v1967_v54 = vadd.f32 %v1966_v52, %v1965_v49 }
 0x3b4   : > { %v1968_v55 = vmul.f32 0.125, %v1961_v53 }
 0x3b5   : > { %v1969_v56 = vmul.f32 0.125, %v1967_v54 }
 0x3b6   : > { %v1970_v57 = vsub.f32 %v1945_v37, %v1968_v55  ;;  %v2225_v37 = vpop.permute.xlu0 %2224 }
 0x3b7   : > { %v1971_v58 = vsub.f32 %v1947_v39, %v1969_v56  ;;  %v2226_v39 = vrot.slane %v2225_v37, 7 }
 0x3b8   : > { %v1972_v1 = vmul.f32 %v1970_v57, %v1970_v57 }
 0x3b9   : > { %v1973_v8 = vmul.f32 %v1971_v58, %v1971_v58 }
 0x3ba   : > { %v1974_v59 = vrot.slane %v1972_v1, 4 }
 0x3bb   : > { %v1980_v60 = vrot.slane %v1973_v8, 4 }
 0x3bc   : > { %v1975_v61 = vadd.f32 %v1974_v59, %v1972_v1 }
 0x3bd   : > { %v1981_v22 = vadd.f32 %v1980_v60, %v1973_v8 }
 0x3be   : > { %v1976_v2 = vrot.slane %v1975_v61, 2 }
 0x3bf   : > { %v1982_v62 = vrot.slane %v1981_v22, 2 }
 0x3c0   : > { %v1977_v63 = vadd.f32 %v1976_v2, %v1975_v61 }
 0x3c1   : > { %v1983_v0 = vadd.f32 %v1982_v62, %v1981_v22 }
 0x3c2   : > { %v1978_v3 = vrot.slane %v1977_v63, 1 }
 0x3c3   : > { %v1984_v4 = vrot.slane %v1983_v0, 1 }
 0x3c4   : > { %v1979_v5 = vadd.f32 %v1978_v3, %v1977_v63 }
 0x3c5   : > { %v1985_v6 = vadd.f32 %v1984_v4, %v1983_v0 }
 0x3c6   : > { %v1986_v7 = vmul.f32 0.125, %v1979_v5 }
 0x3c7   : > { %v1987_v10 = vmul.f32 0.125, %v1985_v6 }
 0x3c8   : > { %v1988_v50 = vadd.f32 1e-05, %v1986_v7 }
 0x3c9   : > { %v1989_v44 = vadd.f32 1e-05, %v1987_v10 }
 0x3ca   : > { %5491 = vrsqrt.f32 %v1988_v50  ;;  %v5381_v50 = vld [vmem:[%s6342_s15 + $0x48] sm:$0xff]  }
 0x3cb   : > { %5493 = vrsqrt.f32 %v1989_v44 }
 0x3d4   : > { %v5492_v19 = vpop.eup %5491 }
 0x3d5   : > { %v5494_v21 = vpop.eup %5493  ;;  %v1992_v23 = vmul.f32 %v5492_v19, %v1970_v57 }
 0x3d6   : > { %v1993_v25 = vmul.f32 %v5494_v21, %v1971_v58 }
 0x3d7   : > { %v2005_v27 = vmul.f32 %v1998_v18, %v1992_v23  ;;  %v4944_v18 = vpop.f32.mrb[1].mxu1  ;;  %v5387_v23 = vld [vmem:[%s6342_s15 + $0x60] sm:$0xff]  }
 0x3d8   : > { %v2006_v28 = vmul.f32 %v2002_v20, %v1993_v25  ;;  %v2123_v19 = vpop.f32.mrb[2].mxu1  ;;  %v5386_v20 = vld [vmem:[%s6342_s15 + $0x18] sm:$0xff]   ;;  %v5389_v25 = vld [vmem:[%s6342_s15 + $0x68] sm:$0xff]  }
 0x3d9   : > { %v2018_v30 = vadd.f32 %v2011_v24, %v2005_v27  ;;  %v4945_v21 = vpop.f32.mrb[3].mxu1  ;;  %v5388_v24 = vld [vmem:[%s6342_s15 + $0x20] sm:$0xff]   ;;  %v5391_v27 = vld [vmem:[%s6342_s15 + $0x70] sm:$0xff]  }
 0x3da   : > { %v2019_v31 = vadd.f32 %v2015_v26, %v2006_v28  ;;  %v5390_v26 = vld [vmem:[%s6342_s15 + $0x28] sm:$0xff]   ;;  %v2562_v28 = vrot.slane %v6465_v17, 6  ;;  %v5395_v17 = vld [vmem:[%s6342_s15 + $0x140] sm:$0xff]   ;;  %v5423_v21 = vld [vmem:[%s6342_s15 + $0x1f0] sm:$0xff]  }
 0x3db   : > { %v2020_v32 = vmax.f32 %v2018_v30, 0.0 }
 0x3dc   : > { %v2021_v33 = vmax.f32 %v2019_v31, 0.0 }
 0x3dd   : > { %v2165_v34 = vrot.slane %v2020_v32, 5  ;;  %v5392_v32 = vld [vmem:[%s6342_s15 + $0x30] sm:$0xff]  }
 0x3de   : > { %v2166_v35 = vrot.slane %v2021_v33, 5  ;;  %v5393_v33 = vld [vmem:[%s6342_s15 + $0x78] sm:$0xff]  }
 0x3df   : > { %2169 = vst [vmem:[#allocation2] sm:$0xf8] %v2165_v34  ;;  %2171 = vst [vmem:[#allocation2 + $0x10] sm:$0x7] %v2165_v34 }
 0x3e0   : > { %2170 = vst [vmem:[#allocation2 + $0x8] sm:$0xf8] %v2166_v35  ;;  %2172 = vst [vmem:[#allocation2 + $0x18] sm:$0x7] %v2166_v35 }
 0x3e6   : > { %v2219_v41 = vld [vmem:[#allocation2] sm:$0xfe]  ;;  %v2221_v43 = vld [vmem:[#allocation2 + $0x10] sm:$0x1] }
 0x3e7   : > { %v2220_v42 = vld [vmem:[#allocation2 + $0x8] sm:$0xfe]  ;;  %v2222_v45 = vld [vmem:[#allocation2 + $0x18] sm:$0x1]  ;;  %v2228_v46 = vmul.f32 %v2226_v39, %v2219_v41  ;;  %v2230_v48 = vmul.f32 %v2226_v39, %v2221_v43  ;;  %v3708_v49 = vld [vmem:[#allocation2] sm:$0xc0] }
 0x3e8   : > { %v2229_v47 = vmul.f32 %v2226_v39, %v2220_v42  ;;  %v3710_v51 = vld [vmem:[#allocation2 + $0x10] sm:$0x3f]  ;;  %v2231_v52 = vmul.f32 %v2226_v39, %v2222_v45  ;;  %v3717_v54 = vmul.f32 %v3715_v40, %v3708_v49  ;;  %v3709_v56 = vld [vmem:[#allocation2 + $0x8] sm:$0xc0]  ;;  %v3711_v57 = vld [vmem:[#allocation2 + $0x18] sm:$0x3f] }
 0x3e9   : > { %v2232_v53 = vpack.c.bf16 %v2230_v48, %v2228_v46  ;;  %v3719_v55 = vmul.f32 %v3715_v40, %v3710_v51  ;;  %v3718_v58 = vmul.f32 %v3715_v40, %v3709_v56  ;;  %v3720_v1 = vmul.f32 %v3715_v40, %v3711_v57  ;;  %v2176_v59 = vld [vmem:[#allocation2 + $0x8] sm:$0xff]  ;;  %v2558_v31 = vld [vmem:[#allocation2 + $0x18] sm:$0x3]  ;;  %v2175_v34 = vld [vmem:[#allocation2] sm:$0xff] }
 0x3ea   : > { %v2233_v8 = vpack.c.bf16 %v2231_v52, %v2229_v47  ;;  %v2184_v63 = vmul.f32 %v6463_v12, %v2176_v59  ;;  %v2556_v30 = vld [vmem:[#allocation2 + $0x8] sm:$0xfc]  ;;  %v2567_v37 = vmul.f32 %v2562_v28, %v2558_v31  ;;  %v2183_v39 = vmul.f32 %v6463_v12, %v2175_v34  ;;  %v5397_v43 = vld [vmem:[%s6342_s15 + $0x148] sm:$0xff]   ;;  %v5399_v12 = vld [vmem:[%s6342_s15 + $0x150] sm:$0xff]  }
 0x3eb   : > { %v3721_v60 = vpack.c.bf16 %v3719_v55, %v3717_v54  ;;  %v2270_v61 = vshll.u32 %v2232_v53, 16  ;;  %v3722_v22 = vpack.c.bf16 %v3720_v1, %v3718_v58  ;;  %v2268_v6 = vshrl.u32 %v2232_v53, 16  ;;  %v5396_v41 = vld [vmem:[%s6342_s15 + $0x100] sm:$0xff]   ;;  %v5398_v46 = vld [vmem:[%s6342_s15 + $0x108] sm:$0xff]   ;;  %v5400_v47 = vld [vmem:[%s6342_s15 + $0x110] sm:$0xff]   ;;  %v2748_v55 = vpop.permute.xlu0 %2747 }
 0x3ec   : > { %v2277_v2 = vshll.u32 %v2233_v8, 16  ;;  %v2275_v3 = vshrl.u32 %v2233_v8, 16  ;;  %v2186_v44 = vpack.c.bf16 %v2184_v63, %v2184_v63  ;;  %v2565_v35 = vmul.f32 %v2562_v28, %v2556_v30  ;;  %v5401_v48 = vld [vmem:[%s6342_s15 + $0x158] sm:$0xff]   ;;  %v5403_v51 = vld [vmem:[%s6342_s15 + $0x160] sm:$0xff]   ;;  %v5405_v53 = vld [vmem:[%s6342_s15 + $0x168] sm:$0xff]  }
 0x3ed   : > { %v2272_v62 = vrot.slane %v2270_v61, 1  ;;  %v3759_v0 = vrot.slane %v3722_v22, 3  ;;  %v3758_v5 = vrot.slane %v3721_v60, 3  ;;  %v2185_v42 = vpack.c.bf16 %v2183_v39, %v2183_v39  ;;  %v5402_v49 = vld [vmem:[%s6342_s15 + $0x118] sm:$0xff]   ;;  %v5404_v52 = vld [vmem:[%s6342_s15 + $0x120] sm:$0xff]   ;;  %v5406_v54 = vld [vmem:[%s6342_s15 + $0x128] sm:$0xff]  }
 0x3ee   : > { %v2279_v4 = vrot.slane %v2277_v2, 1  ;;  %v2569_v40 = vpack.c.bf16 %v2567_v37, %v2565_v35  ;;  %v5407_v56 = vld [vmem:[%s6342_s15 + $0x170] sm:$0xff]   ;;  %v2557_v58 = vld [vmem:[#allocation2 + $0x10] sm:$0x3]  ;;  %v2749_v1 = vrot.slane %v2748_v55, 6  ;;  %v5409_v61 = vld [vmem:[%s6342_s15 + $0x178] sm:$0xff]  }
 0x3ef   : > { %3890 = vmatprep.mubr.bf16.mxu0 %v3759_v0  ;;  %v2273_v10 = vor.u32 %v2272_v62, %v2268_v6  ;;  %v2555_v57 = vld [vmem:[#allocation2] sm:$0xfc]  ;;  %v2566_v60 = vmul.f32 %v2562_v28, %v2557_v58  ;;  %v5411_v0 = vld [vmem:[%s6342_s15 + $0x1c0] sm:$0xff]   ;;  %v5413_v6 = vld [vmem:[%s6342_s15 + $0x1c8] sm:$0xff]  }
 0x3f0   : > { %v2280_v7 = vor.u32 %v2279_v4, %v2275_v3  ;;  %3891 = vmatmul.mubr.bf16.vlgmr.msra.gmra.mrb[4].mxu0 %v3758_v5  ;;  %v2606_v45 = vrot.slane %v2569_v40, 1  ;;  %v5408_v8 = vld [vmem:[%s6342_s15 + $0x130] sm:$0xff]   ;;  %v2564_v59 = vmul.f32 %v2562_v28, %v2555_v57  ;;  %v2752_v22 = vmul.f32 %v2749_v1, %v2556_v30  ;;  %v5410_v62 = vld [vmem:[%s6342_s15 + $0x138] sm:$0xff]   ;;  %v5412_v4 = vld [vmem:[%s6342_s15 + $0x180] sm:$0xff]  }
 0x3f1   : > { %v2754_v2 = vmul.f32 %v2749_v1, %v2558_v31  ;;  %v2934_v18 = vld [vmem:[#allocation2 + $0x8] sm:$0xf8]  ;;  %v2936_v19 = vld [vmem:[#allocation2 + $0x18] sm:$0x7] }
 0x3f2   : > { %2411 = vmatprep.mubr.bf16.mxu1 %v2280_v7  ;;  %v2568_v63 = vpack.c.bf16 %v2566_v60, %v2564_v59  ;;  %v5426_v31 = vld [vmem:[%s6342_s15 + $0x1b8] sm:$0xff]   ;;  %v5428_v37 = vld [vmem:[%s6342_s15 + $0x200] sm:$0xff]   ;;  %v5429_v39 = vld [vmem:[%s6342_s15 + $0x248] sm:$0xff]  }
 0x3f3   : > { %2412 = vmatmul.mubr.bf16.vlgmr.msra.gmra.mrb[4].mxu1 %v2273_v10  ;;  %v2756_v3 = vpack.c.bf16 %v2754_v2, %v2752_v22  ;;  %v5415_v10 = vld [vmem:[%s6342_s15 + $0x1d0] sm:$0xff]   ;;  %v5430_v40 = vld [vmem:[%s6342_s15 + $0x208] sm:$0xff]   ;;  %v3128_v55 = vld [vmem:[#allocation2 + $0x8] sm:$0xf0] }
 0x3f4   : > { %4751 = vmatpush3.bf16.msra.mxu1 %v5380_v9  ;;  %2547 = vmatprep.mubr.bf16.mxu1 %v2186_v44  ;;  %v2605_v5 = vrot.slane %v2568_v63, 1  ;;  %v5414_v9 = vld [vmem:[%s6342_s15 + $0x188] sm:$0xff]   ;;  %v5417_v44 = vld [vmem:[%s6342_s15 + $0x1d8] sm:$0xff]   ;;  %v5443_v2 = vld [vmem:[%s6342_s15 + $0x2c0] sm:$0xff]  }
 0x3f5   : > { %4752 = vmatprep.subr.bf16.mxu1 %v5381_v50  ;;  %v2793_v7 = vrot.slane %v2756_v3, 1  ;;  %v5416_v50 = vld [vmem:[%s6342_s15 + $0x190] sm:$0xff]   ;;  %v5444_v63 = vld [vmem:[%s6342_s15 + $0x280] sm:$0xff]   ;;  %v5445_v3 = vld [vmem:[%s6342_s15 + $0x2c8] sm:$0xff]  }
 0x3f8   : > { %4753 = vmatpush3.bf16.msra.mxu1 %v5382_v11  ;;  %v5418_v11 = vld [vmem:[%s6342_s15 + $0x198] sm:$0xff]  }
 0x3f9   : > { %4754 = vmatprep.subr.bf16.mxu1 %v5383_v13  ;;  %v5419_v13 = vld [vmem:[%s6342_s15 + $0x1e0] sm:$0xff]  }
 0x3fc   : > { %4755 = vmatpush3.bf16.msra.mxu1 %v5384_v14  ;;  %v5420_v14 = vld [vmem:[%s6342_s15 + $0x1a0] sm:$0xff]  }
 0x3fd   : > { %4756 = vmatprep.subr.bf16.mxu1 %v5385_v15  ;;  %v5421_v15 = vld [vmem:[%s6342_s15 + $0x1e8] sm:$0xff]  }
 0x400   : > { %4757 = vmatpush3.bf16.msra.mxu1 %v5386_v20  ;;  %v5422_v20 = vld [vmem:[%s6342_s15 + $0x1a8] sm:$0xff]  }
 0x401   : > { %4758 = vmatprep.subr.bf16.mxu1 %v5387_v23  ;;  %v2938_v23 = vpack.c.bf16 %v2936_v19, %v2934_v18  ;;  %v3129_v18 = vld [vmem:[#allocation2 + $0x10] sm:$0xf]  ;;  %v3321_v19 = vrot.slane %v6469_v36, 4 }
 0x402   : > { %v5460_v36 = vld [vmem:[%s6342_s15 + $0x300] sm:$0xff]  }
 0x403   : > { %v2981_v28 = vshrl.u32 %v2938_v23, 16  ;;  %v2984_v30 = vshll.u32 %v2938_v23, 16 }
 0x404   : > { %4759 = vmatpush3.bf16.msra.mxu1 %v5388_v24  ;;  %v5424_v24 = vld [vmem:[%s6342_s15 + $0x1b0] sm:$0xff]  }
 0x405   : > { %4760 = vmatprep.subr.bf16.mxu1 %v5389_v25  ;;  %v2751_v25 = vmul.f32 %v2749_v1, %v2555_v57  ;;  %v2983_v34 = vrot.slane %v2981_v28, 1  ;;  %v2986_v35 = vrot.slane %v2984_v30, 2  ;;  %v5440_v57 = vld [vmem:[%s6342_s15 + $0x230] sm:$0xff]   ;;  %v5459_v30 = vld [vmem:[%s6342_s15 + $0x340] sm:$0xff]  }
 0x408   : > { %4761 = vmatpush3.bf16.msra.mxu1 %v5390_v26  ;;  %v2753_v26 = vmul.f32 %v2749_v1, %v2557_v58  ;;  %v5441_v58 = vld [vmem:[%s6342_s15 + $0x278] sm:$0xff]  }
 0x409   : > { %4762 = vmatprep.subr.bf16.mxu1 %v5391_v27  ;;  %v5425_v27 = vld [vmem:[%s6342_s15 + $0x1f8] sm:$0xff]  }
 0x40c   : > { %4763 = vmatpush3.bf16.msra.mxu1 %v5392_v32  ;;  %v2755_v32 = vpack.c.bf16 %v2753_v26, %v2751_v25  ;;  %v3324_v25 = vmul.f32 %v3321_v19, %v3128_v55 }
 0x40d   : > { %4764 = vmatprep.subr.bf16.mxu1 %v5393_v33  ;;  %v5427_v33 = vld [vmem:[%s6342_s15 + $0x240] sm:$0xff]  }
 0x410   : > { %4765 = vmatpush3.bf16.msra.mxu1 %v5394_v38  ;;  %v2792_v38 = vrot.slane %v2755_v32, 1 }
 0x411   : > { %4772 = vmatprep.subr.bf16.mxu1 %v5395_v17  ;;  %v2987_v17 = vor.u32 %v2986_v35, %v2983_v34  ;;  %v5462_v35 = vld [vmem:[%s6342_s15 + $0x308] sm:$0xff]  }
 0x413   : > { %2548 = vmatmul.mubr.bf16.vlgmr.msra.gmra.mrb[8].mxu1 %v2185_v42  ;;  %v5432_v42 = vld [vmem:[%s6342_s15 + $0x210] sm:$0xff]  }
 0x414   : > { %4773 = vmatpush3.bf16.msra.mxu1 %v5396_v41  ;;  %2737 = vmatprep.mubr.bf16.mxu1 %v2606_v45  ;;  %v5431_v41 = vld [vmem:[%s6342_s15 + $0x250] sm:$0xff]   ;;  %v5434_v45 = vld [vmem:[%s6342_s15 + $0x218] sm:$0xff]  }
 0x415   : > { %4774 = vmatprep.subr.bf16.mxu1 %v5397_v43  ;;  %v5433_v43 = vld [vmem:[%s6342_s15 + $0x258] sm:$0xff]  }
 0x418   : > { %4775 = vmatpush3.bf16.msra.mxu1 %v5398_v46  ;;  %v5435_v46 = vld [vmem:[%s6342_s15 + $0x260] sm:$0xff]  }
 0x419   : > { %4776 = vmatprep.subr.bf16.mxu1 %v5399_v12  ;;  %v5436_v12 = vld [vmem:[%s6342_s15 + $0x220] sm:$0xff]  }
 0x41c   : > { %4777 = vmatpush3.bf16.msra.mxu1 %v5400_v47  ;;  %v5437_v47 = vld [vmem:[%s6342_s15 + $0x268] sm:$0xff]  }
 0x41d   : > { %4778 = vmatprep.subr.bf16.mxu1 %v5401_v48  ;;  %v2933_v48 = vld [vmem:[#allocation2] sm:$0xf8] }
 0x420   : > { %4779 = vmatpush3.bf16.msra.mxu1 %v5402_v49  ;;  %v2935_v49 = vld [vmem:[#allocation2 + $0x10] sm:$0x7] }
 0x421   : > { %4780 = vmatprep.subr.bf16.mxu1 %v5403_v51  ;;  %v5438_v51 = vld [vmem:[%s6342_s15 + $0x228] sm:$0xff]  }
 0x424   : > { %4781 = vmatpush3.bf16.msra.mxu1 %v5404_v52  ;;  %v5439_v52 = vld [vmem:[%s6342_s15 + $0x270] sm:$0xff]  }
 0x425   : > { %4782 = vmatprep.subr.bf16.mxu1 %v5405_v53  ;;  %v2937_v53 = vpack.c.bf16 %v2935_v49, %v2933_v48  ;;  %v5470_v49 = vld [vmem:[%s6342_s15 + $0x328] sm:$0xff]  }
 0x427   : > { %v2973_v1 = vshrl.u32 %v2937_v53, 16 }
 0x428   : > { %4783 = vmatpush3.bf16.msra.mxu1 %v5406_v54  ;;  %v3134_v54 = vrot.slane %v6467_v29, 4 }
 0x429   : > { %4784 = vmatprep.subr.bf16.mxu1 %v5407_v56  ;;  %v3130_v56 = vld [vmem:[#allocation2 + $0x18] sm:$0xf]  ;;  %v2975_v22 = vrot.slane %v2973_v1, 1  ;;  %v5474_v1 = vld [vmem:[%s6342_s15 + $0x338] sm:$0xff]  }
 0x42a   : > { %v3137_v59 = vmul.f32 %v3134_v54, %v3128_v55  ;;  %v3139_v60 = vmul.f32 %v3134_v54, %v3130_v56  ;;  %v3138_v23 = vmul.f32 %v3134_v54, %v3129_v18  ;;  %v3326_v26 = vmul.f32 %v3321_v19, %v3130_v56  ;;  %v5473_v56 = vld [vmem:[%s6342_s15 + $0x378] sm:$0xff]  }
 0x42b   : > { %v3325_v55 = vmul.f32 %v3321_v19, %v3129_v18 }
 0x42c   : > { %4785 = vmatpush3.bf16.msra.mxu1 %v5408_v8  ;;  %v2976_v8 = vshll.u32 %v2937_v53, 16  ;;  %v5472_v53 = vld [vmem:[%s6342_s15 + $0x330] sm:$0xff]  }
 0x42d   : > { %4786 = vmatprep.subr.bf16.mxu1 %v5409_v61  ;;  %v5442_v61 = vld [vmem:[%s6342_s15 + $0x238] sm:$0xff]  }
 0x42e   : > { %v2978_v29 = vrot.slane %v2976_v8, 2 }
 0x430   : > { %4787 = vmatpush3.bf16.msra.mxu1 %v5410_v62  ;;  %v3141_v62 = vpack.c.bf16 %v3139_v60, %v3137_v59  ;;  %v5475_v59 = vld [vmem:[%s6342_s15 + $0x3c0] sm:$0xff]  }
 0x431   : > { %4794 = vmatprep.subr.bf16.mxu1 %v5411_v0  ;;  %v2979_v0 = vor.u32 %v2978_v29, %v2975_v22  ;;  %v5476_v22 = vld [vmem:[%s6342_s15 + $0x380] sm:$0xff]  }
 0x433   : > { %2738 = vmatmul.mubr.bf16.vlgmr.msra.gmra.mrb[12].mxu1 %v2605_v5  ;;  %v5446_v5 = vld [vmem:[%s6342_s15 + $0x288] sm:$0xff]  }
 0x434   : > { %4795 = vmatpush3.bf16.msra.mxu1 %v5412_v4  ;;  %2924 = vmatprep.mubr.bf16.mxu1 %v2793_v7  ;;  %v3178_v4 = vrot.slane %v3141_v62, 2  ;;  %v5448_v7 = vld [vmem:[%s6342_s15 + $0x290] sm:$0xff]  }
 0x435   : > { %4796 = vmatprep.subr.bf16.mxu1 %v5413_v6  ;;  %v5447_v6 = vld [vmem:[%s6342_s15 + $0x2d0] sm:$0xff]  }
 0x438   : > { %4797 = vmatpush3.bf16.msra.mxu1 %v5414_v9  ;;  %v5449_v9 = vld [vmem:[%s6342_s15 + $0x2d8] sm:$0xff]  }
 0x439   : > { %4798 = vmatprep.subr.bf16.mxu1 %v5415_v10  ;;  %v5450_v10 = vld [vmem:[%s6342_s15 + $0x298] sm:$0xff]  }
 0x43c   : > { %4799 = vmatpush3.bf16.msra.mxu1 %v5416_v50  ;;  %v5451_v50 = vld [vmem:[%s6342_s15 + $0x2e0] sm:$0xff]  }
 0x43d   : > { %4800 = vmatprep.subr.bf16.mxu1 %v5417_v44  ;;  %v5452_v44 = vld [vmem:[%s6342_s15 + $0x2a0] sm:$0xff]  }
 0x440   : > { %4801 = vmatpush3.bf16.msra.mxu1 %v5418_v11  ;;  %v5453_v11 = vld [vmem:[%s6342_s15 + $0x2e8] sm:$0xff]  }
 0x441   : > { %4802 = vmatprep.subr.bf16.mxu1 %v5419_v13  ;;  %v5454_v13 = vld [vmem:[%s6342_s15 + $0x2a8] sm:$0xff]  }
 0x444   : > { %4803 = vmatpush3.bf16.msra.mxu1 %v5420_v14  ;;  %v5455_v14 = vld [vmem:[%s6342_s15 + $0x2f0] sm:$0xff]  }
 0x445   : > { %4804 = vmatprep.subr.bf16.mxu1 %v5421_v15  ;;  %v3127_v15 = vld [vmem:[#allocation2] sm:$0xf0] }
 0x448   : > { %4805 = vmatpush3.bf16.msra.mxu1 %v5422_v20  ;;  %v5456_v20 = vld [vmem:[%s6342_s15 + $0x2b0] sm:$0xff]  }
 0x449   : > { %4806 = vmatprep.subr.bf16.mxu1 %v5423_v21  ;;  %v3136_v21 = vmul.f32 %v3134_v54, %v3127_v15  ;;  %v3323_v54 = vmul.f32 %v3321_v19, %v3127_v15  ;;  %v5487_v19 = vld [vmem:[%s6342_s15 + $0x3f0] sm:$0xff]  }
 0x44b   : > { %v3140_v28 = vpack.c.bf16 %v3138_v23, %v3136_v21  ;;  %v3327_v8 = vpack.c.bf16 %v3325_v55, %v3323_v54 }
 0x44c   : > { %4807 = vmatpush3.bf16.msra.mxu1 %v5424_v24  ;;  %v5457_v24 = vld [vmem:[%s6342_s15 + $0x2f8] sm:$0xff]  }
 0x44d   : > { %4808 = vmatprep.subr.bf16.mxu1 %v5425_v27  ;;  %v5458_v27 = vld [vmem:[%s6342_s15 + $0x2b8] sm:$0xff]   ;;  %v3177_v32 = vrot.slane %v3140_v28, 2  ;;  %v3364_v29 = vrot.slane %v3327_v8, 2  ;;  %v5488_v28 = vld [vmem:[%s6342_s15 + $0x3b0] sm:$0xff]  }
 0x450   : > { %4809 = vmatpush3.bf16.msra.mxu1 %v5426_v31  ;;  %v3328_v31 = vpack.c.bf16 %v3326_v26, %v3324_v25 }
 0x451   : > { %4816 = vmatprep.subr.bf16.mxu1 %v5427_v33  ;;  %v5461_v33 = vld [vmem:[%s6342_s15 + $0x348] sm:$0xff]  }
 0x452   : > { %v3365_v34 = vrot.slane %v3328_v31, 2  ;;  %v5489_v31 = vld [vmem:[%s6342_s15 + $0x3f8] sm:$0xff]  }
 0x453   : > { %2925 = vmatmul.mubr.bf16.vlgmr.msra.gmra.mrb[16].mxu1 %v2792_v38  ;;  %v5464_v38 = vld [vmem:[%s6342_s15 + $0x310] sm:$0xff]  }
 0x454   : > { %4817 = vmatpush3.bf16.msra.mxu1 %v5428_v37  ;;  %3118 = vmatprep.mubr.bf16.mxu1 %v2987_v17  ;;  %v5463_v37 = vld [vmem:[%s6342_s15 + $0x350] sm:$0xff]   ;;  %v3511_v17 = vpop.permute.xlu0 %3510 }
 0x455   : > { %4818 = vmatprep.subr.bf16.mxu1 %v5429_v39  ;;  %v5465_v39 = vld [vmem:[%s6342_s15 + $0x358] sm:$0xff]  }
 0x458   : > { %4819 = vmatpush3.bf16.msra.mxu1 %v5430_v40  ;;  %v5466_v40 = vld [vmem:[%s6342_s15 + $0x318] sm:$0xff]  }
 0x459   : > { %4820 = vmatprep.subr.bf16.mxu1 %v5431_v41  ;;  %v5467_v41 = vld [vmem:[%s6342_s15 + $0x360] sm:$0xff]  }
 0x45c   : > { %4821 = vmatpush3.bf16.msra.mxu1 %v5432_v42  ;;  %v3512_v42 = vrot.slane %v3511_v17, 3 }
 0x45d   : > { %4822 = vmatprep.subr.bf16.mxu1 %v5433_v43  ;;  %v3506_v43 = vld [vmem:[#allocation2 + $0x8] sm:$0xe0] }
 0x460   : > { %4823 = vmatpush3.bf16.msra.mxu1 %v5434_v45  ;;  %v3508_v45 = vld [vmem:[#allocation2 + $0x18] sm:$0x1f] }
 0x461   : > { %4824 = vmatprep.subr.bf16.mxu1 %v5435_v46  ;;  %v5468_v46 = vld [vmem:[%s6342_s15 + $0x320] sm:$0xff]   ;;  %v3517_v48 = vmul.f32 %v3512_v42, %v3508_v45 }
 0x464   : > { %4825 = vmatpush3.bf16.msra.mxu1 %v5436_v12  ;;  %v5469_v12 = vld [vmem:[%s6342_s15 + $0x368] sm:$0xff]  }
 0x465   : > { %4826 = vmatprep.subr.bf16.mxu1 %v5437_v47  ;;  %v3515_v47 = vmul.f32 %v3512_v42, %v3506_v43 }
 0x468   : > { %4827 = vmatpush3.bf16.msra.mxu1 %v5438_v51  ;;  %v5471_v51 = vld [vmem:[%s6342_s15 + $0x370] sm:$0xff]  }
 0x469   : > { %4828 = vmatprep.subr.bf16.mxu1 %v5439_v52  ;;  %v3519_v52 = vpack.c.bf16 %v3517_v48, %v3515_v47 }
 0x46c   : > { %4829 = vmatpush3.bf16.msra.mxu1 %v5440_v57  ;;  %v3562_v57 = vshrl.u32 %v3519_v52, 16 }
 0x46d   : > { %4830 = vmatprep.subr.bf16.mxu1 %v5441_v58  ;;  %v3565_v58 = vshll.u32 %v3519_v52, 16 }
 0x46e   : > { %v3564_v60 = vrot.slane %v3562_v57, 2 }
 0x470   : > { %4831 = vmatpush3.bf16.msra.mxu1 %v5442_v61  ;;  %v3567_v61 = vrot.slane %v3565_v58, 3 }
 0x471   : > { %4838 = vmatprep.subr.bf16.mxu1 %v5443_v2  ;;  %v5477_v2 = vld [vmem:[%s6342_s15 + $0x3c8] sm:$0xff]  }
 0x472   : > { %v3568_v62 = vor.u32 %v3567_v61, %v3564_v60 }
 0x473   : > { %3119 = vmatmul.mubr.bf16.vlgmr.msra.gmra.mrb[20].mxu1 %v2979_v0  ;;  %v5479_v0 = vld [vmem:[%s6342_s15 + $0x3d0] sm:$0xff]  }
 0x474   : > { %4839 = vmatpush3.bf16.msra.mxu1 %v5444_v63  ;;  %3309 = vmatprep.mubr.bf16.mxu1 %v3178_v4  ;;  %v5478_v63 = vld [vmem:[%s6342_s15 + $0x388] sm:$0xff]   ;;  %v5481_v4 = vld [vmem:[%s6342_s15 + $0x3d8] sm:$0xff]  }
 0x475   : > { %4840 = vmatprep.subr.bf16.mxu1 %v5445_v3  ;;  %v5480_v3 = vld [vmem:[%s6342_s15 + $0x390] sm:$0xff]  }
 0x478   : > { %4841 = vmatpush3.bf16.msra.mxu1 %v5446_v5  ;;  %v5482_v5 = vld [vmem:[%s6342_s15 + $0x398] sm:$0xff]  }
 0x479   : > { %4842 = vmatprep.subr.bf16.mxu1 %v5447_v6  ;;  %v5483_v6 = vld [vmem:[%s6342_s15 + $0x3e0] sm:$0xff]  }
 0x47c   : > { %4843 = vmatpush3.bf16.msra.mxu1 %v5448_v7  ;;  %v3505_v7 = vld [vmem:[#allocation2] sm:$0xe0] }
 0x47d   : > { %4844 = vmatprep.subr.bf16.mxu1 %v5449_v9  ;;  %v3507_v9 = vld [vmem:[#allocation2 + $0x10] sm:$0x1f] }
 0x480   : > { %4845 = vmatpush3.bf16.msra.mxu1 %v5450_v10  ;;  %v5484_v10 = vld [vmem:[%s6342_s15 + $0x3a0] sm:$0xff]  }
 0x481   : > { %4846 = vmatprep.subr.bf16.mxu1 %v5451_v50  ;;  %v3514_v50 = vmul.f32 %v3512_v42, %v3505_v7 }
 0x484   : > { %4847 = vmatpush3.bf16.msra.mxu1 %v5452_v44  ;;  %v3516_v44 = vmul.f32 %v3512_v42, %v3507_v9 }
 0x485   : > { %4848 = vmatprep.subr.bf16.mxu1 %v5453_v11  ;;  %v5485_v11 = vld [vmem:[%s6342_s15 + $0x3e8] sm:$0xff]  }
 0x486   : > { %v3518_v15 = vpack.c.bf16 %v3516_v44, %v3514_v50 }
 0x488   : > { %4849 = vmatpush3.bf16.msra.mxu1 %v5454_v13 }
 0x489   : > { %4850 = vmatprep.subr.bf16.mxu1 %v5455_v14  ;;  %v5486_v14 = vld [vmem:[%s6342_s15 + $0x3a8] sm:$0xff]  }
 0x48c   : > { %4851 = vmatpush3.bf16.msra.mxu1 %v5456_v20 }
 0x48d   : > { %4852 = vmatprep.subr.bf16.mxu1 %v5457_v24 }
 0x490   : > { %4853 = vmatpush3.bf16.msra.mxu1 %v5458_v27 }
 0x491   : > { %4860 = vmatprep.subr.bf16.mxu1 %v5459_v30 }
 0x493   : > { %3310 = vmatmul.mubr.bf16.vlgmr.msra.gmra.mrb[24].mxu1 %v3177_v32  ;;  %v3557_v32 = vshll.u32 %v3518_v15, 16 }
 0x494   : > { %4861 = vmatpush3.bf16.msra.mxu1 %v5460_v36  ;;  %3496 = vmatprep.mubr.bf16.mxu1 %v3365_v34  ;;  %v3554_v36 = vshrl.u32 %v3518_v15, 16 }
 0x495   : > { %4862 = vmatprep.subr.bf16.mxu1 %v5461_v33  ;;  %v5490_v33 = vld [vmem:[%s6342_s15 + $0x3b8] sm:$0xff]   ;;  %s580_s15 = scalar_lea.vmem [#allocation15], %s6339_s28 }
 0x496   : > { %v3556_v34 = vrot.slane %v3554_v36, 2 }
 0x498   : > { %4863 = vmatpush3.bf16.msra.mxu1 %v5462_v35  ;;  %v3559_v35 = vrot.slane %v3557_v32, 3 }
 0x499   : > { %4864 = vmatprep.subr.bf16.mxu1 %v5463_v37 }
 0x49a   : > { %v3560_v37 = vor.u32 %v3559_v35, %v3556_v34 }
 0x49c   : > { %4865 = vmatpush3.bf16.msra.mxu1 %v5464_v38 }
 0x49d   : > { %4866 = vmatprep.subr.bf16.mxu1 %v5465_v39 }
 0x4a0   : > { %4867 = vmatpush3.bf16.msra.mxu1 %v5466_v40 }
 0x4a1   : > { %4868 = vmatprep.subr.bf16.mxu1 %v5467_v41 }
 0x4a4   : > { %4869 = vmatpush3.bf16.msra.mxu1 %v5468_v46 }
 0x4a5   : > { %4870 = vmatprep.subr.bf16.mxu1 %v5469_v12 }
 0x4a8   : > { %4871 = vmatpush3.bf16.msra.mxu1 %v5470_v49 }
 0x4a9   : > { %4872 = vmatprep.subr.bf16.mxu1 %v5471_v51 }
 0x4ac   : > { %4873 = vmatpush3.bf16.msra.mxu1 %v5472_v53 }
 0x4ad   : > { %4874 = vmatprep.subr.bf16.mxu1 %v5473_v56 }
 0x4b0   : > { %4875 = vmatpush3.bf16.msra.mxu1 %v5474_v1 }
 0x4b1   : > { %4882 = vmatprep.subr.bf16.mxu1 %v5475_v59 }
 0x4b3   : > { %3497 = vmatmul.mubr.bf16.vlgmr.msra.gmra.mrb[28].mxu1 %v3364_v29 }
 0x4b4   : > { %4883 = vmatpush3.bf16.msra.mxu1 %v5476_v22  ;;  %3699 = vmatprep.mubr.bf16.mxu1 %v3568_v62 }
 0x4b5   : > { %4884 = vmatprep.subr.bf16.mxu1 %v5477_v2 }
 0x4b8   : > { %4885 = vmatpush3.bf16.msra.mxu1 %v5478_v63  ;;  %v2128_v63 = vrot.slane %v6478_v16, 4 }
 0x4b9   : > { %4886 = vmatprep.subr.bf16.mxu1 %v5479_v0 }
 0x4ba   : > { %v2129_v7 = vadd.f32 %v2128_v63, %v6478_v16 }
 0x4bc   : > { %4887 = vmatpush3.bf16.msra.mxu1 %v5480_v3 }
 0x4bd   : > { %4888 = vmatprep.subr.bf16.mxu1 %v5481_v4 }
 0x4c0   : > { %4889 = vmatpush3.bf16.msra.mxu1 %v5482_v5 }
 0x4c1   : > { %4890 = vmatprep.subr.bf16.mxu1 %v5483_v6 }
 0x4c3   : > { %v4920_v13 = vpop.f32.mrb[4].mxu0 }
 0x4c4   : > { %4891 = vmatpush3.bf16.msra.mxu1 %v5484_v10  ;;  %v4921_v18 = vpop.f32.mrb[5].mxu0  ;;  %v2130_v10 = vrot.slane %v2129_v7, 2 }
 0x4c5   : > { %4892 = vmatprep.subr.bf16.mxu1 %v5485_v11  ;;  %v6586_v20 = vadd.f32 %v4921_v18, %v4920_v13  ;;  %v4923_v21 = vpop.f32.mrb[6].mxu0 }
 0x4c6   : > { %v4744_v23 = vpop.f32.mrb[4].mxu1  ;;  %v4924_v24 = vpop.f32.mrb[7].mxu0  ;;  %v2131_v50 = vadd.f32 %v2130_v10, %v2129_v7 }
 0x4c7   : > { %v4745_v25 = vpop.f32.mrb[5].mxu1 }
 0x4c8   : > { %v4746_v26 = vadd.f32 %v4745_v25, %v4744_v23  ;;  %4893 = vmatpush3.bf16.msra.mxu1 %v5486_v14  ;;  %v4747_v27 = vpop.f32.mrb[6].mxu1  ;;  %v2132_v44 = vrot.slane %v2131_v50, 1 }
 0x4c9   : > { %v4748_v30 = vpop.f32.mrb[7].mxu1  ;;  %4894 = vmatprep.subr.bf16.mxu1 %v5487_v19 }
 0x4ca   : > { %v2133_v11 = vadd.f32 %v2132_v44, %v2131_v50 }
 0x4cc   : > { %4895 = vmatpush3.bf16.msra.mxu1 %v5488_v28  ;;  %v2134_v13 = vmul.f32 0.125, %v2133_v11 }
 0x4cd   : > { %4896 = vmatprep.subr.bf16.mxu1 %v5489_v31 }
 0x4ce   : > { %v2135_v14 = vsub.f32 %v6478_v16, %v2134_v13 }
 0x4d0   : > { %4897 = vmatpush3.bf16.msra.mxu1 %v5490_v33  ;;  %v2136_v15 = vmul.f32 %v2135_v14, %v2135_v14 }
 0x4d2   : > { %v2137_v25 = vrot.slane %v2136_v15, 4 }
 0x4d3   : > { %3700 = vmatmul.mubr.bf16.vlgmr.msra.gmra.mrb[32].mxu1 %v3560_v37 }
 0x4d4   : > { %v2138_v28 = vadd.f32 %v2137_v25, %v2136_v15 }
 0x4d6   : > { %v2139_v36 = vrot.slane %v2138_v28, 2 }
 0x4d8   : > { %v2140_v34 = vadd.f32 %v2139_v36, %v2138_v28 }
 0x4da   : > { %v2141_v16 = vrot.slane %v2140_v34, 1 }
 0x4e6   : > { %v4766_v38 = vpop.f32.mrb[8].mxu1 }
 0x4e7   : > { %v4767_v39 = vpop.f32.mrb[9].mxu1 }
 0x4e8   : > { %v4768_v17 = vadd.f32 %v4767_v39, %v4766_v38  ;;  %v4769_v40 = vpop.f32.mrb[10].mxu1 }
 0x4e9   : > { %v4770_v41 = vpop.f32.mrb[11].mxu1 }
 0x4ea   : > { %v2550_v42 = vadd.f32 %v4768_v17, %v4746_v26  ;;  %v2142_v17 = vadd.f32 %v2141_v16, %v2140_v34 }
 0x506   : > { %v4788_v43 = vpop.f32.mrb[12].mxu1 }
 0x507   : > { %v4789_v45 = vpop.f32.mrb[13].mxu1 }
 0x508   : > { %v4790_v46 = vadd.f32 %v4789_v45, %v4788_v43  ;;  %v4791_v12 = vpop.f32.mrb[14].mxu1 }
 0x509   : > { %v4792_v47 = vpop.f32.mrb[15].mxu1 }
 0x50a   : > { %v2745_v48 = vadd.f32 %v4790_v46, %v2550_v42  ;;  %v2143_v42 = vmul.f32 0.125, %v2142_v17 }
 0x50c   : > { %v2144_v45 = vadd.f32 1e-05, %v2143_v42 }
 0x50e   : > { %5495 = vrsqrt.f32 %v2144_v45 }
 0x526   : > { %v4810_v49 = vpop.f32.mrb[16].mxu1 }
 0x527   : > { %v4811_v51 = vpop.f32.mrb[17].mxu1 }
 0x528   : > { %v4812_v52 = vadd.f32 %v4811_v51, %v4810_v49  ;;  %v4813_v53 = vpop.f32.mrb[18].mxu1  ;;  %v5496_v51 = vpop.eup %5495 }
 0x529   : > { %v4814_v54 = vpop.f32.mrb[19].mxu1  ;;  %v4313_v53 = vld [vmem:[%s580_s15] ss:$0 sm:$0xff] }
 0x52a   : > { %v2932_v55 = vadd.f32 %v4812_v52, %v2745_v48  ;;  %v2146_v52 = vmul.f32 %v5496_v51, %v2135_v14 }
 0x546   : > { %v4832_v56 = vpop.f32.mrb[20].mxu1 }
 0x547   : > { %v4833_v57 = vpop.f32.mrb[21].mxu1 }
 0x548   : > { %v4834_v58 = vadd.f32 %v4833_v57, %v4832_v56  ;;  %v4835_v1 = vpop.f32.mrb[22].mxu1  ;;  %v2153_v56 = vmul.f32 %v4313_v53, %v2146_v52 }
 0x549   : > { %v4836_v8 = vpop.f32.mrb[23].mxu1  ;;  %v4716_v1 = vld [vmem:[%s559_s22] ss:$0 sm:$0xff] }
 0x54a   : > { %v3126_v59 = vadd.f32 %v4834_v58, %v2932_v55  ;;  %v4715_v55 = vld [vmem:[%s551_s25] ss:$0 sm:$0xff] }
 0x54b   : > { %v4314_v58 = vld [vmem:[%s588_s24] ss:$0 sm:$0xff] }
 0x566   : > { %v4854_v60 = vpop.f32.mrb[24].mxu1 }
 0x567   : > { %v4855_v61 = vpop.f32.mrb[25].mxu1 }
 0x568   : > { %v4856_v22 = vadd.f32 %v4855_v61, %v4854_v60  ;;  %v4857_v29 = vpop.f32.mrb[26].mxu1 }
 0x569   : > { %v4858_v2 = vpop.f32.mrb[27].mxu1 }
 0x56a   : > { %v3317_v62 = vadd.f32 %v4856_v22, %v3126_v59  ;;  %v2160_v59 = vadd.f32 %v4314_v58, %v2153_v56 }
 0x586   : > { %v4876_v0 = vpop.f32.mrb[28].mxu1 }
 0x587   : > { %v4877_v3 = vpop.f32.mrb[29].mxu1 }
 0x588   : > { %v4878_v4 = vadd.f32 %v4877_v3, %v4876_v0  ;;  %v4879_v5 = vpop.f32.mrb[30].mxu1 }
 0x589   : > { %v4880_v6 = vpop.f32.mrb[31].mxu1 }
 0x58a   : > { %v3504_v9 = vadd.f32 %v4878_v4, %v3317_v62 }
 0x5a6   : > { %v4898_v18 = vpop.f32.mrb[32].mxu1 }
 0x5a7   : > { %v4899_v19 = vpop.f32.mrb[33].mxu1 }
 0x5a8   : > { %v4900_v21 = vadd.f32 %v4899_v19, %v4898_v18  ;;  %v4901_v23 = vpop.f32.mrb[34].mxu1 }
 0x5a9   : > { %v4902_v24 = vpop.f32.mrb[35].mxu1 }
 0x5aa   : > { %v3707_v26 = vadd.f32 %v4900_v21, %v3504_v9 }
 0x5ac   : > { %v3898_v27 = vadd.f32 %v6586_v20, %v3707_v26 }
 0x5ae   : > { %v3901_v30 = vrot.slane %v3898_v27, 4 }
 0x5b0   : > { %v3902_v31 = vadd.f32 %v3901_v30, %v3898_v27 }
 0x5b2   : > { %v3903_v32 = vrot.slane %v3902_v31, 2 }
 0x5b4   : > { %v3904_v33 = vadd.f32 %v3903_v32, %v3902_v31 }
 0x5b6   : > { %v3905_v35 = vrot.slane %v3904_v33, 1 }
 0x5b8   : > { %v3906_v37 = vadd.f32 %v3905_v35, %v3904_v33 }
 0x5ba   : > { %v3907_v38 = vmul.f32 0.125, %v3906_v37 }
 0x5bc   : > { %v3908_v39 = vsub.f32 %v3898_v27, %v3907_v38 }
 0x5be   : > { %v3909_v40 = vmul.f32 %v3908_v39, %v3908_v39 }
 0x5c0   : > { %v3910_v41 = vrot.slane %v3909_v40, 4 }
 0x5c2   : > { %v3911_v43 = vadd.f32 %v3910_v41, %v3909_v40 }
 0x5c4   : > { %v3912_v20 = vrot.slane %v3911_v43, 2 }
 0x5c6   : > { %v3913_v46 = vadd.f32 %v3912_v20, %v3911_v43 }
 0x5c8   : > { %v3914_v12 = vrot.slane %v3913_v46, 1 }
 0x5ca   : > { %v3915_v47 = vadd.f32 %v3914_v12, %v3913_v46 }
 0x5cc   : > { %v3916_v48 = vmul.f32 0.125, %v3915_v47 }
 0x5ce   : > { %v3917_v49 = vadd.f32 1e-05, %v3916_v48 }
 0x5d0   : > { %5497 = vrsqrt.f32 %v3917_v49 }
 0x5da   : > { %v5498_v54 = vpop.eup %5497 }
 0x5db   : > { %v3919_v57 = vmul.f32 %v5498_v54, %v3908_v39 }
 0x5dd   : > { %v3926_v8 = vmul.f32 %v4715_v55, %v3919_v57 }
 0x5df   : > { %v3933_v60 = vadd.f32 %v4716_v1, %v3926_v8 }
 0x5e1   : > { %v3934_v61 = vadd.f32 %v3933_v60, %v2160_v59 }
 0x5e3   : > { %v3935_v22 = vmax.f32 %v3934_v61, 0.0 }
 0x5e5   : > { %v3936_v29 = vpack.c.bf16 %v3935_v22, %v3935_v22 }
 0x5e7   : > { %3937 = vst [vmem:[%s652_s19] sm:$0xf] %v3936_v29 }
 0x5e8 PF: > { %s6706_s24 = sld [smem:[#allocation26_spill]]  ;;  %s6707_s21 = sld [smem:[#allocation23_spill]] }
 0x5e9   : > { %s6708_s22 = sld [smem:[#allocation24_spill]]  ;;  %s6709_s23 = sld [smem:[#allocation27_spill]] }
 0x5ee   : > { %p22_p6 = scmp.ge.s32.totalorder %s6706_s24, 4  }
 0x5f0   :  { %24 = sbr.rel (!%p22_p6) target bundleno = 10 (0xa), region = 198 }
 0x5f7   :  { %3957 = vsyncpa [#allocation4], 1 }
 0x5f8   :  { %3959 = vsyncpa [#allocation4 + $0x1], 1 }
 0x5f9   :  { %3960 = vsyncpa [#allocation6], 1 }
 0x5fa   :  { %3961 = vsyncpa [#allocation9], 1 }

// kernel: resnet18_forward.9
= control target key start
LH: loop header
LB: loop body
LE: loop exit
PB: predicated region body
PF: predicated region fallthrough
CT: control target
= control target key end

     0   :  { %s2975_s30 = smov 0   ;;  %s2977_s10 = smov 0   ;;  %s3635_s0 = inlined_call_operand.vmem [shape: f32[6,512], index: 0, kind: input, shape index: {}]   ;;  %s3636_s1 = inlined_call_operand.vmem [shape: bf16[1,512,512], index: 1, kind: input, shape index: {}]   ;;  %s3637_s2 = inlined_call_operand.vmem [shape: f32[1,512], index: 2, kind: input, shape index: {}]   ;;  %s3638_s3 = inlined_call_operand.vmem [shape: f32[1,512], index: 3, kind: input, shape index: {}]   ;;  %s3639_s4 = inlined_call_operand.vmem [shape: bf16[1,512,512], index: 4, kind: input, shape index: {}]   ;;  %s3640_s5 = inlined_call_operand.vmem [shape: f32[1,512], index: 5, kind: input, shape index: {}]   ;;  %s3641_s6 = inlined_call_operand.vmem [shape: f32[1,512], index: 6, kind: input, shape index: {}]   ;;  %s3642_s7 = inlined_call_operand.vmem [shape: bf16[2,512], index: 7, kind: input, shape index: {}]   ;;  %s3643_s8 = inlined_call_operand.vmem [shape: bf16[512,128], index: 8, kind: input, shape index: {}]   ;;  %s3644_s9 = inlined_call_operand.vmem [shape: f32[4,2,128], index: 9, kind: output, shape index: {}]  }
   0x1   :  { %s2979_s11 = smov 0  }
   0x2 LB: > { %s2991_s12 = sadd.s32 4294967295, %s2921_s11   ;;  %s2994_s13 = sadd.s32 1, %s2921_s11   ;;  %s2921_s11 = sphi %s2979_s11, %s3647_s11   ;;  %s2917_s10 = sphi %s2977_s10, %s3646_s10   ;;  %s2913_s30 = sphi %s2975_s30, %s3645_s30  }
   0x3   : > { %s107_s14 = ssub.s32 %s2921_s11, %s2994_s13  ;;  %s110_s15 = sadd.s32 1, %s2917_s10 }
   0x4   : > { %p108_p0 = scmp.eq.s32.totalorder %s107_s14, 0  ;;  %p117_p1 = scmp.ne.s32.totalorder %s2917_s10, %s2913_s30 }
   0x5   : > { %p118_p2 = scmp.eq.s32.totalorder %s2921_s11, 0  ;;  %p2370_p4 = scmp.ge.s32.totalorder %s2921_s11, 4 }
   0x6   : > { %s3003_s16 = scalar_select %p108_p0, %s2917_s10, %s110_s15  }
   0x7   : > { %p119_p3 = por %p118_p2, %p117_p1  ;;  %285 = sbr.rel (%p2370_p4) target bundleno = 61 (0x3d), region = 32 }
   0xe   : > { %288 = sbr.rel (!%p119_p3) target bundleno = 61 (0x3d), region = 36  ;;  %s290_s17 = sand.u32 (%p119_p3), 1, %s2917_s10  }
   0xf   : > { %s2372_s18 = sshll.u32 (%p119_p3), %s2921_s11, 2  ;;  %s2371_s19 = sshll.u32 (%p119_p3), %s290_s17, 8 }
  0x10   : > { %s3011_s22 = scalar_lea.vmem (%p119_p3), %s3639_s4, %s2372_s18  ;;  %s3015_s23 = scalar_lea.vmem (%p119_p3), [#allocation2], %s2371_s19 }
  0x11   : > { %v310_v0 = vld [vmem:[%s3011_s22] sm:$0xf] (%p119_p3)  ;;  %v312_v1 = vld [vmem:[%s3011_s22 + $0x10] sm:$0xf] (%p119_p3) }
  0x12   : > { %311 = vst [vmem:[%s3015_s23] sm:$0xf] (%p119_p3), %v310_v0  ;;  %313 = vst [vmem:[%s3015_s23 + $0x4] sm:$0xf] (%p119_p3), %v312_v1  ;;  %v314_v2 = vld [vmem:[%s3011_s22 + $0x20] sm:$0xf] (%p119_p3) }
  0x13   : > { %v316_v3 = vld [vmem:[%s3011_s22 + $0x30] sm:$0xf] (%p119_p3)  ;;  %v318_v4 = vld [vmem:[%s3011_s22 + $0x40] sm:$0xf] (%p119_p3)  ;;  %315 = vst [vmem:[%s3015_s23 + $0x8] sm:$0xf] (%p119_p3), %v314_v2 }
  0x14   : > { %317 = vst [vmem:[%s3015_s23 + $0xc] sm:$0xf] (%p119_p3), %v316_v3  ;;  %319 = vst [vmem:[%s3015_s23 + $0x10] sm:$0xf] (%p119_p3), %v318_v4  ;;  %v320_v5 = vld [vmem:[%s3011_s22 + $0x50] sm:$0xf] (%p119_p3) }
  0x15   : > { %v322_v6 = vld [vmem:[%s3011_s22 + $0x60] sm:$0xf]  ;;  %v324_v7 = vld [vmem:[%s3011_s22 + $0x70] sm:$0xf]  ;;  %321 = vst [vmem:[%s3015_s23 + $0x14] sm:$0xf] %v320_v5 }
  0x16   : > { %323 = vst [vmem:[%s3015_s23 + $0x18] sm:$0xf] %v322_v6  ;;  %325 = vst [vmem:[%s3015_s23 + $0x1c] sm:$0xf] %v324_v7  ;;  %v326_v8 = vld [vmem:[%s3011_s22 + $0x80] sm:$0xf] }
  0x17   : > { %v328_v9 = vld [vmem:[%s3011_s22 + $0x90] sm:$0xf]  ;;  %v330_v10 = vld [vmem:[%s3011_s22 + $0xa0] sm:$0xf]  ;;  %327 = vst [vmem:[%s3015_s23 + $0x20] sm:$0xf] %v326_v8 }
  0x18   : > { %329 = vst [vmem:[%s3015_s23 + $0x24] sm:$0xf] %v328_v9  ;;  %331 = vst [vmem:[%s3015_s23 + $0x28] sm:$0xf] %v330_v10  ;;  %v332_v11 = vld [vmem:[%s3011_s22 + $0xb0] sm:$0xf] }
  0x19   : > { %v334_v12 = vld [vmem:[%s3011_s22 + $0xc0] sm:$0xf]  ;;  %v336_v13 = vld [vmem:[%s3011_s22 + $0xd0] sm:$0xf]  ;;  %333 = vst [vmem:[%s3015_s23 + $0x2c] sm:$0xf] %v332_v11 }
  0x1a   : > { %335 = vst [vmem:[%s3015_s23 + $0x30] sm:$0xf] %v334_v12  ;;  %337 = vst [vmem:[%s3015_s23 + $0x34] sm:$0xf] %v336_v13  ;;  %v338_v14 = vld [vmem:[%s3011_s22 + $0xe0] sm:$0xf] }
  0x1b   : > { %v340_v15 = vld [vmem:[%s3011_s22 + $0xf0] sm:$0xf]  ;;  %v342_v16 = vld [vmem:[%s3011_s22 + $0x100] sm:$0xf]  ;;  %339 = vst [vmem:[%s3015_s23 + $0x38] sm:$0xf] %v338_v14 }
  0x1c   : > { %341 = vst [vmem:[%s3015_s23 + $0x3c] sm:$0xf] %v340_v15  ;;  %343 = vst [vmem:[%s3015_s23 + $0x40] sm:$0xf] %v342_v16  ;;  %v344_v17 = vld [vmem:[%s3011_s22 + $0x110] sm:$0xf] }
  0x1d   : > { %v346_v18 = vld [vmem:[%s3011_s22 + $0x120] sm:$0xf]  ;;  %v348_v19 = vld [vmem:[%s3011_s22 + $0x130] sm:$0xf]  ;;  %345 = vst [vmem:[%s3015_s23 + $0x44] sm:$0xf] %v344_v17 }
  0x1e   : > { %347 = vst [vmem:[%s3015_s23 + $0x48] sm:$0xf] %v346_v18  ;;  %349 = vst [vmem:[%s3015_s23 + $0x4c] sm:$0xf] %v348_v19  ;;  %v350_v20 = vld [vmem:[%s3011_s22 + $0x140] sm:$0xf] }
  0x1f   : > { %v352_v21 = vld [vmem:[%s3011_s22 + $0x150] sm:$0xf]  ;;  %v354_v22 = vld [vmem:[%s3011_s22 + $0x160] sm:$0xf]  ;;  %351 = vst [vmem:[%s3015_s23 + $0x50] sm:$0xf] %v350_v20 }
  0x20   : > { %353 = vst [vmem:[%s3015_s23 + $0x54] sm:$0xf] %v352_v21  ;;  %355 = vst [vmem:[%s3015_s23 + $0x58] sm:$0xf] %v354_v22  ;;  %v356_v23 = vld [vmem:[%s3011_s22 + $0x170] sm:$0xf] }
  0x21   : > { %v358_v24 = vld [vmem:[%s3011_s22 + $0x180] sm:$0xf]  ;;  %v360_v25 = vld [vmem:[%s3011_s22 + $0x190] sm:$0xf]  ;;  %357 = vst [vmem:[%s3015_s23 + $0x5c] sm:$0xf] %v356_v23 }
  0x22   : > { %359 = vst [vmem:[%s3015_s23 + $0x60] sm:$0xf] %v358_v24  ;;  %361 = vst [vmem:[%s3015_s23 + $0x64] sm:$0xf] %v360_v25  ;;  %v362_v26 = vld [vmem:[%s3011_s22 + $0x1a0] sm:$0xf] }
  0x23   : > { %v364_v27 = vld [vmem:[%s3011_s22 + $0x1b0] sm:$0xf]  ;;  %v366_v28 = vld [vmem:[%s3011_s22 + $0x1c0] sm:$0xf]  ;;  %363 = vst [vmem:[%s3015_s23 + $0x68] sm:$0xf] %v362_v26 }
  0x24   : > { %365 = vst [vmem:[%s3015_s23 + $0x6c] sm:$0xf] %v364_v27  ;;  %367 = vst [vmem:[%s3015_s23 + $0x70] sm:$0xf] %v366_v28  ;;  %v368_v29 = vld [vmem:[%s3011_s22 + $0x1d0] sm:$0xf] }
  0x25   : > { %v370_v30 = vld [vmem:[%s3011_s22 + $0x1e0] sm:$0xf]  ;;  %v372_v31 = vld [vmem:[%s3011_s22 + $0x1f0] sm:$0xf]  ;;  %369 = vst [vmem:[%s3015_s23 + $0x74] sm:$0xf] %v368_v29 }
  0x26   : > { %371 = vst [vmem:[%s3015_s23 + $0x78] sm:$0xf] %v370_v30  ;;  %373 = vst [vmem:[%s3015_s23 + $0x7c] sm:$0xf] %v372_v31  ;;  %v374_v32 = vld [vmem:[%s3011_s22 + $0x200] sm:$0xf] }
  0x27   : > { %v376_v33 = vld [vmem:[%s3011_s22 + $0x210] sm:$0xf]  ;;  %v378_v34 = vld [vmem:[%s3011_s22 + $0x220] sm:$0xf]  ;;  %375 = vst [vmem:[%s3015_s23 + $0x80] sm:$0xf] %v374_v32 }
  0x28   : > { %377 = vst [vmem:[%s3015_s23 + $0x84] sm:$0xf] %v376_v33  ;;  %379 = vst [vmem:[%s3015_s23 + $0x88] sm:$0xf] %v378_v34  ;;  %v380_v35 = vld [vmem:[%s3011_s22 + $0x230] sm:$0xf] }
  0x29   : > { %v382_v36 = vld [vmem:[%s3011_s22 + $0x240] sm:$0xf]  ;;  %v384_v37 = vld [vmem:[%s3011_s22 + $0x250] sm:$0xf]  ;;  %381 = vst [vmem:[%s3015_s23 + $0x8c] sm:$0xf] %v380_v35 }
  0x2a   : > { %383 = vst [vmem:[%s3015_s23 + $0x90] sm:$0xf] %v382_v36  ;;  %385 = vst [vmem:[%s3015_s23 + $0x94] sm:$0xf] %v384_v37  ;;  %v386_v38 = vld [vmem:[%s3011_s22 + $0x260] sm:$0xf] }
  0x2b   : > { %v388_v39 = vld [vmem:[%s3011_s22 + $0x270] sm:$0xf]  ;;  %v390_v40 = vld [vmem:[%s3011_s22 + $0x280] sm:$0xf]  ;;  %387 = vst [vmem:[%s3015_s23 + $0x98] sm:$0xf] %v386_v38 }
  0x2c   : > { %389 = vst [vmem:[%s3015_s23 + $0x9c] sm:$0xf] %v388_v39  ;;  %391 = vst [vmem:[%s3015_s23 + $0xa0] sm:$0xf] %v390_v40  ;;  %v392_v41 = vld [vmem:[%s3011_s22 + $0x290] sm:$0xf] }
  0x2d   : > { %v394_v42 = vld [vmem:[%s3011_s22 + $0x2a0] sm:$0xf]  ;;  %v396_v43 = vld [vmem:[%s3011_s22 + $0x2b0] sm:$0xf]  ;;  %393 = vst [vmem:[%s3015_s23 + $0xa4] sm:$0xf] %v392_v41 }
  0x2e   : > { %395 = vst [vmem:[%s3015_s23 + $0xa8] sm:$0xf] %v394_v42  ;;  %397 = vst [vmem:[%s3015_s23 + $0xac] sm:$0xf] %v396_v43  ;;  %v398_v44 = vld [vmem:[%s3011_s22 + $0x2c0] sm:$0xf] }
  0x2f   : > { %v400_v45 = vld [vmem:[%s3011_s22 + $0x2d0] sm:$0xf]  ;;  %v402_v46 = vld [vmem:[%s3011_s22 + $0x2e0] sm:$0xf]  ;;  %399 = vst [vmem:[%s3015_s23 + $0xb0] sm:$0xf] %v398_v44 }
  0x30   : > { %401 = vst [vmem:[%s3015_s23 + $0xb4] sm:$0xf] %v400_v45  ;;  %403 = vst [vmem:[%s3015_s23 + $0xb8] sm:$0xf] %v402_v46  ;;  %v404_v47 = vld [vmem:[%s3011_s22 + $0x2f0] sm:$0xf] }
  0x31   : > { %v406_v48 = vld [vmem:[%s3011_s22 + $0x300] sm:$0xf]  ;;  %v408_v49 = vld [vmem:[%s3011_s22 + $0x310] sm:$0xf]  ;;  %405 = vst [vmem:[%s3015_s23 + $0xbc] sm:$0xf] %v404_v47 }
  0x32   : > { %407 = vst [vmem:[%s3015_s23 + $0xc0] sm:$0xf] %v406_v48  ;;  %409 = vst [vmem:[%s3015_s23 + $0xc4] sm:$0xf] %v408_v49  ;;  %v410_v50 = vld [vmem:[%s3011_s22 + $0x320] sm:$0xf] }
  0x33   : > { %v412_v51 = vld [vmem:[%s3011_s22 + $0x330] sm:$0xf]  ;;  %v414_v52 = vld [vmem:[%s3011_s22 + $0x340] sm:$0xf]  ;;  %411 = vst [vmem:[%s3015_s23 + $0xc8] sm:$0xf] %v410_v50 }
  0x34   : > { %413 = vst [vmem:[%s3015_s23 + $0xcc] sm:$0xf] %v412_v51  ;;  %415 = vst [vmem:[%s3015_s23 + $0xd0] sm:$0xf] %v414_v52  ;;  %v416_v53 = vld [vmem:[%s3011_s22 + $0x350] sm:$0xf] }
  0x35   : > { %v418_v54 = vld [vmem:[%s3011_s22 + $0x360] sm:$0xf]  ;;  %v420_v55 = vld [vmem:[%s3011_s22 + $0x370] sm:$0xf]  ;;  %417 = vst [vmem:[%s3015_s23 + $0xd4] sm:$0xf] %v416_v53 }
  0x36   : > { %419 = vst [vmem:[%s3015_s23 + $0xd8] sm:$0xf] %v418_v54  ;;  %421 = vst [vmem:[%s3015_s23 + $0xdc] sm:$0xf] %v420_v55  ;;  %v422_v56 = vld [vmem:[%s3011_s22 + $0x380] sm:$0xf] }
  0x37   : > { %v424_v57 = vld [vmem:[%s3011_s22 + $0x390] sm:$0xf]  ;;  %v426_v58 = vld [vmem:[%s3011_s22 + $0x3a0] sm:$0xf]  ;;  %423 = vst [vmem:[%s3015_s23 + $0xe0] sm:$0xf] %v422_v56 }
  0x38   : > { %425 = vst [vmem:[%s3015_s23 + $0xe4] sm:$0xf] %v424_v57  ;;  %427 = vst [vmem:[%s3015_s23 + $0xe8] sm:$0xf] %v426_v58  ;;  %v428_v59 = vld [vmem:[%s3011_s22 + $0x3b0] sm:$0xf] }
  0x39   : > { %v430_v60 = vld [vmem:[%s3011_s22 + $0x3c0] sm:$0xf]  ;;  %v432_v61 = vld [vmem:[%s3011_s22 + $0x3d0] sm:$0xf]  ;;  %429 = vst [vmem:[%s3015_s23 + $0xec] sm:$0xf] %v428_v59 }
  0x3a   : > { %431 = vst [vmem:[%s3015_s23 + $0xf0] sm:$0xf] %v430_v60  ;;  %433 = vst [vmem:[%s3015_s23 + $0xf4] sm:$0xf] %v432_v61  ;;  %v434_v62 = vld [vmem:[%s3011_s22 + $0x3e0] sm:$0xf] }
  0x3b   : > { %v436_v63 = vld [vmem:[%s3011_s22 + $0x3f0] sm:$0xf]  ;;  %435 = vst [vmem:[%s3015_s23 + $0xf8] sm:$0xf] %v434_v62 }
  0x3c   : > { %437 = vst [vmem:[%s3015_s23 + $0xfc] sm:$0xf] %v436_v63 }
  0x3d PF: > { %p2373_p5 = scmp.ge.s32.totalorder %s2921_s11, 1  ;;  %p614_p6 = scmp.lt.s32.totalorder %s2921_s11, 5 }
  0x3f   : > { %p615_p7 = pnand %p2373_p5, %p614_p6 }
  0x40   : > { %v2657_v0 = vld [vmem:[%s3636_s1 + $0x4] ss:$16 sps:$4 sm:$0xff] (!%p615_p7)   ;;  %v2659_v1 = vld [vmem:[%s3636_s1 + $0xc] ss:$16 sps:$4 sm:$0xff] (!%p615_p7)   ;;  %v2661_v2 = vld [vmem:[%s3636_s1] ss:$16 sps:$4 sm:$0xff] (!%p615_p7)  }
  0x41   : > { %618 = sbr.rel (%p615_p7) target bundleno = 957 (0x3bd), region = 93  ;;  %1477 = vmatprep.subr.bf16.mxu0 (!%p615_p7), %v2657_v0  ;;  %v2662_v3 = vld [vmem:[%s3636_s1 + $0x8] ss:$16 sps:$4 sm:$0xff] (!%p615_p7)   ;;  %1559 = vmatprep.subr.bf16.mxu1 (!%p615_p7), %v2659_v1  ;;  %v2663_v4 = vld [vmem:[%s3636_s1 + $0x24] ss:$16 sps:$4 sm:$0xff] (!%p615_p7)   ;;  %s621_s11 = sand.u32 (!%p615_p7), 1, %s2913_s30  }
  0x42   : > { %1478 = vmatpush1.bf16.msra.mxu0 (!%p615_p7), %v2661_v2  ;;  %1560 = vmatpush1.bf16.msra.mxu1 (!%p615_p7), %v2662_v3  ;;  %v2665_v5 = vld [vmem:[%s3636_s1 + $0x2c] ss:$16 sps:$4 sm:$0xff] (!%p615_p7)   ;;  %v2667_v6 = vld [vmem:[%s3636_s1 + $0x20] ss:$16 sps:$4 sm:$0xff] (!%p615_p7)   ;;  %v2668_v7 = vld [vmem:[%s3636_s1 + $0x28] ss:$16 sps:$4 sm:$0xff] (!%p615_p7)  }
  0x43   : > { %1479 = vmatprep.subr.bf16.mxu0 (!%p615_p7), %v2663_v4  ;;  %1561 = vmatprep.subr.bf16.mxu1 (!%p615_p7), %v2665_v5  ;;  %v2669_v8 = vld [vmem:[%s3636_s1 + $0x44] ss:$16 sps:$4 sm:$0xff] (!%p615_p7)   ;;  %v2671_v9 = vld [vmem:[%s3636_s1 + $0x4c] ss:$16 sps:$4 sm:$0xff] (!%p615_p7)   ;;  %v2673_v10 = vld [vmem:[%s3636_s1 + $0x40] ss:$16 sps:$4 sm:$0xff] (!%p615_p7)  }
  0x44   : > { %v2674_v11 = vld [vmem:[%s3636_s1 + $0x48] ss:$16 sps:$4 sm:$0xff] (!%p615_p7)   ;;  %v2675_v12 = vld [vmem:[%s3636_s1 + $0x64] ss:$16 sps:$4 sm:$0xff] (!%p615_p7)   ;;  %v2677_v13 = vld [vmem:[%s3636_s1 + $0x6c] ss:$16 sps:$4 sm:$0xff] (!%p615_p7)  }
  0x45   : > { %v2679_v14 = vld [vmem:[%s3636_s1 + $0x60] ss:$16 sps:$4 sm:$0xff] (!%p615_p7)   ;;  %v2680_v15 = vld [vmem:[%s3636_s1 + $0x68] ss:$16 sps:$4 sm:$0xff] (!%p615_p7)   ;;  %v2681_v16 = vld [vmem:[%s3636_s1 + $0x84] ss:$16 sps:$4 sm:$0xff] (!%p615_p7)  }
  0x46   : > { %1480 = vmatpush1.bf16.msra.mxu0 (!%p615_p7), %v2667_v6  ;;  %1562 = vmatpush1.bf16.msra.mxu1 (!%p615_p7), %v2668_v7  ;;  %v2683_v17 = vld [vmem:[%s3636_s1 + $0x8c] ss:$16 sps:$4 sm:$0xff] (!%p615_p7)   ;;  %v2685_v18 = vld [vmem:[%s3636_s1 + $0x80] ss:$16 sps:$4 sm:$0xff] (!%p615_p7)   ;;  %v2686_v19 = vld [vmem:[%s3636_s1 + $0x88] ss:$16 sps:$4 sm:$0xff] (!%p615_p7)  }
  0x47   : > { %1481 = vmatprep.subr.bf16.mxu0 (!%p615_p7), %v2669_v8  ;;  %1563 = vmatprep.subr.bf16.mxu1 (!%p615_p7), %v2671_v9  ;;  %v2687_v20 = vld [vmem:[%s3636_s1 + $0xa4] ss:$16 sps:$4 sm:$0xff] (!%p615_p7)   ;;  %v2689_v21 = vld [vmem:[%s3636_s1 + $0xac] ss:$16 sps:$4 sm:$0xff] (!%p615_p7)   ;;  %v2691_v22 = vld [vmem:[%s3636_s1 + $0xa0] ss:$16 sps:$4 sm:$0xff] (!%p615_p7)  }
  0x48   : > { %v2692_v23 = vld [vmem:[%s3636_s1 + $0xa8] ss:$16 sps:$4 sm:$0xff]   ;;  %v2693_v24 = vld [vmem:[%s3636_s1 + $0xc4] ss:$16 sps:$4 sm:$0xff]   ;;  %v2695_v25 = vld [vmem:[%s3636_s1 + $0xcc] ss:$16 sps:$4 sm:$0xff]  }
  0x49   : > { %v2697_v26 = vld [vmem:[%s3636_s1 + $0xc0] ss:$16 sps:$4 sm:$0xff]   ;;  %v2698_v27 = vld [vmem:[%s3636_s1 + $0xc8] ss:$16 sps:$4 sm:$0xff]   ;;  %v2699_v28 = vld [vmem:[%s3636_s1 + $0xe4] ss:$16 sps:$4 sm:$0xff]  }
  0x4a   : > { %1482 = vmatpush1.bf16.msra.mxu0 %v2673_v10  ;;  %1564 = vmatpush1.bf16.msra.mxu1 %v2674_v11  ;;  %v2701_v29 = vld [vmem:[%s3636_s1 + $0xec] ss:$16 sps:$4 sm:$0xff]   ;;  %v2703_v30 = vld [vmem:[%s3636_s1 + $0xe0] ss:$16 sps:$4 sm:$0xff]   ;;  %v2704_v31 = vld [vmem:[%s3636_s1 + $0xe8] ss:$16 sps:$4 sm:$0xff]  }
  0x4b   : > { %1483 = vmatprep.subr.bf16.mxu0 %v2675_v12  ;;  %1565 = vmatprep.subr.bf16.mxu1 %v2677_v13  ;;  %v2705_v32 = vld [vmem:[%s3636_s1 + $0x104] ss:$16 sps:$4 sm:$0xff]   ;;  %v2707_v33 = vld [vmem:[%s3636_s1 + $0x10c] ss:$16 sps:$4 sm:$0xff]   ;;  %v2709_v34 = vld [vmem:[%s3636_s1 + $0x100] ss:$16 sps:$4 sm:$0xff]  }
  0x4c   : > { %v2710_v35 = vld [vmem:[%s3636_s1 + $0x108] ss:$16 sps:$4 sm:$0xff]   ;;  %v2711_v36 = vld [vmem:[%s3636_s1 + $0x124] ss:$16 sps:$4 sm:$0xff]   ;;  %v2713_v37 = vld [vmem:[%s3636_s1 + $0x12c] ss:$16 sps:$4 sm:$0xff]  }
  0x4d   : > { %v2715_v38 = vld [vmem:[%s3636_s1 + $0x120] ss:$16 sps:$4 sm:$0xff]   ;;  %v2716_v39 = vld [vmem:[%s3636_s1 + $0x128] ss:$16 sps:$4 sm:$0xff]   ;;  %v2717_v40 = vld [vmem:[%s3636_s1 + $0x144] ss:$16 sps:$4 sm:$0xff]  }
  0x4e   : > { %1484 = vmatpush1.bf16.msra.mxu0 %v2679_v14  ;;  %1566 = vmatpush1.bf16.msra.mxu1 %v2680_v15  ;;  %v2719_v41 = vld [vmem:[%s3636_s1 + $0x14c] ss:$16 sps:$4 sm:$0xff]   ;;  %v2721_v42 = vld [vmem:[%s3636_s1 + $0x140] ss:$16 sps:$4 sm:$0xff]   ;;  %v2722_v43 = vld [vmem:[%s3636_s1 + $0x148] ss:$16 sps:$4 sm:$0xff]  }
  0x4f   : > { %1485 = vmatprep.subr.bf16.mxu0 %v2681_v16  ;;  %1567 = vmatprep.subr.bf16.mxu1 %v2683_v17  ;;  %v2723_v44 = vld [vmem:[%s3636_s1 + $0x164] ss:$16 sps:$4 sm:$0xff]   ;;  %v2725_v45 = vld [vmem:[%s3636_s1 + $0x16c] ss:$16 sps:$4 sm:$0xff]   ;;  %v690_v46 = vld [vmem:[%s3635_s0 + $0x8] sm:$0xc] }
  0x50   : > { %v2727_v47 = vld [vmem:[%s3636_s1 + $0x160] ss:$16 sps:$4 sm:$0xff]   ;;  %v694_v48 = vpack.c.bf16 %v690_v46, %v690_v46  ;;  %v2728_v49 = vld [vmem:[%s3636_s1 + $0x168] ss:$16 sps:$4 sm:$0xff]   ;;  %v2729_v50 = vld [vmem:[%s3636_s1 + $0x184] ss:$16 sps:$4 sm:$0xff]  }
  0x51   : > { %v2731_v51 = vld [vmem:[%s3636_s1 + $0x18c] ss:$16 sps:$4 sm:$0xff]   ;;  %v2733_v53 = vld [vmem:[%s3636_s1 + $0x180] ss:$16 sps:$4 sm:$0xff]   ;;  %v2734_v54 = vld [vmem:[%s3636_s1 + $0x188] ss:$16 sps:$4 sm:$0xff]  }
  0x52   : > { %1486 = vmatpush1.bf16.msra.mxu0 %v2685_v18  ;;  %1568 = vmatpush1.bf16.msra.mxu1 %v2686_v19  ;;  %v830_v52 = vrot.slane %v694_v48, 1  ;;  %v2735_v55 = vld [vmem:[%s3636_s1 + $0x1a4] ss:$16 sps:$4 sm:$0xff]   ;;  %v2737_v56 = vld [vmem:[%s3636_s1 + $0x1ac] ss:$16 sps:$4 sm:$0xff]   ;;  %s2374_s17 = sshll.u32 %s621_s11, 8 }
  0x53   : > { %1487 = vmatprep.subr.bf16.mxu0 %v2687_v20  ;;  %1569 = vmatprep.subr.bf16.mxu1 %v2689_v21  ;;  %v2739_v57 = vld [vmem:[%s3636_s1 + $0x1a0] ss:$16 sps:$4 sm:$0xff]   ;;  %v2740_v58 = vld [vmem:[%s3636_s1 + $0x1a8] ss:$16 sps:$4 sm:$0xff]   ;;  %v2741_v59 = vld [vmem:[%s3636_s1 + $0x1c4] ss:$16 sps:$4 sm:$0xff]  }
  0x54   : > { %1509 = vmatprep.mubr.bf16.mxu0 %v830_v52  ;;  %1591 = vmatprep.mubr.bf16.mxu1 %v830_v52  ;;  %v2743_v60 = vld [vmem:[%s3636_s1 + $0x1cc] ss:$16 sps:$4 sm:$0xff]   ;;  %v2745_v61 = vld [vmem:[%s3636_s1 + $0x1c0] ss:$16 sps:$4 sm:$0xff]   ;;  %v2746_v62 = vld [vmem:[%s3636_s1 + $0x1c8] ss:$16 sps:$4 sm:$0xff]  }
  0x55   : > { %v689_v63 = vld [vmem:[%s3635_s0] sm:$0xc]  ;;  %v2747_v0 = vld [vmem:[%s3636_s1 + $0x1e4] ss:$16 sps:$4 sm:$0xff]   ;;  %v2749_v1 = vld [vmem:[%s3636_s1 + $0x1ec] ss:$16 sps:$4 sm:$0xff]  }
  0x56   : > { %1488 = vmatpush1.bf16.msra.mxu0 %v2691_v22  ;;  %1570 = vmatpush1.bf16.msra.mxu1 %v2692_v23  ;;  %v693_v2 = vpack.c.bf16 %v689_v63, %v689_v63  ;;  %v2751_v3 = vld [vmem:[%s3636_s1 + $0x1e0] ss:$16 sps:$4 sm:$0xff]   ;;  %v2752_v4 = vld [vmem:[%s3636_s1 + $0x1e8] ss:$16 sps:$4 sm:$0xff]   ;;  %v2755_v5 = vld [vmem:[%s3636_s1 + $0x204] ss:$16 sps:$4 sm:$0xff]  }
  0x57   : > { %1489 = vmatprep.subr.bf16.mxu0 %v2693_v24  ;;  %1571 = vmatprep.subr.bf16.mxu1 %v2695_v25  ;;  %v2758_v6 = vld [vmem:[%s3636_s1 + $0x20c] ss:$16 sps:$4 sm:$0xff]   ;;  %v2753_v8 = vld [vmem:[%s3636_s1 + $0x200] ss:$16 sps:$4 sm:$0xff]   ;;  %v2756_v9 = vld [vmem:[%s3636_s1 + $0x208] ss:$16 sps:$4 sm:$0xff]  }
  0x58   : > { %v829_v7 = vrot.slane %v693_v2, 1  ;;  %v2761_v10 = vld [vmem:[%s3636_s1 + $0x224] ss:$16 sps:$4 sm:$0xff]   ;;  %v2764_v11 = vld [vmem:[%s3636_s1 + $0x22c] ss:$16 sps:$4 sm:$0xff]   ;;  %s3542_s18 = scalar_lea.vmem [#allocation2], %s2374_s17 }
  0x59   : > { %v2759_v12 = vld [vmem:[%s3636_s1 + $0x220] ss:$16 sps:$4 sm:$0xff]   ;;  %v2762_v13 = vld [vmem:[%s3636_s1 + $0x228] ss:$16 sps:$4 sm:$0xff]   ;;  %v2767_v14 = vld [vmem:[%s3636_s1 + $0x244] ss:$16 sps:$4 sm:$0xff]  }
  0x5a   : > { %1490 = vmatpush1.bf16.msra.mxu0 %v2697_v26  ;;  %1572 = vmatpush1.bf16.msra.mxu1 %v2698_v27  ;;  %v2770_v15 = vld [vmem:[%s3636_s1 + $0x24c] ss:$16 sps:$4 sm:$0xff]   ;;  %v2765_v16 = vld [vmem:[%s3636_s1 + $0x240] ss:$16 sps:$4 sm:$0xff]   ;;  %v2768_v17 = vld [vmem:[%s3636_s1 + $0x248] ss:$16 sps:$4 sm:$0xff]  }
  0x5b   : > { %1491 = vmatprep.subr.bf16.mxu0 %v2699_v28  ;;  %1573 = vmatprep.subr.bf16.mxu1 %v2701_v29  ;;  %v2773_v18 = vld [vmem:[%s3636_s1 + $0x264] ss:$16 sps:$4 sm:$0xff]   ;;  %v2776_v19 = vld [vmem:[%s3636_s1 + $0x26c] ss:$16 sps:$4 sm:$0xff]   ;;  %v2771_v20 = vld [vmem:[%s3636_s1 + $0x260] ss:$16 sps:$4 sm:$0xff]  }
  0x5c   : > { %v2774_v21 = vld [vmem:[%s3636_s1 + $0x268] ss:$16 sps:$4 sm:$0xff]   ;;  %v2779_v22 = vld [vmem:[%s3636_s1 + $0x284] ss:$16 sps:$4 sm:$0xff]   ;;  %v2782_v23 = vld [vmem:[%s3636_s1 + $0x28c] ss:$16 sps:$4 sm:$0xff]  }
  0x5d   : > { %v2777_v24 = vld [vmem:[%s3636_s1 + $0x280] ss:$16 sps:$4 sm:$0xff]   ;;  %v2780_v25 = vld [vmem:[%s3636_s1 + $0x288] ss:$16 sps:$4 sm:$0xff]   ;;  %v2785_v26 = vld [vmem:[%s3636_s1 + $0x2a4] ss:$16 sps:$4 sm:$0xff]  }
  0x5e   : > { %1492 = vmatpush1.bf16.msra.mxu0 %v2703_v30  ;;  %1574 = vmatpush1.bf16.msra.mxu1 %v2704_v31  ;;  %v2788_v27 = vld [vmem:[%s3636_s1 + $0x2ac] ss:$16 sps:$4 sm:$0xff]   ;;  %v2783_v28 = vld [vmem:[%s3636_s1 + $0x2a0] ss:$16 sps:$4 sm:$0xff]   ;;  %v2786_v29 = vld [vmem:[%s3636_s1 + $0x2a8] ss:$16 sps:$4 sm:$0xff]  }
  0x5f   : > { %1493 = vmatprep.subr.bf16.mxu0 %v2705_v32  ;;  %1575 = vmatprep.subr.bf16.mxu1 %v2707_v33  ;;  %v2791_v30 = vld [vmem:[%s3636_s1 + $0x2c4] ss:$16 sps:$4 sm:$0xff]   ;;  %v2794_v31 = vld [vmem:[%s3636_s1 + $0x2cc] ss:$16 sps:$4 sm:$0xff]   ;;  %v692_v32 = vld [vmem:[%s3635_s0 + $0x18] sm:$0xc] }
  0x60   : > { %v696_v33 = vpack.c.bf16 %v692_v32, %v692_v32  ;;  %v2812_v46 = vld [vmem:[%s3636_s1 + $0x32c] ss:$16 sps:$4 sm:$0xff]   ;;  %v2810_v48 = vld [vmem:[%s3636_s1 + $0x328] ss:$16 sps:$4 sm:$0xff]   ;;  %v2831_v63 = vld [vmem:[%s3636_s1 + $0x3a0] ss:$16 sps:$4 sm:$0xff]  }
  0x61   : > { %v2816_v52 = vld [vmem:[%s3636_s1 + $0x348] ss:$16 sps:$4 sm:$0xff]   ;;  %v2842_v2 = vld [vmem:[%s3636_s1 + $0x3cc] ss:$16 sps:$4 sm:$0xff]   ;;  %vm1643_vm0 = vcmask 1041408   ;;  %s2375_s22 = sshll.u32 %s2991_s12, 4 }
  0x62   : > { %1494 = vmatpush1.bf16.msra.mxu0 %v2709_v34  ;;  %1576 = vmatpush1.bf16.msra.mxu1 %v2710_v35  ;;  %v2789_v34 = vld [vmem:[%s3636_s1 + $0x2c0] ss:$16 sps:$4 sm:$0xff]   ;;  %v2792_v35 = vld [vmem:[%s3636_s1 + $0x2c8] ss:$16 sps:$4 sm:$0xff]   ;;  %p679_p8 = scmp.lt.s32.totalorder %s2375_s22, 63  ;;  %vm2924_vm1 = vmmov 0  }
  0x63   : > { %1495 = vmatprep.subr.bf16.mxu0 %v2711_v36  ;;  %1577 = vmatprep.subr.bf16.mxu1 %v2713_v37  ;;  %v2797_v36 = vld [vmem:[%s3636_s1 + $0x2e4] ss:$16 sps:$4 sm:$0xff]   ;;  %v2800_v37 = vld [vmem:[%s3636_s1 + $0x2ec] ss:$16 sps:$4 sm:$0xff]   ;;  %p669_p9 = scmp.lt.s32.totalorder %s2991_s12, 3 }
  0x64   : > { %v2869_v32 = vld [vmem:[%s3542_s18 + $0x68] sm:$0xff]   ;;  %s3649_s22 = smov (!%p679_p8, %s2375_s22), 63 }
  0x65   : > { %s2376_s23 = sshll.u32 %s3649_s22, 2  ;;  %s3651_s12 = smov (!%p669_p9, %s2991_s12), 3 }
  0x66   : > { %1496 = vmatpush1.bf16.msra.mxu0 %v2715_v38  ;;  %1578 = vmatpush1.bf16.msra.mxu1 %v2716_v39  ;;  %v832_v38 = vrot.slane %v696_v33, 1  ;;  %v2795_v39 = vld [vmem:[%s3636_s1 + $0x2e0] ss:$16 sps:$4 sm:$0xff]   ;;  %v2870_v33 = vld [vmem:[%s3542_s18 + $0xe8] sm:$0xff]   ;;  %s682_s26 = scalar_lea.vmem %s3643_s8, %s2376_s23  ;;  %s671_s29 = scalar_lea.vmem %s3640_s5, %s3651_s12 }
  0x67   : > { %1497 = vmatprep.subr.bf16.mxu0 %v2717_v40  ;;  %1579 = vmatprep.subr.bf16.mxu1 %v2719_v41  ;;  %v2798_v40 = vld [vmem:[%s3636_s1 + $0x2e8] ss:$16 sps:$4 sm:$0xff]   ;;  %v2803_v41 = vld [vmem:[%s3636_s1 + $0x304] ss:$16 sps:$4 sm:$0xff]   ;;  %s677_s11 = scalar_lea.vmem %s3642_s7, %s3651_s12  ;;  %s674_s30 = scalar_lea.vmem %s3641_s6, %s3651_s12 }
  0x68   : > { %s2377_s19 = sshll.u32 %s3651_s12, 1 }
  0x69   : > { %s687_s22 = scalar_lea.vmem %s3644_s9, %s2377_s19 }
  0x6a   : > { %1498 = vmatpush1.bf16.msra.mxu0 %v2721_v42  ;;  %1580 = vmatpush1.bf16.msra.mxu1 %v2722_v43  ;;  %v2806_v42 = vld [vmem:[%s3636_s1 + $0x30c] ss:$16 sps:$4 sm:$0xff]   ;;  %v2801_v43 = vld [vmem:[%s3636_s1 + $0x300] ss:$16 sps:$4 sm:$0xff]  }
  0x6b   : > { %1499 = vmatprep.subr.bf16.mxu0 %v2723_v44  ;;  %1581 = vmatprep.subr.bf16.mxu1 %v2725_v45  ;;  %v2804_v44 = vld [vmem:[%s3636_s1 + $0x308] ss:$16 sps:$4 sm:$0xff]   ;;  %v2809_v45 = vld [vmem:[%s3636_s1 + $0x324] ss:$16 sps:$4 sm:$0xff]  }
  0x6e   : > { %1500 = vmatpush1.bf16.msra.mxu0 %v2727_v47  ;;  %1582 = vmatpush1.bf16.msra.mxu1 %v2728_v49  ;;  %v2807_v47 = vld [vmem:[%s3636_s1 + $0x320] ss:$16 sps:$4 sm:$0xff]   ;;  %v2815_v49 = vld [vmem:[%s3636_s1 + $0x344] ss:$16 sps:$4 sm:$0xff]  }
  0x6f   : > { %1501 = vmatprep.subr.bf16.mxu0 %v2729_v50  ;;  %1583 = vmatprep.subr.bf16.mxu1 %v2731_v51  ;;  %v2818_v50 = vld [vmem:[%s3636_s1 + $0x34c] ss:$16 sps:$4 sm:$0xff]   ;;  %v2813_v51 = vld [vmem:[%s3636_s1 + $0x340] ss:$16 sps:$4 sm:$0xff]  }
  0x72   : > { %1502 = vmatpush1.bf16.msra.mxu0 %v2733_v53  ;;  %1584 = vmatpush1.bf16.msra.mxu1 %v2734_v54  ;;  %v2821_v53 = vld [vmem:[%s3636_s1 + $0x364] ss:$16 sps:$4 sm:$0xff]   ;;  %v2824_v54 = vld [vmem:[%s3636_s1 + $0x36c] ss:$16 sps:$4 sm:$0xff]  }
  0x73   : > { %1503 = vmatprep.subr.bf16.mxu0 %v2735_v55  ;;  %1585 = vmatprep.subr.bf16.mxu1 %v2737_v56  ;;  %v2819_v55 = vld [vmem:[%s3636_s1 + $0x360] ss:$16 sps:$4 sm:$0xff]   ;;  %v2822_v56 = vld [vmem:[%s3636_s1 + $0x368] ss:$16 sps:$4 sm:$0xff]  }
  0x76   : > { %1504 = vmatpush1.bf16.msra.mxu0 %v2739_v57  ;;  %1586 = vmatpush1.bf16.msra.mxu1 %v2740_v58  ;;  %v2827_v57 = vld [vmem:[%s3636_s1 + $0x384] ss:$16 sps:$4 sm:$0xff]   ;;  %v2830_v58 = vld [vmem:[%s3636_s1 + $0x38c] ss:$16 sps:$4 sm:$0xff]  }
  0x77   : > { %1505 = vmatprep.subr.bf16.mxu0 %v2741_v59  ;;  %1587 = vmatprep.subr.bf16.mxu1 %v2743_v60  ;;  %v2825_v59 = vld [vmem:[%s3636_s1 + $0x380] ss:$16 sps:$4 sm:$0xff]   ;;  %v2828_v60 = vld [vmem:[%s3636_s1 + $0x388] ss:$16 sps:$4 sm:$0xff]  }
  0x7a   : > { %1506 = vmatpush1.bf16.msra.mxu0 %v2745_v61  ;;  %1588 = vmatpush1.bf16.msra.mxu1 %v2746_v62  ;;  %v2833_v61 = vld [vmem:[%s3636_s1 + $0x3a4] ss:$16 sps:$4 sm:$0xff]   ;;  %v2836_v62 = vld [vmem:[%s3636_s1 + $0x3ac] ss:$16 sps:$4 sm:$0xff]  }
  0x7b   : > { %1507 = vmatprep.subr.bf16.mxu0 %v2747_v0  ;;  %1589 = vmatprep.subr.bf16.mxu1 %v2749_v1  ;;  %v2834_v0 = vld [vmem:[%s3636_s1 + $0x3a8] ss:$16 sps:$4 sm:$0xff]   ;;  %v2839_v1 = vld [vmem:[%s3636_s1 + $0x3c4] ss:$16 sps:$4 sm:$0xff]  }
  0x7e   : > { %1508 = vmatpush1.bf16.msra.mxu0 %v2751_v3  ;;  %1590 = vmatpush1.bf16.msra.mxu1 %v2752_v4  ;;  %v2837_v3 = vld [vmem:[%s3636_s1 + $0x3c0] ss:$16 sps:$4 sm:$0xff]   ;;  %v2840_v4 = vld [vmem:[%s3636_s1 + $0x3c8] ss:$16 sps:$4 sm:$0xff]  }
  0x7f   : > { %1518 = vmatprep.subr.bf16.mxu0 %v2755_v5  ;;  %1600 = vmatprep.subr.bf16.mxu1 %v2758_v6  ;;  %v691_v5 = vld [vmem:[%s3635_s0 + $0x10] sm:$0xc]  ;;  %v2845_v6 = vld [vmem:[%s3636_s1 + $0x3e4] ss:$16 sps:$4 sm:$0xff]  }
  0x81   : > { %1510 = vmatmul.mubr.bf16.vlgmr.msra.gmra.mrb[0].mxu0 %v829_v7  ;;  %1592 = vmatmul.mubr.bf16.vlgmr.msra.gmra.mrb[0].mxu1 %v829_v7  ;;  %v2848_v7 = vld [vmem:[%s3636_s1 + $0x3ec] ss:$16 sps:$4 sm:$0xff]  }
  0x82   : > { %1519 = vmatpush1.bf16.msra.mxu0 %v2753_v8  ;;  %1601 = vmatpush1.bf16.msra.mxu1 %v2756_v9  ;;  %v695_v8 = vpack.c.bf16 %v691_v5, %v691_v5  ;;  %v2843_v9 = vld [vmem:[%s3636_s1 + $0x3e0] ss:$16 sps:$4 sm:$0xff]  }
  0x83   : > { %1520 = vmatprep.subr.bf16.mxu0 %v2761_v10  ;;  %1602 = vmatprep.subr.bf16.mxu1 %v2764_v11  ;;  %v2846_v10 = vld [vmem:[%s3636_s1 + $0x3e8] ss:$16 sps:$4 sm:$0xff]  }
  0x84   : > { %1550 = vmatprep.mubr.bf16.mxu0 %v832_v38  ;;  %1632 = vmatprep.mubr.bf16.mxu1 %v832_v38  ;;  %v831_v11 = vrot.slane %v695_v8, 1  ;;  %v2875_v38 = vld [vmem:[%s3542_s18 + $0x30] sm:$0xff]  }
  0x86   : > { %1521 = vmatpush1.bf16.msra.mxu0 %v2759_v12  ;;  %1603 = vmatpush1.bf16.msra.mxu1 %v2762_v13  ;;  %v2849_v12 = vld [vmem:[%s3542_s18 + $0x40] sm:$0xff]  }
  0x87   : > { %1522 = vmatprep.subr.bf16.mxu0 %v2767_v14  ;;  %1604 = vmatprep.subr.bf16.mxu1 %v2770_v15  ;;  %v2850_v13 = vld [vmem:[%s3542_s18 + $0xc0] sm:$0xff]  }
  0x88   : > { %v2851_v14 = vld [vmem:[%s3542_s18] sm:$0xff]  }
  0x89   : > { %v2852_v15 = vld [vmem:[%s3542_s18 + $0x80] sm:$0xff]  }
  0x8a   : > { %1523 = vmatpush1.bf16.msra.mxu0 %v2765_v16  ;;  %1605 = vmatpush1.bf16.msra.mxu1 %v2768_v17  ;;  %v2853_v16 = vld [vmem:[%s3542_s18 + $0x48] sm:$0xff]  }
  0x8b   : > { %1524 = vmatprep.subr.bf16.mxu0 %v2773_v18  ;;  %1606 = vmatprep.subr.bf16.mxu1 %v2776_v19  ;;  %v2854_v17 = vld [vmem:[%s3542_s18 + $0xc8] sm:$0xff]  }
  0x8c   : > { %v2855_v18 = vld [vmem:[%s3542_s18 + $0x8] sm:$0xff]  }
  0x8d   : > { %v2856_v19 = vld [vmem:[%s3542_s18 + $0x88] sm:$0xff]  }
  0x8e   : > { %1525 = vmatpush1.bf16.msra.mxu0 %v2771_v20  ;;  %1607 = vmatpush1.bf16.msra.mxu1 %v2774_v21  ;;  %v2857_v20 = vld [vmem:[%s3542_s18 + $0x50] sm:$0xff]  }
  0x8f   : > { %1526 = vmatprep.subr.bf16.mxu0 %v2779_v22  ;;  %1608 = vmatprep.subr.bf16.mxu1 %v2782_v23  ;;  %v2858_v21 = vld [vmem:[%s3542_s18 + $0xd0] sm:$0xff]  }
  0x90   : > { %v2859_v22 = vld [vmem:[%s3542_s18 + $0x10] sm:$0xff]  }
  0x91   : > { %v2860_v23 = vld [vmem:[%s3542_s18 + $0x90] sm:$0xff]  }
  0x92   : > { %1527 = vmatpush1.bf16.msra.mxu0 %v2777_v24  ;;  %1609 = vmatpush1.bf16.msra.mxu1 %v2780_v25  ;;  %v2861_v24 = vld [vmem:[%s3542_s18 + $0x58] sm:$0xff]  }
  0x93   : > { %1528 = vmatprep.subr.bf16.mxu0 %v2785_v26  ;;  %1610 = vmatprep.subr.bf16.mxu1 %v2788_v27  ;;  %v2862_v25 = vld [vmem:[%s3542_s18 + $0xd8] sm:$0xff]  }
  0x94   : > { %v2863_v26 = vld [vmem:[%s3542_s18 + $0x18] sm:$0xff]  }
  0x95   : > { %v2864_v27 = vld [vmem:[%s3542_s18 + $0x98] sm:$0xff]  }
  0x96   : > { %1529 = vmatpush1.bf16.msra.mxu0 %v2783_v28  ;;  %1611 = vmatpush1.bf16.msra.mxu1 %v2786_v29  ;;  %v2865_v28 = vld [vmem:[%s3542_s18 + $0x60] sm:$0xff]  }
  0x97   : > { %1530 = vmatprep.subr.bf16.mxu0 %v2791_v30  ;;  %1612 = vmatprep.subr.bf16.mxu1 %v2794_v31  ;;  %v2866_v29 = vld [vmem:[%s3542_s18 + $0xe0] sm:$0xff]  }
  0x98   : > { %v2867_v30 = vld [vmem:[%s3542_s18 + $0x20] sm:$0xff]  }
  0x99   : > { %v2868_v31 = vld [vmem:[%s3542_s18 + $0xa0] sm:$0xff]  }
  0x9a   : > { %1531 = vmatpush1.bf16.msra.mxu0 %v2789_v34  ;;  %1613 = vmatpush1.bf16.msra.mxu1 %v2792_v35  ;;  %v2871_v34 = vld [vmem:[%s3542_s18 + $0x28] sm:$0xff]  }
  0x9b   : > { %1532 = vmatprep.subr.bf16.mxu0 %v2797_v36  ;;  %1614 = vmatprep.subr.bf16.mxu1 %v2800_v37  ;;  %v2872_v35 = vld [vmem:[%s3542_s18 + $0xa8] sm:$0xff]   ;;  %v2873_v36 = vld [vmem:[%s3542_s18 + $0x70] sm:$0xff]  }
  0x9c   : > { %v2874_v37 = vld [vmem:[%s3542_s18 + $0xf0] sm:$0xff]  }
  0x9e   : > { %1533 = vmatpush1.bf16.msra.mxu0 %v2795_v39  ;;  %1615 = vmatpush1.bf16.msra.mxu1 %v2798_v40  ;;  %v2876_v39 = vld [vmem:[%s3542_s18 + $0xb0] sm:$0xff]   ;;  %v2877_v40 = vld [vmem:[%s3542_s18 + $0x78] sm:$0xff]  }
  0x9f   : > { %1534 = vmatprep.subr.bf16.mxu0 %v2803_v41  ;;  %1616 = vmatprep.subr.bf16.mxu1 %v2806_v42  ;;  %v2878_v41 = vld [vmem:[%s3542_s18 + $0xf8] sm:$0xff]  }
  0xa0   : > { %v2879_v42 = vld [vmem:[%s3542_s18 + $0x38] sm:$0xff]  }
  0xa2   : > { %1535 = vmatpush1.bf16.msra.mxu0 %v2801_v43  ;;  %1617 = vmatpush1.bf16.msra.mxu1 %v2804_v44  ;;  %v2880_v43 = vld [vmem:[%s3542_s18 + $0xb8] sm:$0xff]  }
  0xa3   : > { %1536 = vmatprep.subr.bf16.mxu0 %v2809_v45  ;;  %1618 = vmatprep.subr.bf16.mxu1 %v2812_v46 }
  0xa6   : > { %1537 = vmatpush1.bf16.msra.mxu0 %v2807_v47  ;;  %1619 = vmatpush1.bf16.msra.mxu1 %v2810_v48 }
  0xa7   : > { %1538 = vmatprep.subr.bf16.mxu0 %v2815_v49  ;;  %1620 = vmatprep.subr.bf16.mxu1 %v2818_v50 }
  0xaa   : > { %1539 = vmatpush1.bf16.msra.mxu0 %v2813_v51  ;;  %1621 = vmatpush1.bf16.msra.mxu1 %v2816_v52 }
  0xab   : > { %1540 = vmatprep.subr.bf16.mxu0 %v2821_v53  ;;  %1622 = vmatprep.subr.bf16.mxu1 %v2824_v54 }
  0xae   : > { %1541 = vmatpush1.bf16.msra.mxu0 %v2819_v55  ;;  %1623 = vmatpush1.bf16.msra.mxu1 %v2822_v56 }
  0xaf   : > { %1542 = vmatprep.subr.bf16.mxu0 %v2827_v57  ;;  %1624 = vmatprep.subr.bf16.mxu1 %v2830_v58 }
  0xb2   : > { %1543 = vmatpush1.bf16.msra.mxu0 %v2825_v59  ;;  %1625 = vmatpush1.bf16.msra.mxu1 %v2828_v60 }
  0xb3   : > { %1544 = vmatprep.subr.bf16.mxu0 %v2833_v61  ;;  %1626 = vmatprep.subr.bf16.mxu1 %v2836_v62 }
  0xb6   : > { %1545 = vmatpush1.bf16.msra.mxu0 %v2831_v63  ;;  %1627 = vmatpush1.bf16.msra.mxu1 %v2834_v0 }
  0xb7   : > { %1546 = vmatprep.subr.bf16.mxu0 %v2839_v1  ;;  %1628 = vmatprep.subr.bf16.mxu1 %v2842_v2 }
  0xba   : > { %1547 = vmatpush1.bf16.msra.mxu0 %v2837_v3  ;;  %1629 = vmatpush1.bf16.msra.mxu1 %v2840_v4 }
  0xbb   : > { %1548 = vmatprep.subr.bf16.mxu0 %v2845_v6  ;;  %1630 = vmatprep.subr.bf16.mxu1 %v2848_v7 }
  0xbe   : > { %1549 = vmatpush1.bf16.msra.mxu0 %v2843_v9  ;;  %1631 = vmatpush1.bf16.msra.mxu1 %v2846_v10 }
  0xbf   : > { %2550 = vmatprep.subr.bf16.mxu0 %v2849_v12  ;;  %2572 = vmatprep.subr.bf16.mxu1 %v2850_v13 }
  0xc1   : > { %1551 = vmatmul.mubr.bf16.vlgmr.msra.gmra.mrb[0].mxu0 %v831_v11  ;;  %1633 = vmatmul.mubr.bf16.vlgmr.msra.gmra.mrb[0].mxu1 %v831_v11 }
  0xc2   : > { %2551 = vmatpush3.bf16.msra.mxu0 %v2851_v14  ;;  %2573 = vmatpush3.bf16.msra.mxu1 %v2852_v15 }
  0xc3   : > { %2552 = vmatprep.subr.bf16.mxu0 %v2853_v16  ;;  %2574 = vmatprep.subr.bf16.mxu1 %v2854_v17 }
  0xc6   : > { %2553 = vmatpush3.bf16.msra.mxu0 %v2855_v18  ;;  %2575 = vmatpush3.bf16.msra.mxu1 %v2856_v19 }
  0xc7   : > { %2554 = vmatprep.subr.bf16.mxu0 %v2857_v20  ;;  %2576 = vmatprep.subr.bf16.mxu1 %v2858_v21 }
  0xca   : > { %2555 = vmatpush3.bf16.msra.mxu0 %v2859_v22  ;;  %2577 = vmatpush3.bf16.msra.mxu1 %v2860_v23 }
  0xcb   : > { %2556 = vmatprep.subr.bf16.mxu0 %v2861_v24  ;;  %2578 = vmatprep.subr.bf16.mxu1 %v2862_v25 }
  0xce   : > { %2557 = vmatpush3.bf16.msra.mxu0 %v2863_v26  ;;  %2579 = vmatpush3.bf16.msra.mxu1 %v2864_v27 }
  0xcf   : > { %2558 = vmatprep.subr.bf16.mxu0 %v2865_v28  ;;  %2580 = vmatprep.subr.bf16.mxu1 %v2866_v29 }
  0xd2   : > { %2559 = vmatpush3.bf16.msra.mxu0 %v2867_v30  ;;  %2581 = vmatpush3.bf16.msra.mxu1 %v2868_v31 }
  0xd3   : > { %2560 = vmatprep.subr.bf16.mxu0 %v2869_v32  ;;  %2582 = vmatprep.subr.bf16.mxu1 %v2870_v33 }
  0xd6   : > { %2561 = vmatpush3.bf16.msra.mxu0 %v2871_v34  ;;  %2583 = vmatpush3.bf16.msra.mxu1 %v2872_v35 }
  0xd7   : > { %2562 = vmatprep.subr.bf16.mxu0 %v2873_v36  ;;  %2584 = vmatprep.subr.bf16.mxu1 %v2874_v37 }
  0xda   : > { %2563 = vmatpush3.bf16.msra.mxu0 %v2875_v38  ;;  %2585 = vmatpush3.bf16.msra.mxu1 %v2876_v39 }
  0xdb   : > { %2564 = vmatprep.subr.bf16.mxu0 %v2877_v40  ;;  %2586 = vmatprep.subr.bf16.mxu1 %v2878_v41 }
  0xde   : > { %2565 = vmatpush3.bf16.msra.mxu0 %v2879_v42  ;;  %2587 = vmatpush3.bf16.msra.mxu1 %v2880_v43 }
 0x194   : > { %v1552_v44 = vpop.f32.mrb[0].mxu0  ;;  %v1634_v45 = vpop.f32.mrb[0].mxu1 }
 0x195   : > { %v1644_v46 = vsel %vm1643_vm0, %v1552_v44, 0.0  ;;  %v1658_v47 = vsel %vm1643_vm0, %v1634_v45, 0.0  ;;  %v1554_v48 = vpop.f32.mrb[1].mxu0  ;;  %v1636_v49 = vpop.f32.mrb[1].mxu1 }
 0x196   : > { %v1645_v50 = vrot.slane %v1644_v46, 4  ;;  %v1659_v51 = vrot.slane %v1658_v47, 4  ;;  %v1651_v52 = vsel %vm1643_vm0, %v1554_v48, 0.0  ;;  %v1665_v53 = vsel %vm1643_vm0, %v1636_v49, 0.0  ;;  %v1556_v54 = vpop.f32.mrb[2].mxu0  ;;  %v1638_v55 = vpop.f32.mrb[2].mxu1 }
 0x197   : > { %v1652_v56 = vrot.slane %v1651_v52, 4  ;;  %v1666_v57 = vrot.slane %v1665_v53, 4  ;;  %v1557_v58 = vpop.f32.mrb[3].mxu0  ;;  %v1639_v59 = vpop.f32.mrb[3].mxu1 }
 0x198   : > { %v1646_v60 = vadd.f32 %v1645_v50, %v1644_v46  ;;  %v1660_v61 = vadd.f32 %v1659_v51, %v1658_v47  ;;  %v1729_v58 = vlaneseq }
 0x199   : > { %v1653_v62 = vadd.f32 %v1652_v56, %v1651_v52  ;;  %v1667_v63 = vadd.f32 %v1666_v57, %v1665_v53 }
 0x19a   : > { %v1647_v0 = vrot.slane %v1646_v60, 2  ;;  %v1661_v1 = vrot.slane %v1660_v61, 2 }
 0x19b   : > { %v1654_v2 = vrot.slane %v1653_v62, 2  ;;  %v1668_v3 = vrot.slane %v1667_v63, 2 }
 0x19c   : > { %v1648_v4 = vadd.f32 %v1647_v0, %v1646_v60  ;;  %v1662_v5 = vadd.f32 %v1661_v1, %v1660_v61  ;;  %v1730_v1 = vshrl.u32 %v1729_v58, 7 }
 0x19d   : > { %v1655_v6 = vadd.f32 %v1654_v2, %v1653_v62  ;;  %v1669_v7 = vadd.f32 %v1668_v3, %v1667_v63  ;;  %v1641_v3 = vld [vmem:[%s3637_s2] sm:$0xf] }
 0x19e   : > { %v1649_v8 = vrot.slane %v1648_v4, 1  ;;  %v1663_v9 = vrot.slane %v1662_v5, 1  ;;  %v1731_v2 = vsub.s32 0, %v1730_v1 }
 0x19f   : > { %v1656_v10 = vrot.slane %v1655_v6, 1  ;;  %v1670_v11 = vrot.slane %v1669_v7, 1 }
 0x1a0   : > { %v1650_v12 = vadd.f32 %v1649_v8, %v1648_v4  ;;  %v1664_v13 = vadd.f32 %v1663_v9, %v1662_v5  ;;  %v1739_v4 = vsub.s32 2, %v1730_v1  ;;  %v1735_v5 = vsub.s32 1, %v1730_v1 }
 0x1a1   : > { %v1657_v14 = vadd.f32 %v1656_v10, %v1655_v6  ;;  %v1671_v15 = vadd.f32 %v1670_v11, %v1669_v7  ;;  %v1642_v6 = vld [vmem:[%s3638_s3] sm:$0xf]  ;;  %v1743_v7 = vsub.s32 3, %v1730_v1  ;;  %v1732_v8 = vrot.slane %v1641_v3, %v1731_v2 }
 0x1a2   : > { %v1672_v16 = vmul.f32 0.5, %v1650_v12  ;;  %v1674_v17 = vmul.f32 0.5, %v1664_v13  ;;  %v1740_v10 = vrot.slane %v1641_v3, %v1739_v4  ;;  %v1757_v13 = vrot.slane %v1642_v6, %v1731_v2 }
 0x1a3   : > { %v1673_v18 = vmul.f32 0.5, %v1657_v14  ;;  %v1675_v19 = vmul.f32 0.5, %v1671_v15  ;;  %v1736_v14 = vrot.slane %v1641_v3, %v1735_v5 }
 0x1a4   : > { %v1676_v20 = vsub.f32 %v1552_v44, %v1672_v16  ;;  %v3580_v21 = vsub.f32 %v1634_v45, %v1674_v17  ;;  %v1765_v17 = vrot.slane %v1642_v6, %v1739_v4 }
 0x1a5   : > { %v3582_v22 = vsub.f32 %v1554_v48, %v1673_v18  ;;  %v3584_v23 = vsub.f32 %v1636_v49, %v1675_v19  ;;  %v1744_v18 = vrot.slane %v1641_v3, %v1743_v7 }
 0x1a6   : > { %v1680_v24 = vmul.f32 %v1676_v20, %v1676_v20  ;;  %v1682_v25 = vmul.f32 %v3580_v21, %v3580_v21 }
 0x1a7   : > { %v1681_v26 = vmul.f32 %v3582_v22, %v3582_v22  ;;  %v1683_v27 = vmul.f32 %v3584_v23, %v3584_v23 }
 0x1a8   : > { %v1684_v28 = vsel %vm1643_vm0, %v1680_v24, 0.0  ;;  %v1698_v29 = vsel %vm1643_vm0, %v1682_v25, 0.0 }
 0x1a9   : > { %v1685_v30 = vrot.slane %v1684_v28, 4  ;;  %v1699_v31 = vrot.slane %v1698_v29, 4  ;;  %v1691_v32 = vsel %vm1643_vm0, %v1681_v26, 0.0  ;;  %v1705_v33 = vsel %vm1643_vm0, %v1683_v27, 0.0 }
 0x1aa   : > { %v1692_v34 = vrot.slane %v1691_v32, 4  ;;  %v1706_v35 = vrot.slane %v1705_v33, 4  ;;  %v1761_v26 = vrot.slane %v1642_v6, %v1735_v5 }
 0x1ab   : > { %v1686_v36 = vadd.f32 %v1685_v30, %v1684_v28  ;;  %v1700_v37 = vadd.f32 %v1699_v31, %v1698_v29  ;;  %v1769_v29 = vrot.slane %v1642_v6, %v1743_v7 }
 0x1ac   : > { %v1693_v38 = vadd.f32 %v1692_v34, %v1691_v32  ;;  %v1707_v39 = vadd.f32 %v1706_v35, %v1705_v33 }
 0x1ad   : > { %v1687_v40 = vrot.slane %v1686_v36, 2  ;;  %v1701_v41 = vrot.slane %v1700_v37, 2 }
 0x1ae   : > { %v1694_v42 = vrot.slane %v1693_v38, 2  ;;  %v1708_v43 = vrot.slane %v1707_v39, 2 }
 0x1af   : > { %v1688_v44 = vadd.f32 %v1687_v40, %v1686_v36  ;;  %v1702_v45 = vadd.f32 %v1701_v41, %v1700_v37  ;;  %v2923_v41 = vmov 0.0  }
 0x1b0   : > { %v1695_v46 = vadd.f32 %v1694_v42, %v1693_v38  ;;  %v1709_v47 = vadd.f32 %v1708_v43, %v1707_v39  ;;  %2603 = vmatprep.subr.bf16.mxu0 %v2923_v41  ;;  %v2882_v42 = vld [vmem:[%s682_s26 + $0x8] sm:$0xff]   ;;  %v2883_v43 = vld [vmem:[%s682_s26 + $0x10] sm:$0xff]  }
 0x1b1   : > { %v1689_v48 = vrot.slane %v1688_v44, 1  ;;  %v1703_v49 = vrot.slane %v1702_v45, 1 }
 0x1b2   : > { %v1696_v50 = vrot.slane %v1695_v46, 1  ;;  %v1710_v51 = vrot.slane %v1709_v47, 1 }
 0x1b3   : > { %v1690_v52 = vadd.f32 %v1689_v48, %v1688_v44  ;;  %v1704_v53 = vadd.f32 %v1703_v49, %v1702_v45  ;;  %v2884_v44 = vld [vmem:[%s682_s26 + $0x18] sm:$0xff]   ;;  %v2885_v45 = vld [vmem:[%s682_s26 + $0x20] sm:$0xff]  }
 0x1b4   : > { %v1697_v54 = vadd.f32 %v1696_v50, %v1695_v46  ;;  %v1711_v55 = vadd.f32 %v1710_v51, %v1709_v47  ;;  %v2886_v46 = vld [vmem:[%s682_s26 + $0x28] sm:$0xff]   ;;  %v2887_v47 = vld [vmem:[%s682_s26 + $0x30] sm:$0xff]   ;;  %v2888_v48 = vld [vmem:[%s682_s26 + $0x38] sm:$0xff]  }
 0x1b5   : > { %v1712_v56 = vmul.f32 0.5, %v1690_v52  ;;  %v1714_v57 = vmul.f32 0.5, %v1704_v53 }
 0x1b6   : > { %v1713_v59 = vmul.f32 0.5, %v1697_v54  ;;  %v1715_v60 = vmul.f32 0.5, %v1711_v55 }
 0x1b7   : > { %v1716_v61 = vadd.f32 1e-05, %v1712_v56  ;;  %v1718_v62 = vadd.f32 1e-05, %v1714_v57 }
 0x1b8   : > { %v1717_v63 = vadd.f32 1e-05, %v1713_v59  ;;  %v1719_v0 = vadd.f32 1e-05, %v1715_v60 }
 0x1b9   : > { %2889 = vrsqrt.f32 %v1716_v61 }
 0x1ba   : > { %2891 = vrsqrt.f32 %v1718_v62 }
 0x1bb   : > { %2893 = vrsqrt.f32 %v1717_v63 }
 0x1bc   : > { %2895 = vrsqrt.f32 %v1719_v0 }
 0x1c3   : > { %v2890_v9 = vpop.eup %2889 }
 0x1c4   : > { %v2892_v11 = vpop.eup %2891  ;;  %v1724_v12 = vmul.f32 %v2890_v9, %v1676_v20 }
 0x1c5   : > { %v2894_v15 = vpop.eup %2893  ;;  %v1726_v16 = vmul.f32 %v2892_v11, %v3580_v21 }
 0x1c6   : > { %v2896_v19 = vpop.eup %2895  ;;  %v1749_v24 = vmul.f32 %v1732_v8, %v1724_v12  ;;  %v1725_v25 = vmul.f32 %v2894_v15, %v3582_v22 }
 0x1c7   : > { %v1751_v27 = vmul.f32 %v1740_v10, %v1726_v16  ;;  %v1727_v28 = vmul.f32 %v2896_v19, %v3584_v23  ;;  %v2881_v23 = vld [vmem:[%s682_s26] sm:$0xff]  }
 0x1c8   : > { %v1774_v30 = vadd.f32 %v1757_v13, %v1749_v24  ;;  %v1750_v31 = vmul.f32 %v1736_v14, %v1725_v25  ;;  %v2538_v16 = vld [vmem:[%s671_s29] ss:$0 sm:$0xff] }
 0x1c9   : > { %v1776_v32 = vadd.f32 %v1765_v17, %v1751_v27  ;;  %v1752_v20 = vmul.f32 %v1744_v18, %v1727_v28  ;;  %v1782_v17 = vld [vmem:[%s677_s11] sm:$0x1] }
 0x1ca   : > { %v1775_v33 = vadd.f32 %v1761_v26, %v1750_v31  ;;  %v1778_v35 = vmax.f32 %v1774_v30, 0.0  ;;  %v2539_v19 = vld [vmem:[%s674_s30] ss:$0 sm:$0xff]  ;;  %v1783_v25 = vunpack.c.l.bf16 %v1782_v17 }
 0x1cb   : > { %v1777_v34 = vadd.f32 %v1769_v29, %v1752_v20  ;;  %v1780_v36 = vmax.f32 %v1776_v32, 0.0 }
 0x1cc   : > { %v1779_v21 = vmax.f32 %v1775_v33, 0.0  ;;  %v1784_v40 = vpack.c.bf16 %v1778_v35, %v1778_v35 }
 0x1cd   : > { %v1781_v37 = vmax.f32 %v1777_v34, 0.0  ;;  %v1786_v22 = vpack.c.bf16 %v1780_v36, %v1780_v36 }
 0x1ce   : > { %v1785_v38 = vpack.c.bf16 %v1779_v21, %v1779_v21 }
 0x1cf   : > { %v1787_v39 = vpack.c.bf16 %v1781_v37, %v1781_v37 }
 0x1d0   : > { %2076 = vmatprep.mubr.bf16.mxu0 %v1785_v38 }
 0x1d1   : > { %2116 = vmatprep.mubr.bf16.mxu1 %v1787_v39  ;;  %2077 = vmatmul.mubr.bf16.vlgmr.msra.gmra.mrb[4].mxu0 %v1784_v40 }
 0x1d2   : > { %2117 = vmatmul.mubr.bf16.vlgmr.msra.gmra.mrb[4].mxu1 %v1786_v22  ;;  %2604 = vmatpush3.bf16.msra.mxu0 %v2881_v23 }
 0x1d3   : > { %2605 = vmatprep.subr.bf16.mxu0 %v2923_v41  ;;  %2619 = vmatprep.mubr.msk.bf16.mxu0 %vm2924_vm1, %v2923_v41 }
 0x1d6   : > { %2606 = vmatpush3.bf16.msra.mxu0 %v2882_v42 }
 0x1d7   : > { %2607 = vmatprep.subr.bf16.mxu0 %v2923_v41 }
 0x1da   : > { %2608 = vmatpush3.bf16.msra.mxu0 %v2883_v43 }
 0x1db   : > { %2609 = vmatprep.subr.bf16.mxu0 %v2923_v41 }
 0x1de   : > { %2610 = vmatpush3.bf16.msra.mxu0 %v2884_v44 }
 0x1df   : > { %2611 = vmatprep.subr.bf16.mxu0 %v2923_v41 }
 0x1e2   : > { %2612 = vmatpush3.bf16.msra.mxu0 %v2885_v45 }
 0x1e3   : > { %2613 = vmatprep.subr.bf16.mxu0 %v2923_v41 }
 0x1e6   : > { %2614 = vmatpush3.bf16.msra.mxu0 %v2886_v46 }
 0x1e7   : > { %2615 = vmatprep.subr.bf16.mxu0 %v2923_v41 }
 0x1ea   : > { %2616 = vmatpush3.bf16.msra.mxu0 %v2887_v47 }
 0x1eb   : > { %2617 = vmatprep.subr.bf16.mxu0 %v2923_v41 }
 0x1ee   : > { %2618 = vmatpush3.bf16.msra.mxu0 %v2888_v48 }
 0x2a4   : > { %v2566_v49 = vpop.f32.mrb[4].mxu0 }
 0x2a5   : > { %v2588_v50 = vpop.f32.mrb[4].mxu1  ;;  %v2567_v51 = vpop.f32.mrb[5].mxu0 }
 0x2a6   : > { %v2568_v52 = vadd.f32 %v2567_v51, %v2566_v49  ;;  %v2589_v53 = vpop.f32.mrb[5].mxu1  ;;  %v2569_v54 = vpop.f32.mrb[6].mxu0 }
 0x2a7   : > { %v2590_v55 = vadd.f32 %v2589_v53, %v2588_v50  ;;  %v2591_v56 = vpop.f32.mrb[6].mxu1  ;;  %v2570_v57 = vpop.f32.mrb[7].mxu0 }
 0x2a8   : > { %v2592_v58 = vpop.f32.mrb[7].mxu1 }
 0x2a9   : > { %v2119_v59 = vadd.f32 %v2590_v55, %v2568_v52 }
 0x2ab   : > { %v2126_v60 = vsel %vm1643_vm0, %v2119_v59, 0.0 }
 0x2ac   : > { %v2127_v61 = vrot.slane %v2126_v60, 4 }
 0x2ae   : > { %v2128_v62 = vadd.f32 %v2127_v61, %v2126_v60 }
 0x2b0   : > { %v2129_v63 = vrot.slane %v2128_v62, 2 }
 0x2b2   : > { %v2130_v0 = vadd.f32 %v2129_v63, %v2128_v62 }
 0x2b4   : > { %v2131_v1 = vrot.slane %v2130_v0, 1 }
 0x2b6   : > { %v2132_v2 = vadd.f32 %v2131_v1, %v2130_v0 }
 0x2b8   : > { %v2133_v3 = vmul.f32 0.5, %v2132_v2 }
 0x2ba   : > { %v2134_v4 = vsub.f32 %v2119_v59, %v2133_v3 }
 0x2bc   : > { %v2135_v5 = vmul.f32 %v2134_v4, %v2134_v4 }
 0x2be   : > { %v2136_v6 = vsel %vm1643_vm0, %v2135_v5, 0.0 }
 0x2bf   : > { %v2137_v7 = vrot.slane %v2136_v6, 4 }
 0x2c1   : > { %v2138_v8 = vadd.f32 %v2137_v7, %v2136_v6 }
 0x2c3   : > { %v2139_v9 = vrot.slane %v2138_v8, 2 }
 0x2c5   : > { %v2140_v10 = vadd.f32 %v2139_v9, %v2138_v8 }
 0x2c7   : > { %v2141_v11 = vrot.slane %v2140_v10, 1 }
 0x2c9   : > { %v2142_v12 = vadd.f32 %v2141_v11, %v2140_v10 }
 0x2cb   : > { %v2143_v13 = vmul.f32 0.5, %v2142_v12 }
 0x2cd   : > { %v2144_v14 = vadd.f32 1e-05, %v2143_v13 }
 0x2cf   : > { %2897 = vrsqrt.f32 %v2144_v14 }
 0x2d9   : > { %v2898_v15 = vpop.eup %2897 }
 0x2da   : > { %v2146_v18 = vmul.f32 %v2898_v15, %v2134_v4 }
 0x2dc   : > { %v2153_v24 = vmul.f32 %v2538_v16, %v2146_v18 }
 0x2de   : > { %v2160_v26 = vadd.f32 %v2539_v19, %v2153_v24 }
 0x2e0   : > { %v2161_v27 = vadd.f32 %v2160_v26, %v1783_v25 }
 0x2e2   : > { %v2162_v28 = vmax.f32 %v2161_v27, 0.0 }
 0x2e4   : > { %v2163_v29 = vpack.c.bf16 %v2162_v28, %v2162_v28 }
 0x2e6   : > { %2620 = vmatmul.mubr.bf16.vlgmr.msra.gmra.mrb[8].mxu0 %v2163_v29 }
 0x3b9   : > { %v2262_v30 = vpop.f32.mrb[8].mxu0 }
 0x3ba   : > { %2268 = vst [vmem:[%s687_s22] sm:$0x3] %v2262_v30  ;;  %v2621_v31 = vpop.f32.mrb[9].mxu0 }
 0x3bb   : > { %v2265_v32 = vpop.f32.mrb[10].mxu0 }
 0x3bc   : > { %v2622_v20 = vpop.f32.mrb[11].mxu0 }
 0x3bd PF: > { %p16_p10 = scmp.ge.s32.totalorder %s2994_s13, 6   ;;  %s3645_s30 = smov %s2917_s10 }
 0x3be   : > { %s3646_s10 = smov %s3003_s16  ;;  %s3647_s11 = smov %s2994_s13 }
 0x3bf   :  { %18 = sbr.rel (!%p16_p10) target bundleno = 2 (0x2), region = 144 }

// kernel: resnet18_forward.8
= control target key start
LH: loop header
LB: loop body
LE: loop exit
PB: predicated region body
PF: predicated region fallthrough
CT: control target
= control target key end

     0   :  { %s4784_s13 = smov 0   ;;  %s4786_s14 = smov 0   ;;  %s5959_s0 = inlined_call_operand.vmem [shape: f32[12,256], index: 0, kind: input, shape index: {}]   ;;  %s5960_s1 = inlined_call_operand.vmem [shape: bf16[4,256,512], index: 1, kind: input, shape index: {}]   ;;  %s5961_s2 = inlined_call_operand.vmem [shape: f32[1,512], index: 2, kind: input, shape index: {}]   ;;  %s5962_s3 = inlined_call_operand.vmem [shape: f32[1,512], index: 3, kind: input, shape index: {}]   ;;  %s5963_s4 = inlined_call_operand.vmem [shape: bf16[1,512,512], index: 4, kind: input, shape index: {}]   ;;  %s5964_s5 = inlined_call_operand.vmem [shape: f32[1,512], index: 5, kind: input, shape index: {}]   ;;  %s5965_s6 = inlined_call_operand.vmem [shape: f32[1,512], index: 6, kind: input, shape index: {}]   ;;  %s5966_s7 = inlined_call_operand.vmem [shape: bf16[1,256,512], index: 7, kind: input, shape index: {}]   ;;  %s5967_s8 = inlined_call_operand.vmem [shape: f32[1,512], index: 8, kind: input, shape index: {}]   ;;  %s5968_s9 = inlined_call_operand.vmem [shape: f32[1,512], index: 9, kind: input, shape index: {}]   ;;  %s5969_s10 = inlined_call_operand.vmem [shape: bf16[2,512], index: 10, kind: output, shape index: {}]  }
   0x1   :  { %s4788_s15 = smov 0  }
   0x2 LB: > { %s3634_s16 = sadd.s32 4294967295, %s4727_s15   ;;  %s4801_s17 = sadd.s32 1, %s4727_s15   ;;  %s4727_s15 = sphi %s4788_s15, %s5973_s15   ;;  %s4723_s14 = sphi %s4786_s14, %s5972_s14   ;;  %s4719_s13 = sphi %s4784_s13, %s5971_s13  }
   0x3   : > { %s108_s18 = ssub.s32 %s4727_s15, %s4801_s17  ;;  %s111_s19 = sadd.s32 1, %s4723_s14 }
   0x4   : > { %p109_p0 = scmp.eq.s32.totalorder %s108_s18, 0  ;;  %p118_p1 = scmp.ne.s32.totalorder %s4723_s14, %s4719_s13 }
   0x5   : > { %p119_p2 = scmp.eq.s32.totalorder %s4727_s15, 0  ;;  %p3637_p4 = scmp.ge.s32.totalorder %s4727_s15, 4 }
   0x6   : > { %s4810_s20 = scalar_select %p109_p0, %s4723_s14, %s111_s19  }
   0x7   : > { %p4812_p3 = por %p119_p2, %p118_p1  ;;  %312 = sbr.rel (%p3637_p4) target bundleno = 86 (0x56), region = 32 }
   0xe   : > { %315 = sbr.rel (!%p4812_p3) target bundleno = 61 (0x3d), region = 36  ;;  %s317_s22 = sand.u32 (%p4812_p3), 1, %s4723_s14  }
   0xf   : > { %s3639_s23 = sshll.u32 (%p4812_p3), %s4727_s15, 2  ;;  %s3638_s24 = sshll.u32 (%p4812_p3), %s317_s22, 8 }
  0x10   : > { %s4824_s27 = scalar_lea.vmem (%p4812_p3), %s5963_s4, %s3639_s23  ;;  %s4828_s28 = scalar_lea.vmem (%p4812_p3), [#allocation2], %s3638_s24 }
  0x11   : > { %v337_v0 = vld [vmem:[%s4824_s27] sm:$0xf] (%p4812_p3)  ;;  %v339_v1 = vld [vmem:[%s4824_s27 + $0x10] sm:$0xf] (%p4812_p3) }
  0x12   : > { %338 = vst [vmem:[%s4828_s28] sm:$0xf] (%p4812_p3), %v337_v0  ;;  %340 = vst [vmem:[%s4828_s28 + $0x4] sm:$0xf] (%p4812_p3), %v339_v1  ;;  %v341_v2 = vld [vmem:[%s4824_s27 + $0x20] sm:$0xf] (%p4812_p3) }
  0x13   : > { %v343_v3 = vld [vmem:[%s4824_s27 + $0x30] sm:$0xf] (%p4812_p3)  ;;  %v345_v4 = vld [vmem:[%s4824_s27 + $0x40] sm:$0xf] (%p4812_p3)  ;;  %342 = vst [vmem:[%s4828_s28 + $0x8] sm:$0xf] (%p4812_p3), %v341_v2 }
  0x14   : > { %344 = vst [vmem:[%s4828_s28 + $0xc] sm:$0xf] (%p4812_p3), %v343_v3  ;;  %346 = vst [vmem:[%s4828_s28 + $0x10] sm:$0xf] (%p4812_p3), %v345_v4  ;;  %v347_v5 = vld [vmem:[%s4824_s27 + $0x50] sm:$0xf] (%p4812_p3) }
  0x15   : > { %v349_v6 = vld [vmem:[%s4824_s27 + $0x60] sm:$0xf]  ;;  %v351_v7 = vld [vmem:[%s4824_s27 + $0x70] sm:$0xf]  ;;  %348 = vst [vmem:[%s4828_s28 + $0x14] sm:$0xf] %v347_v5 }
  0x16   : > { %350 = vst [vmem:[%s4828_s28 + $0x18] sm:$0xf] %v349_v6  ;;  %352 = vst [vmem:[%s4828_s28 + $0x1c] sm:$0xf] %v351_v7  ;;  %v353_v8 = vld [vmem:[%s4824_s27 + $0x80] sm:$0xf] }
  0x17   : > { %v355_v9 = vld [vmem:[%s4824_s27 + $0x90] sm:$0xf]  ;;  %v357_v10 = vld [vmem:[%s4824_s27 + $0xa0] sm:$0xf]  ;;  %354 = vst [vmem:[%s4828_s28 + $0x20] sm:$0xf] %v353_v8 }
  0x18   : > { %356 = vst [vmem:[%s4828_s28 + $0x24] sm:$0xf] %v355_v9  ;;  %358 = vst [vmem:[%s4828_s28 + $0x28] sm:$0xf] %v357_v10  ;;  %v359_v11 = vld [vmem:[%s4824_s27 + $0xb0] sm:$0xf] }
  0x19   : > { %v361_v12 = vld [vmem:[%s4824_s27 + $0xc0] sm:$0xf]  ;;  %v363_v13 = vld [vmem:[%s4824_s27 + $0xd0] sm:$0xf]  ;;  %360 = vst [vmem:[%s4828_s28 + $0x2c] sm:$0xf] %v359_v11 }
  0x1a   : > { %362 = vst [vmem:[%s4828_s28 + $0x30] sm:$0xf] %v361_v12  ;;  %364 = vst [vmem:[%s4828_s28 + $0x34] sm:$0xf] %v363_v13  ;;  %v365_v14 = vld [vmem:[%s4824_s27 + $0xe0] sm:$0xf] }
  0x1b   : > { %v367_v15 = vld [vmem:[%s4824_s27 + $0xf0] sm:$0xf]  ;;  %v369_v16 = vld [vmem:[%s4824_s27 + $0x100] sm:$0xf]  ;;  %366 = vst [vmem:[%s4828_s28 + $0x38] sm:$0xf] %v365_v14 }
  0x1c   : > { %368 = vst [vmem:[%s4828_s28 + $0x3c] sm:$0xf] %v367_v15  ;;  %370 = vst [vmem:[%s4828_s28 + $0x40] sm:$0xf] %v369_v16  ;;  %v371_v17 = vld [vmem:[%s4824_s27 + $0x110] sm:$0xf] }
  0x1d   : > { %v373_v18 = vld [vmem:[%s4824_s27 + $0x120] sm:$0xf]  ;;  %v375_v19 = vld [vmem:[%s4824_s27 + $0x130] sm:$0xf]  ;;  %372 = vst [vmem:[%s4828_s28 + $0x44] sm:$0xf] %v371_v17 }
  0x1e   : > { %374 = vst [vmem:[%s4828_s28 + $0x48] sm:$0xf] %v373_v18  ;;  %376 = vst [vmem:[%s4828_s28 + $0x4c] sm:$0xf] %v375_v19  ;;  %v377_v20 = vld [vmem:[%s4824_s27 + $0x140] sm:$0xf] }
  0x1f   : > { %v379_v21 = vld [vmem:[%s4824_s27 + $0x150] sm:$0xf]  ;;  %v381_v22 = vld [vmem:[%s4824_s27 + $0x160] sm:$0xf]  ;;  %378 = vst [vmem:[%s4828_s28 + $0x50] sm:$0xf] %v377_v20 }
  0x20   : > { %380 = vst [vmem:[%s4828_s28 + $0x54] sm:$0xf] %v379_v21  ;;  %382 = vst [vmem:[%s4828_s28 + $0x58] sm:$0xf] %v381_v22  ;;  %v383_v23 = vld [vmem:[%s4824_s27 + $0x170] sm:$0xf] }
  0x21   : > { %v385_v24 = vld [vmem:[%s4824_s27 + $0x180] sm:$0xf]  ;;  %v387_v25 = vld [vmem:[%s4824_s27 + $0x190] sm:$0xf]  ;;  %384 = vst [vmem:[%s4828_s28 + $0x5c] sm:$0xf] %v383_v23 }
  0x22   : > { %386 = vst [vmem:[%s4828_s28 + $0x60] sm:$0xf] %v385_v24  ;;  %388 = vst [vmem:[%s4828_s28 + $0x64] sm:$0xf] %v387_v25  ;;  %v389_v26 = vld [vmem:[%s4824_s27 + $0x1a0] sm:$0xf] }
  0x23   : > { %v391_v27 = vld [vmem:[%s4824_s27 + $0x1b0] sm:$0xf]  ;;  %v393_v28 = vld [vmem:[%s4824_s27 + $0x1c0] sm:$0xf]  ;;  %390 = vst [vmem:[%s4828_s28 + $0x68] sm:$0xf] %v389_v26 }
  0x24   : > { %392 = vst [vmem:[%s4828_s28 + $0x6c] sm:$0xf] %v391_v27  ;;  %394 = vst [vmem:[%s4828_s28 + $0x70] sm:$0xf] %v393_v28  ;;  %v395_v29 = vld [vmem:[%s4824_s27 + $0x1d0] sm:$0xf] }
  0x25   : > { %v397_v30 = vld [vmem:[%s4824_s27 + $0x1e0] sm:$0xf]  ;;  %v399_v31 = vld [vmem:[%s4824_s27 + $0x1f0] sm:$0xf]  ;;  %396 = vst [vmem:[%s4828_s28 + $0x74] sm:$0xf] %v395_v29 }
  0x26   : > { %398 = vst [vmem:[%s4828_s28 + $0x78] sm:$0xf] %v397_v30  ;;  %400 = vst [vmem:[%s4828_s28 + $0x7c] sm:$0xf] %v399_v31  ;;  %v401_v32 = vld [vmem:[%s4824_s27 + $0x200] sm:$0xf] }
  0x27   : > { %v403_v33 = vld [vmem:[%s4824_s27 + $0x210] sm:$0xf]  ;;  %v405_v34 = vld [vmem:[%s4824_s27 + $0x220] sm:$0xf]  ;;  %402 = vst [vmem:[%s4828_s28 + $0x80] sm:$0xf] %v401_v32 }
  0x28   : > { %404 = vst [vmem:[%s4828_s28 + $0x84] sm:$0xf] %v403_v33  ;;  %406 = vst [vmem:[%s4828_s28 + $0x88] sm:$0xf] %v405_v34  ;;  %v407_v35 = vld [vmem:[%s4824_s27 + $0x230] sm:$0xf] }
  0x29   : > { %v409_v36 = vld [vmem:[%s4824_s27 + $0x240] sm:$0xf]  ;;  %v411_v37 = vld [vmem:[%s4824_s27 + $0x250] sm:$0xf]  ;;  %408 = vst [vmem:[%s4828_s28 + $0x8c] sm:$0xf] %v407_v35 }
  0x2a   : > { %410 = vst [vmem:[%s4828_s28 + $0x90] sm:$0xf] %v409_v36  ;;  %412 = vst [vmem:[%s4828_s28 + $0x94] sm:$0xf] %v411_v37  ;;  %v413_v38 = vld [vmem:[%s4824_s27 + $0x260] sm:$0xf] }
  0x2b   : > { %v415_v39 = vld [vmem:[%s4824_s27 + $0x270] sm:$0xf]  ;;  %v417_v40 = vld [vmem:[%s4824_s27 + $0x280] sm:$0xf]  ;;  %414 = vst [vmem:[%s4828_s28 + $0x98] sm:$0xf] %v413_v38 }
  0x2c   : > { %416 = vst [vmem:[%s4828_s28 + $0x9c] sm:$0xf] %v415_v39  ;;  %418 = vst [vmem:[%s4828_s28 + $0xa0] sm:$0xf] %v417_v40  ;;  %v419_v41 = vld [vmem:[%s4824_s27 + $0x290] sm:$0xf] }
  0x2d   : > { %v421_v42 = vld [vmem:[%s4824_s27 + $0x2a0] sm:$0xf]  ;;  %v423_v43 = vld [vmem:[%s4824_s27 + $0x2b0] sm:$0xf]  ;;  %420 = vst [vmem:[%s4828_s28 + $0xa4] sm:$0xf] %v419_v41 }
  0x2e   : > { %422 = vst [vmem:[%s4828_s28 + $0xa8] sm:$0xf] %v421_v42  ;;  %424 = vst [vmem:[%s4828_s28 + $0xac] sm:$0xf] %v423_v43  ;;  %v425_v44 = vld [vmem:[%s4824_s27 + $0x2c0] sm:$0xf] }
  0x2f   : > { %v427_v45 = vld [vmem:[%s4824_s27 + $0x2d0] sm:$0xf]  ;;  %v429_v46 = vld [vmem:[%s4824_s27 + $0x2e0] sm:$0xf]  ;;  %426 = vst [vmem:[%s4828_s28 + $0xb0] sm:$0xf] %v425_v44 }
  0x30   : > { %428 = vst [vmem:[%s4828_s28 + $0xb4] sm:$0xf] %v427_v45  ;;  %430 = vst [vmem:[%s4828_s28 + $0xb8] sm:$0xf] %v429_v46  ;;  %v431_v47 = vld [vmem:[%s4824_s27 + $0x2f0] sm:$0xf] }
  0x31   : > { %v433_v48 = vld [vmem:[%s4824_s27 + $0x300] sm:$0xf]  ;;  %v435_v49 = vld [vmem:[%s4824_s27 + $0x310] sm:$0xf]  ;;  %432 = vst [vmem:[%s4828_s28 + $0xbc] sm:$0xf] %v431_v47 }
  0x32   : > { %434 = vst [vmem:[%s4828_s28 + $0xc0] sm:$0xf] %v433_v48  ;;  %436 = vst [vmem:[%s4828_s28 + $0xc4] sm:$0xf] %v435_v49  ;;  %v437_v50 = vld [vmem:[%s4824_s27 + $0x320] sm:$0xf] }
  0x33   : > { %v439_v51 = vld [vmem:[%s4824_s27 + $0x330] sm:$0xf]  ;;  %v441_v52 = vld [vmem:[%s4824_s27 + $0x340] sm:$0xf]  ;;  %438 = vst [vmem:[%s4828_s28 + $0xc8] sm:$0xf] %v437_v50 }
  0x34   : > { %440 = vst [vmem:[%s4828_s28 + $0xcc] sm:$0xf] %v439_v51  ;;  %442 = vst [vmem:[%s4828_s28 + $0xd0] sm:$0xf] %v441_v52  ;;  %v443_v53 = vld [vmem:[%s4824_s27 + $0x350] sm:$0xf] }
  0x35   : > { %v445_v54 = vld [vmem:[%s4824_s27 + $0x360] sm:$0xf]  ;;  %v447_v55 = vld [vmem:[%s4824_s27 + $0x370] sm:$0xf]  ;;  %444 = vst [vmem:[%s4828_s28 + $0xd4] sm:$0xf] %v443_v53 }
  0x36   : > { %446 = vst [vmem:[%s4828_s28 + $0xd8] sm:$0xf] %v445_v54  ;;  %448 = vst [vmem:[%s4828_s28 + $0xdc] sm:$0xf] %v447_v55  ;;  %v449_v56 = vld [vmem:[%s4824_s27 + $0x380] sm:$0xf] }
  0x37   : > { %v451_v57 = vld [vmem:[%s4824_s27 + $0x390] sm:$0xf]  ;;  %v453_v58 = vld [vmem:[%s4824_s27 + $0x3a0] sm:$0xf]  ;;  %450 = vst [vmem:[%s4828_s28 + $0xe0] sm:$0xf] %v449_v56 }
  0x38   : > { %452 = vst [vmem:[%s4828_s28 + $0xe4] sm:$0xf] %v451_v57  ;;  %454 = vst [vmem:[%s4828_s28 + $0xe8] sm:$0xf] %v453_v58  ;;  %v455_v59 = vld [vmem:[%s4824_s27 + $0x3b0] sm:$0xf] }
  0x39   : > { %v457_v60 = vld [vmem:[%s4824_s27 + $0x3c0] sm:$0xf]  ;;  %v459_v61 = vld [vmem:[%s4824_s27 + $0x3d0] sm:$0xf]  ;;  %456 = vst [vmem:[%s4828_s28 + $0xec] sm:$0xf] %v455_v59 }
  0x3a   : > { %458 = vst [vmem:[%s4828_s28 + $0xf0] sm:$0xf] %v457_v60  ;;  %460 = vst [vmem:[%s4828_s28 + $0xf4] sm:$0xf] %v459_v61  ;;  %v461_v62 = vld [vmem:[%s4824_s27 + $0x3e0] sm:$0xf] }
  0x3b   : > { %v463_v63 = vld [vmem:[%s4824_s27 + $0x3f0] sm:$0xf]  ;;  %462 = vst [vmem:[%s4828_s28 + $0xf8] sm:$0xf] %v461_v62 }
  0x3c   : > { %464 = vst [vmem:[%s4828_s28 + $0xfc] sm:$0xf] %v463_v63 }
  0x3d PF: > { %627 = sbr.rel (!%p4812_p3) target bundleno = 86 (0x56), region = 85  ;;  %s629_s29 = sand.u32 (%p4812_p3), 1, %s4723_s14  }
  0x3e   : > { %s3641_s30 = sshll.u32 (%p4812_p3), %s4727_s15, 2  ;;  %s3640_s11 = sshll.u32 (%p4812_p3), %s629_s29, 7 }
  0x3f   : > { %s4963_s19 = scalar_lea.vmem (%p4812_p3), %s5966_s7, %s3641_s30  ;;  %s4967_s21 = scalar_lea.vmem (%p4812_p3), [#allocation3], %s3640_s11 }
  0x40   : > { %v649_v0 = vld [vmem:[%s4963_s19] sm:$0xf] (%p4812_p3)  ;;  %v651_v1 = vld [vmem:[%s4963_s19 + $0x10] sm:$0xf] (%p4812_p3) }
  0x41   : > { %650 = vst [vmem:[%s4967_s21] sm:$0xf] (%p4812_p3), %v649_v0  ;;  %652 = vst [vmem:[%s4967_s21 + $0x4] sm:$0xf] (%p4812_p3), %v651_v1  ;;  %v653_v2 = vld [vmem:[%s4963_s19 + $0x20] sm:$0xf] (%p4812_p3) }
  0x42   : > { %v655_v3 = vld [vmem:[%s4963_s19 + $0x30] sm:$0xf] (%p4812_p3)  ;;  %v657_v4 = vld [vmem:[%s4963_s19 + $0x40] sm:$0xf] (%p4812_p3)  ;;  %654 = vst [vmem:[%s4967_s21 + $0x8] sm:$0xf] (%p4812_p3), %v653_v2 }
  0x43   : > { %656 = vst [vmem:[%s4967_s21 + $0xc] sm:$0xf] (%p4812_p3), %v655_v3  ;;  %658 = vst [vmem:[%s4967_s21 + $0x10] sm:$0xf] (%p4812_p3), %v657_v4  ;;  %v659_v5 = vld [vmem:[%s4963_s19 + $0x50] sm:$0xf] (%p4812_p3) }
  0x44   : > { %v661_v6 = vld [vmem:[%s4963_s19 + $0x60] sm:$0xf]  ;;  %v663_v7 = vld [vmem:[%s4963_s19 + $0x70] sm:$0xf]  ;;  %660 = vst [vmem:[%s4967_s21 + $0x14] sm:$0xf] %v659_v5 }
  0x45   : > { %662 = vst [vmem:[%s4967_s21 + $0x18] sm:$0xf] %v661_v6  ;;  %664 = vst [vmem:[%s4967_s21 + $0x1c] sm:$0xf] %v663_v7  ;;  %v665_v8 = vld [vmem:[%s4963_s19 + $0x80] sm:$0xf] }
  0x46   : > { %v667_v9 = vld [vmem:[%s4963_s19 + $0x90] sm:$0xf]  ;;  %v669_v10 = vld [vmem:[%s4963_s19 + $0xa0] sm:$0xf]  ;;  %666 = vst [vmem:[%s4967_s21 + $0x20] sm:$0xf] %v665_v8 }
  0x47   : > { %668 = vst [vmem:[%s4967_s21 + $0x24] sm:$0xf] %v667_v9  ;;  %670 = vst [vmem:[%s4967_s21 + $0x28] sm:$0xf] %v669_v10  ;;  %v671_v11 = vld [vmem:[%s4963_s19 + $0xb0] sm:$0xf] }
  0x48   : > { %v673_v12 = vld [vmem:[%s4963_s19 + $0xc0] sm:$0xf]  ;;  %v675_v13 = vld [vmem:[%s4963_s19 + $0xd0] sm:$0xf]  ;;  %672 = vst [vmem:[%s4967_s21 + $0x2c] sm:$0xf] %v671_v11 }
  0x49   : > { %674 = vst [vmem:[%s4967_s21 + $0x30] sm:$0xf] %v673_v12  ;;  %676 = vst [vmem:[%s4967_s21 + $0x34] sm:$0xf] %v675_v13  ;;  %v677_v14 = vld [vmem:[%s4963_s19 + $0xe0] sm:$0xf] }
  0x4a   : > { %v679_v15 = vld [vmem:[%s4963_s19 + $0xf0] sm:$0xf]  ;;  %v681_v16 = vld [vmem:[%s4963_s19 + $0x100] sm:$0xf]  ;;  %678 = vst [vmem:[%s4967_s21 + $0x38] sm:$0xf] %v677_v14 }
  0x4b   : > { %680 = vst [vmem:[%s4967_s21 + $0x3c] sm:$0xf] %v679_v15  ;;  %682 = vst [vmem:[%s4967_s21 + $0x40] sm:$0xf] %v681_v16  ;;  %v683_v17 = vld [vmem:[%s4963_s19 + $0x110] sm:$0xf] }
  0x4c   : > { %v685_v18 = vld [vmem:[%s4963_s19 + $0x120] sm:$0xf]  ;;  %v687_v19 = vld [vmem:[%s4963_s19 + $0x130] sm:$0xf]  ;;  %684 = vst [vmem:[%s4967_s21 + $0x44] sm:$0xf] %v683_v17 }
  0x4d   : > { %686 = vst [vmem:[%s4967_s21 + $0x48] sm:$0xf] %v685_v18  ;;  %688 = vst [vmem:[%s4967_s21 + $0x4c] sm:$0xf] %v687_v19  ;;  %v689_v20 = vld [vmem:[%s4963_s19 + $0x140] sm:$0xf] }
  0x4e   : > { %v691_v21 = vld [vmem:[%s4963_s19 + $0x150] sm:$0xf]  ;;  %v693_v22 = vld [vmem:[%s4963_s19 + $0x160] sm:$0xf]  ;;  %690 = vst [vmem:[%s4967_s21 + $0x50] sm:$0xf] %v689_v20 }
  0x4f   : > { %692 = vst [vmem:[%s4967_s21 + $0x54] sm:$0xf] %v691_v21  ;;  %694 = vst [vmem:[%s4967_s21 + $0x58] sm:$0xf] %v693_v22  ;;  %v695_v23 = vld [vmem:[%s4963_s19 + $0x170] sm:$0xf] }
  0x50   : > { %v697_v24 = vld [vmem:[%s4963_s19 + $0x180] sm:$0xf]  ;;  %v699_v25 = vld [vmem:[%s4963_s19 + $0x190] sm:$0xf]  ;;  %696 = vst [vmem:[%s4967_s21 + $0x5c] sm:$0xf] %v695_v23 }
  0x51   : > { %698 = vst [vmem:[%s4967_s21 + $0x60] sm:$0xf] %v697_v24  ;;  %700 = vst [vmem:[%s4967_s21 + $0x64] sm:$0xf] %v699_v25  ;;  %v701_v26 = vld [vmem:[%s4963_s19 + $0x1a0] sm:$0xf] }
  0x52   : > { %v703_v27 = vld [vmem:[%s4963_s19 + $0x1b0] sm:$0xf]  ;;  %v705_v28 = vld [vmem:[%s4963_s19 + $0x1c0] sm:$0xf]  ;;  %702 = vst [vmem:[%s4967_s21 + $0x68] sm:$0xf] %v701_v26 }
  0x53   : > { %704 = vst [vmem:[%s4967_s21 + $0x6c] sm:$0xf] %v703_v27  ;;  %706 = vst [vmem:[%s4967_s21 + $0x70] sm:$0xf] %v705_v28  ;;  %v707_v29 = vld [vmem:[%s4963_s19 + $0x1d0] sm:$0xf] }
  0x54   : > { %v709_v30 = vld [vmem:[%s4963_s19 + $0x1e0] sm:$0xf]  ;;  %v711_v31 = vld [vmem:[%s4963_s19 + $0x1f0] sm:$0xf]  ;;  %708 = vst [vmem:[%s4967_s21 + $0x74] sm:$0xf] %v707_v29 }
  0x55   : > { %710 = vst [vmem:[%s4967_s21 + $0x78] sm:$0xf] %v709_v30  ;;  %712 = vst [vmem:[%s4967_s21 + $0x7c] sm:$0xf] %v711_v31 }
  0x56 PF: > { %p3642_p5 = scmp.ge.s32.totalorder %s4727_s15, 1  ;;  %p810_p6 = scmp.lt.s32.totalorder %s4727_s15, 5 }
  0x58   : > { %p811_p7 = pnand %p3642_p5, %p810_p6 }
  0x59   : > { %v4261_v32 = vld [vmem:[%s5960_s1 + $0x204] ss:$16 sps:$4 sm:$0xff] (!%p811_p7)   ;;  %v4263_v33 = vld [vmem:[%s5960_s1 + $0x20c] ss:$16 sps:$4 sm:$0xff] (!%p811_p7)   ;;  %v4265_v34 = vld [vmem:[%s5960_s1 + $0x200] ss:$16 sps:$4 sm:$0xff] (!%p811_p7)  }
  0x5a   : > { %814 = sbr.rel (%p811_p7) target bundleno = 896 (0x380), region = 134  ;;  %1354 = vmatprep.subr.bf16.mxu0 (!%p811_p7), %v4261_v32  ;;  %v4266_v35 = vld [vmem:[%s5960_s1 + $0x208] ss:$16 sps:$4 sm:$0xff] (!%p811_p7)   ;;  %1395 = vmatprep.subr.bf16.mxu1 (!%p811_p7), %v4263_v33  ;;  %v4267_v36 = vld [vmem:[%s5960_s1 + $0x224] ss:$16 sps:$4 sm:$0xff] (!%p811_p7)   ;;  %s817_s22 = sand.u32 (!%p811_p7), 1, %s4719_s13  }
  0x5b   : > { %1355 = vmatpush1.bf16.msra.mxu0 (!%p811_p7), %v4265_v34  ;;  %1396 = vmatpush1.bf16.msra.mxu1 (!%p811_p7), %v4266_v35  ;;  %v4269_v37 = vld [vmem:[%s5960_s1 + $0x22c] ss:$16 sps:$4 sm:$0xff] (!%p811_p7)   ;;  %v4271_v38 = vld [vmem:[%s5960_s1 + $0x220] ss:$16 sps:$4 sm:$0xff] (!%p811_p7)   ;;  %v4272_v39 = vld [vmem:[%s5960_s1 + $0x228] ss:$16 sps:$4 sm:$0xff] (!%p811_p7)  }
  0x5c   : > { %1356 = vmatprep.subr.bf16.mxu0 (!%p811_p7), %v4267_v36  ;;  %1397 = vmatprep.subr.bf16.mxu1 (!%p811_p7), %v4269_v37  ;;  %v4273_v40 = vld [vmem:[%s5960_s1 + $0x244] ss:$16 sps:$4 sm:$0xff] (!%p811_p7)   ;;  %v4275_v41 = vld [vmem:[%s5960_s1 + $0x24c] ss:$16 sps:$4 sm:$0xff] (!%p811_p7)   ;;  %v4277_v42 = vld [vmem:[%s5960_s1 + $0x240] ss:$16 sps:$4 sm:$0xff] (!%p811_p7)  }
  0x5d   : > { %v4278_v43 = vld [vmem:[%s5960_s1 + $0x248] ss:$16 sps:$4 sm:$0xff] (!%p811_p7)   ;;  %v4279_v44 = vld [vmem:[%s5960_s1 + $0x264] ss:$16 sps:$4 sm:$0xff] (!%p811_p7)   ;;  %v4281_v45 = vld [vmem:[%s5960_s1 + $0x26c] ss:$16 sps:$4 sm:$0xff] (!%p811_p7)  }
  0x5e   : > { %v4283_v46 = vld [vmem:[%s5960_s1 + $0x260] ss:$16 sps:$4 sm:$0xff] (!%p811_p7)   ;;  %v4284_v47 = vld [vmem:[%s5960_s1 + $0x268] ss:$16 sps:$4 sm:$0xff] (!%p811_p7)   ;;  %v4285_v48 = vld [vmem:[%s5960_s1 + $0x284] ss:$16 sps:$4 sm:$0xff] (!%p811_p7)  }
  0x5f   : > { %1357 = vmatpush1.bf16.msra.mxu0 (!%p811_p7), %v4271_v38  ;;  %1398 = vmatpush1.bf16.msra.mxu1 (!%p811_p7), %v4272_v39  ;;  %v4287_v49 = vld [vmem:[%s5960_s1 + $0x28c] ss:$16 sps:$4 sm:$0xff] (!%p811_p7)   ;;  %v4289_v50 = vld [vmem:[%s5960_s1 + $0x280] ss:$16 sps:$4 sm:$0xff] (!%p811_p7)   ;;  %v4290_v51 = vld [vmem:[%s5960_s1 + $0x288] ss:$16 sps:$4 sm:$0xff] (!%p811_p7)  }
  0x60   : > { %1358 = vmatprep.subr.bf16.mxu0 (!%p811_p7), %v4273_v40  ;;  %1399 = vmatprep.subr.bf16.mxu1 (!%p811_p7), %v4275_v41  ;;  %v4291_v52 = vld [vmem:[%s5960_s1 + $0x2a4] ss:$16 sps:$4 sm:$0xff] (!%p811_p7)   ;;  %v4293_v53 = vld [vmem:[%s5960_s1 + $0x2ac] ss:$16 sps:$4 sm:$0xff] (!%p811_p7)   ;;  %v4295_v54 = vld [vmem:[%s5960_s1 + $0x2a0] ss:$16 sps:$4 sm:$0xff] (!%p811_p7)  }
  0x61   : > { %v4296_v55 = vld [vmem:[%s5960_s1 + $0x2a8] ss:$16 sps:$4 sm:$0xff]   ;;  %v4297_v56 = vld [vmem:[%s5960_s1 + $0x2c4] ss:$16 sps:$4 sm:$0xff]   ;;  %v4299_v57 = vld [vmem:[%s5960_s1 + $0x2cc] ss:$16 sps:$4 sm:$0xff]  }
  0x62   : > { %v4301_v58 = vld [vmem:[%s5960_s1 + $0x2c0] ss:$16 sps:$4 sm:$0xff]   ;;  %v4302_v59 = vld [vmem:[%s5960_s1 + $0x2c8] ss:$16 sps:$4 sm:$0xff]   ;;  %v4303_v60 = vld [vmem:[%s5960_s1 + $0x2e4] ss:$16 sps:$4 sm:$0xff]  }
  0x63   : > { %1359 = vmatpush1.bf16.msra.mxu0 %v4277_v42  ;;  %1400 = vmatpush1.bf16.msra.mxu1 %v4278_v43  ;;  %v4305_v61 = vld [vmem:[%s5960_s1 + $0x2ec] ss:$16 sps:$4 sm:$0xff]   ;;  %v4307_v62 = vld [vmem:[%s5960_s1 + $0x2e0] ss:$16 sps:$4 sm:$0xff]   ;;  %v4308_v63 = vld [vmem:[%s5960_s1 + $0x2e8] ss:$16 sps:$4 sm:$0xff]  }
  0x64   : > { %1360 = vmatprep.subr.bf16.mxu0 %v4279_v44  ;;  %1401 = vmatprep.subr.bf16.mxu1 %v4281_v45  ;;  %v4309_v0 = vld [vmem:[%s5960_s1 + $0x304] ss:$16 sps:$4 sm:$0xff]   ;;  %v4311_v1 = vld [vmem:[%s5960_s1 + $0x30c] ss:$16 sps:$4 sm:$0xff]   ;;  %v4313_v2 = vld [vmem:[%s5960_s1 + $0x300] ss:$16 sps:$4 sm:$0xff]  }
  0x65   : > { %v4314_v3 = vld [vmem:[%s5960_s1 + $0x308] ss:$16 sps:$4 sm:$0xff]   ;;  %v4315_v4 = vld [vmem:[%s5960_s1 + $0x324] ss:$16 sps:$4 sm:$0xff]   ;;  %v4317_v5 = vld [vmem:[%s5960_s1 + $0x32c] ss:$16 sps:$4 sm:$0xff]  }
  0x66   : > { %v4319_v6 = vld [vmem:[%s5960_s1 + $0x320] ss:$16 sps:$4 sm:$0xff]   ;;  %v4320_v7 = vld [vmem:[%s5960_s1 + $0x328] ss:$16 sps:$4 sm:$0xff]   ;;  %v4321_v8 = vld [vmem:[%s5960_s1 + $0x344] ss:$16 sps:$4 sm:$0xff]  }
  0x67   : > { %1361 = vmatpush1.bf16.msra.mxu0 %v4283_v46  ;;  %1402 = vmatpush1.bf16.msra.mxu1 %v4284_v47  ;;  %v4323_v9 = vld [vmem:[%s5960_s1 + $0x34c] ss:$16 sps:$4 sm:$0xff]   ;;  %v4325_v10 = vld [vmem:[%s5960_s1 + $0x340] ss:$16 sps:$4 sm:$0xff]   ;;  %v4326_v11 = vld [vmem:[%s5960_s1 + $0x348] ss:$16 sps:$4 sm:$0xff]  }
  0x68   : > { %1362 = vmatprep.subr.bf16.mxu0 %v4285_v48  ;;  %1403 = vmatprep.subr.bf16.mxu1 %v4287_v49  ;;  %v4327_v12 = vld [vmem:[%s5960_s1 + $0x364] ss:$16 sps:$4 sm:$0xff]   ;;  %v4329_v13 = vld [vmem:[%s5960_s1 + $0x36c] ss:$16 sps:$4 sm:$0xff]   ;;  %v4331_v15 = vld [vmem:[%s5960_s1 + $0x360] ss:$16 sps:$4 sm:$0xff]  }
  0x69   : > { %v960_v14 = vld [vmem:[%s5959_s0 + $0x8] sm:$0x30]  ;;  %v4332_v17 = vld [vmem:[%s5960_s1 + $0x368] ss:$16 sps:$4 sm:$0xff]   ;;  %v4333_v18 = vld [vmem:[%s5960_s1 + $0x384] ss:$16 sps:$4 sm:$0xff]  }
  0x6a   : > { %v962_v16 = vpack.c.bf16 %v960_v14, %v960_v14  ;;  %v4335_v19 = vld [vmem:[%s5960_s1 + $0x38c] ss:$16 sps:$4 sm:$0xff]   ;;  %v4337_v21 = vld [vmem:[%s5960_s1 + $0x380] ss:$16 sps:$4 sm:$0xff]   ;;  %v4338_v22 = vld [vmem:[%s5960_s1 + $0x388] ss:$16 sps:$4 sm:$0xff]  }
  0x6b   : > { %1363 = vmatpush1.bf16.msra.mxu0 %v4289_v50  ;;  %1404 = vmatpush1.bf16.msra.mxu1 %v4290_v51  ;;  %v4339_v23 = vld [vmem:[%s5960_s1 + $0x3a4] ss:$16 sps:$4 sm:$0xff]   ;;  %v4341_v24 = vld [vmem:[%s5960_s1 + $0x3ac] ss:$16 sps:$4 sm:$0xff]   ;;  %v4343_v25 = vld [vmem:[%s5960_s1 + $0x3a0] ss:$16 sps:$4 sm:$0xff]  }
  0x6c   : > { %1364 = vmatprep.subr.bf16.mxu0 %v4291_v52  ;;  %1405 = vmatprep.subr.bf16.mxu1 %v4293_v53  ;;  %v1031_v20 = vrot.slane %v962_v16, 2  ;;  %v4344_v26 = vld [vmem:[%s5960_s1 + $0x3a8] ss:$16 sps:$4 sm:$0xff]   ;;  %v4345_v27 = vld [vmem:[%s5960_s1 + $0x3c4] ss:$16 sps:$4 sm:$0xff]   ;;  %s3644_s11 = sshll.u32 %s817_s22, 7 }
  0x6d   : > { %v4347_v28 = vld [vmem:[%s5960_s1 + $0x3cc] ss:$16 sps:$4 sm:$0xff]   ;;  %v4349_v29 = vld [vmem:[%s5960_s1 + $0x3c0] ss:$16 sps:$4 sm:$0xff]   ;;  %v4350_v30 = vld [vmem:[%s5960_s1 + $0x3c8] ss:$16 sps:$4 sm:$0xff]  }
  0x6e   : > { %1386 = vmatprep.mubr.bf16.mxu0 %v1031_v20  ;;  %1427 = vmatprep.mubr.bf16.mxu1 %v1031_v20  ;;  %v959_v31 = vld [vmem:[%s5959_s0] sm:$0x30]  ;;  %v4353_v33 = vld [vmem:[%s5960_s1 + $0x3ec] ss:$16 sps:$4 sm:$0xff]   ;;  %v4355_v35 = vld [vmem:[%s5960_s1 + $0x3e0] ss:$16 sps:$4 sm:$0xff]  }
  0x6f   : > { %1365 = vmatpush1.bf16.msra.mxu0 %v4295_v54  ;;  %1406 = vmatpush1.bf16.msra.mxu1 %v4296_v55  ;;  %v4351_v32 = vld [vmem:[%s5960_s1 + $0x3e4] ss:$16 sps:$4 sm:$0xff]   ;;  %v961_v34 = vpack.c.bf16 %v959_v31, %v959_v31  ;;  %v4356_v36 = vld [vmem:[%s5960_s1 + $0x3e8] ss:$16 sps:$4 sm:$0xff]   ;;  %v4362_v38 = vld [vmem:[%s5960_s1 + $0xc] ss:$16 sps:$4 sm:$0xff]  }
  0x70   : > { %1366 = vmatprep.subr.bf16.mxu0 %v4297_v56  ;;  %1407 = vmatprep.subr.bf16.mxu1 %v4299_v57  ;;  %v4359_v37 = vld [vmem:[%s5960_s1 + $0x4] ss:$16 sps:$4 sm:$0xff]   ;;  %v4357_v40 = vld [vmem:[%s5960_s1] ss:$16 sps:$4 sm:$0xff]   ;;  %v4360_v41 = vld [vmem:[%s5960_s1 + $0x8] ss:$16 sps:$4 sm:$0xff]  }
  0x71   : > { %v1030_v39 = vrot.slane %v961_v34, 2  ;;  %v4365_v42 = vld [vmem:[%s5960_s1 + $0x24] ss:$16 sps:$4 sm:$0xff]   ;;  %v4368_v43 = vld [vmem:[%s5960_s1 + $0x2c] ss:$16 sps:$4 sm:$0xff]   ;;  %s5593_s27 = scalar_lea.vmem [#allocation3], %s3644_s11 }
  0x72   : > { %v4363_v44 = vld [vmem:[%s5960_s1 + $0x20] ss:$16 sps:$4 sm:$0xff]   ;;  %v4366_v45 = vld [vmem:[%s5960_s1 + $0x28] ss:$16 sps:$4 sm:$0xff]   ;;  %v4371_v46 = vld [vmem:[%s5960_s1 + $0x44] ss:$16 sps:$4 sm:$0xff]  }
  0x73   : > { %1367 = vmatpush1.bf16.msra.mxu0 %v4301_v58  ;;  %1408 = vmatpush1.bf16.msra.mxu1 %v4302_v59  ;;  %v4374_v47 = vld [vmem:[%s5960_s1 + $0x4c] ss:$16 sps:$4 sm:$0xff]   ;;  %v4369_v48 = vld [vmem:[%s5960_s1 + $0x40] ss:$16 sps:$4 sm:$0xff]   ;;  %v4372_v49 = vld [vmem:[%s5960_s1 + $0x48] ss:$16 sps:$4 sm:$0xff]  }
  0x74   : > { %1368 = vmatprep.subr.bf16.mxu0 %v4303_v60  ;;  %1409 = vmatprep.subr.bf16.mxu1 %v4305_v61  ;;  %v4377_v50 = vld [vmem:[%s5960_s1 + $0x64] ss:$16 sps:$4 sm:$0xff]   ;;  %v4380_v51 = vld [vmem:[%s5960_s1 + $0x6c] ss:$16 sps:$4 sm:$0xff]   ;;  %v4375_v52 = vld [vmem:[%s5960_s1 + $0x60] ss:$16 sps:$4 sm:$0xff]  }
  0x75   : > { %v4378_v53 = vld [vmem:[%s5960_s1 + $0x68] ss:$16 sps:$4 sm:$0xff]   ;;  %v4383_v54 = vld [vmem:[%s5960_s1 + $0x84] ss:$16 sps:$4 sm:$0xff]   ;;  %v4386_v55 = vld [vmem:[%s5960_s1 + $0x8c] ss:$16 sps:$4 sm:$0xff]  }
  0x76   : > { %v4381_v56 = vld [vmem:[%s5960_s1 + $0x80] ss:$16 sps:$4 sm:$0xff]   ;;  %v4384_v57 = vld [vmem:[%s5960_s1 + $0x88] ss:$16 sps:$4 sm:$0xff]   ;;  %v4389_v58 = vld [vmem:[%s5960_s1 + $0xa4] ss:$16 sps:$4 sm:$0xff]  }
  0x77   : > { %1369 = vmatpush1.bf16.msra.mxu0 %v4307_v62  ;;  %1410 = vmatpush1.bf16.msra.mxu1 %v4308_v63  ;;  %v4392_v59 = vld [vmem:[%s5960_s1 + $0xac] ss:$16 sps:$4 sm:$0xff]   ;;  %v4387_v60 = vld [vmem:[%s5960_s1 + $0xa0] ss:$16 sps:$4 sm:$0xff]   ;;  %v4390_v61 = vld [vmem:[%s5960_s1 + $0xa8] ss:$16 sps:$4 sm:$0xff]  }
  0x78   : > { %1370 = vmatprep.subr.bf16.mxu0 %v4309_v0  ;;  %1411 = vmatprep.subr.bf16.mxu1 %v4311_v1  ;;  %v4395_v62 = vld [vmem:[%s5960_s1 + $0xc4] ss:$16 sps:$4 sm:$0xff]   ;;  %v4398_v63 = vld [vmem:[%s5960_s1 + $0xcc] ss:$16 sps:$4 sm:$0xff]   ;;  %v892_v0 = vld [vmem:[%s5959_s0 + $0x8] sm:$0xc] }
  0x79   : > { %v4393_v1 = vld [vmem:[%s5960_s1 + $0xc0] ss:$16 sps:$4 sm:$0xff]   ;;  %v4416_v14 = vld [vmem:[%s5960_s1 + $0x12c] ss:$16 sps:$4 sm:$0xff]   ;;  %v4414_v16 = vld [vmem:[%s5960_s1 + $0x128] ss:$16 sps:$4 sm:$0xff]  }
  0x7a   : > { %v4420_v20 = vld [vmem:[%s5960_s1 + $0x148] ss:$16 sps:$4 sm:$0xff]   ;;  %v4435_v31 = vld [vmem:[%s5960_s1 + $0x1a0] ss:$16 sps:$4 sm:$0xff]   ;;  %v4446_v34 = vld [vmem:[%s5960_s1 + $0x1cc] ss:$16 sps:$4 sm:$0xff]  }
  0x7b   : > { %1371 = vmatpush1.bf16.msra.mxu0 %v4313_v2  ;;  %1412 = vmatpush1.bf16.msra.mxu1 %v4314_v3  ;;  %v894_v2 = vpack.c.bf16 %v892_v0, %v892_v0  ;;  %v4396_v3 = vld [vmem:[%s5960_s1 + $0xc8] ss:$16 sps:$4 sm:$0xff]   ;;  %v4482_v0 = vld [vmem:[%s5960_s1 + $0x48c] ss:$16 sps:$4 sm:$0xff]   ;;  %s3643_s30 = sshll.u32 %s817_s22, 8  ;;  %vm2802_vm0 = vcmask 1041408  }
  0x7c   : > { %1372 = vmatprep.subr.bf16.mxu0 %v4315_v4  ;;  %1413 = vmatprep.subr.bf16.mxu1 %v4317_v5  ;;  %v4401_v4 = vld [vmem:[%s5960_s1 + $0xe4] ss:$16 sps:$4 sm:$0xff]   ;;  %v4404_v5 = vld [vmem:[%s5960_s1 + $0xec] ss:$16 sps:$4 sm:$0xff]   ;;  %s5651_s26 = scalar_lea.vmem [#allocation2], %s3643_s30  ;;  %p875_p8 = scmp.lt.s32.totalorder %s3634_s16, 3 }
  0x7e   : > { %s5975_s16 = smov (!%p875_p8, %s3634_s16), 3 }
  0x7f   : > { %1373 = vmatpush1.bf16.msra.mxu0 %v4319_v6  ;;  %1414 = vmatpush1.bf16.msra.mxu1 %v4320_v7  ;;  %v5324_v6 = vrot.slane %v894_v2, 1  ;;  %v4399_v7 = vld [vmem:[%s5960_s1 + $0xe0] ss:$16 sps:$4 sm:$0xff]   ;;  %v4480_v2 = vld [vmem:[%s5960_s1 + $0x488] ss:$16 sps:$4 sm:$0xff]   ;;  %s883_s28 = scalar_lea.vmem %s5967_s8, %s5975_s16  ;;  %s877_s18 = scalar_lea.vmem %s5964_s5, %s5975_s16 }
  0x80   : > { %1374 = vmatprep.subr.bf16.mxu0 %v4321_v8  ;;  %1415 = vmatprep.subr.bf16.mxu1 %v4323_v9  ;;  %v4402_v8 = vld [vmem:[%s5960_s1 + $0xe8] ss:$16 sps:$4 sm:$0xff]   ;;  %v4407_v9 = vld [vmem:[%s5960_s1 + $0x104] ss:$16 sps:$4 sm:$0xff]   ;;  %s886_s23 = scalar_lea.vmem %s5968_s9, %s5975_s16  ;;  %s880_s15 = scalar_lea.vmem %s5965_s6, %s5975_s16 }
  0x81   : > { %s889_s24 = scalar_lea.vmem %s5969_s10, %s5975_s16 }
  0x83   : > { %1375 = vmatpush1.bf16.msra.mxu0 %v4325_v10  ;;  %1416 = vmatpush1.bf16.msra.mxu1 %v4326_v11  ;;  %v4410_v10 = vld [vmem:[%s5960_s1 + $0x10c] ss:$16 sps:$4 sm:$0xff]   ;;  %v4405_v11 = vld [vmem:[%s5960_s1 + $0x100] ss:$16 sps:$4 sm:$0xff]  }
  0x84   : > { %1376 = vmatprep.subr.bf16.mxu0 %v4327_v12  ;;  %1417 = vmatprep.subr.bf16.mxu1 %v4329_v13  ;;  %v4408_v12 = vld [vmem:[%s5960_s1 + $0x108] ss:$16 sps:$4 sm:$0xff]   ;;  %v4413_v13 = vld [vmem:[%s5960_s1 + $0x124] ss:$16 sps:$4 sm:$0xff]  }
  0x87   : > { %1377 = vmatpush1.bf16.msra.mxu0 %v4331_v15  ;;  %1418 = vmatpush1.bf16.msra.mxu1 %v4332_v17  ;;  %v4411_v15 = vld [vmem:[%s5960_s1 + $0x120] ss:$16 sps:$4 sm:$0xff]   ;;  %v4419_v17 = vld [vmem:[%s5960_s1 + $0x144] ss:$16 sps:$4 sm:$0xff]  }
  0x88   : > { %1378 = vmatprep.subr.bf16.mxu0 %v4333_v18  ;;  %1419 = vmatprep.subr.bf16.mxu1 %v4335_v19  ;;  %v4422_v18 = vld [vmem:[%s5960_s1 + $0x14c] ss:$16 sps:$4 sm:$0xff]   ;;  %v4417_v19 = vld [vmem:[%s5960_s1 + $0x140] ss:$16 sps:$4 sm:$0xff]  }
  0x8b   : > { %1379 = vmatpush1.bf16.msra.mxu0 %v4337_v21  ;;  %1420 = vmatpush1.bf16.msra.mxu1 %v4338_v22  ;;  %v4425_v21 = vld [vmem:[%s5960_s1 + $0x164] ss:$16 sps:$4 sm:$0xff]   ;;  %v4428_v22 = vld [vmem:[%s5960_s1 + $0x16c] ss:$16 sps:$4 sm:$0xff]  }
  0x8c   : > { %1380 = vmatprep.subr.bf16.mxu0 %v4339_v23  ;;  %1421 = vmatprep.subr.bf16.mxu1 %v4341_v24  ;;  %v4423_v23 = vld [vmem:[%s5960_s1 + $0x160] ss:$16 sps:$4 sm:$0xff]   ;;  %v4426_v24 = vld [vmem:[%s5960_s1 + $0x168] ss:$16 sps:$4 sm:$0xff]  }
  0x8f   : > { %1381 = vmatpush1.bf16.msra.mxu0 %v4343_v25  ;;  %1422 = vmatpush1.bf16.msra.mxu1 %v4344_v26  ;;  %v4431_v25 = vld [vmem:[%s5960_s1 + $0x184] ss:$16 sps:$4 sm:$0xff]   ;;  %v4434_v26 = vld [vmem:[%s5960_s1 + $0x18c] ss:$16 sps:$4 sm:$0xff]  }
  0x90   : > { %1382 = vmatprep.subr.bf16.mxu0 %v4345_v27  ;;  %1423 = vmatprep.subr.bf16.mxu1 %v4347_v28  ;;  %v4429_v27 = vld [vmem:[%s5960_s1 + $0x180] ss:$16 sps:$4 sm:$0xff]   ;;  %v4432_v28 = vld [vmem:[%s5960_s1 + $0x188] ss:$16 sps:$4 sm:$0xff]  }
  0x93   : > { %1383 = vmatpush1.bf16.msra.mxu0 %v4349_v29  ;;  %1424 = vmatpush1.bf16.msra.mxu1 %v4350_v30  ;;  %v4437_v29 = vld [vmem:[%s5960_s1 + $0x1a4] ss:$16 sps:$4 sm:$0xff]   ;;  %v4440_v30 = vld [vmem:[%s5960_s1 + $0x1ac] ss:$16 sps:$4 sm:$0xff]  }
  0x94   : > { %1384 = vmatprep.subr.bf16.mxu0 %v4351_v32  ;;  %1425 = vmatprep.subr.bf16.mxu1 %v4353_v33  ;;  %v4438_v32 = vld [vmem:[%s5960_s1 + $0x1a8] ss:$16 sps:$4 sm:$0xff]   ;;  %v4443_v33 = vld [vmem:[%s5960_s1 + $0x1c4] ss:$16 sps:$4 sm:$0xff]  }
  0x97   : > { %1385 = vmatpush1.bf16.msra.mxu0 %v4355_v35  ;;  %1426 = vmatpush1.bf16.msra.mxu1 %v4356_v36  ;;  %v4441_v35 = vld [vmem:[%s5960_s1 + $0x1c0] ss:$16 sps:$4 sm:$0xff]   ;;  %v4444_v36 = vld [vmem:[%s5960_s1 + $0x1c8] ss:$16 sps:$4 sm:$0xff]  }
  0x98   : > { %1762 = vmatprep.subr.bf16.mxu0 %v4359_v37  ;;  %1803 = vmatprep.subr.bf16.mxu1 %v4362_v38  ;;  %v4449_v37 = vld [vmem:[%s5960_s1 + $0x1e4] ss:$16 sps:$4 sm:$0xff]   ;;  %v891_v38 = vld [vmem:[%s5959_s0] sm:$0xc] }
  0x9a   : > { %1387 = vmatmul.mubr.bf16.vlgmr.msra.gmra.mrb[0].mxu0 %v1030_v39  ;;  %1428 = vmatmul.mubr.bf16.vlgmr.msra.gmra.mrb[0].mxu1 %v1030_v39  ;;  %v4452_v39 = vld [vmem:[%s5960_s1 + $0x1ec] ss:$16 sps:$4 sm:$0xff]  }
  0x9b   : > { %1763 = vmatpush1.bf16.msra.mxu0 %v4357_v40  ;;  %1804 = vmatpush1.bf16.msra.mxu1 %v4360_v41  ;;  %v4447_v40 = vld [vmem:[%s5960_s1 + $0x1e0] ss:$16 sps:$4 sm:$0xff]   ;;  %v4450_v41 = vld [vmem:[%s5960_s1 + $0x1e8] ss:$16 sps:$4 sm:$0xff]  }
  0x9c   : > { %1764 = vmatprep.subr.bf16.mxu0 %v4365_v42  ;;  %1805 = vmatprep.subr.bf16.mxu1 %v4368_v43  ;;  %v893_v42 = vpack.c.bf16 %v891_v38, %v891_v38  ;;  %v4455_v43 = vld [vmem:[%s5960_s1 + $0x404] ss:$16 sps:$4 sm:$0xff]   ;;  %v4531_v38 = vld [vmem:[%s5960_s1 + $0x5a0] ss:$16 sps:$4 sm:$0xff]  }
  0x9d   : > { %1794 = vmatprep.mubr.bf16.mxu0 %v5324_v6  ;;  %1835 = vmatprep.mubr.bf16.mxu1 %v5324_v6 }
  0x9f   : > { %1765 = vmatpush1.bf16.msra.mxu0 %v4363_v44  ;;  %1806 = vmatpush1.bf16.msra.mxu1 %v4366_v45  ;;  %v4458_v44 = vld [vmem:[%s5960_s1 + $0x40c] ss:$16 sps:$4 sm:$0xff]   ;;  %v4453_v45 = vld [vmem:[%s5960_s1 + $0x400] ss:$16 sps:$4 sm:$0xff]  }
  0xa0   : > { %1766 = vmatprep.subr.bf16.mxu0 %v4371_v46  ;;  %1807 = vmatprep.subr.bf16.mxu1 %v4374_v47  ;;  %v4456_v46 = vld [vmem:[%s5960_s1 + $0x408] ss:$16 sps:$4 sm:$0xff]   ;;  %v5445_v47 = vrot.slane %v893_v42, 1  ;;  %v1844_v42 = vld [vmem:[%s5959_s0] sm:$0xc0] }
  0xa3   : > { %1767 = vmatpush1.bf16.msra.mxu0 %v4369_v48  ;;  %1808 = vmatpush1.bf16.msra.mxu1 %v4372_v49  ;;  %v4461_v48 = vld [vmem:[%s5960_s1 + $0x424] ss:$16 sps:$4 sm:$0xff]   ;;  %v4464_v49 = vld [vmem:[%s5960_s1 + $0x42c] ss:$16 sps:$4 sm:$0xff]  }
  0xa4   : > { %1768 = vmatprep.subr.bf16.mxu0 %v4377_v50  ;;  %1809 = vmatprep.subr.bf16.mxu1 %v4380_v51  ;;  %v1845_v50 = vld [vmem:[%s5959_s0 + $0x8] sm:$0xc0] }
  0xa5   : > { %v1847_v51 = vpack.c.bf16 %v1845_v50, %v1845_v50  ;;  %v4546_v50 = vld [vmem:[%s5960_s1 + $0x5e8] ss:$16 sps:$4 sm:$0xff]  }
  0xa7   : > { %1769 = vmatpush1.bf16.msra.mxu0 %v4375_v52  ;;  %1810 = vmatpush1.bf16.msra.mxu1 %v4378_v53  ;;  %v4459_v52 = vld [vmem:[%s5960_s1 + $0x420] ss:$16 sps:$4 sm:$0xff]   ;;  %v4462_v53 = vld [vmem:[%s5960_s1 + $0x428] ss:$16 sps:$4 sm:$0xff]  }
  0xa8   : > { %1770 = vmatprep.subr.bf16.mxu0 %v4383_v54  ;;  %1811 = vmatprep.subr.bf16.mxu1 %v4386_v55  ;;  %v1916_v54 = vrot.slane %v1847_v51, 3  ;;  %v4467_v55 = vld [vmem:[%s5960_s1 + $0x444] ss:$16 sps:$4 sm:$0xff]  }
  0xa9   : > { %v4551_v51 = vld [vmem:[%s5960_s1 + $0x604] ss:$16 sps:$4 sm:$0xff]  }
  0xab   : > { %1771 = vmatpush1.bf16.msra.mxu0 %v4381_v56  ;;  %1812 = vmatpush1.bf16.msra.mxu1 %v4384_v57  ;;  %v4470_v56 = vld [vmem:[%s5960_s1 + $0x44c] ss:$16 sps:$4 sm:$0xff]   ;;  %v4465_v57 = vld [vmem:[%s5960_s1 + $0x440] ss:$16 sps:$4 sm:$0xff]  }
  0xac   : > { %1772 = vmatprep.subr.bf16.mxu0 %v4389_v58  ;;  %1813 = vmatprep.subr.bf16.mxu1 %v4392_v59  ;;  %v4468_v58 = vld [vmem:[%s5960_s1 + $0x448] ss:$16 sps:$4 sm:$0xff]   ;;  %v4473_v59 = vld [vmem:[%s5960_s1 + $0x464] ss:$16 sps:$4 sm:$0xff]  }
  0xaf   : > { %1773 = vmatpush1.bf16.msra.mxu0 %v4387_v60  ;;  %1814 = vmatpush1.bf16.msra.mxu1 %v4390_v61  ;;  %v4476_v60 = vld [vmem:[%s5960_s1 + $0x46c] ss:$16 sps:$4 sm:$0xff]   ;;  %v4471_v61 = vld [vmem:[%s5960_s1 + $0x460] ss:$16 sps:$4 sm:$0xff]  }
  0xb0   : > { %1774 = vmatprep.subr.bf16.mxu0 %v4395_v62  ;;  %1815 = vmatprep.subr.bf16.mxu1 %v4398_v63  ;;  %v4474_v62 = vld [vmem:[%s5960_s1 + $0x468] ss:$16 sps:$4 sm:$0xff]   ;;  %v4479_v63 = vld [vmem:[%s5960_s1 + $0x484] ss:$16 sps:$4 sm:$0xff]  }
  0xb3   : > { %1775 = vmatpush1.bf16.msra.mxu0 %v4393_v1  ;;  %1816 = vmatpush1.bf16.msra.mxu1 %v4396_v3  ;;  %v4477_v1 = vld [vmem:[%s5960_s1 + $0x480] ss:$16 sps:$4 sm:$0xff]   ;;  %v4485_v3 = vld [vmem:[%s5960_s1 + $0x4a4] ss:$16 sps:$4 sm:$0xff]  }
  0xb4   : > { %1776 = vmatprep.subr.bf16.mxu0 %v4401_v4  ;;  %1817 = vmatprep.subr.bf16.mxu1 %v4404_v5  ;;  %v4488_v4 = vld [vmem:[%s5960_s1 + $0x4ac] ss:$16 sps:$4 sm:$0xff]   ;;  %v4483_v5 = vld [vmem:[%s5960_s1 + $0x4a0] ss:$16 sps:$4 sm:$0xff]  }
  0xb7   : > { %1777 = vmatpush1.bf16.msra.mxu0 %v4399_v7  ;;  %1818 = vmatpush1.bf16.msra.mxu1 %v4402_v8  ;;  %v4486_v7 = vld [vmem:[%s5960_s1 + $0x4a8] ss:$16 sps:$4 sm:$0xff]   ;;  %v4491_v8 = vld [vmem:[%s5960_s1 + $0x4c4] ss:$16 sps:$4 sm:$0xff]  }
  0xb8   : > { %1778 = vmatprep.subr.bf16.mxu0 %v4407_v9  ;;  %1819 = vmatprep.subr.bf16.mxu1 %v4410_v10  ;;  %v4494_v9 = vld [vmem:[%s5960_s1 + $0x4cc] ss:$16 sps:$4 sm:$0xff]   ;;  %v4489_v10 = vld [vmem:[%s5960_s1 + $0x4c0] ss:$16 sps:$4 sm:$0xff]  }
  0xbb   : > { %1779 = vmatpush1.bf16.msra.mxu0 %v4405_v11  ;;  %1820 = vmatpush1.bf16.msra.mxu1 %v4408_v12  ;;  %v4492_v11 = vld [vmem:[%s5960_s1 + $0x4c8] ss:$16 sps:$4 sm:$0xff]   ;;  %v4497_v12 = vld [vmem:[%s5960_s1 + $0x4e4] ss:$16 sps:$4 sm:$0xff]  }
  0xbc   : > { %1780 = vmatprep.subr.bf16.mxu0 %v4413_v13  ;;  %1821 = vmatprep.subr.bf16.mxu1 %v4416_v14  ;;  %v4500_v13 = vld [vmem:[%s5960_s1 + $0x4ec] ss:$16 sps:$4 sm:$0xff]   ;;  %v4495_v14 = vld [vmem:[%s5960_s1 + $0x4e0] ss:$16 sps:$4 sm:$0xff]  }
  0xbf   : > { %1781 = vmatpush1.bf16.msra.mxu0 %v4411_v15  ;;  %1822 = vmatpush1.bf16.msra.mxu1 %v4414_v16  ;;  %v4498_v15 = vld [vmem:[%s5960_s1 + $0x4e8] ss:$16 sps:$4 sm:$0xff]   ;;  %v4503_v16 = vld [vmem:[%s5960_s1 + $0x504] ss:$16 sps:$4 sm:$0xff]  }
  0xc0   : > { %1782 = vmatprep.subr.bf16.mxu0 %v4419_v17  ;;  %1823 = vmatprep.subr.bf16.mxu1 %v4422_v18  ;;  %v4506_v17 = vld [vmem:[%s5960_s1 + $0x50c] ss:$16 sps:$4 sm:$0xff]   ;;  %v4501_v18 = vld [vmem:[%s5960_s1 + $0x500] ss:$16 sps:$4 sm:$0xff]  }
  0xc3   : > { %1783 = vmatpush1.bf16.msra.mxu0 %v4417_v19  ;;  %1824 = vmatpush1.bf16.msra.mxu1 %v4420_v20  ;;  %v4504_v19 = vld [vmem:[%s5960_s1 + $0x508] ss:$16 sps:$4 sm:$0xff]   ;;  %v4509_v20 = vld [vmem:[%s5960_s1 + $0x524] ss:$16 sps:$4 sm:$0xff]  }
  0xc4   : > { %1784 = vmatprep.subr.bf16.mxu0 %v4425_v21  ;;  %1825 = vmatprep.subr.bf16.mxu1 %v4428_v22  ;;  %v4512_v21 = vld [vmem:[%s5960_s1 + $0x52c] ss:$16 sps:$4 sm:$0xff]   ;;  %v4507_v22 = vld [vmem:[%s5960_s1 + $0x520] ss:$16 sps:$4 sm:$0xff]  }
  0xc7   : > { %1785 = vmatpush1.bf16.msra.mxu0 %v4423_v23  ;;  %1826 = vmatpush1.bf16.msra.mxu1 %v4426_v24  ;;  %v4510_v23 = vld [vmem:[%s5960_s1 + $0x528] ss:$16 sps:$4 sm:$0xff]   ;;  %v4515_v24 = vld [vmem:[%s5960_s1 + $0x544] ss:$16 sps:$4 sm:$0xff]  }
  0xc8   : > { %1786 = vmatprep.subr.bf16.mxu0 %v4431_v25  ;;  %1827 = vmatprep.subr.bf16.mxu1 %v4434_v26  ;;  %v4518_v25 = vld [vmem:[%s5960_s1 + $0x54c] ss:$16 sps:$4 sm:$0xff]   ;;  %v4513_v26 = vld [vmem:[%s5960_s1 + $0x540] ss:$16 sps:$4 sm:$0xff]  }
  0xcb   : > { %1787 = vmatpush1.bf16.msra.mxu0 %v4429_v27  ;;  %1828 = vmatpush1.bf16.msra.mxu1 %v4432_v28  ;;  %v4516_v27 = vld [vmem:[%s5960_s1 + $0x548] ss:$16 sps:$4 sm:$0xff]   ;;  %v4521_v28 = vld [vmem:[%s5960_s1 + $0x564] ss:$16 sps:$4 sm:$0xff]  }
  0xcc   : > { %1788 = vmatprep.subr.bf16.mxu0 %v4437_v29  ;;  %1829 = vmatprep.subr.bf16.mxu1 %v4440_v30  ;;  %v4524_v29 = vld [vmem:[%s5960_s1 + $0x56c] ss:$16 sps:$4 sm:$0xff]   ;;  %v4519_v30 = vld [vmem:[%s5960_s1 + $0x560] ss:$16 sps:$4 sm:$0xff]  }
  0xcf   : > { %1789 = vmatpush1.bf16.msra.mxu0 %v4435_v31  ;;  %1830 = vmatpush1.bf16.msra.mxu1 %v4438_v32  ;;  %v4522_v31 = vld [vmem:[%s5960_s1 + $0x568] ss:$16 sps:$4 sm:$0xff]   ;;  %v4527_v32 = vld [vmem:[%s5960_s1 + $0x584] ss:$16 sps:$4 sm:$0xff]  }
  0xd0   : > { %1790 = vmatprep.subr.bf16.mxu0 %v4443_v33  ;;  %1831 = vmatprep.subr.bf16.mxu1 %v4446_v34  ;;  %v4530_v33 = vld [vmem:[%s5960_s1 + $0x58c] ss:$16 sps:$4 sm:$0xff]   ;;  %v4525_v34 = vld [vmem:[%s5960_s1 + $0x580] ss:$16 sps:$4 sm:$0xff]  }
  0xd3   : > { %1791 = vmatpush1.bf16.msra.mxu0 %v4441_v35  ;;  %1832 = vmatpush1.bf16.msra.mxu1 %v4444_v36  ;;  %v4528_v35 = vld [vmem:[%s5960_s1 + $0x588] ss:$16 sps:$4 sm:$0xff]   ;;  %v4533_v36 = vld [vmem:[%s5960_s1 + $0x5a4] ss:$16 sps:$4 sm:$0xff]  }
  0xd4   : > { %1792 = vmatprep.subr.bf16.mxu0 %v4449_v37  ;;  %1833 = vmatprep.subr.bf16.mxu1 %v4452_v39  ;;  %v4536_v37 = vld [vmem:[%s5960_s1 + $0x5ac] ss:$16 sps:$4 sm:$0xff]   ;;  %v4534_v39 = vld [vmem:[%s5960_s1 + $0x5a8] ss:$16 sps:$4 sm:$0xff]  }
  0xd7   : > { %1793 = vmatpush1.bf16.msra.mxu0 %v4447_v40  ;;  %1834 = vmatpush1.bf16.msra.mxu1 %v4450_v41  ;;  %v4539_v40 = vld [vmem:[%s5960_s1 + $0x5c4] ss:$16 sps:$4 sm:$0xff]   ;;  %v4542_v41 = vld [vmem:[%s5960_s1 + $0x5cc] ss:$16 sps:$4 sm:$0xff]  }
  0xd8   : > { %2239 = vmatprep.subr.bf16.mxu0 %v4455_v43  ;;  %2280 = vmatprep.subr.bf16.mxu1 %v4458_v44  ;;  %v4537_v43 = vld [vmem:[%s5960_s1 + $0x5c0] ss:$16 sps:$4 sm:$0xff]   ;;  %v4540_v44 = vld [vmem:[%s5960_s1 + $0x5c8] ss:$16 sps:$4 sm:$0xff]  }
  0xda   : > { %1795 = vmatmul.mubr.bf16.vlgmr.msra.gmra.mrb[0].mxu0 %v5445_v47  ;;  %1836 = vmatmul.mubr.bf16.vlgmr.msra.gmra.mrb[0].mxu1 %v5445_v47 }
  0xdb   : > { %2240 = vmatpush1.bf16.msra.mxu0 %v4453_v45  ;;  %2281 = vmatpush1.bf16.msra.mxu1 %v4456_v46  ;;  %v4545_v45 = vld [vmem:[%s5960_s1 + $0x5e4] ss:$16 sps:$4 sm:$0xff]   ;;  %v4548_v46 = vld [vmem:[%s5960_s1 + $0x5ec] ss:$16 sps:$4 sm:$0xff]  }
  0xdc   : > { %2241 = vmatprep.subr.bf16.mxu0 %v4461_v48  ;;  %2282 = vmatprep.subr.bf16.mxu1 %v4464_v49  ;;  %v1846_v48 = vpack.c.bf16 %v1844_v42, %v1844_v42  ;;  %v4543_v49 = vld [vmem:[%s5960_s1 + $0x5e0] ss:$16 sps:$4 sm:$0xff]   ;;  %v4624_v42 = vld [vmem:[%s5960_s1 + $0x788] ss:$16 sps:$4 sm:$0xff]  }
  0xdd   : > { %2271 = vmatprep.mubr.bf16.mxu0 %v1916_v54  ;;  %2312 = vmatprep.mubr.bf16.mxu1 %v1916_v54  ;;  %v2326_v54 = vld [vmem:[%s5959_s0 + $0x18] sm:$0x3] }
  0xdf   : > { %2242 = vmatpush1.bf16.msra.mxu0 %v4459_v52  ;;  %2283 = vmatpush1.bf16.msra.mxu1 %v4462_v53  ;;  %v4554_v52 = vld [vmem:[%s5960_s1 + $0x60c] ss:$16 sps:$4 sm:$0xff]   ;;  %v1915_v53 = vrot.slane %v1846_v48, 3  ;;  %v4635_v48 = vld [vmem:[%s5960_s1 + $0x7c4] ss:$16 sps:$4 sm:$0xff]  }
  0xe0   : > { %2243 = vmatprep.subr.bf16.mxu0 %v4467_v55  ;;  %2284 = vmatprep.subr.bf16.mxu1 %v4470_v56  ;;  %v4549_v55 = vld [vmem:[%s5960_s1 + $0x600] ss:$16 sps:$4 sm:$0xff]   ;;  %v4552_v56 = vld [vmem:[%s5960_s1 + $0x608] ss:$16 sps:$4 sm:$0xff]  }
  0xe3   : > { %2244 = vmatpush1.bf16.msra.mxu0 %v4465_v57  ;;  %2285 = vmatpush1.bf16.msra.mxu1 %v4468_v58  ;;  %v4557_v57 = vld [vmem:[%s5960_s1 + $0x624] ss:$16 sps:$4 sm:$0xff]   ;;  %v4560_v58 = vld [vmem:[%s5960_s1 + $0x62c] ss:$16 sps:$4 sm:$0xff]  }
  0xe4   : > { %2245 = vmatprep.subr.bf16.mxu0 %v4473_v59  ;;  %2286 = vmatprep.subr.bf16.mxu1 %v4476_v60  ;;  %v4555_v59 = vld [vmem:[%s5960_s1 + $0x620] ss:$16 sps:$4 sm:$0xff]   ;;  %v4558_v60 = vld [vmem:[%s5960_s1 + $0x628] ss:$16 sps:$4 sm:$0xff]  }
  0xe7   : > { %2246 = vmatpush1.bf16.msra.mxu0 %v4471_v61  ;;  %2287 = vmatpush1.bf16.msra.mxu1 %v4474_v62  ;;  %v2328_v61 = vpack.c.bf16 %v2326_v54, %v2326_v54  ;;  %v4563_v62 = vld [vmem:[%s5960_s1 + $0x644] ss:$16 sps:$4 sm:$0xff]   ;;  %v4639_v54 = vld [vmem:[%s5960_s1 + $0x7e0] ss:$16 sps:$4 sm:$0xff]  }
  0xe8   : > { %2247 = vmatprep.subr.bf16.mxu0 %v4479_v63  ;;  %2288 = vmatprep.subr.bf16.mxu1 %v4482_v0  ;;  %v4566_v63 = vld [vmem:[%s5960_s1 + $0x64c] ss:$16 sps:$4 sm:$0xff]   ;;  %v4561_v0 = vld [vmem:[%s5960_s1 + $0x640] ss:$16 sps:$4 sm:$0xff]  }
  0xeb   : > { %2248 = vmatpush1.bf16.msra.mxu0 %v4477_v1  ;;  %2289 = vmatpush1.bf16.msra.mxu1 %v4480_v2  ;;  %v4564_v1 = vld [vmem:[%s5960_s1 + $0x648] ss:$16 sps:$4 sm:$0xff]   ;;  %v4569_v2 = vld [vmem:[%s5960_s1 + $0x664] ss:$16 sps:$4 sm:$0xff]  }
  0xec   : > { %2249 = vmatprep.subr.bf16.mxu0 %v4485_v3  ;;  %2290 = vmatprep.subr.bf16.mxu1 %v4488_v4  ;;  %v4572_v3 = vld [vmem:[%s5960_s1 + $0x66c] ss:$16 sps:$4 sm:$0xff]   ;;  %v4567_v4 = vld [vmem:[%s5960_s1 + $0x660] ss:$16 sps:$4 sm:$0xff]  }
  0xef   : > { %2250 = vmatpush1.bf16.msra.mxu0 %v4483_v5  ;;  %2291 = vmatpush1.bf16.msra.mxu1 %v4486_v7  ;;  %v4570_v5 = vld [vmem:[%s5960_s1 + $0x668] ss:$16 sps:$4 sm:$0xff]   ;;  %v4575_v7 = vld [vmem:[%s5960_s1 + $0x684] ss:$16 sps:$4 sm:$0xff]  }
  0xf0   : > { %2251 = vmatprep.subr.bf16.mxu0 %v4491_v8  ;;  %2292 = vmatprep.subr.bf16.mxu1 %v4494_v9  ;;  %v4578_v8 = vld [vmem:[%s5960_s1 + $0x68c] ss:$16 sps:$4 sm:$0xff]   ;;  %v4573_v9 = vld [vmem:[%s5960_s1 + $0x680] ss:$16 sps:$4 sm:$0xff]  }
  0xf3   : > { %2252 = vmatpush1.bf16.msra.mxu0 %v4489_v10  ;;  %2293 = vmatpush1.bf16.msra.mxu1 %v4492_v11  ;;  %v4576_v10 = vld [vmem:[%s5960_s1 + $0x688] ss:$16 sps:$4 sm:$0xff]   ;;  %v4581_v11 = vld [vmem:[%s5960_s1 + $0x6a4] ss:$16 sps:$4 sm:$0xff]  }
  0xf4   : > { %2253 = vmatprep.subr.bf16.mxu0 %v4497_v12  ;;  %2294 = vmatprep.subr.bf16.mxu1 %v4500_v13  ;;  %v4584_v12 = vld [vmem:[%s5960_s1 + $0x6ac] ss:$16 sps:$4 sm:$0xff]   ;;  %v4579_v13 = vld [vmem:[%s5960_s1 + $0x6a0] ss:$16 sps:$4 sm:$0xff]  }
  0xf7   : > { %2254 = vmatpush1.bf16.msra.mxu0 %v4495_v14  ;;  %2295 = vmatpush1.bf16.msra.mxu1 %v4498_v15  ;;  %v4582_v14 = vld [vmem:[%s5960_s1 + $0x6a8] ss:$16 sps:$4 sm:$0xff]   ;;  %v4587_v15 = vld [vmem:[%s5960_s1 + $0x6c4] ss:$16 sps:$4 sm:$0xff]  }
  0xf8   : > { %2255 = vmatprep.subr.bf16.mxu0 %v4503_v16  ;;  %2296 = vmatprep.subr.bf16.mxu1 %v4506_v17  ;;  %v4590_v16 = vld [vmem:[%s5960_s1 + $0x6cc] ss:$16 sps:$4 sm:$0xff]   ;;  %v4585_v17 = vld [vmem:[%s5960_s1 + $0x6c0] ss:$16 sps:$4 sm:$0xff]  }
  0xfb   : > { %2256 = vmatpush1.bf16.msra.mxu0 %v4501_v18  ;;  %2297 = vmatpush1.bf16.msra.mxu1 %v4504_v19  ;;  %v4588_v18 = vld [vmem:[%s5960_s1 + $0x6c8] ss:$16 sps:$4 sm:$0xff]   ;;  %v4593_v19 = vld [vmem:[%s5960_s1 + $0x6e4] ss:$16 sps:$4 sm:$0xff]  }
  0xfc   : > { %2257 = vmatprep.subr.bf16.mxu0 %v4509_v20  ;;  %2298 = vmatprep.subr.bf16.mxu1 %v4512_v21  ;;  %v4596_v20 = vld [vmem:[%s5960_s1 + $0x6ec] ss:$16 sps:$4 sm:$0xff]   ;;  %v4591_v21 = vld [vmem:[%s5960_s1 + $0x6e0] ss:$16 sps:$4 sm:$0xff]  }
  0xff   : > { %2258 = vmatpush1.bf16.msra.mxu0 %v4507_v22  ;;  %2299 = vmatpush1.bf16.msra.mxu1 %v4510_v23  ;;  %v4594_v22 = vld [vmem:[%s5960_s1 + $0x6e8] ss:$16 sps:$4 sm:$0xff]   ;;  %v4599_v23 = vld [vmem:[%s5960_s1 + $0x704] ss:$16 sps:$4 sm:$0xff]  }
 0x100   : > { %2259 = vmatprep.subr.bf16.mxu0 %v4515_v24  ;;  %2300 = vmatprep.subr.bf16.mxu1 %v4518_v25  ;;  %v4602_v24 = vld [vmem:[%s5960_s1 + $0x70c] ss:$16 sps:$4 sm:$0xff]   ;;  %v4597_v25 = vld [vmem:[%s5960_s1 + $0x700] ss:$16 sps:$4 sm:$0xff]  }
 0x103   : > { %2260 = vmatpush1.bf16.msra.mxu0 %v4513_v26  ;;  %2301 = vmatpush1.bf16.msra.mxu1 %v4516_v27  ;;  %v4600_v26 = vld [vmem:[%s5960_s1 + $0x708] ss:$16 sps:$4 sm:$0xff]   ;;  %v4605_v27 = vld [vmem:[%s5960_s1 + $0x724] ss:$16 sps:$4 sm:$0xff]  }
 0x104   : > { %2261 = vmatprep.subr.bf16.mxu0 %v4521_v28  ;;  %2302 = vmatprep.subr.bf16.mxu1 %v4524_v29  ;;  %v4608_v28 = vld [vmem:[%s5960_s1 + $0x72c] ss:$16 sps:$4 sm:$0xff]   ;;  %v4603_v29 = vld [vmem:[%s5960_s1 + $0x720] ss:$16 sps:$4 sm:$0xff]  }
 0x107   : > { %2262 = vmatpush1.bf16.msra.mxu0 %v4519_v30  ;;  %2303 = vmatpush1.bf16.msra.mxu1 %v4522_v31  ;;  %v4606_v30 = vld [vmem:[%s5960_s1 + $0x728] ss:$16 sps:$4 sm:$0xff]   ;;  %v4611_v31 = vld [vmem:[%s5960_s1 + $0x744] ss:$16 sps:$4 sm:$0xff]  }
 0x108   : > { %2263 = vmatprep.subr.bf16.mxu0 %v4527_v32  ;;  %2304 = vmatprep.subr.bf16.mxu1 %v4530_v33  ;;  %v4614_v32 = vld [vmem:[%s5960_s1 + $0x74c] ss:$16 sps:$4 sm:$0xff]   ;;  %v4609_v33 = vld [vmem:[%s5960_s1 + $0x740] ss:$16 sps:$4 sm:$0xff]  }
 0x10b   : > { %2264 = vmatpush1.bf16.msra.mxu0 %v4525_v34  ;;  %2305 = vmatpush1.bf16.msra.mxu1 %v4528_v35  ;;  %v4612_v34 = vld [vmem:[%s5960_s1 + $0x748] ss:$16 sps:$4 sm:$0xff]   ;;  %v4617_v35 = vld [vmem:[%s5960_s1 + $0x764] ss:$16 sps:$4 sm:$0xff]  }
 0x10c   : > { %2265 = vmatprep.subr.bf16.mxu0 %v4533_v36  ;;  %2306 = vmatprep.subr.bf16.mxu1 %v4536_v37  ;;  %v4620_v36 = vld [vmem:[%s5960_s1 + $0x76c] ss:$16 sps:$4 sm:$0xff]   ;;  %v4615_v37 = vld [vmem:[%s5960_s1 + $0x760] ss:$16 sps:$4 sm:$0xff]  }
 0x10f   : > { %2266 = vmatpush1.bf16.msra.mxu0 %v4531_v38  ;;  %2307 = vmatpush1.bf16.msra.mxu1 %v4534_v39  ;;  %v4618_v38 = vld [vmem:[%s5960_s1 + $0x768] ss:$16 sps:$4 sm:$0xff]   ;;  %v4623_v39 = vld [vmem:[%s5960_s1 + $0x784] ss:$16 sps:$4 sm:$0xff]  }
 0x110   : > { %2267 = vmatprep.subr.bf16.mxu0 %v4539_v40  ;;  %2308 = vmatprep.subr.bf16.mxu1 %v4542_v41  ;;  %v4626_v40 = vld [vmem:[%s5960_s1 + $0x78c] ss:$16 sps:$4 sm:$0xff]   ;;  %v4621_v41 = vld [vmem:[%s5960_s1 + $0x780] ss:$16 sps:$4 sm:$0xff]  }
 0x113   : > { %2268 = vmatpush1.bf16.msra.mxu0 %v4537_v43  ;;  %2309 = vmatpush1.bf16.msra.mxu1 %v4540_v44  ;;  %v4629_v43 = vld [vmem:[%s5960_s1 + $0x7a4] ss:$16 sps:$4 sm:$0xff]   ;;  %v4632_v44 = vld [vmem:[%s5960_s1 + $0x7ac] ss:$16 sps:$4 sm:$0xff]  }
 0x114   : > { %2269 = vmatprep.subr.bf16.mxu0 %v4545_v45  ;;  %2310 = vmatprep.subr.bf16.mxu1 %v4548_v46  ;;  %v4627_v45 = vld [vmem:[%s5960_s1 + $0x7a0] ss:$16 sps:$4 sm:$0xff]   ;;  %v4630_v46 = vld [vmem:[%s5960_s1 + $0x7a8] ss:$16 sps:$4 sm:$0xff]  }
 0x117   : > { %2270 = vmatpush1.bf16.msra.mxu0 %v4543_v49  ;;  %2311 = vmatpush1.bf16.msra.mxu1 %v4546_v50  ;;  %v4638_v49 = vld [vmem:[%s5960_s1 + $0x7cc] ss:$16 sps:$4 sm:$0xff]   ;;  %v4633_v50 = vld [vmem:[%s5960_s1 + $0x7c0] ss:$16 sps:$4 sm:$0xff]  }
 0x118   : > { %2714 = vmatprep.subr.bf16.mxu0 %v4551_v51  ;;  %2755 = vmatprep.subr.bf16.mxu1 %v4554_v52  ;;  %v4636_v51 = vld [vmem:[%s5960_s1 + $0x7c8] ss:$16 sps:$4 sm:$0xff]   ;;  %v4641_v52 = vld [vmem:[%s5960_s1 + $0x7e4] ss:$16 sps:$4 sm:$0xff]  }
 0x11a   : > { %2272 = vmatmul.mubr.bf16.vlgmr.msra.gmra.mrb[0].mxu0 %v1915_v53  ;;  %2313 = vmatmul.mubr.bf16.vlgmr.msra.gmra.mrb[0].mxu1 %v1915_v53  ;;  %v4644_v53 = vld [vmem:[%s5960_s1 + $0x7ec] ss:$16 sps:$4 sm:$0xff]  }
 0x11b   : > { %2715 = vmatpush1.bf16.msra.mxu0 %v4549_v55  ;;  %2756 = vmatpush1.bf16.msra.mxu1 %v4552_v56  ;;  %v4642_v55 = vld [vmem:[%s5960_s1 + $0x7e8] ss:$16 sps:$4 sm:$0xff]   ;;  %v2325_v56 = vld [vmem:[%s5959_s0 + $0x10] sm:$0x3] }
 0x11c   : > { %2716 = vmatprep.subr.bf16.mxu0 %v4557_v57  ;;  %2757 = vmatprep.subr.bf16.mxu1 %v4560_v58  ;;  %v4645_v57 = vld [vmem:[%s5593_s27 + $0x40] sm:$0xff]   ;;  %v2327_v58 = vpack.c.bf16 %v2325_v56, %v2325_v56 }
 0x11d   : > { %2746 = vmatprep.mubr.bf16.mxu0 %v2328_v61  ;;  %2787 = vmatprep.mubr.bf16.mxu1 %v2328_v61  ;;  %v4648_v61 = vld [vmem:[%s5593_s27 + $0x8] sm:$0xff]  }
 0x11f   : > { %2717 = vmatpush1.bf16.msra.mxu0 %v4555_v59  ;;  %2758 = vmatpush1.bf16.msra.mxu1 %v4558_v60  ;;  %v4646_v59 = vld [vmem:[%s5593_s27] sm:$0xff]   ;;  %v4647_v60 = vld [vmem:[%s5593_s27 + $0x48] sm:$0xff]  }
 0x120   : > { %2718 = vmatprep.subr.bf16.mxu0 %v4563_v62  ;;  %2759 = vmatprep.subr.bf16.mxu1 %v4566_v63  ;;  %v4649_v62 = vld [vmem:[%s5593_s27 + $0x50] sm:$0xff]  }
 0x121   : > { %v4650_v63 = vld [vmem:[%s5593_s27 + $0x10] sm:$0xff]  }
 0x123   : > { %2719 = vmatpush1.bf16.msra.mxu0 %v4561_v0  ;;  %2760 = vmatpush1.bf16.msra.mxu1 %v4564_v1  ;;  %v4651_v0 = vld [vmem:[%s5593_s27 + $0x58] sm:$0xff]  }
 0x124   : > { %2720 = vmatprep.subr.bf16.mxu0 %v4569_v2  ;;  %2761 = vmatprep.subr.bf16.mxu1 %v4572_v3  ;;  %v4652_v1 = vld [vmem:[%s5593_s27 + $0x18] sm:$0xff]   ;;  %v4653_v2 = vld [vmem:[%s5593_s27 + $0x60] sm:$0xff]  }
 0x125   : > { %v4654_v3 = vld [vmem:[%s5593_s27 + $0x20] sm:$0xff]  }
 0x127   : > { %2721 = vmatpush1.bf16.msra.mxu0 %v4567_v4  ;;  %2762 = vmatpush1.bf16.msra.mxu1 %v4570_v5  ;;  %v4656_v4 = vld [vmem:[%s5593_s27 + $0x28] sm:$0xff]   ;;  %v4657_v5 = vld [vmem:[%s5593_s27 + $0x70] sm:$0xff]  }
 0x128   : > { %2722 = vmatprep.subr.bf16.mxu0 %v4575_v7  ;;  %2763 = vmatprep.subr.bf16.mxu1 %v4578_v8  ;;  %v4658_v7 = vld [vmem:[%s5593_s27 + $0x30] sm:$0xff]   ;;  %v4659_v8 = vld [vmem:[%s5593_s27 + $0x78] sm:$0xff]  }
 0x12b   : > { %2723 = vmatpush1.bf16.msra.mxu0 %v4573_v9  ;;  %2764 = vmatpush1.bf16.msra.mxu1 %v4576_v10  ;;  %v4660_v9 = vld [vmem:[%s5593_s27 + $0x38] sm:$0xff]   ;;  %v4661_v10 = vld [vmem:[%s5651_s26 + $0x40] sm:$0xff]  }
 0x12c   : > { %2724 = vmatprep.subr.bf16.mxu0 %v4581_v11  ;;  %2765 = vmatprep.subr.bf16.mxu1 %v4584_v12  ;;  %v4662_v11 = vld [vmem:[%s5651_s26 + $0xc0] sm:$0xff]  }
 0x12d   : > { %v4663_v12 = vld [vmem:[%s5651_s26] sm:$0xff]  }
 0x12f   : > { %2725 = vmatpush1.bf16.msra.mxu0 %v4579_v13  ;;  %2766 = vmatpush1.bf16.msra.mxu1 %v4582_v14  ;;  %v4664_v13 = vld [vmem:[%s5651_s26 + $0x80] sm:$0xff]   ;;  %v4665_v14 = vld [vmem:[%s5651_s26 + $0x48] sm:$0xff]  }
 0x130   : > { %2726 = vmatprep.subr.bf16.mxu0 %v4587_v15  ;;  %2767 = vmatprep.subr.bf16.mxu1 %v4590_v16  ;;  %v4666_v15 = vld [vmem:[%s5651_s26 + $0xc8] sm:$0xff]  }
 0x131   : > { %v4667_v16 = vld [vmem:[%s5651_s26 + $0x8] sm:$0xff]  }
 0x133   : > { %2727 = vmatpush1.bf16.msra.mxu0 %v4585_v17  ;;  %2768 = vmatpush1.bf16.msra.mxu1 %v4588_v18  ;;  %v4668_v17 = vld [vmem:[%s5651_s26 + $0x88] sm:$0xff]   ;;  %v4670_v18 = vld [vmem:[%s5651_s26 + $0xd0] sm:$0xff]  }
 0x134   : > { %2728 = vmatprep.subr.bf16.mxu0 %v4593_v19  ;;  %2769 = vmatprep.subr.bf16.mxu1 %v4596_v20  ;;  %v4671_v19 = vld [vmem:[%s5651_s26 + $0x10] sm:$0xff]  }
 0x135   : > { %v4672_v20 = vld [vmem:[%s5651_s26 + $0x90] sm:$0xff]  }
 0x137   : > { %2729 = vmatpush1.bf16.msra.mxu0 %v4591_v21  ;;  %2770 = vmatpush1.bf16.msra.mxu1 %v4594_v22  ;;  %v4673_v21 = vld [vmem:[%s5651_s26 + $0x58] sm:$0xff]  }
 0x138   : > { %2730 = vmatprep.subr.bf16.mxu0 %v4599_v23  ;;  %2771 = vmatprep.subr.bf16.mxu1 %v4602_v24  ;;  %v4674_v22 = vld [vmem:[%s5651_s26 + $0xd8] sm:$0xff]  }
 0x139   : > { %v4675_v23 = vld [vmem:[%s5651_s26 + $0x18] sm:$0xff]  }
 0x13a   : > { %v4676_v24 = vld [vmem:[%s5651_s26 + $0x98] sm:$0xff]  }
 0x13b   : > { %2731 = vmatpush1.bf16.msra.mxu0 %v4597_v25  ;;  %2772 = vmatpush1.bf16.msra.mxu1 %v4600_v26  ;;  %v4677_v25 = vld [vmem:[%s5651_s26 + $0x60] sm:$0xff]  }
 0x13c   : > { %2732 = vmatprep.subr.bf16.mxu0 %v4605_v27  ;;  %2773 = vmatprep.subr.bf16.mxu1 %v4608_v28  ;;  %v4678_v26 = vld [vmem:[%s5651_s26 + $0xe0] sm:$0xff]  }
 0x13d   : > { %v4679_v27 = vld [vmem:[%s5651_s26 + $0x20] sm:$0xff]  }
 0x13e   : > { %v4680_v28 = vld [vmem:[%s5651_s26 + $0xa0] sm:$0xff]  }
 0x13f   : > { %2733 = vmatpush1.bf16.msra.mxu0 %v4603_v29  ;;  %2774 = vmatpush1.bf16.msra.mxu1 %v4606_v30  ;;  %v4681_v29 = vld [vmem:[%s5651_s26 + $0x68] sm:$0xff]  }
 0x140   : > { %2734 = vmatprep.subr.bf16.mxu0 %v4611_v31  ;;  %2775 = vmatprep.subr.bf16.mxu1 %v4614_v32  ;;  %v4682_v30 = vld [vmem:[%s5651_s26 + $0xe8] sm:$0xff]  }
 0x141   : > { %v4683_v31 = vld [vmem:[%s5651_s26 + $0x28] sm:$0xff]  }
 0x142   : > { %v4684_v32 = vld [vmem:[%s5651_s26 + $0xa8] sm:$0xff]  }
 0x143   : > { %2735 = vmatpush1.bf16.msra.mxu0 %v4609_v33  ;;  %2776 = vmatpush1.bf16.msra.mxu1 %v4612_v34  ;;  %v4685_v33 = vld [vmem:[%s5651_s26 + $0x70] sm:$0xff]  }
 0x144   : > { %2736 = vmatprep.subr.bf16.mxu0 %v4617_v35  ;;  %2777 = vmatprep.subr.bf16.mxu1 %v4620_v36  ;;  %v4686_v34 = vld [vmem:[%s5651_s26 + $0xf0] sm:$0xff]  }
 0x145   : > { %v4687_v35 = vld [vmem:[%s5651_s26 + $0x30] sm:$0xff]  }
 0x146   : > { %v4688_v36 = vld [vmem:[%s5651_s26 + $0xb0] sm:$0xff]  }
 0x147   : > { %2737 = vmatpush1.bf16.msra.mxu0 %v4615_v37  ;;  %2778 = vmatpush1.bf16.msra.mxu1 %v4618_v38  ;;  %v4689_v37 = vld [vmem:[%s5651_s26 + $0x78] sm:$0xff]  }
 0x148   : > { %2738 = vmatprep.subr.bf16.mxu0 %v4623_v39  ;;  %2779 = vmatprep.subr.bf16.mxu1 %v4626_v40  ;;  %v4690_v38 = vld [vmem:[%s5651_s26 + $0xf8] sm:$0xff]  }
 0x149   : > { %v4691_v39 = vld [vmem:[%s5651_s26 + $0x38] sm:$0xff]  }
 0x14a   : > { %v4692_v40 = vld [vmem:[%s5651_s26 + $0xb8] sm:$0xff]  }
 0x14b   : > { %2739 = vmatpush1.bf16.msra.mxu0 %v4621_v41  ;;  %2780 = vmatpush1.bf16.msra.mxu1 %v4624_v42 }
 0x14c   : > { %2740 = vmatprep.subr.bf16.mxu0 %v4629_v43  ;;  %2781 = vmatprep.subr.bf16.mxu1 %v4632_v44 }
 0x14f   : > { %2741 = vmatpush1.bf16.msra.mxu0 %v4627_v45  ;;  %2782 = vmatpush1.bf16.msra.mxu1 %v4630_v46 }
 0x150   : > { %2742 = vmatprep.subr.bf16.mxu0 %v4635_v48  ;;  %2783 = vmatprep.subr.bf16.mxu1 %v4638_v49 }
 0x153   : > { %2743 = vmatpush1.bf16.msra.mxu0 %v4633_v50  ;;  %2784 = vmatpush1.bf16.msra.mxu1 %v4636_v51 }
 0x154   : > { %2744 = vmatprep.subr.bf16.mxu0 %v4641_v52  ;;  %2785 = vmatprep.subr.bf16.mxu1 %v4644_v53 }
 0x157   : > { %2745 = vmatpush1.bf16.msra.mxu0 %v4639_v54  ;;  %2786 = vmatpush1.bf16.msra.mxu1 %v4642_v55 }
 0x158   : > { %4147 = vmatprep.subr.bf16.mxu0 %v4645_v57  ;;  %4169 = vmatprep.subr.bf16.mxu1 %v4661_v10 }
 0x15a   : > { %2747 = vmatmul.mubr.bf16.vlgmr.msra.gmra.mrb[0].mxu0 %v2327_v58  ;;  %2788 = vmatmul.mubr.bf16.vlgmr.msra.gmra.mrb[0].mxu1 %v2327_v58 }
 0x15b   : > { %4148 = vmatpush3.bf16.msra.mxu0 %v4646_v59  ;;  %3101 = vmatprep.mubr.bf16.mxu0 %v5324_v6  ;;  %v4655_v6 = vld [vmem:[%s5593_s27 + $0x68] sm:$0xff]  }
 0x15c   : > { %4149 = vmatprep.subr.bf16.mxu0 %v4647_v60  ;;  %4170 = vmatpush3.bf16.msra.mxu1 %v4663_v12 }
 0x15d   : > { %4171 = vmatprep.subr.bf16.mxu1 %v4665_v14 }
 0x15f   : > { %4150 = vmatpush3.bf16.msra.mxu0 %v4648_v61 }
 0x160   : > { %4151 = vmatprep.subr.bf16.mxu0 %v4649_v62  ;;  %4172 = vmatpush3.bf16.msra.mxu1 %v4667_v16 }
 0x163   : > { %4152 = vmatpush3.bf16.msra.mxu0 %v4650_v63 }
 0x164   : > { %4153 = vmatprep.subr.bf16.mxu0 %v4651_v0 }
 0x167   : > { %4154 = vmatpush3.bf16.msra.mxu0 %v4652_v1 }
 0x168   : > { %4155 = vmatprep.subr.bf16.mxu0 %v4653_v2 }
 0x16b   : > { %4156 = vmatpush3.bf16.msra.mxu0 %v4654_v3 }
 0x16c   : > { %4157 = vmatprep.subr.bf16.mxu0 %v4655_v6 }
 0x16f   : > { %4158 = vmatpush3.bf16.msra.mxu0 %v4656_v4 }
 0x170   : > { %4159 = vmatprep.subr.bf16.mxu0 %v4657_v5 }
 0x173   : > { %4160 = vmatpush3.bf16.msra.mxu0 %v4658_v7 }
 0x174   : > { %4161 = vmatprep.subr.bf16.mxu0 %v4659_v8 }
 0x177   : > { %4162 = vmatpush3.bf16.msra.mxu0 %v4660_v9 }
 0x178   : > { %4191 = vmatprep.subr.bf16.mxu0 %v4662_v11 }
 0x17a   : > { %3102 = vmatmul.mubr.bf16.vlgmr.msra.gmra.mrb[4].mxu0 %v5445_v47  ;;  %v4669_v47 = vld [vmem:[%s5651_s26 + $0x50] sm:$0xff]  }
 0x17b   : > { %4192 = vmatpush3.bf16.msra.mxu0 %v4664_v13  ;;  %4173 = vmatprep.subr.bf16.mxu1 %v4669_v47 }
 0x17c   : > { %4193 = vmatprep.subr.bf16.mxu0 %v4666_v15  ;;  %4174 = vmatpush3.bf16.msra.mxu1 %v4671_v19 }
 0x17d   : > { %4175 = vmatprep.subr.bf16.mxu1 %v4673_v21 }
 0x17f   : > { %4194 = vmatpush3.bf16.msra.mxu0 %v4668_v17 }
 0x180   : > { %4195 = vmatprep.subr.bf16.mxu0 %v4670_v18  ;;  %4176 = vmatpush3.bf16.msra.mxu1 %v4675_v23 }
 0x181   : > { %4177 = vmatprep.subr.bf16.mxu1 %v4677_v25 }
 0x183   : > { %4196 = vmatpush3.bf16.msra.mxu0 %v4672_v20 }
 0x184   : > { %4197 = vmatprep.subr.bf16.mxu0 %v4674_v22  ;;  %4178 = vmatpush3.bf16.msra.mxu1 %v4679_v27 }
 0x185   : > { %4179 = vmatprep.subr.bf16.mxu1 %v4681_v29 }
 0x187   : > { %4198 = vmatpush3.bf16.msra.mxu0 %v4676_v24 }
 0x188   : > { %4199 = vmatprep.subr.bf16.mxu0 %v4678_v26  ;;  %4180 = vmatpush3.bf16.msra.mxu1 %v4683_v31 }
 0x189   : > { %4181 = vmatprep.subr.bf16.mxu1 %v4685_v33 }
 0x18b   : > { %4200 = vmatpush3.bf16.msra.mxu0 %v4680_v28 }
 0x18c   : > { %4201 = vmatprep.subr.bf16.mxu0 %v4682_v30  ;;  %4182 = vmatpush3.bf16.msra.mxu1 %v4687_v35 }
 0x18d   : > { %4183 = vmatprep.subr.bf16.mxu1 %v4689_v37 }
 0x18f   : > { %4202 = vmatpush3.bf16.msra.mxu0 %v4684_v32 }
 0x190   : > { %4203 = vmatprep.subr.bf16.mxu0 %v4686_v34  ;;  %4184 = vmatpush3.bf16.msra.mxu1 %v4691_v39 }
 0x193   : > { %4204 = vmatpush3.bf16.msra.mxu0 %v4688_v36 }
 0x194   : > { %4205 = vmatprep.subr.bf16.mxu0 %v4690_v38 }
 0x197   : > { %4206 = vmatpush3.bf16.msra.mxu0 %v4692_v40 }
 0x22d   : > { %v2748_v41 = vpop.f32.mrb[0].mxu0  ;;  %v2789_v42 = vpop.f32.mrb[0].mxu1 }
 0x22e   : > { %v2803_v43 = vsel %vm2802_vm0, %v2748_v41, 0.0  ;;  %v2817_v44 = vsel %vm2802_vm0, %v2789_v42, 0.0  ;;  %v2750_v45 = vpop.f32.mrb[1].mxu0  ;;  %v2791_v46 = vpop.f32.mrb[1].mxu1 }
 0x22f   : > { %v2804_v48 = vrot.slane %v2803_v43, 4  ;;  %v2818_v49 = vrot.slane %v2817_v44, 4  ;;  %v2810_v50 = vsel %vm2802_vm0, %v2750_v45, 0.0  ;;  %v2824_v51 = vsel %vm2802_vm0, %v2791_v46, 0.0  ;;  %v2752_v52 = vpop.f32.mrb[2].mxu0  ;;  %v2793_v53 = vpop.f32.mrb[2].mxu1 }
 0x230   : > { %v2811_v54 = vrot.slane %v2810_v50, 4  ;;  %v2825_v55 = vrot.slane %v2824_v51, 4  ;;  %v2753_v56 = vpop.f32.mrb[3].mxu0  ;;  %v2794_v57 = vpop.f32.mrb[3].mxu1 }
 0x231   : > { %v2805_v58 = vadd.f32 %v2804_v48, %v2803_v43  ;;  %v2819_v59 = vadd.f32 %v2818_v49, %v2817_v44 }
 0x232   : > { %v2812_v60 = vadd.f32 %v2811_v54, %v2810_v50  ;;  %v2826_v61 = vadd.f32 %v2825_v55, %v2824_v51 }
 0x233   : > { %v2806_v62 = vrot.slane %v2805_v58, 2  ;;  %v2820_v63 = vrot.slane %v2819_v59, 2 }
 0x234   : > { %v2813_v0 = vrot.slane %v2812_v60, 2  ;;  %v2827_v1 = vrot.slane %v2826_v61, 2 }
 0x235   : > { %v2807_v2 = vadd.f32 %v2806_v62, %v2805_v58  ;;  %v2821_v3 = vadd.f32 %v2820_v63, %v2819_v59  ;;  %v2888_v58 = vlaneseq }
 0x236   : > { %v2814_v6 = vadd.f32 %v2813_v0, %v2812_v60  ;;  %v2828_v4 = vadd.f32 %v2827_v1, %v2826_v61 }
 0x237   : > { %v2808_v5 = vrot.slane %v2807_v2, 1  ;;  %v2822_v7 = vrot.slane %v2821_v3, 1 }
 0x238   : > { %v2815_v8 = vrot.slane %v2814_v6, 1  ;;  %v2829_v9 = vrot.slane %v2828_v4, 1 }
 0x239   : > { %v2809_v10 = vadd.f32 %v2808_v5, %v2807_v2  ;;  %v2823_v11 = vadd.f32 %v2822_v7, %v2821_v3  ;;  %v2800_v5 = vld [vmem:[%s5961_s2] sm:$0xf] }
 0x23a   : > { %v2816_v12 = vadd.f32 %v2815_v8, %v2814_v6  ;;  %v2830_v13 = vadd.f32 %v2829_v9, %v2828_v4  ;;  %v2889_v6 = vshrl.u32 %v2888_v58, 7  ;;  %v2801_v9 = vld [vmem:[%s5962_s3] sm:$0xf] }
 0x23b   : > { %v2831_v14 = vmul.f32 0.5, %v2809_v10  ;;  %v2833_v15 = vmul.f32 0.5, %v2823_v11 }
 0x23c   : > { %v2832_v16 = vmul.f32 0.5, %v2816_v12  ;;  %v2834_v17 = vmul.f32 0.5, %v2830_v13  ;;  %v2890_v4 = vsub.s32 0, %v2889_v6  ;;  %v2898_v7 = vsub.s32 2, %v2889_v6 }
 0x23d   : > { %v5896_v47 = vsub.f32 %v2748_v41, %v2831_v14  ;;  %v5898_v18 = vsub.f32 %v2789_v42, %v2833_v15  ;;  %v2894_v8 = vsub.s32 1, %v2889_v6  ;;  %v2902_v10 = vsub.s32 3, %v2889_v6 }
 0x23e   : > { %v5900_v19 = vsub.f32 %v2750_v45, %v2832_v16  ;;  %v5902_v20 = vsub.f32 %v2791_v46, %v2834_v17  ;;  %v2891_v11 = vrot.slane %v2800_v5, %v2890_v4  ;;  %v2899_v13 = vrot.slane %v2800_v5, %v2898_v7 }
 0x23f   : > { %v2839_v21 = vmul.f32 %v5896_v47, %v5896_v47  ;;  %v2841_v22 = vmul.f32 %v5898_v18, %v5898_v18  ;;  %v2916_v16 = vrot.slane %v2801_v9, %v2890_v4  ;;  %v2895_v17 = vrot.slane %v2800_v5, %v2894_v8 }
 0x240   : > { %v2840_v23 = vmul.f32 %v5900_v19, %v5900_v19  ;;  %v2842_v24 = vmul.f32 %v5902_v20, %v5902_v20 }
 0x241   : > { %v2843_v25 = vsel %vm2802_vm0, %v2839_v21, 0.0  ;;  %v2857_v26 = vsel %vm2802_vm0, %v2841_v22, 0.0 }
 0x242   : > { %v2844_v27 = vrot.slane %v2843_v25, 4  ;;  %v2858_v28 = vrot.slane %v2857_v26, 4  ;;  %v2850_v29 = vsel %vm2802_vm0, %v2840_v23, 0.0  ;;  %v2864_v30 = vsel %vm2802_vm0, %v2842_v24, 0.0 }
 0x243   : > { %v2851_v31 = vrot.slane %v2850_v29, 4  ;;  %v2865_v32 = vrot.slane %v2864_v30, 4  ;;  %v2924_v23 = vrot.slane %v2801_v9, %v2898_v7  ;;  %v2903_v24 = vrot.slane %v2800_v5, %v2902_v10 }
 0x244   : > { %v2845_v33 = vadd.f32 %v2844_v27, %v2843_v25  ;;  %v2859_v34 = vadd.f32 %v2858_v28, %v2857_v26  ;;  %v2920_v28 = vrot.slane %v2801_v9, %v2894_v8 }
 0x245   : > { %v2852_v35 = vadd.f32 %v2851_v31, %v2850_v29  ;;  %v2866_v36 = vadd.f32 %v2865_v32, %v2864_v30  ;;  %v2928_v31 = vrot.slane %v2801_v9, %v2902_v10 }
 0x246   : > { %v2846_v37 = vrot.slane %v2845_v33, 2  ;;  %v2860_v38 = vrot.slane %v2859_v34, 2 }
 0x247   : > { %v2853_v39 = vrot.slane %v2852_v35, 2  ;;  %v2867_v40 = vrot.slane %v2866_v36, 2 }
 0x248   : > { %v2847_v41 = vadd.f32 %v2846_v37, %v2845_v33  ;;  %v2861_v42 = vadd.f32 %v2860_v38, %v2859_v34 }
 0x249   : > { %v2854_v43 = vadd.f32 %v2853_v39, %v2852_v35  ;;  %v2868_v44 = vadd.f32 %v2867_v40, %v2866_v36 }
 0x24a   : > { %v2848_v45 = vrot.slane %v2847_v41, 1  ;;  %v2862_v46 = vrot.slane %v2861_v42, 1 }
 0x24b   : > { %v2855_v48 = vrot.slane %v2854_v43, 1  ;;  %v2869_v49 = vrot.slane %v2868_v44, 1 }
 0x24c   : > { %v2849_v50 = vadd.f32 %v2848_v45, %v2847_v41  ;;  %v2863_v51 = vadd.f32 %v2862_v46, %v2861_v42 }
 0x24d   : > { %v2856_v52 = vadd.f32 %v2855_v48, %v2854_v43  ;;  %v2870_v53 = vadd.f32 %v2869_v49, %v2868_v44  ;;  %v4163_v54 = vpop.f32.mrb[4].mxu0 }
 0x24e   : > { %v2871_v55 = vmul.f32 0.5, %v2849_v50  ;;  %v2873_v56 = vmul.f32 0.5, %v2863_v51  ;;  %v4164_v57 = vpop.f32.mrb[5].mxu0 }
 0x24f   : > { %v2872_v59 = vmul.f32 0.5, %v2856_v52  ;;  %v2874_v60 = vmul.f32 0.5, %v2870_v53  ;;  %v4165_v61 = vadd.f32 %v4164_v57, %v4163_v54  ;;  %v4166_v62 = vpop.f32.mrb[6].mxu0 }
 0x250   : > { %v2875_v63 = vadd.f32 1e-05, %v2871_v55  ;;  %v2877_v0 = vadd.f32 1e-05, %v2873_v56  ;;  %v4167_v1 = vpop.f32.mrb[7].mxu0 }
 0x251   : > { %v2876_v2 = vadd.f32 1e-05, %v2872_v59  ;;  %v2878_v3 = vadd.f32 1e-05, %v2874_v60 }
 0x252   : > { %4693 = vrsqrt.f32 %v2875_v63 }
 0x253   : > { %4695 = vrsqrt.f32 %v2877_v0 }
 0x254   : > { %4697 = vrsqrt.f32 %v2876_v2 }
 0x255   : > { %4699 = vrsqrt.f32 %v2878_v3 }
 0x25c   : > { %v4694_v12 = vpop.eup %4693 }
 0x25d   : > { %v4696_v14 = vpop.eup %4695  ;;  %v2883_v15 = vmul.f32 %v4694_v12, %v5896_v47 }
 0x25e   : > { %v4698_v21 = vpop.eup %4697  ;;  %v2885_v22 = vmul.f32 %v4696_v14, %v5898_v18 }
 0x25f   : > { %v4700_v25 = vpop.eup %4699  ;;  %v2908_v26 = vmul.f32 %v2891_v11, %v2883_v15  ;;  %v2884_v27 = vmul.f32 %v4698_v21, %v5900_v19 }
 0x260   : > { %v2910_v29 = vmul.f32 %v2899_v13, %v2885_v22  ;;  %v2886_v30 = vmul.f32 %v4700_v25, %v5902_v20  ;;  %v3111_v20 = vsel %vm2802_vm0, %v4165_v61, 0.0 }
 0x261   : > { %v2933_v32 = vadd.f32 %v2916_v16, %v2908_v26  ;;  %v2909_v33 = vmul.f32 %v2895_v17, %v2884_v27  ;;  %v3112_v43 = vrot.slane %v3111_v20, 4 }
 0x262   : > { %v2935_v34 = vadd.f32 %v2924_v23, %v2910_v29  ;;  %v2911_v47 = vmul.f32 %v2903_v24, %v2886_v30 }
 0x263   : > { %v2934_v35 = vadd.f32 %v2920_v28, %v2909_v33  ;;  %v2937_v37 = vmax.f32 %v2933_v32, 0.0  ;;  %v3113_v44 = vadd.f32 %v3112_v43, %v3111_v20  ;;  %v4109_v33 = vld [vmem:[%s883_s28] ss:$0 sm:$0xff] }
 0x264   : > { %v2936_v36 = vadd.f32 %v2928_v31, %v2911_v47  ;;  %v2939_v18 = vmax.f32 %v2935_v34, 0.0  ;;  %v4143_v47 = vld [vmem:[%s877_s18] ss:$0 sm:$0xff] }
 0x265   : > { %v2938_v38 = vmax.f32 %v2934_v35, 0.0  ;;  %v3146_v42 = vpack.c.bf16 %v2937_v37, %v2937_v37  ;;  %v3114_v45 = vrot.slane %v3113_v44, 2  ;;  %v4110_v37 = vld [vmem:[%s886_s23] ss:$0 sm:$0xff] }
 0x266   : > { %v2940_v39 = vmax.f32 %v2936_v36, 0.0  ;;  %v3148_v19 = vpack.c.bf16 %v2939_v18, %v2939_v18 }
 0x267   : > { %v3147_v40 = vpack.c.bf16 %v2938_v38, %v2938_v38  ;;  %v3115_v46 = vadd.f32 %v3114_v45, %v3113_v44  ;;  %v4144_v38 = vld [vmem:[%s880_s15] ss:$0 sm:$0xff] }
 0x268   : > { %v3149_v41 = vpack.c.bf16 %v2940_v39, %v2940_v39 }
 0x269   : > { %3438 = vmatprep.mubr.bf16.mxu1 %v3147_v40  ;;  %v3116_v48 = vrot.slane %v3115_v46, 1 }
 0x26a   : > { %3478 = vmatprep.mubr.bf16.mxu0 %v3149_v41  ;;  %3439 = vmatmul.mubr.bf16.vlgmr.msra.gmra.mrb[4].mxu1 %v3146_v42 }
 0x26b   : > { %3479 = vmatmul.mubr.bf16.vlgmr.msra.gmra.mrb[8].mxu0 %v3148_v19  ;;  %v3117_v49 = vadd.f32 %v3116_v48, %v3115_v46 }
 0x26d   : > { %v3118_v50 = vmul.f32 0.5, %v3117_v49 }
 0x26f   : > { %v3119_v51 = vsub.f32 %v4165_v61, %v3118_v50 }
 0x271   : > { %v3120_v52 = vmul.f32 %v3119_v51, %v3119_v51 }
 0x273   : > { %v3121_v56 = vsel %vm2802_vm0, %v3120_v52, 0.0 }
 0x274   : > { %v3122_v1 = vrot.slane %v3121_v56, 4 }
 0x276   : > { %v3123_v4 = vadd.f32 %v3122_v1, %v3121_v56 }
 0x278   : > { %v3124_v7 = vrot.slane %v3123_v4, 2 }
 0x27a   : > { %v3125_v10 = vadd.f32 %v3124_v7, %v3123_v4 }
 0x27c   : > { %v3126_v13 = vrot.slane %v3125_v10, 1 }
 0x27e   : > { %v3127_v16 = vadd.f32 %v3126_v13, %v3125_v10 }
 0x280   : > { %v3128_v22 = vmul.f32 0.5, %v3127_v16 }
 0x282   : > { %v3129_v25 = vadd.f32 1e-05, %v3128_v22 }
 0x284   : > { %4701 = vrsqrt.f32 %v3129_v25 }
 0x28e   : > { %v4702_v31 = vpop.eup %4701 }
 0x28f   : > { %v3131_v32 = vmul.f32 %v4702_v31, %v3119_v51 }
 0x291   : > { %v3138_v35 = vmul.f32 %v4109_v33, %v3131_v32 }
 0x293   : > { %v3145_v39 = vadd.f32 %v4110_v37, %v3138_v35 }
 0x33d   : > { %v4185_v53 = vpop.f32.mrb[4].mxu1 }
 0x33e   : > { %v4207_v54 = vpop.f32.mrb[8].mxu0  ;;  %v4186_v55 = vpop.f32.mrb[5].mxu1 }
 0x33f   : > { %v4187_v57 = vadd.f32 %v4186_v55, %v4185_v53  ;;  %v4208_v58 = vpop.f32.mrb[9].mxu0  ;;  %v4188_v59 = vpop.f32.mrb[6].mxu1 }
 0x340   : > { %v4209_v60 = vadd.f32 %v4208_v58, %v4207_v54  ;;  %v4210_v62 = vpop.f32.mrb[10].mxu0  ;;  %v4189_v63 = vpop.f32.mrb[7].mxu1 }
 0x341   : > { %v4211_v0 = vpop.f32.mrb[11].mxu0 }
 0x342   : > { %v3481_v2 = vadd.f32 %v4209_v60, %v4187_v57 }
 0x344   : > { %v3488_v3 = vsel %vm2802_vm0, %v3481_v2, 0.0 }
 0x345   : > { %v3489_v6 = vrot.slane %v3488_v3, 4 }
 0x347   : > { %v3490_v61 = vadd.f32 %v3489_v6, %v3488_v3 }
 0x349   : > { %v3491_v5 = vrot.slane %v3490_v61, 2 }
 0x34b   : > { %v3492_v8 = vadd.f32 %v3491_v5, %v3490_v61 }
 0x34d   : > { %v3493_v9 = vrot.slane %v3492_v8, 1 }
 0x34f   : > { %v3494_v11 = vadd.f32 %v3493_v9, %v3492_v8 }
 0x351   : > { %v3495_v12 = vmul.f32 0.5, %v3494_v11 }
 0x353   : > { %v3496_v14 = vsub.f32 %v3481_v2, %v3495_v12 }
 0x355   : > { %v3497_v15 = vmul.f32 %v3496_v14, %v3496_v14 }
 0x357   : > { %v3498_v17 = vsel %vm2802_vm0, %v3497_v15, 0.0 }
 0x358   : > { %v3499_v21 = vrot.slane %v3498_v17, 4 }
 0x35a   : > { %v3500_v23 = vadd.f32 %v3499_v21, %v3498_v17 }
 0x35c   : > { %v3501_v24 = vrot.slane %v3500_v23, 2 }
 0x35e   : > { %v3502_v26 = vadd.f32 %v3501_v24, %v3500_v23 }
 0x360   : > { %v3503_v27 = vrot.slane %v3502_v26, 1 }
 0x362   : > { %v3504_v28 = vadd.f32 %v3503_v27, %v3502_v26 }
 0x364   : > { %v3505_v29 = vmul.f32 0.5, %v3504_v28 }
 0x366   : > { %v3506_v30 = vadd.f32 1e-05, %v3505_v29 }
 0x368   : > { %4703 = vrsqrt.f32 %v3506_v30 }
 0x372   : > { %v4704_v34 = vpop.eup %4703 }
 0x373   : > { %v3508_v36 = vmul.f32 %v4704_v34, %v3496_v14 }
 0x375   : > { %v3515_v18 = vmul.f32 %v4143_v47, %v3508_v36 }
 0x377   : > { %v3522_v40 = vadd.f32 %v4144_v38, %v3515_v18 }
 0x379   : > { %v3523_v41 = vadd.f32 %v3522_v40, %v3145_v39 }
 0x37b   : > { %v3524_v42 = vmax.f32 %v3523_v41, 0.0 }
 0x37d   : > { %v3525_v19 = vpack.c.bf16 %v3524_v42, %v3524_v42 }
 0x37f   : > { %3526 = vst [vmem:[%s889_s24] sm:$0x1] %v3525_v19 }
 0x380 PF: > { %p17_p9 = scmp.ge.s32.totalorder %s4801_s17, 6   ;;  %s5971_s13 = smov %s4723_s14 }
 0x381   : > { %s5972_s14 = smov %s4810_s20  ;;  %s5973_s15 = smov %s4801_s17 }
 0x382   :  { %19 = sbr.rel (!%p17_p9) target bundleno = 2 (0x2), region = 200 }

</bundles_post_ra>
